<compile_context>
chip_gen: v7x
topology: tpu7x:2x2x1
jax: 0.10.0
libtpu: 0.0.40
codegen_flags: <defaults>
</compile_context>

<pallas_src>
import functools

import jax
import jax.numpy as jnp
from jax import lax
from jax.experimental import pallas as pl
from jax.experimental.pallas import tpu as pltpu

_EPS = 1e-5


def _compiler_params():
    return pltpu.CompilerParams(
        dimension_semantics=("parallel",),        # shard batch across TCs
        vmem_limit_bytes=48 * 1024 * 1024,        # fits v7x's 64 MiB VMEM
    )


# ---------------------------------------------------------------------------
# In-kernel helpers
# ---------------------------------------------------------------------------
def _chw_matmul_pad(x_chw, ah, aw):
    """(C, h, w) channel-major -> (H+2, W+2, C) HWC, via two interp matmuls.

    ah: (H+2, h), aw: (W+2, w).  Folds the CHW->HWC relayout, any spatial
    resampling / F.pad encoded in ah/aw, and the conv 1px zero halo into two
    MXU matmuls so NCHW inputs never round-trip HBM for a transpose.
    """
    t = jnp.einsum("ph,chw->pcw", ah, x_chw,
                   preferred_element_type=jnp.float32)        # (H+2, C, w)
    return jnp.einsum("qw,pcw->pqc", aw, t,
                      preferred_element_type=jnp.float32)     # (H+2, W+2, C)


def _im2col3x3(xp, h, w):
    """xp: (H+2, W+2, C) zero-padded -> (H*W, 9*C) patches.

    Column order is (dy, dx, cin), matching weight.reshape(9*C, Cout), so the
    3x3 conv becomes a single fat K=9*C MXU matmul.
    """
    cols = []
    for dy in range(3):
        for dx in range(3):
            cols.append(xp[dy:dy + h, dx:dx + w, :])
    im = jnp.concatenate(cols, axis=-1)          # (H, W, 9*C)
    return im.reshape(h * w, im.shape[-1])       # leading-dim collapse only


# ---------------------------------------------------------------------------
# K1: upsample(x1) + pad + concat(x2, x1) + conv1 + BN1 partial sums
# ---------------------------------------------------------------------------
def _k1_up_concat_conv(x1_ref, x2_ref, ah1_ref, aw1_ref, ah2_ref, aw2_ref,
                       w_ref, b_ref, y_ref, st_ref, *, H, W):
    # x1: (C1, h1, w1) NCHW block     x2: (C2, H, W) NCHW block
    # ah1/aw1: bilinear-x2 + F.pad + halo matrices for x1
    # ah2/aw2: identity + halo matrices for x2 (pure relayout + conv pad)
    # w : (9*(C2+C1), Cm) bf16        b: (Cm, 1)
    # y : (Cm, H*W) bf16 pre-BN conv1 (lane-dense)   st: (Cm, 2) [sum, sumsq]
    x1 = x1_ref[...].astype(jnp.float32)
    x2 = x2_ref[...].astype(jnp.float32)

    x1p = _chw_matmul_pad(x1, ah1_ref[...], aw1_ref[...])    # (H+2, W+2, C1)
    x2p = _chw_matmul_pad(x2, ah2_ref[...], aw2_ref[...])    # (H+2, W+2, C2)
    xc = jnp.concatenate([x2p, x1p], axis=-1)                # torch.cat([x2,x1],1)

    im = _im2col3x3(xc, H, W).astype(jnp.bfloat16)           # (H*W, 9*Cin)
    acc = lax.dot_general(w_ref[...], im,                    # (Cm, H*W), f32 acc
                          (((0,), (1,)), ((), ())),
                          preferred_element_type=jnp.float32)
    acc = acc + b_ref[...].astype(jnp.float32)

    y_ref[...] = acc.astype(y_ref.dtype)                     # lane-dense store
    ssum = jnp.sum(acc, axis=1, keepdims=True)               # (Cm, 1)
    ssq = jnp.sum(acc * acc, axis=1, keepdims=True)
    st_ref[...] = jnp.concatenate([ssum, ssq], axis=1)       # (Cm, 2)


# ---------------------------------------------------------------------------
# K2: BN1 normalize + ReLU + conv2 + BN2 partial sums (channel-major output)
# ---------------------------------------------------------------------------
def _k2_bn_relu_conv(y1_ref, sc_ref, sh_ref, ah_ref, aw_ref, w_ref, b_ref,
                     y2_ref, st_ref, *, H, W):
    # y1: (Cm, H, W) bf16    sc/sh: (Cm, W)   ah/aw: identity+halo matrices
    # w : (9*Cm, Co) bf16    b: (Co, 1)
    # y2: (Co, H*W) bf16 lane-dense           st: (Co, 2)
    y1 = y1_ref[...].astype(jnp.float32)
    a = jnp.maximum(y1 * sc_ref[...][:, None, :]
                    + sh_ref[...][:, None, :], 0.0)          # BN1 + ReLU
    ap = _chw_matmul_pad(a, ah_ref[...], aw_ref[...])        # (H+2, W+2, Cm)
    im = _im2col3x3(ap, H, W).astype(jnp.bfloat16)           # (H*W, 9*Cm)
    acc = lax.dot_general(w_ref[...], im,                    # (Co, H*W)
                          (((0,), (1,)), ((), ())),
                          preferred_element_type=jnp.float32)
    acc = acc + b_ref[...].astype(jnp.float32)
    y2_ref[...] = acc.astype(y2_ref.dtype)
    ssum = jnp.sum(acc, axis=1, keepdims=True)               # (Co, 1)
    ssq = jnp.sum(acc * acc, axis=1, keepdims=True)
    st_ref[...] = jnp.concatenate([ssum, ssq], axis=1)       # (Co, 2)


# ---------------------------------------------------------------------------
# K3: BN2 normalize + ReLU (elementwise, lane-dense (N, Co, H*W) layout)
# ---------------------------------------------------------------------------
def _k3_bn_relu(y2_ref, sc_ref, sh_ref, o_ref):
    y = y2_ref[...].astype(jnp.float32)                      # (Co, H*W)
    o_ref[...] = jnp.maximum(y * sc_ref[...] + sh_ref[...], 0.0).astype(
        o_ref.dtype)


# ---------------------------------------------------------------------------
# Host-side helpers
# ---------------------------------------------------------------------------
def _upsample_pad_matrix(target, in_size):
    """(target+2, in_size): bilinear x2 upsample (align_corners=True)
    + F.pad to `target` + 1px conv zero halo, folded into one matrix."""
    up = 2 * in_size
    pad_before = (target - up) // 2
    denom = max(up - 1, 1)
    src = jnp.arange(up, dtype=jnp.float32) * ((in_size - 1) / denom)
    i0 = jnp.clip(jnp.floor(src).astype(jnp.int32), 0, in_size - 1)
    i1 = jnp.clip(i0 + 1, 0, in_size - 1)
    frac = src - i0.astype(jnp.float32)
    rows = (jax.nn.one_hot(i0, in_size, dtype=jnp.float32) * (1.0 - frac)[:, None]
            + jax.nn.one_hot(i1, in_size, dtype=jnp.float32) * frac[:, None])
    m = jnp.zeros((target + 2, in_size), jnp.float32)
    return m.at[1 + pad_before:1 + pad_before + up, :].set(rows)


def _pad_identity_matrix(size):
    """(size+2, size): identity with a 1px zero halo (conv padding=1)."""
    m = jnp.zeros((size + 2, size), jnp.float32)
    return m.at[1:size + 1, :].set(jnp.eye(size, dtype=jnp.float32))


def init_up_params(key, in_channels, out_channels):
    mid = in_channels // 2          # DoubleConv mid_channels
    outc = out_channels // 2        # DoubleConv out_channels
    k1, k2 = jax.random.split(key)

    def conv_w(k, cin, cout):
        std = (2.0 / (cin * 9)) ** 0.5          # kaiming_normal_, fan_in, a=0
        return std * jax.random.normal(k, (3, 3, cin, cout), jnp.float32)

    return {
        "w1": conv_w(k1, in_channels, mid),
        "b1": jnp.zeros((mid,), jnp.float32),
        "g1": jnp.ones((mid,), jnp.float32),
        "be1": jnp.zeros((mid,), jnp.float32),
        "w2": conv_w(k2, mid, outc),
        "b2": jnp.zeros((outc,), jnp.float32),
        "g2": jnp.ones((outc,), jnp.float32),
        "be2": jnp.zeros((outc,), jnp.float32),
    }


# ---------------------------------------------------------------------------
# Up.forward
# ---------------------------------------------------------------------------
def up_forward(params, x1_nchw, x2_nchw):
    n, c1, h1, w1 = x1_nchw.shape
    _, c2, hh, ww = x2_nchw.shape
    cin = c2 + c1
    out_dtype = x2_nchw.dtype
    hw = hh * ww
    count = float(n * hw)

    w1_flat = params["w1"].reshape(9 * cin, -1).astype(jnp.bfloat16)
    cm = w1_flat.shape[1]
    w2_flat = params["w2"].reshape(9 * cm, -1).astype(jnp.bfloat16)
    co = w2_flat.shape[1]

    ah1 = _upsample_pad_matrix(hh, h1)       # x1: upsample + F.pad + halo
    aw1 = _upsample_pad_matrix(ww, w1)
    ah2 = _pad_identity_matrix(hh)           # x2 / y1: relayout + halo only
    aw2 = _pad_identity_matrix(ww)

    # --- K1: upsample + pad + concat + conv1 + BN1 partial sums -------------
    k1 = functools.partial(_k1_up_concat_conv, H=hh, W=ww)
    flops1 = 2 * n * (c1 * ((hh + 2) * h1 * w1 + (hh + 2) * (ww + 2) * w1)
                      + c2 * ((hh + 2) * hh * ww + (hh + 2) * (ww + 2) * ww)
                      + hw * 9 * cin * cm)
    bytes1 = (4 * (x1_nchw.size + x2_nchw.size) + 2 * n * cm * hw
              + 4 * n * cm * 2 + 2 * w1_flat.size)
    y1_pre, stats1 = pl.pallas_call(
        k1,
        grid=(n,),
        in_specs=[
            pl.BlockSpec((None, c1, h1, w1), lambda i: (i, 0, 0, 0)),
            pl.BlockSpec((None, c2, hh, ww), lambda i: (i, 0, 0, 0)),
            pl.BlockSpec((hh + 2, h1), lambda i: (0, 0)),
            pl.BlockSpec((ww + 2, w1), lambda i: (0, 0)),
            pl.BlockSpec((hh + 2, hh), lambda i: (0, 0)),
            pl.BlockSpec((ww + 2, ww), lambda i: (0, 0)),
            pl.BlockSpec((9 * cin, cm), lambda i: (0, 0)),
            pl.BlockSpec((cm, 1), lambda i: (0, 0)),
        ],
        out_specs=(
            pl.BlockSpec((None, cm, hw), lambda i: (i, 0, 0)),
            pl.BlockSpec((None, cm, 2), lambda i: (i, 0, 0)),
        ),
        out_shape=(
            jax.ShapeDtypeStruct((n, cm, hw), jnp.bfloat16),
            jax.ShapeDtypeStruct((n, cm, 2), jnp.float32),
        ),
        compiler_params=_compiler_params(),
        cost_estimate=pl.CostEstimate(flops=int(flops1), transcendentals=0,
                                      bytes_accessed=int(bytes1)),
    )(x1_nchw, x2_nchw, ah1, aw1, ah2, aw2, w1_flat,
      params["b1"].reshape(cm, 1))

    # --- tiny global BN1 reduction (a few KB of XLA work) --------------------
    s1 = jnp.sum(stats1, axis=0)                        # (Cm, 2)
    mean1 = s1[:, 0] / count
    var1 = jnp.maximum(s1[:, 1] / count - mean1 * mean1, 0.0)
    scale1 = params["g1"] * lax.rsqrt(var1 + _EPS)
    shift1 = params["be1"] - mean1 * scale1
    sc1 = jnp.broadcast_to(scale1[:, None], (cm, ww))   # sublane-only bcast in K2
    sh1 = jnp.broadcast_to(shift1[:, None], (cm, ww))

    # --- K2: BN1+ReLU + conv2 + BN2 partial sums -----------------------------
    y1_4d = y1_pre.reshape(n, cm, hh, ww)               # free metadata reshape
    k2 = functools.partial(_k2_bn_relu_conv, H=hh, W=ww)
    flops2 = 2 * n * (cm * ((hh + 2) * hh * ww + (hh + 2) * (ww + 2) * ww)
                      + hw * 9 * cm * co)
    bytes2 = (2 * n * cm * hw + 2 * n * co * hw + 4 * n * co * 2
              + 2 * w2_flat.size + 8 * cm * ww)
    y2_pre, stats2 = pl.pallas_call(
        k2,
        grid=(n,),
        in_specs=[
            pl.BlockSpec((None, cm, hh, ww), lambda i: (i, 0, 0, 0)),
            pl.BlockSpec((cm, ww), lambda i: (0, 0)),
            pl.BlockSpec((cm, ww), lambda i: (0, 0)),
            pl.BlockSpec((hh + 2, hh), lambda i: (0, 0)),
            pl.BlockSpec((ww + 2, ww), lambda i: (0, 0)),
            pl.BlockSpec((9 * cm, co), lambda i: (0, 0)),
            pl.BlockSpec((co, 1), lambda i: (0, 0)),
        ],
        out_specs=(
            pl.BlockSpec((None, co, hw), lambda i: (i, 0, 0)),
            pl.BlockSpec((None, co, 2), lambda i: (i, 0, 0)),
        ),
        out_shape=(
            jax.ShapeDtypeStruct((n, co, hw), jnp.bfloat16),
            jax.ShapeDtypeStruct((n, co, 2), jnp.float32),
        ),
        compiler_params=_compiler_params(),
        cost_estimate=pl.CostEstimate(flops=int(flops2), transcendentals=0,
                                      bytes_accessed=int(bytes2)),
    )(y1_4d, sc1, sh1, ah2, aw2, w2_flat, params["b2"].reshape(co, 1))

    s2 = jnp.sum(stats2, axis=0)                        # (Co, 2)
    mean2 = s2[:, 0] / count
    var2 = jnp.maximum(s2[:, 1] / count - mean2 * mean2, 0.0)
    scale2 = params["g2"] * lax.rsqrt(var2 + _EPS)
    shift2 = params["be2"] - mean2 * scale2

    # --- K3: BN2 + ReLU on lane-dense (N, Co, H*W) ----------------------------
    out_flat = pl.pallas_call(
        _k3_bn_relu,
        grid=(n,),
        in_specs=[
            pl.BlockSpec((None, co, hw), lambda i: (i, 0, 0)),
            pl.BlockSpec((co, 1), lambda i: (0, 0)),
            pl.BlockSpec((co, 1), lambda i: (0, 0)),
        ],
        out_specs=pl.BlockSpec((None, co, hw), lambda i: (i, 0, 0)),
        out_shape=jax.ShapeDtypeStruct((n, co, hw), out_dtype),
        compiler_params=_compiler_params(),
        cost_estimate=pl.CostEstimate(flops=int(3 * n * co * hw),
                                      transcendentals=0,
                                      bytes_accessed=int(6 * n * co * hw)),
    )(y2_pre, scale2.reshape(co, 1), shift2.reshape(co, 1))

    # Free reshape (minor-dim split) straight to NCHW — no output transpose.
    return out_flat.reshape(n, co, hh, ww)


# ---------------------------------------------------------------------------
# Pure-JAX reference (for the correctness check in __main__)
# ---------------------------------------------------------------------------
def _ref_bilinear_up_x2(x):
    n, h, w, c = x.shape
    ho, wo = 2 * h, 2 * w
    ys = jnp.arange(ho, dtype=jnp.float32) * ((h - 1) / max(ho - 1, 1))
    xs = jnp.arange(wo, dtype=jnp.float32) * ((w - 1) / max(wo - 1, 1))
    y0 = jnp.floor(ys).astype(jnp.int32)
    y1 = jnp.clip(y0 + 1, 0, h - 1)
    x0 = jnp.floor(xs).astype(jnp.int32)
    x1 = jnp.clip(x0 + 1, 0, w - 1)
    fy = (ys - y0)[None, :, None, None]
    fx = (xs - x0)[None, None, :, None]
    g = lambda yi, xi: x[:, yi][:, :, xi]
    top = g(y0, x0) * (1 - fx) + g(y0, x1) * fx
    bot = g(y1, x0) * (1 - fx) + g(y1, x1) * fx
    return top * (1 - fy) + bot * fy


def ref_up_forward(params, x1_nchw, x2_nchw):
    x1 = jnp.transpose(x1_nchw, (0, 2, 3, 1)).astype(jnp.float32)
    x2 = jnp.transpose(x2_nchw, (0, 2, 3, 1)).astype(jnp.float32)
    _, hh, ww, _ = x2.shape
    _, h1, w1, _ = x1.shape
    x1u = _ref_bilinear_up_x2(x1)
    dy, dx = hh - 2 * h1, ww - 2 * w1
    x1u = jnp.pad(x1u, ((0, 0), (dy // 2, dy - dy // 2),
                        (dx // 2, dx - dx // 2), (0, 0)))
    x = jnp.concatenate([x2, x1u], axis=-1)

    def conv_bn_relu(x, wgt, b, g, be):
        y = lax.conv_general_dilated(
            x, wgt, (1, 1), ((1, 1), (1, 1)),
            dimension_numbers=("NHWC", "HWIO", "NHWC")) + b
        m = jnp.mean(y, axis=(0, 1, 2))
        v = jnp.mean((y - m) ** 2, axis=(0, 1, 2))
        return jnp.maximum((y - m) * lax.rsqrt(v + _EPS) * g + be, 0.0)

    y = conv_bn_relu(x, params["w1"], params["b1"], params["g1"], params["be1"])
    y = conv_bn_relu(y, params["w2"], params["b2"], params["g2"], params["be2"])
    return jnp.transpose(y, (0, 3, 1, 2))


if __name__ == "__main__":
    in_channels, out_channels = 8, 8
    key = jax.random.PRNGKey(0)
    k_p, k_x1, k_x2 = jax.random.split(key, 3)

    params = init_up_params(k_p, in_channels, out_channels)

    # x1: deeper feature map (half spatial, in_channels//2 channels)
    # x2: skip connection   (full spatial, in_channels//2 channels)
    x1 = jax.random.normal(k_x1, (2, in_channels // 2, 8, 8), jnp.float32)
    x2 = jax.random.normal(k_x2, (2, in_channels // 2, 16, 16), jnp.float32)

    out = jax.block_until_ready(jax.jit(up_forward)(params, x1, x2))

    expected = (2, out_channels // 2, 16, 16)
    assert out.shape == expected, (out.shape, expected)
    assert bool(jnp.all(jnp.isfinite(out)))

    ref = jax.block_until_ready(jax.jit(ref_up_forward)(params, x1, x2))
    err = float(jnp.max(jnp.abs(out - ref)))
    assert err < 0.1, f"max abs err vs reference: {err}"
    print("KERNEL_OK")
</pallas_src>

<mosaic_0001>
module attributes {stable_mosaic.version = 11 : i64} {
  func.func @_k3_bn_relu(%arg0: i32, %arg1: memref<1x4x256xbf16, #tpu.memory_space<vmem>>, %arg2: memref<4x1xf32, #tpu.memory_space<vmem>>, %arg3: memref<4x1xf32, #tpu.memory_space<vmem>>, %arg4: memref<1x4x256xf32, #tpu.memory_space<vmem>>) attributes {dimension_semantics = [#tpu.dimension_semantics<parallel>], iteration_bounds = array<i64: 2>, scalar_prefetch = 0 : i64, scratch_operands = 0 : i64, tpu.core_type = #tpu.core_type<tc>, window_params = [{transform_indices = @transform_0, window_bounds = array<i64: 1, 4, 256>}, {pipeline_mode = #tpu.pipeline_mode<synchronous>, transform_indices = @transform_1, window_bounds = array<i64: 4, 1>}, {pipeline_mode = #tpu.pipeline_mode<synchronous>, transform_indices = @transform_2, window_bounds = array<i64: 4, 1>}, {transform_indices = @transform_3, window_bounds = array<i64: 1, 4, 256>}]} {
    %c0 = arith.constant 0 : index
    %c0_0 = arith.constant 0 : index
    %c0_1 = arith.constant 0 : index
    %0 = vector.load %arg1[%c0, %c0_0, %c0_1] : memref<1x4x256xbf16, #tpu.memory_space<vmem>>, vector<1x4x256xbf16>
    %1 = vector.shape_cast %0 : vector<1x4x256xbf16> to vector<4x256xbf16>
    %2 = arith.extf %1 : vector<4x256xbf16> to vector<4x256xf32>
    %c0_2 = arith.constant 0 : index
    %c0_3 = arith.constant 0 : index
    %3 = vector.load %arg2[%c0_2, %c0_3] : memref<4x1xf32, #tpu.memory_space<vmem>>, vector<4x1xf32>
    %4 = vector.broadcast %3 : vector<4x1xf32> to vector<4x256xf32>
    %5 = arith.mulf %2, %4 : vector<4x256xf32>
    %c0_4 = arith.constant 0 : index
    %c0_5 = arith.constant 0 : index
    %6 = vector.load %arg3[%c0_4, %c0_5] : memref<4x1xf32, #tpu.memory_space<vmem>>, vector<4x1xf32>
    %7 = vector.broadcast %6 : vector<4x1xf32> to vector<4x256xf32>
    %8 = arith.addf %5, %7 : vector<4x256xf32>
    %cst = arith.constant 0.000000e+00 : f32
    %9 = vector.broadcast %cst : f32 to vector<4x256xf32>
    %10 = arith.maximumf %8, %9 : vector<4x256xf32>
    %c0_6 = arith.constant 0 : index
    %c0_7 = arith.constant 0 : index
    %c0_8 = arith.constant 0 : index
    %11 = vector.load %arg4[%c0_6, %c0_7, %c0_8] : memref<1x4x256xf32, #tpu.memory_space<vmem>>, vector<1x4x256xf32>
    %12 = vector.shape_cast %11 : vector<1x4x256xf32> to vector<4x256xf32>
    %13 = vector.shape_cast %10 : vector<4x256xf32> to vector<1x4x256xf32>
    tpu.vector_store %arg4[%c0_6, %c0_7, %c0_8], %13 {strides = array<i32>} : memref<1x4x256xf32, #tpu.memory_space<vmem>>, vector<1x4x256xf32>,
    return
  }
  func.func @transform_0(%arg0: i32) -> (i32, i32, i32) {
    %c0_i32 = arith.constant 0 : i32
    %c0_i32_0 = arith.constant 0 : i32
    %c0_i32_1 = arith.constant 0 : i32
    return %arg0, %c0_i32, %c0_i32_0 : i32, i32, i32
  }
  func.func @transform_1(%arg0: i32) -> (i32, i32) {
    %c0_i32 = arith.constant 0 : i32
    %c0_i32_0 = arith.constant 0 : i32
    %c0_i32_1 = arith.constant 0 : i32
    return %c0_i32, %c0_i32_0 : i32, i32
  }
  func.func @transform_2(%arg0: i32) -> (i32, i32) {
    %c0_i32 = arith.constant 0 : i32
    %c0_i32_0 = arith.constant 0 : i32
    %c0_i32_1 = arith.constant 0 : i32
    return %c0_i32, %c0_i32_0 : i32, i32
  }
  func.func @transform_3(%arg0: i32) -> (i32, i32, i32) {
    %c0_i32 = arith.constant 0 : i32
    %c0_i32_0 = arith.constant 0 : i32
    %c0_i32_1 = arith.constant 0 : i32
    return %arg0, %c0_i32, %c0_i32_0 : i32, i32, i32
  }
}

module attributes {stable_mosaic.version = 11 : i64} {
  func.func @_k1_up_concat_conv(%arg0: i32, %arg1: memref<1x4x8x8xf32, #tpu.memory_space<vmem>>, %arg2: memref<1x4x16x16xf32, #tpu.memory_space<vmem>>, %arg3: memref<18x8xf32, #tpu.memory_space<vmem>>, %arg4: memref<18x8xf32, #tpu.memory_space<vmem>>, %arg5: memref<18x16xf32, #tpu.memory_space<vmem>>, %arg6: memref<18x16xf32, #tpu.memory_space<vmem>>, %arg7: memref<72x4xbf16, #tpu.memory_space<vmem>>, %arg8: memref<4x1xf32, #tpu.memory_space<vmem>>, %arg9: memref<1x4x256xbf16, #tpu.memory_space<vmem>>, %arg10: memref<1x4x2xf32, #tpu.memory_space<vmem>>) attributes {dimension_semantics = [#tpu.dimension_semantics<parallel>], iteration_bounds = array<i64: 2>, scalar_prefetch = 0 : i64, scratch_operands = 0 : i64, tpu.core_type = #tpu.core_type<tc>, window_params = [{transform_indices = @transform_0, window_bounds = array<i64: 1, 4, 8, 8>}, {transform_indices = @transform_1, window_bounds = array<i64: 1, 4, 16, 16>}, {pipeline_mode = #tpu.pipeline_mode<synchronous>, transform_indices = @transform_2, window_bounds = array<i64: 18, 8>}, {pipeline_mode = #tpu.pipeline_mode<synchronous>, transform_indices = @transform_3, window_bounds = array<i64: 18, 8>}, {pipeline_mode = #tpu.pipeline_mode<synchronous>, transform_indices = @transform_4, window_bounds = array<i64: 18, 16>}, {pipeline_mode = #tpu.pipeline_mode<synchronous>, transform_indices = @transform_5, window_bounds = array<i64: 18, 16>}, {pipeline_mode = #tpu.pipeline_mode<synchronous>, transform_indices = @transform_6, window_bounds = array<i64: 72, 4>}, {pipeline_mode = #tpu.pipeline_mode<synchronous>, transform_indices = @transform_7, window_bounds = array<i64: 4, 1>}, {transform_indices = @transform_8, window_bounds = array<i64: 1, 4, 256>}, {transform_indices = @transform_9, window_bounds = array<i64: 1, 4, 2>}]} {
    %c0 = arith.constant 0 : index
    %c0_0 = arith.constant 0 : index
    %c0_1 = arith.constant 0 : index
    %c0_2 = arith.constant 0 : index
    %0 = vector.load %arg1[%c0, %c0_0, %c0_1, %c0_2] : memref<1x4x8x8xf32, #tpu.memory_space<vmem>>, vector<1x4x8x8xf32>
    %1 = vector.shape_cast %0 : vector<1x4x8x8xf32> to vector<4x8x8xf32>
    %c0_3 = arith.constant 0 : index
    %c0_4 = arith.constant 0 : index
    %c0_5 = arith.constant 0 : index
    %c0_6 = arith.constant 0 : index
    %2 = vector.load %arg2[%c0_3, %c0_4, %c0_5, %c0_6] : memref<1x4x16x16xf32, #tpu.memory_space<vmem>>, vector<1x4x16x16xf32>
    %3 = vector.shape_cast %2 : vector<1x4x16x16xf32> to vector<4x16x16xf32>
    %c0_7 = arith.constant 0 : index
    %c0_8 = arith.constant 0 : index
    %4 = vector.load %arg3[%c0_7, %c0_8] : memref<18x8xf32, #tpu.memory_space<vmem>>, vector<18x8xf32>
    %c0_9 = arith.constant 0 : index
    %c0_10 = arith.constant 0 : index
    %5 = vector.load %arg4[%c0_9, %c0_10] : memref<18x8xf32, #tpu.memory_space<vmem>>, vector<18x8xf32>
    "tpu.trace_start"() <{level = 10 : i32, message = "ph,chw->pcw"}> : () -> ()
    %cst = arith.constant dense<0.000000e+00> : vector<18x4x8xf32>
    %6 = tpu.matmul %4, %1, %cst {dimension_numbers = #tpu.dot_dimension_numbers<[1], [1], [0], [0, 2], [0, 0, 1, 0, 1, 2], [], []>} : vector<18x8xf32>, vector<4x8x8xf32>, vector<18x4x8xf32> -> vector<18x4x8xf32>
    "tpu.trace_stop"() : () -> ()
    "tpu.trace_start"() <{level = 10 : i32, message = "qw,pcw->pqc"}> : () -> ()
    %cst_11 = arith.constant dense<0.000000e+00> : vector<18x4x18xf32>
    %7 = tpu.matmul %6, %5, %cst_11 {dimension_numbers = #tpu.dot_dimension_numbers<[2], [1], [0, 1], [0], [0, 0, 0, 1, 1, 0], [], []>} : vector<18x4x8xf32>, vector<18x8xf32>, vector<18x4x18xf32> -> vector<18x4x18xf32>
    %8 = tpu.transpose %7, [0, 2, 1] : vector<18x4x18xf32> -> vector<18x18x4xf32>
    "tpu.trace_stop"() : () -> ()
    %c0_12 = arith.constant 0 : index
    %c0_13 = arith.constant 0 : index
    %9 = vector.load %arg5[%c0_12, %c0_13] : memref<18x16xf32, #tpu.memory_space<vmem>>, vector<18x16xf32>
    %c0_14 = arith.constant 0 : index
    %c0_15 = arith.constant 0 : index
    %10 = vector.load %arg6[%c0_14, %c0_15] : memref<18x16xf32, #tpu.memory_space<vmem>>, vector<18x16xf32>
    "tpu.trace_start"() <{level = 10 : i32, message = "ph,chw->pcw"}> : () -> ()
    %cst_16 = arith.constant dense<0.000000e+00> : vector<18x4x16xf32>
    %11 = tpu.matmul %9, %3, %cst_16 {dimension_numbers = #tpu.dot_dimension_numbers<[1], [1], [0], [0, 2], [0, 0, 1, 0, 1, 2], [], []>} : vector<18x16xf32>, vector<4x16x16xf32>, vector<18x4x16xf32> -> vector<18x4x16xf32>
    "tpu.trace_stop"() : () -> ()
    "tpu.trace_start"() <{level = 10 : i32, message = "qw,pcw->pqc"}> : () -> ()
    %cst_17 = arith.constant dense<0.000000e+00> : vector<18x4x18xf32>
    %12 = tpu.matmul %11, %10, %cst_17 {dimension_numbers = #tpu.dot_dimension_numbers<[2], [1], [0, 1], [0], [0, 0, 0, 1, 1, 0], [], []>} : vector<18x4x16xf32>, vector<18x16xf32>, vector<18x4x18xf32> -> vector<18x4x18xf32>
    %13 = tpu.transpose %12, [0, 2, 1] : vector<18x4x18xf32> -> vector<18x18x4xf32>
    "tpu.trace_stop"() : () -> ()
    %14 = tpu.concatenate %13, %8 in 2 : vector<18x18x4xf32>, vector<18x18x4xf32> -> vector<18x18x8xf32>
    %15 = vector.extract_strided_slice %14 {offsets = [0, 0, 0], sizes = [16, 16, 8], strides = [1, 1, 1]} : vector<18x18x8xf32> to vector<16x16x8xf32>
    %16 = vector.extract_strided_slice %14 {offsets = [0, 1, 0], sizes = [16, 16, 8], strides = [1, 1, 1]} : vector<18x18x8xf32> to vector<16x16x8xf32>
    %17 = vector.extract_strided_slice %14 {offsets = [0, 2, 0], sizes = [16, 16, 8], strides = [1, 1, 1]} : vector<18x18x8xf32> to vector<16x16x8xf32>
    %18 = vector.extract_strided_slice %14 {offsets = [1, 0, 0], sizes = [16, 16, 8], strides = [1, 1, 1]} : vector<18x18x8xf32> to vector<16x16x8xf32>
    %19 = vector.extract_strided_slice %14 {offsets = [1, 1, 0], sizes = [16, 16, 8], strides = [1, 1, 1]} : vector<18x18x8xf32> to vector<16x16x8xf32>
    %20 = vector.extract_strided_slice %14 {offsets = [1, 2, 0], sizes = [16, 16, 8], strides = [1, 1, 1]} : vector<18x18x8xf32> to vector<16x16x8xf32>
    %21 = vector.extract_strided_slice %14 {offsets = [2, 0, 0], sizes = [16, 16, 8], strides = [1, 1, 1]} : vector<18x18x8xf32> to vector<16x16x8xf32>
    %22 = vector.extract_strided_slice %14 {offsets = [2, 1, 0], sizes = [16, 16, 8], strides = [1, 1, 1]} : vector<18x18x8xf32> to vector<16x16x8xf32>
    %23 = vector.extract_strided_slice %14 {offsets = [2, 2, 0], sizes = [16, 16, 8], strides = [1, 1, 1]} : vector<18x18x8xf32> to vector<16x16x8xf32>
    %24 = tpu.concatenate %15, %16, %17, %18, %19, %20, %21, %22, %23 in 2 : vector<16x16x8xf32>, vector<16x16x8xf32>, vector<16x16x8xf32>, vector<16x16x8xf32>, vector<16x16x8xf32>, vector<16x16x8xf32>, vector<16x16x8xf32>, vector<16x16x8xf32>, vector<16x16x8xf32> -> vector<16x16x72xf32>
    %25 = vector.shape_cast %24 : vector<16x16x72xf32> to vector<256x72xf32>
    %26 = arith.truncf %25 : vector<256x72xf32> to vector<256x72xbf16>
    %c0_18 = arith.constant 0 : index
    %c0_19 = arith.constant 0 : index
    %27 = vector.load %arg7[%c0_18, %c0_19] : memref<72x4xbf16, #tpu.memory_space<vmem>>, vector<72x4xbf16>
    %cst_20 = arith.constant dense<0.000000e+00> : vector<4x256xf32>
    %28 = tpu.matmul %27, %26, %cst_20 {dimension_numbers = #tpu.dot_dimension_numbers<[0], [1], [1], [0], [0, 1, 1, 0], [], []>} : vector<72x4xbf16>, vector<256x72xbf16>, vector<4x256xf32> -> vector<4x256xf32>
    %c0_21 = arith.constant 0 : index
    %c0_22 = arith.constant 0 : index
    %29 = vector.load %arg8[%c0_21, %c0_22] : memref<4x1xf32, #tpu.memory_space<vmem>>, vector<4x1xf32>
    %30 = vector.broadcast %29 : vector<4x1xf32> to vector<4x256xf32>
    %31 = arith.addf %28, %30 : vector<4x256xf32>
    %32 = arith.truncf %31 : vector<4x256xf32> to vector<4x256xbf16>
    %c0_23 = arith.constant 0 : index
    %c0_24 = arith.constant 0 : index
    %c0_25 = arith.constant 0 : index
    %33 = vector.load %arg9[%c0_23, %c0_24, %c0_25] : memref<1x4x256xbf16, #tpu.memory_space<vmem>>, vector<1x4x256xbf16>
    %34 = vector.shape_cast %33 : vector<1x4x256xbf16> to vector<4x256xbf16>
    %35 = vector.shape_cast %32 : vector<4x256xbf16> to vector<1x4x256xbf16>
    tpu.vector_store %arg9[%c0_23, %c0_24, %c0_25], %35 {strides = array<i32>} : memref<1x4x256xbf16, #tpu.memory_space<vmem>>, vector<1x4x256xbf16>,
    %cst_26 = arith.constant dense<0.000000e+00> : vector<4xf32>
    %36 = vector.multi_reduction <add>, %31, %cst_26 [1] : vector<4x256xf32> to vector<4xf32>
    %37 = vector.shape_cast %36 : vector<4xf32> to vector<4x1xf32>
    %38 = arith.mulf %31, %31 : vector<4x256xf32>
    %cst_27 = arith.constant dense<0.000000e+00> : vector<4xf32>
    %39 = vector.multi_reduction <add>, %38, %cst_27 [1] : vector<4x256xf32> to vector<4xf32>
    %40 = vector.shape_cast %39 : vector<4xf32> to vector<4x1xf32>
    %41 = tpu.concatenate %37, %40 in 1 : vector<4x1xf32>, vector<4x1xf32> -> vector<4x2xf32>
    %c0_28 = arith.constant 0 : index
    %c0_29 = arith.constant 0 : index
    %c0_30 = arith.constant 0 : index
    %42 = vector.load %arg10[%c0_28, %c0_29, %c0_30] : memref<1x4x2xf32, #tpu.memory_space<vmem>>, vector<1x4x2xf32>
    %43 = vector.shape_cast %42 : vector<1x4x2xf32> to vector<4x2xf32>
    %44 = vector.shape_cast %41 : vector<4x2xf32> to vector<1x4x2xf32>
    tpu.vector_store %arg10[%c0_28, %c0_29, %c0_30], %44 {strides = array<i32>} : memref<1x4x2xf32, #tpu.memory_space<vmem>>, vector<1x4x2xf32>,
    return
  }
  func.func @transform_0(%arg0: i32) -> (i32, i32, i32, i32) {
    %c0_i32 = arith.constant 0 : i32
    %c0_i32_0 = arith.constant 0 : i32
    %c0_i32_1 = arith.constant 0 : i32
    %c0_i32_2 = arith.constant 0 : i32
    return %arg0, %c0_i32, %c0_i32_0, %c0_i32_1 : i32, i32, i32, i32
  }
  func.func @transform_1(%arg0: i32) -> (i32, i32, i32, i32) {
    %c0_i32 = arith.constant 0 : i32
    %c0_i32_0 = arith.constant 0 : i32
    %c0_i32_1 = arith.constant 0 : i32
    %c0_i32_2 = arith.constant 0 : i32
    return %arg0, %c0_i32, %c0_i32_0, %c0_i32_1 : i32, i32, i32, i32
  }
  func.func @transform_2(%arg0: i32) -> (i32, i32) {
    %c0_i32 = arith.constant 0 : i32
    %c0_i32_0 = arith.constant 0 : i32
    %c0_i32_1 = arith.constant 0 : i32
    return %c0_i32, %c0_i32_0 : i32, i32
  }
  func.func @transform_3(%arg0: i32) -> (i32, i32) {
    %c0_i32 = arith.constant 0 : i32
    %c0_i32_0 = arith.constant 0 : i32
    %c0_i32_1 = arith.constant 0 : i32
    return %c0_i32, %c0_i32_0 : i32, i32
  }
  func.func @transform_4(%arg0: i32) -> (i32, i32) {
    %c0_i32 = arith.constant 0 : i32
    %c0_i32_0 = arith.constant 0 : i32
    %c0_i32_1 = arith.constant 0 : i32
    return %c0_i32, %c0_i32_0 : i32, i32
  }
  func.func @transform_5(%arg0: i32) -> (i32, i32) {
    %c0_i32 = arith.constant 0 : i32
    %c0_i32_0 = arith.constant 0 : i32
    %c0_i32_1 = arith.constant 0 : i32
    return %c0_i32, %c0_i32_0 : i32, i32
  }
  func.func @transform_6(%arg0: i32) -> (i32, i32) {
    %c0_i32 = arith.constant 0 : i32
    %c0_i32_0 = arith.constant 0 : i32
    %c0_i32_1 = arith.constant 0 : i32
    return %c0_i32, %c0_i32_0 : i32, i32
  }
  func.func @transform_7(%arg0: i32) -> (i32, i32) {
    %c0_i32 = arith.constant 0 : i32
    %c0_i32_0 = arith.constant 0 : i32
    %c0_i32_1 = arith.constant 0 : i32
    return %c0_i32, %c0_i32_0 : i32, i32
  }
  func.func @transform_8(%arg0: i32) -> (i32, i32, i32) {
    %c0_i32 = arith.constant 0 : i32
    %c0_i32_0 = arith.constant 0 : i32
    %c0_i32_1 = arith.constant 0 : i32
    return %arg0, %c0_i32, %c0_i32_0 : i32, i32, i32
  }
  func.func @transform_9(%arg0: i32) -> (i32, i32, i32) {
    %c0_i32 = arith.constant 0 : i32
    %c0_i32_0 = arith.constant 0 : i32
    %c0_i32_1 = arith.constant 0 : i32
    return %arg0, %c0_i32, %c0_i32_0 : i32, i32, i32
  }
}

module attributes {stable_mosaic.version = 11 : i64} {
  func.func @_k2_bn_relu_conv(%arg0: i32, %arg1: memref<1x4x16x16xbf16, #tpu.memory_space<vmem>>, %arg2: memref<4x16xf32, #tpu.memory_space<vmem>>, %arg3: memref<4x16xf32, #tpu.memory_space<vmem>>, %arg4: memref<18x16xf32, #tpu.memory_space<vmem>>, %arg5: memref<18x16xf32, #tpu.memory_space<vmem>>, %arg6: memref<36x4xbf16, #tpu.memory_space<vmem>>, %arg7: memref<4x1xf32, #tpu.memory_space<vmem>>, %arg8: memref<1x4x256xbf16, #tpu.memory_space<vmem>>, %arg9: memref<1x4x2xf32, #tpu.memory_space<vmem>>) attributes {dimension_semantics = [#tpu.dimension_semantics<parallel>], iteration_bounds = array<i64: 2>, scalar_prefetch = 0 : i64, scratch_operands = 0 : i64, tpu.core_type = #tpu.core_type<tc>, window_params = [{transform_indices = @transform_0, window_bounds = array<i64: 1, 4, 16, 16>}, {pipeline_mode = #tpu.pipeline_mode<synchronous>, transform_indices = @transform_1, window_bounds = array<i64: 4, 16>}, {pipeline_mode = #tpu.pipeline_mode<synchronous>, transform_indices = @transform_2, window_bounds = array<i64: 4, 16>}, {pipeline_mode = #tpu.pipeline_mode<synchronous>, transform_indices = @transform_3, window_bounds = array<i64: 18, 16>}, {pipeline_mode = #tpu.pipeline_mode<synchronous>, transform_indices = @transform_4, window_bounds = array<i64: 18, 16>}, {pipeline_mode = #tpu.pipeline_mode<synchronous>, transform_indices = @transform_5, window_bounds = array<i64: 36, 4>}, {pipeline_mode = #tpu.pipeline_mode<synchronous>, transform_indices = @transform_6, window_bounds = array<i64: 4, 1>}, {transform_indices = @transform_7, window_bounds = array<i64: 1, 4, 256>}, {transform_indices = @transform_8, window_bounds = array<i64: 1, 4, 2>}]} {
    %c0 = arith.constant 0 : index
    %c0_0 = arith.constant 0 : index
    %c0_1 = arith.constant 0 : index
    %c0_2 = arith.constant 0 : index
    %0 = vector.load %arg1[%c0, %c0_0, %c0_1, %c0_2] : memref<1x4x16x16xbf16, #tpu.memory_space<vmem>>, vector<1x4x16x16xbf16>
    %1 = vector.shape_cast %0 : vector<1x4x16x16xbf16> to vector<4x16x16xbf16>
    %2 = arith.extf %1 : vector<4x16x16xbf16> to vector<4x16x16xf32>
    %c0_3 = arith.constant 0 : index
    %c0_4 = arith.constant 0 : index
    %3 = vector.load %arg2[%c0_3, %c0_4] : memref<4x16xf32, #tpu.memory_space<vmem>>, vector<4x16xf32>
    %4 = vector.shape_cast %3 : vector<4x16xf32> to vector<4x1x16xf32>
    %5 = vector.broadcast %4 : vector<4x1x16xf32> to vector<4x16x16xf32>
    %6 = arith.mulf %2, %5 : vector<4x16x16xf32>
    %c0_5 = arith.constant 0 : index
    %c0_6 = arith.constant 0 : index
    %7 = vector.load %arg3[%c0_5, %c0_6] : memref<4x16xf32, #tpu.memory_space<vmem>>, vector<4x16xf32>
    %8 = vector.shape_cast %7 : vector<4x16xf32> to vector<4x1x16xf32>
    %9 = vector.broadcast %8 : vector<4x1x16xf32> to vector<4x16x16xf32>
    %10 = arith.addf %6, %9 : vector<4x16x16xf32>
    %cst = arith.constant 0.000000e+00 : f32
    %11 = vector.broadcast %cst : f32 to vector<4x16x16xf32>
    %12 = arith.maximumf %10, %11 : vector<4x16x16xf32>
    %c0_7 = arith.constant 0 : index
    %c0_8 = arith.constant 0 : index
    %13 = vector.load %arg4[%c0_7, %c0_8] : memref<18x16xf32, #tpu.memory_space<vmem>>, vector<18x16xf32>
    %c0_9 = arith.constant 0 : index
    %c0_10 = arith.constant 0 : index
    %14 = vector.load %arg5[%c0_9, %c0_10] : memref<18x16xf32, #tpu.memory_space<vmem>>, vector<18x16xf32>
    "tpu.trace_start"() <{level = 10 : i32, message = "ph,chw->pcw"}> : () -> ()
    %cst_11 = arith.constant dense<0.000000e+00> : vector<18x4x16xf32>
    %15 = tpu.matmul %13, %12, %cst_11 {dimension_numbers = #tpu.dot_dimension_numbers<[1], [1], [0], [0, 2], [0, 0, 1, 0, 1, 2], [], []>} : vector<18x16xf32>, vector<4x16x16xf32>, vector<18x4x16xf32> -> vector<18x4x16xf32>
    "tpu.trace_stop"() : () -> ()
    "tpu.trace_start"() <{level = 10 : i32, message = "qw,pcw->pqc"}> : () -> ()
    %cst_12 = arith.constant dense<0.000000e+00> : vector<18x4x18xf32>
    %16 = tpu.matmul %15, %14, %cst_12 {dimension_numbers = #tpu.dot_dimension_numbers<[2], [1], [0, 1], [0], [0, 0, 0, 1, 1, 0], [], []>} : vector<18x4x16xf32>, vector<18x16xf32>, vector<18x4x18xf32> -> vector<18x4x18xf32>
    %17 = tpu.transpose %16, [0, 2, 1] : vector<18x4x18xf32> -> vector<18x18x4xf32>
    "tpu.trace_stop"() : () -> ()
    %18 = vector.extract_strided_slice %17 {offsets = [0, 0, 0], sizes = [16, 16, 4], strides = [1, 1, 1]} : vector<18x18x4xf32> to vector<16x16x4xf32>
    %19 = vector.extract_strided_slice %17 {offsets = [0, 1, 0], sizes = [16, 16, 4], strides = [1, 1, 1]} : vector<18x18x4xf32> to vector<16x16x4xf32>
    %20 = vector.extract_strided_slice %17 {offsets = [0, 2, 0], sizes = [16, 16, 4], strides = [1, 1, 1]} : vector<18x18x4xf32> to vector<16x16x4xf32>
    %21 = vector.extract_strided_slice %17 {offsets = [1, 0, 0], sizes = [16, 16, 4], strides = [1, 1, 1]} : vector<18x18x4xf32> to vector<16x16x4xf32>
    %22 = vector.extract_strided_slice %17 {offsets = [1, 1, 0], sizes = [16, 16, 4], strides = [1, 1, 1]} : vector<18x18x4xf32> to vector<16x16x4xf32>
    %23 = vector.extract_strided_slice %17 {offsets = [1, 2, 0], sizes = [16, 16, 4], strides = [1, 1, 1]} : vector<18x18x4xf32> to vector<16x16x4xf32>
    %24 = vector.extract_strided_slice %17 {offsets = [2, 0, 0], sizes = [16, 16, 4], strides = [1, 1, 1]} : vector<18x18x4xf32> to vector<16x16x4xf32>
    %25 = vector.extract_strided_slice %17 {offsets = [2, 1, 0], sizes = [16, 16, 4], strides = [1, 1, 1]} : vector<18x18x4xf32> to vector<16x16x4xf32>
    %26 = vector.extract_strided_slice %17 {offsets = [2, 2, 0], sizes = [16, 16, 4], strides = [1, 1, 1]} : vector<18x18x4xf32> to vector<16x16x4xf32>
    %27 = tpu.concatenate %18, %19, %20, %21, %22, %23, %24, %25, %26 in 2 : vector<16x16x4xf32>, vector<16x16x4xf32>, vector<16x16x4xf32>, vector<16x16x4xf32>, vector<16x16x4xf32>, vector<16x16x4xf32>, vector<16x16x4xf32>, vector<16x16x4xf32>, vector<16x16x4xf32> -> vector<16x16x36xf32>
    %28 = vector.shape_cast %27 : vector<16x16x36xf32> to vector<256x36xf32>
    %29 = arith.truncf %28 : vector<256x36xf32> to vector<256x36xbf16>
    %c0_13 = arith.constant 0 : index
    %c0_14 = arith.constant 0 : index
    %30 = vector.load %arg6[%c0_13, %c0_14] : memref<36x4xbf16, #tpu.memory_space<vmem>>, vector<36x4xbf16>
    %cst_15 = arith.constant dense<0.000000e+00> : vector<4x256xf32>
    %31 = tpu.matmul %30, %29, %cst_15 {dimension_numbers = #tpu.dot_dimension_numbers<[0], [1], [1], [0], [0, 1, 1, 0], [], []>} : vector<36x4xbf16>, vector<256x36xbf16>, vector<4x256xf32> -> vector<4x256xf32>
    %c0_16 = arith.constant 0 : index
    %c0_17 = arith.constant 0 : index
    %32 = vector.load %arg7[%c0_16, %c0_17] : memref<4x1xf32, #tpu.memory_space<vmem>>, vector<4x1xf32>
    %33 = vector.broadcast %32 : vector<4x1xf32> to vector<4x256xf32>
    %34 = arith.addf %31, %33 : vector<4x256xf32>
    %35 = arith.truncf %34 : vector<4x256xf32> to vector<4x256xbf16>
    %c0_18 = arith.constant 0 : index
    %c0_19 = arith.constant 0 : index
    %c0_20 = arith.constant 0 : index
    %36 = vector.load %arg8[%c0_18, %c0_19, %c0_20] : memref<1x4x256xbf16, #tpu.memory_space<vmem>>, vector<1x4x256xbf16>
    %37 = vector.shape_cast %36 : vector<1x4x256xbf16> to vector<4x256xbf16>
    %38 = vector.shape_cast %35 : vector<4x256xbf16> to vector<1x4x256xbf16>
    tpu.vector_store %arg8[%c0_18, %c0_19, %c0_20], %38 {strides = array<i32>} : memref<1x4x256xbf16, #tpu.memory_space<vmem>>, vector<1x4x256xbf16>,
    %cst_21 = arith.constant dense<0.000000e+00> : vector<4xf32>
    %39 = vector.multi_reduction <add>, %34, %cst_21 [1] : vector<4x256xf32> to vector<4xf32>
    %40 = vector.shape_cast %39 : vector<4xf32> to vector<4x1xf32>
    %41 = arith.mulf %34, %34 : vector<4x256xf32>
    %cst_22 = arith.constant dense<0.000000e+00> : vector<4xf32>
    %42 = vector.multi_reduction <add>, %41, %cst_22 [1] : vector<4x256xf32> to vector<4xf32>
    %43 = vector.shape_cast %42 : vector<4xf32> to vector<4x1xf32>
    %44 = tpu.concatenate %40, %43 in 1 : vector<4x1xf32>, vector<4x1xf32> -> vector<4x2xf32>
    %c0_23 = arith.constant 0 : index
    %c0_24 = arith.constant 0 : index
    %c0_25 = arith.constant 0 : index
    %45 = vector.load %arg9[%c0_23, %c0_24, %c0_25] : memref<1x4x2xf32, #tpu.memory_space<vmem>>, vector<1x4x2xf32>
    %46 = vector.shape_cast %45 : vector<1x4x2xf32> to vector<4x2xf32>
    %47 = vector.shape_cast %44 : vector<4x2xf32> to vector<1x4x2xf32>
    tpu.vector_store %arg9[%c0_23, %c0_24, %c0_25], %47 {strides = array<i32>} : memref<1x4x2xf32, #tpu.memory_space<vmem>>, vector<1x4x2xf32>,
    return
  }
  func.func @transform_0(%arg0: i32) -> (i32, i32, i32, i32) {
    %c0_i32 = arith.constant 0 : i32
    %c0_i32_0 = arith.constant 0 : i32
    %c0_i32_1 = arith.constant 0 : i32
    %c0_i32_2 = arith.constant 0 : i32
    return %arg0, %c0_i32, %c0_i32_0, %c0_i32_1 : i32, i32, i32, i32
  }
  func.func @transform_1(%arg0: i32) -> (i32, i32) {
    %c0_i32 = arith.constant 0 : i32
    %c0_i32_0 = arith.constant 0 : i32
    %c0_i32_1 = arith.constant 0 : i32
    return %c0_i32, %c0_i32_0 : i32, i32
  }
  func.func @transform_2(%arg0: i32) -> (i32, i32) {
    %c0_i32 = arith.constant 0 : i32
    %c0_i32_0 = arith.constant 0 : i32
    %c0_i32_1 = arith.constant 0 : i32
    return %c0_i32, %c0_i32_0 : i32, i32
  }
  func.func @transform_3(%arg0: i32) -> (i32, i32) {
    %c0_i32 = arith.constant 0 : i32
    %c0_i32_0 = arith.constant 0 : i32
    %c0_i32_1 = arith.constant 0 : i32
    return %c0_i32, %c0_i32_0 : i32, i32
  }
  func.func @transform_4(%arg0: i32) -> (i32, i32) {
    %c0_i32 = arith.constant 0 : i32
    %c0_i32_0 = arith.constant 0 : i32
    %c0_i32_1 = arith.constant 0 : i32
    return %c0_i32, %c0_i32_0 : i32, i32
  }
  func.func @transform_5(%arg0: i32) -> (i32, i32) {
    %c0_i32 = arith.constant 0 : i32
    %c0_i32_0 = arith.constant 0 : i32
    %c0_i32_1 = arith.constant 0 : i32
    return %c0_i32, %c0_i32_0 : i32, i32
  }
  func.func @transform_6(%arg0: i32) -> (i32, i32) {
    %c0_i32 = arith.constant 0 : i32
    %c0_i32_0 = arith.constant 0 : i32
    %c0_i32_1 = arith.constant 0 : i32
    return %c0_i32, %c0_i32_0 : i32, i32
  }
  func.func @transform_7(%arg0: i32) -> (i32, i32, i32) {
    %c0_i32 = arith.constant 0 : i32
    %c0_i32_0 = arith.constant 0 : i32
    %c0_i32_1 = arith.constant 0 : i32
    return %arg0, %c0_i32, %c0_i32_0 : i32, i32, i32
  }
  func.func @transform_8(%arg0: i32) -> (i32, i32, i32) {
    %c0_i32 = arith.constant 0 : i32
    %c0_i32_0 = arith.constant 0 : i32
    %c0_i32_1 = arith.constant 0 : i32
    return %arg0, %c0_i32, %c0_i32_0 : i32, i32, i32
  }
}

</mosaic_0001>

<bundles_post_ra>
// kernel: up_forward.5
= control target key start
LH: loop header
LB: loop body
LE: loop exit
PB: predicated region body
PF: predicated region fallthrough
CT: control target
= control target key end

     0   :  { %s312_s12 = smov 0   ;;  %s335_s0 = inlined_call_operand.vmem [shape: bf16[2,4,256], index: 0, kind: input, shape index: {}]   ;;  %s336_s1 = inlined_call_operand.vmem [shape: f32[4,1], index: 1, kind: input, shape index: {}]   ;;  %s337_s2 = inlined_call_operand.vmem [shape: f32[4,1], index: 2, kind: input, shape index: {}]   ;;  %s338_s3 = inlined_call_operand.vmem [shape: f32[2,4,256], index: 3, kind: output, shape index: {}]  }
   0x1 LB: > { %s258_s13 = sadd.s32 4294967295, %s288_s12   ;;  %p262_p0 = scmp.ge.s32.totalorder %s288_s12, 1  ;;  %s288_s12 = sphi %s312_s12, %s13_s12  }
   0x2   : > { %p137_p1 = scmp.lt.s32.totalorder %s288_s12, 3 }
   0x4   : > { %p138_p2 = pnand %p262_p0, %p137_p1 }
   0x5   : > { %v173_v0 = vld [vmem:[%s336_s1] sm:$0xf] (!%p138_p2)  ;;  %v290_v1 = vmov (!%p138_p2), 0   ;;  %p161_p3 = scmp.lt.s32.totalorder (!%p138_p2), %s258_s13, 1  ;;  %v291_v3 = vmov (!%p138_p2), 839922192   ;;  %v181_v5 = vlaneseq (!%p138_p2) }
   0x6   : > { %141 = sbr.rel (%p138_p2) target bundleno = 146 (0x92), region = 32  ;;  %281 = vset.pattern.permute.xlu0 (!%p138_p2), %v290_v1  ;;  %v187_v2 = vld [vmem:[%s337_s2] sm:$0xf] (!%p138_p2)  ;;  %v179_v4 = vunpack.c.l.s4 (!%p138_p2), %v291_v3 }
   0x7   : > { %176 = vperm.xlu0 (!%p138_p2), %281, %v173_v0   ;;  %v182_v7 = vshrl.u32 (!%p138_p2), %v181_v5, 7 }
   0x8   : > { %v180_v6 = vunpack.c.0.s8 (!%p138_p2), %v179_v4 }
   0xa   : > { %v183_v8 = vsub.s32 (!%p138_p2), %v180_v6, %v182_v7 }
   0xb   : > { %190 = vperm.xlu0 (!%p138_p2), %281, %v187_v2  }
   0xd   : > { %s340_s13 = smov (!%p161_p3, %s258_s13), 1 }
   0xe   : > { %s269_s18 = sshll.u32 %s340_s13, 2  ;;  %s270_s22 = sshll.u32 %s340_s13, 3 }
   0xf   : > { %s165_s21 = scalar_lea.vmem %s335_s0, %s269_s18  ;;  %s170_s25 = scalar_lea.vmem %s338_s3, %s270_s22 }
  0x10   : > { %v171_v9 = vld [vmem:[%s165_s21] sm:$0xf] }
  0x11   : > { %v172_v11 = vunpack.c.l.bf16 %v171_v9 }
  0x86   : > { %v177_v10 = vpop.permute.xlu0 %176 }
  0x87   : > { %v184_v12 = vrot.slane %v177_v10, %v183_v8 }
  0x89   : > { %v186_v14 = vmul.f32 %v184_v12, %v172_v11 }
  0x8a   : > { %v191_v13 = vpop.permute.xlu0 %190 }
  0x8b   : > { %v198_v15 = vrot.slane %v191_v13, %v183_v8 }
  0x8d   : > { %v200_v16 = vadd.f32 %v198_v15, %v186_v14 }
  0x8f   : > { %v201_v17 = vmax.f32 %v200_v16, 0.0 }
  0x91   : > { %202 = vst [vmem:[%s170_s25] sm:$0xff] %v201_v17 }
  0x92 PF: > { %s13_s12 = sadd.s32 1, %s288_s12  }
  0x93   : > { %p10_p4 = scmp.ge.s32.totalorder %s13_s12, 4  }
  0x95   :  { %12 = sbr.rel (!%p10_p4) target bundleno = 1 (0x1), region = 62 }

// kernel: up_forward.4
= control target key start
LH: loop header
LB: loop body
LE: loop exit
PB: predicated region body
PF: predicated region fallthrough
CT: control target
= control target key end

     0   :  { %s4492_s27 = smov 0   ;;  %s5958_s0 = inlined_call_operand.vmem [shape: bf16[2,4,16,16], index: 0, kind: input, shape index: {}]   ;;  %s5959_s1 = inlined_call_operand.vmem [shape: f32[4,16], index: 1, kind: input, shape index: {}]   ;;  %s5960_s2 = inlined_call_operand.vmem [shape: f32[4,16], index: 2, kind: input, shape index: {}]   ;;  %s5961_s3 = inlined_call_operand.vmem [shape: f32[18,16], index: 3, kind: input, shape index: {}, may-alias: {3,4}]   ;;  %s5962_s4 = inlined_call_operand.vmem [shape: f32[18,16], index: 4, kind: input, shape index: {}, may-alias: {3,4}]   ;;  %s5963_s5 = inlined_call_operand.vmem [shape: bf16[36,4], index: 5, kind: input, shape index: {}]   ;;  %s5964_s6 = inlined_call_operand.vmem [shape: f32[4,1], index: 6, kind: input, shape index: {}]   ;;  %s5965_s7 = inlined_call_operand.vmem [shape: bf16[2,4,256], index: 7, kind: output, shape index: {0}]   ;;  %s5966_s8 = inlined_call_operand.vmem [shape: f32[2,4,2], index: 8, kind: output, shape index: {1}]  }
   0x1 LB: > { %s3425_s28 = sadd.s32 4294967295, %s4426_s27   ;;  %p3429_p0 = scmp.ge.s32.totalorder %s4426_s27, 1  ;;  %s4426_s27 = sphi %s4492_s27, %s19_s27  }
   0x2   : > { %p265_p1 = scmp.lt.s32.totalorder %s4426_s27, 3 }
   0x4   : > { %p266_p2 = pnand %p3429_p0, %p265_p1 }
   0x6   : > { %269 = sbr.rel (%p266_p2) target bundleno = 1669 (0x685), region = 48 }
   0xd   : > { %p303_p3 = scmp.lt.s32.totalorder %s3425_s28, 1  ;;  %v3435_v0 = vld.sshfl [vmem:[%s5959_s1] sm:$0x33 pattern:$0x75316420]  ;;  %v347_v1 = vlaneseq  ;;  %s4432_s15 = smov 16  }
   0xe   : > { %v3436_v2 = vld.sshfl [vmem:[%s5960_s2] sm:$0x33 pattern:$0x75316420]  ;;  %v4428_v3 = vmov 1966171168   ;;  %v343_v11 = vcombine.high %v3435_v0, %v3435_v0 }
   0xf   : > { %s6068_s28 = smov (!%p303_p3, %s3425_s28), 1  ;;  %v345_v4 = vunpack.c.l.s4 %v4428_v3  ;;  %v4508_v5 = vshrl.u32 %v347_v1, 7  ;;  %v4429_v6 = vmov 1983009808   ;;  %v4430_v9 = vmov 1934713408  }
  0x10   : > { %v459_v7 = vunpack.c.l.s4 %v4429_v6  ;;  %s3464_s11 = sshll.u32 %s6068_s28, 5  ;;  %v491_v10 = vunpack.c.l.s4 %v4430_v9  ;;  %v397_v12 = vcombine.high %v3436_v2, %v3436_v2  ;;  %s4433_s16 = smov 48   ;;  %vm4434_vm0 = vmmov 0  }
  0x11   : > { %v346_v8 = vunpack.c.0.s8 %v345_v4  ;;  %s307_s14 = scalar_lea.vmem %s5958_s0, %s3464_s11  ;;  %v362_v20 = vsub.s32 0, %v4508_v5  ;;  %s4436_s17 = smov 32   ;;  %vm752_vm1 = vcmask 130048   ;;  %vm755_vm2 = vcmask 261120  }
  0x12   : > { %v3467_v13 = vld [vmem:[%s307_s14] sm:$0xff]   ;;  %v3482_v14 = vld [vmem:[%s307_s14 + $0x8] sm:$0xff]   ;;  %v3483_v15 = vld [vmem:[%s307_s14 + $0x10] sm:$0xff]   ;;  %v460_v17 = vunpack.c.0.s8 %v459_v7  ;;  %v492_v21 = vunpack.c.0.s8 %v491_v10  ;;  %vm758_vm3 = vcmask 392192   ;;  %s4437_s30 = smov 96   ;;  %s4438_s9 = smov 112  }
  0x13   : > { %v349_v16 = vsub.s32 %v346_v8, %v4508_v5  ;;  %v3468_v18 = vunpack.c.l.bf16 %v3467_v13  ;;  %v3484_v19 = vld [vmem:[%s307_s14 + $0x18] sm:$0xff]   ;;  %v3469_v22 = vunpack.c.h.bf16 %v3467_v13  ;;  %v3472_v23 = vunpack.c.l.bf16 %v3482_v14  ;;  %vm3571_vm4 = vmpackc.low %vm752_vm1, %vm752_vm1  ;;  %s4439_s12 = smov 80   ;;  %s4440_s13 = smov 12  }
  0x14   : > { %v3473_v24 = vunpack.c.h.bf16 %v3482_v14  ;;  %v3476_v25 = vunpack.c.l.bf16 %v3483_v15  ;;  %v3477_v30 = vunpack.c.h.bf16 %v3483_v15  ;;  %v3480_v31 = vunpack.c.l.bf16 %v3484_v19  ;;  %s4441_s14 = smov 24   ;;  %s4443_s18 = smov 8  }
  0x15   : > { %v350_v26 = vrot.slane %v3435_v0, %v349_v16  ;;  %v357_v27 = vrot.slane %v343_v11, %v349_v16  ;;  %v404_v28 = vrot.slane %v3436_v2, %v349_v16  ;;  %v411_v29 = vrot.slane %v397_v12, %v349_v16  ;;  %s4444_s19 = smov 20   ;;  %s4445_s20 = smov 28  }
  0x16   : > { %v3481_v32 = vunpack.c.h.bf16 %v3484_v19  ;;  %v4517_v33 = vsub.s32 %v460_v17, %v4508_v5  ;;  %v4520_v7 = vsub.s32 %v492_v21, %v4508_v5  ;;  %vm1938_vm5 = vcmask 1046528   ;;  %s3465_s29 = sshll.u32 %s6068_s28, 2 }
  0x17   : > { %v358_v34 = vcombine.high %v350_v26, %v350_v26  ;;  %v359_v35 = vcombine.high %v357_v27, %v357_v27  ;;  %v363_v36 = vrot.slane %v350_v26, %v362_v20  ;;  %v367_v37 = vrot.slane %v357_v27, %v362_v20  ;;  %s312_s10 = scalar_lea.vmem %s5965_s7, %s3465_s29 }
  0x18   : > { %v412_v38 = vcombine.high %v404_v28, %v404_v28  ;;  %v413_v39 = vcombine.high %v411_v29, %v411_v29  ;;  %v417_v40 = vrot.slane %v404_v28, %v362_v20  ;;  %v421_v41 = vrot.slane %v411_v29, %v362_v20 }
  0x19   : > { %v371_v42 = vrot.slane %v358_v34, %v362_v20  ;;  %v375_v43 = vrot.slane %v359_v35, %v362_v20  ;;  %v380_v44 = vmul.f32 %v3468_v18, %v363_v36  ;;  %v381_v45 = vmul.f32 %v3469_v22, %v363_v36 }
  0x1a   : > { %v382_v46 = vmul.f32 %v3472_v23, %v367_v37  ;;  %v383_v47 = vmul.f32 %v3473_v24, %v367_v37  ;;  %v425_v48 = vrot.slane %v412_v38, %v362_v20  ;;  %v429_v49 = vrot.slane %v413_v39, %v362_v20 }
  0x1b   : > { %v384_v50 = vmul.f32 %v3476_v25, %v371_v42  ;;  %v385_v51 = vmul.f32 %v3477_v30, %v371_v42  ;;  %v386_v52 = vmul.f32 %v3480_v31, %v375_v43  ;;  %v387_v53 = vmul.f32 %v3481_v32, %v375_v43 }
  0x1c   : > { %v434_v54 = vadd.f32 %v417_v40, %v380_v44  ;;  %v435_v55 = vadd.f32 %v417_v40, %v381_v45  ;;  %v436_v56 = vadd.f32 %v421_v41, %v382_v46  ;;  %v437_v57 = vadd.f32 %v421_v41, %v383_v47 }
  0x1d   : > { %v438_v58 = vadd.f32 %v425_v48, %v384_v50  ;;  %v439_v59 = vadd.f32 %v425_v48, %v385_v51  ;;  %v440_v60 = vadd.f32 %v429_v49, %v386_v52  ;;  %v441_v61 = vadd.f32 %v429_v49, %v387_v53 }
  0x1e   : > { %v442_v62 = vmax.f32 %v434_v54, 0.0  ;;  %v443_v63 = vmax.f32 %v435_v55, 0.0  ;;  %v444_v0 = vmax.f32 %v436_v56, 0.0  ;;  %v445_v1 = vmax.f32 %v437_v57, 0.0 }
  0x1f   : > { %v446_v2 = vmax.f32 %v438_v58, 0.0  ;;  %v447_v3 = vmax.f32 %v439_v59, 0.0  ;;  %v448_v4 = vmax.f32 %v440_v60, 0.0  ;;  %v449_v6 = vmax.f32 %v441_v61, 0.0 }
  0x20   : > { %vm2115_vm6 = vcmask 1045504   ;;  %vm2894_vm7 = vcmask 31744   ;;  %vm2927_vm8 = vcmask 64512   ;;  %vm2960_vm9 = vcmask 97280  }
  0x21   : > { %v456_v8 = vcombine.low %v442_v62, %v446_v2  ;;  %v457_v9 = vcombine.high %v442_v62, %v446_v2  ;;  %v472_v10 = vcombine.low %v444_v0, %v448_v4  ;;  %v473_v11 = vcombine.high %v444_v0, %v448_v4 }
  0x22   : > { %v524_v12 = vcombine.low %v443_v63, %v447_v3  ;;  %v525_v13 = vcombine.high %v443_v63, %v447_v3  ;;  %v540_v14 = vcombine.low %v445_v1, %v449_v6  ;;  %v541_v15 = vcombine.high %v445_v1, %v449_v6 }
  0x23   : > { %v464_v16 = vrot.slane %v456_v8, %v4517_v33  ;;  %v471_v17 = vrot.slane %v457_v9, %v4517_v33  ;;  %v480_v18 = vrot.slane %v472_v10, %v4517_v33  ;;  %v487_v19 = vrot.slane %v473_v11, %v4517_v33 }
  0x24   : > { %v532_v20 = vrot.slane %v524_v12, %v4517_v33  ;;  %v539_v5 = vrot.slane %v525_v13, %v4517_v33  ;;  %v548_v21 = vrot.slane %v540_v14, %v4517_v33  ;;  %v555_v22 = vrot.slane %v541_v15, %v4517_v33 }
  0x25   : > { %v488_v23 = vcombine.low %v464_v16, %v480_v18  ;;  %v489_v24 = vcombine.high %v464_v16, %v480_v18  ;;  %v504_v25 = vcombine.low %v471_v17, %v487_v19  ;;  %v505_v26 = vcombine.high %v471_v17, %v487_v19 }
  0x26   : > { %v556_v27 = vcombine.low %v532_v20, %v548_v21  ;;  %v557_v28 = vcombine.high %v532_v20, %v548_v21  ;;  %v572_v29 = vcombine.low %v539_v5, %v555_v22  ;;  %v573_v30 = vcombine.high %v539_v5, %v555_v22 }
  0x27   : > { %v496_v31 = vrot.slane %v488_v23, %v4520_v7  ;;  %v503_v32 = vrot.slane %v489_v24, %v4520_v7  ;;  %v512_v34 = vrot.slane %v504_v25, %v4520_v7  ;;  %v519_v35 = vrot.slane %v505_v26, %v4520_v7 }
  0x28   : > { %v564_v36 = vrot.slane %v556_v27, %v4520_v7  ;;  %v571_v37 = vrot.slane %v557_v28, %v4520_v7  ;;  %v580_v38 = vrot.slane %v572_v29, %v4520_v7  ;;  %v587_v39 = vrot.slane %v573_v30, %v4520_v7 }
  0x29   : > { %v592_v40 = vcombine.low %v496_v31, %v503_v32  ;;  %v3437_v41 = vcombine.high %v496_v31, %v503_v32  ;;  %v608_v42 = vcombine.low %v512_v34, %v519_v35  ;;  %v3438_v43 = vcombine.high %v512_v34, %v519_v35 }
  0x2a   : > { %v660_v44 = vcombine.low %v564_v36, %v571_v37  ;;  %v3439_v45 = vcombine.high %v564_v36, %v571_v37  ;;  %v676_v46 = vcombine.low %v580_v38, %v587_v39  ;;  %v3440_v47 = vcombine.high %v580_v38, %v587_v39 }
  0x2b   : > { %v599_v48 = vrot.slane %v592_v40, %v4517_v33  ;;  %v607_v49 = vrot.slane %v3437_v41, %v4517_v33  ;;  %v615_v50 = vrot.slane %v608_v42, %v4517_v33  ;;  %v623_v51 = vrot.slane %v3438_v43, %v4517_v33 }
  0x2c   : > { %v667_v52 = vrot.slane %v660_v44, %v4517_v33  ;;  %v675_v53 = vrot.slane %v3439_v45, %v4517_v33  ;;  %v683_v54 = vrot.slane %v676_v46, %v4517_v33  ;;  %v691_v55 = vrot.slane %v3440_v47, %v4517_v33 }
  0x2d   : > { %v624_v56 = vcombine.low %v599_v48, %v607_v49  ;;  %v640_v57 = vcombine.low %v615_v50, %v623_v51  ;;  %v625_v58 = vcombine.high %v599_v48, %v607_v49  ;;  %v641_v59 = vcombine.high %v615_v50, %v623_v51  ;;  %v450_v48 = vld [vmem:[%s5961_s3] sm:$0xff]  ;;  %v451_v49 = vld [vmem:[%s5961_s3 + $0x8] sm:$0xff]  ;;  %v452_v50 = vld [vmem:[%s5961_s3 + $0x10] sm:$0x3] }
  0x2e   : > { %v692_v60 = vcombine.low %v667_v52, %v675_v53  ;;  %v708_v61 = vcombine.low %v683_v54, %v691_v55  ;;  %v693_v62 = vcombine.high %v667_v52, %v675_v53  ;;  %v709_v63 = vcombine.high %v683_v54, %v691_v55  ;;  %v453_v53 = vld [vmem:[%s5962_s4] sm:$0xff]  ;;  %v454_v54 = vld [vmem:[%s5962_s4 + $0x8] sm:$0xff] }
  0x2f   : > { %v632_v0 = vrot.slane %v624_v56, %v4520_v7  ;;  %v648_v1 = vrot.slane %v640_v57, %v4520_v7  ;;  %v639_v2 = vrot.slane %v625_v58, %v4520_v7  ;;  %v655_v3 = vrot.slane %v641_v59, %v4520_v7 }
  0x30   : > { %v700_v4 = vrot.slane %v692_v60, %v4520_v7  ;;  %v716_v6 = vrot.slane %v708_v61, %v4520_v7  ;;  %v707_v8 = vrot.slane %v693_v62, %v4520_v7  ;;  %v723_v9 = vrot.slane %v709_v63, %v4520_v7 }
  0x31   : > { %v657_v10 = vcombine.high %v632_v0, %v648_v1  ;;  %v656_v11 = vcombine.low %v632_v0, %v648_v1  ;;  %v658_v12 = vcombine.low %v639_v2, %v655_v3  ;;  %v659_v13 = vcombine.high %v639_v2, %v655_v3 }
  0x32   : > { %v724_v14 = vcombine.low %v700_v4, %v716_v6  ;;  %v725_v15 = vcombine.high %v700_v4, %v716_v6  ;;  %v726_v16 = vcombine.low %v707_v8, %v723_v9  ;;  %v727_v17 = vcombine.high %v707_v8, %v723_v9  ;;  %v455_v4 = vld [vmem:[%s5962_s4 + $0x10] sm:$0x3] }
  0x33   : > { %v4431_v20 = vmov 0.0|0.0   ;;  %v4435_v21 = vmov 0.0   ;;  %v3570_v55 = vpack.c.bf16 %v454_v54, %v453_v53  ;;  %vm3025_vm10 = vcmask 162816  }
  0x34   : > { %v3608_v18 = vpack.i.bf16 %v725_v15, %v657_v10  ;;  %v3618_v19 = vpack.i.bf16 %v727_v17, %v659_v13  ;;  %3566 = vmatprep.subr.bf16.mxu1 %v4431_v20  ;;  %v3613_v5 = vpack.i.bf16 %v726_v16, %v658_v12  ;;  %3524 = vmatprep.mubr.msk.f32.mxu1 %vm4434_vm0, %v4435_v21  ;;  %vm3058_vm11 = vcmask 195584  }
  0x35   : > { %v761_v22 = vcombine.low %v4435_v21, %v4435_v21  ;;  %v796_v61 = vcombine.high %v4435_v21, %v4435_v21  ;;  %vm3091_vm12 = vcmask 228352   ;;  %vm3215_vm13 = vcmask 293888  }
  0x36   : > { %3609 = vrot.lane.b32.xlu0 %v3608_v18, %s4432_s15  ;;  %3619 = vrot.lane.b32.xlu1 %v3618_v19, %s4433_s16  ;;  %vm3322_vm14 = vcmask 1043456   ;;  %vm3335_vm15 = vcmask 7168  }
  0x37   : > { %v768_v23 = vrot.slane %v761_v22, %v4517_v33  ;;  %v803_v60 = vrot.slane %v761_v22, %v4520_v7  ;;  %v810_v3 = vrot.slane %v796_v61, %v4520_v7 }
  0x39   : > { %v769_v24 = vcombine.low %v768_v23, %v768_v23  ;;  %v770_v25 = vcombine.high %v768_v23, %v768_v23  ;;  %v811_v2 = vcombine.high %v803_v60, %v4435_v21  ;;  %v812_v10 = vcombine.high %v810_v3, %v4435_v21 }
  0x3a   : > { %3614 = vrot.lane.b32.xlu0 %v3613_v5, %s4436_s17 }
  0x3b   : > { %v777_v26 = vrot.slane %v769_v24, %v4520_v7  ;;  %v784_v27 = vrot.slane %v770_v25, %v4520_v7 }
  0x3d   : > { %v786_v28 = vcombine.high %v777_v26, %v777_v26  ;;  %v787_v29 = vcombine.low %v784_v27, %v784_v27  ;;  %v788_v30 = vcombine.high %v784_v27, %v784_v27  ;;  %v785_v51 = vcombine.low %v777_v26, %v777_v26 }
  0x3f   : > { %815 = vrot.lane.b32.xlu1 %v786_v28, %s4432_s15  ;;  %823 = vrot.lane.b32.xlu0 %v787_v29, %s4436_s17 }
  0x43   : > { %831 = vrot.lane.b32.xlu1 %v788_v30, %s4433_s16 }
  0xa8   : > { %v3610_v31 = vpop.permute.xlu0 %3609  ;;  %v3620_v32 = vpop.permute.xlu1 %3619 }
  0xa9   : > { %v3612_v34 = vunpack.i.h.bf16 %v3610_v31  ;;  %v3611_v35 = vunpack.i.l.bf16 %v3610_v31  ;;  %v3622_v37 = vunpack.i.h.bf16 %v3620_v32  ;;  %v3621_v38 = vunpack.i.l.bf16 %v3620_v32 }
  0xab   : > { %v753_v41 = vsel %vm752_vm1, %v656_v11, %v3611_v35  ;;  %v754_v42 = vsel %vm752_vm1, %v724_v14, %v3612_v34 }
  0xac   : > { %v3615_v36 = vpop.permute.xlu0 %3614 }
  0xad   : > { %v3617_v39 = vunpack.i.h.bf16 %v3615_v36  ;;  %v3616_v40 = vunpack.i.l.bf16 %v3615_v36 }
  0xaf   : > { %v756_v43 = vsel %vm755_vm2, %v753_v41, %v3616_v40  ;;  %v757_v44 = vsel %vm755_vm2, %v754_v42, %v3617_v39 }
  0xb0   : > { %v759_v45 = vsel %vm758_vm3, %v756_v43, %v3621_v38  ;;  %v760_v46 = vsel %vm758_vm3, %v757_v44, %v3622_v37 }
  0xb1   : > { %v3567_v47 = vpack.c.bf16 %v760_v46, %v759_v45  ;;  %v816_v52 = vpop.permute.xlu1 %815  ;;  %v824_v57 = vpop.permute.xlu0 %823 }
  0xb2   : > { %v837_v56 = vsel %vm752_vm1, %v785_v51, %v816_v52 }
  0xb3   : > { %3568 = vmatpush3.bf16.msra.mxu1 %v3567_v47  ;;  %v839_v58 = vsel %vm755_vm2, %v837_v56, %v824_v57 }
  0xb4   : > { %3569 = vmatprep.subr.bf16.mxu1 %v4431_v20 }
  0xb5   : > { %v832_v59 = vpop.permute.xlu1 %831 }
  0xb6   : > { %3525 = vmatmul.mubr.msk.f32.vlgmr.msra.gmra.mrb[0].mxu1 %vm752_vm1, %v450_v48  ;;  %v841_v62 = vsel %vm758_vm3, %v839_v58, %v832_v59 }
  0xb7   : > { %3527 = vmatprep.mubr.msk.f32.mxu1 %vm4434_vm0, %v4435_v21 }
  0xba   : > { %3528 = vmatmul.mubr.msk.f32.gmra.mrb[2].mxu1 %vm752_vm1, %v451_v49 }
  0xbb   : > { %3530 = vmatprep.mubr.msk.f32.mxu1 %vm4434_vm0, %v4435_v21 }
  0xbc   : > { %3572 = vmatpush3.bf16.xpose.msk.msra.mxu1 %vm3571_vm4, %v3570_v55 }
  0xbd   : > { %3537 = vmatprep.subr.mxu1 %v4435_v21 }
  0xbe   : > { %3531 = vmatmul.mubr.msk.f32.gmra.mrb[4].mxu1 %vm752_vm1, %v452_v50 }
  0xbf   : > { %3539 = vmatprep.mubr.msk.f32.mxu1 %vm4434_vm0, %v4435_v21 }
  0xc4   : > { %3538 = vmatpush3.xpose.msk.msra.mxu1 %vm752_vm1, %v455_v4 }
 0x189   : > { %v918_v63 = vpop.f32.mrb[0].mxu1 }
 0x18a   : > { %v919_v0 = vadd.f32 %v918_v63, %v841_v62  ;;  %v3526_v1 = vpop.f32.mrb[1].mxu1 }
 0x18c   : > { %944 = vrot.lane.b32.xlu1 %v919_v0, %s4437_s30  ;;  %935 = vrot.lane.b32.xlu0 %v919_v0, %s4438_s9 }
 0x18d   : > { %v923_v6 = vpop.f32.mrb[2].mxu1 }
 0x18e   : > { %v4614_v8 = vadd.f32 %v923_v6, %v841_v62  ;;  %v3529_v9 = vpop.f32.mrb[3].mxu1 }
 0x190   : > { %817 = vrot.lane.b32.xlu1 %v811_v2, %s4432_s15  ;;  %953 = vrot.lane.b32.xlu0 %v919_v0, %s4439_s12 }
 0x191   : > { %v928_v11 = vpop.f32.mrb[4].mxu1 }
 0x192   : > { %v3532_v12 = vpop.f32.mrb[5].mxu1 }
 0x194   : > { %833 = vrot.lane.b32.xlu1 %v812_v10, %s4433_s16  ;;  %825 = vrot.lane.b32.xlu0 %v810_v3, %s4436_s17  ;;  %s4442_s16 = smov 4  }
 0x198   : > { %946 = vrot.lane.b32.xlu1 %v4614_v8, %s4437_s30  ;;  %937 = vrot.lane.b32.xlu0 %v4614_v8, %s4438_s9 }
 0x19c   : > { %955 = vrot.lane.b32.xlu0 %v4614_v8, %s4439_s12 }
 0x1fe   : > { %v945_v13 = vpop.permute.xlu1 %944  ;;  %v936_v14 = vpop.permute.xlu0 %935 }
 0x1ff   : > { %v962_v15 = vcombine.low %v919_v0, %v945_v13  ;;  %v963_v16 = vcombine.high %v919_v0, %v945_v13 }
 0x201   : > { %v970_v5 = vrot.slane %v962_v15, %v4517_v33  ;;  %v977_v24 = vrot.slane %v963_v16, %v4517_v33 }
 0x202   : > { %v818_v17 = vpop.permute.xlu1 %817  ;;  %v954_v18 = vpop.permute.xlu0 %953 }
 0x203   : > { %v978_v19 = vcombine.low %v936_v14, %v954_v18  ;;  %v979_v20 = vcombine.high %v936_v14, %v954_v18  ;;  %v838_v27 = vsel %vm752_vm1, %v803_v60, %v818_v17 }
 0x205   : > { %v986_v22 = vrot.slane %v978_v19, %v4517_v33  ;;  %v993_v23 = vrot.slane %v979_v20, %v4517_v33 }
 0x206   : > { %v834_v25 = vpop.permute.xlu1 %833  ;;  %v826_v26 = vpop.permute.xlu0 %825 }
 0x207   : > { %v994_v28 = vcombine.low %v970_v5, %v986_v22  ;;  %v995_v29 = vcombine.high %v970_v5, %v986_v22  ;;  %v1010_v30 = vcombine.low %v977_v24, %v993_v23  ;;  %v840_v31 = vsel %vm755_vm2, %v838_v27, %v826_v26 }
 0x208   : > { %v842_v34 = vsel %vm758_vm3, %v840_v31, %v834_v25  ;;  %v1011_v40 = vcombine.high %v977_v24, %v993_v23 }
 0x209   : > { %v1002_v32 = vrot.slane %v994_v28, %v4520_v7  ;;  %v1009_v35 = vrot.slane %v995_v29, %v4520_v7  ;;  %v4636_v36 = vadd.f32 %v928_v11, %v842_v34  ;;  %v1018_v41 = vrot.slane %v1010_v30, %v4520_v7 }
 0x20a   : > { %v947_v37 = vpop.permute.xlu1 %946  ;;  %v938_v38 = vpop.permute.xlu0 %937  ;;  %v1025_v48 = vrot.slane %v1011_v40, %v4520_v7 }
 0x20b   : > { %v1026_v39 = vcombine.high %v1002_v32, %v4435_v21  ;;  %948 = vrot.lane.b32.xlu0 %v4636_v36, %s4437_s30  ;;  %939 = vrot.lane.b32.xlu1 %v4636_v36, %s4438_s9  ;;  %v1030_v43 = vcombine.low %v4614_v8, %v947_v37  ;;  %v1027_v44 = vcombine.high %v1009_v35, %v4435_v21 }
 0x20c   : > { %v1028_v47 = vcombine.high %v1018_v41, %v4435_v21  ;;  %v1031_v53 = vcombine.high %v4614_v8, %v947_v37  ;;  %v1029_v55 = vcombine.high %v1025_v48, %v4435_v21 }
 0x20d   : > { %v1141_v42 = vcombine.low %v1002_v32, %v1026_v39  ;;  %v1038_v49 = vrot.slane %v1030_v43, %v4517_v33  ;;  %v1142_v52 = vcombine.low %v1009_v35, %v1027_v44 }
 0x20e   : > { %v956_v45 = vpop.permute.xlu0 %955  ;;  %v1143_v58 = vcombine.low %v1018_v41, %v1028_v47  ;;  %v1045_v60 = vrot.slane %v1031_v53, %v4517_v33  ;;  %v1144_v62 = vcombine.low %v1025_v48, %v1029_v55 }
 0x20f   : > { %v1046_v46 = vcombine.low %v938_v38, %v956_v45  ;;  %3540 = vmatmul.mubr.msk.f32.vlgmr.msra.gmra.mrb[6].mxu1 %vm752_vm1, %v1141_v42  ;;  %957 = vrot.lane.b32.xlu1 %v4636_v36, %s4439_s12  ;;  %v1047_v50 = vcombine.high %v938_v38, %v956_v45  ;;  %s316_s12 = scalar_lea.vmem %s5966_s8, %s3465_s29 }
 0x210   : > { %3542 = vmatprep.mubr.msk.f32.mxu1 %vm4434_vm0, %v4435_v21 }
 0x211   : > { %v1054_v51 = vrot.slane %v1046_v46, %v4517_v33  ;;  %v1061_v56 = vrot.slane %v1047_v50, %v4517_v33 }
 0x213   : > { %v1062_v54 = vcombine.low %v1038_v49, %v1054_v51  ;;  %3543 = vmatmul.mubr.msk.f32.gmra.mrb[8].mxu1 %vm752_vm1, %v1142_v52  ;;  %v1063_v57 = vcombine.high %v1038_v49, %v1054_v51  ;;  %v1078_v61 = vcombine.low %v1045_v60, %v1061_v56  ;;  %v1079_v1 = vcombine.high %v1045_v60, %v1061_v56 }
 0x214   : > { %3545 = vmatprep.mubr.msk.f32.mxu1 %vm4434_vm0, %v4435_v21 }
 0x215   : > { %v1070_v59 = vrot.slane %v1062_v54, %v4520_v7  ;;  %v1077_v0 = vrot.slane %v1063_v57, %v4520_v7  ;;  %v1086_v4 = vrot.slane %v1078_v61, %v4520_v7  ;;  %v1093_v9 = vrot.slane %v1079_v1, %v4520_v7 }
 0x217   : > { %3546 = vmatmul.mubr.msk.f32.gmra.mrb[10].mxu1 %vm752_vm1, %v1143_v58  ;;  %v1094_v63 = vcombine.high %v1070_v59, %v4435_v21  ;;  %v1095_v3 = vcombine.high %v1077_v0, %v4435_v21  ;;  %v1096_v8 = vcombine.high %v1086_v4, %v4435_v21  ;;  %v1097_v11 = vcombine.high %v1093_v9, %v4435_v21 }
 0x218   : > { %3548 = vmatprep.mubr.msk.f32.mxu1 %vm4434_vm0, %v4435_v21 }
 0x219   : > { %v1145_v2 = vcombine.low %v1070_v59, %v1094_v63  ;;  %v1146_v6 = vcombine.low %v1077_v0, %v1095_v3  ;;  %v1147_v10 = vcombine.low %v1086_v4, %v1096_v8  ;;  %v1148_v12 = vcombine.low %v1093_v9, %v1097_v11 }
 0x21b   : > { %3549 = vmatmul.mubr.msk.f32.gmra.mrb[12].mxu1 %vm752_vm1, %v1144_v62 }
 0x21c   : > { %3551 = vmatprep.mubr.msk.f32.mxu1 %vm4434_vm0, %v4435_v21 }
 0x21f   : > { %3552 = vmatmul.mubr.msk.f32.gmra.mrb[14].mxu1 %vm752_vm1, %v1145_v2 }
 0x220   : > { %3554 = vmatprep.mubr.msk.f32.mxu1 %vm4434_vm0, %v4435_v21 }
 0x223   : > { %3555 = vmatmul.mubr.msk.f32.gmra.mrb[16].mxu1 %vm752_vm1, %v1146_v6 }
 0x224   : > { %3557 = vmatprep.mubr.msk.f32.mxu1 %vm4434_vm0, %v4435_v21 }
 0x227   : > { %3558 = vmatmul.mubr.msk.f32.gmra.mrb[18].mxu1 %vm752_vm1, %v1147_v10 }
 0x228   : > { %3560 = vmatprep.mubr.msk.f32.mxu1 %vm4434_vm0, %v4435_v21 }
 0x22b   : > { %3561 = vmatmul.mubr.msk.f32.gmra.mrb[20].mxu1 %vm752_vm1, %v1148_v12 }
 0x22c   : > { %3563 = vmatprep.mubr.msk.f32.mxu1 %vm4434_vm0, %v4435_v21  ;;  %vm3337_vm0 = vcmask 11264  }
 0x27d   : > { %v949_v13 = vpop.permute.xlu0 %948  ;;  %v940_v14 = vpop.permute.xlu1 %939 }
 0x27e   : > { %v1098_v15 = vcombine.low %v4636_v36, %v949_v13 }
 0x280   : > { %v1105_v18 = vrot.slane %v1098_v15, %v4517_v33 }
 0x281   : > { %v958_v16 = vpop.permute.xlu1 %957 }
 0x282   : > { %v1106_v17 = vcombine.low %v940_v14, %v958_v16 }
 0x284   : > { %v1113_v19 = vrot.slane %v1106_v17, %v4517_v33 }
 0x286   : > { %v1114_v20 = vcombine.low %v1105_v18, %v1113_v19 }
 0x288   : > { %v1121_v5 = vrot.slane %v1114_v20, %v4520_v7 }
 0x28a   : > { %v1122_v22 = vcombine.high %v1121_v5, %v4435_v21 }
 0x28c   : > { %v1149_v23 = vcombine.low %v1121_v5, %v1122_v22 }
 0x28e   : > { %3564 = vmatmul.mubr.msk.f32.gmra.mrb[22].mxu1 %vm752_vm1, %v1149_v23 }
 0x2e2   : > { %v1243_v24 = vpop.f32.mrb[6].mxu1 }
 0x2e3   : > { %v1296_v25 = vcombine.high %v1243_v24, %v1243_v24  ;;  %v3541_v26 = vpop.f32.mrb[7].mxu1 }
 0x2e5   : > { %v3623_v27 = vpack.i.bf16 %v1296_v25, %v1243_v24 }
 0x2e6   : > { %v1248_v28 = vpop.f32.mrb[8].mxu1 }
 0x2e7   : > { %v1297_v29 = vcombine.high %v1248_v28, %v1248_v28  ;;  %3624 = vxpose.xlu0.b32.start.end [1/1] (short) (narrow) %v3623_v27, 24  ;;  %v3544_v30 = vpop.f32.mrb[9].mxu1 }
 0x2e9   : > { %v3640_v31 = vpack.i.bf16 %v1297_v29, %v1248_v28 }
 0x2ea   : > { %v1253_v32 = vpop.f32.mrb[10].mxu1 }
 0x2eb   : > { %v1298_v34 = vcombine.high %v1253_v32, %v1253_v32  ;;  %3641 = vxpose.xlu1.b32.start.end [1/1] (short) (narrow) %v3640_v31, 24  ;;  %v3547_v33 = vpop.f32.mrb[11].mxu1 }
 0x2ed   : > { %v3657_v35 = vpack.i.bf16 %v1298_v34, %v1253_v32 }
 0x2ee   : > { %v1258_v7 = vpop.f32.mrb[12].mxu1 }
 0x2ef   : > { %v3550_v36 = vpop.f32.mrb[13].mxu1  ;;  %v1299_v37 = vcombine.high %v1258_v7, %v1258_v7 }
 0x2f0   : > { %3658 = vxpose.xlu0.b32.start.end [1/1] (short) (narrow) %v3657_v35, 24 }
 0x2f1   : > { %v3674_v43 = vpack.i.bf16 %v1299_v37, %v1258_v7 }
 0x2f2   : > { %v1263_v21 = vpop.f32.mrb[14].mxu1 }
 0x2f3   : > { %v1300_v38 = vcombine.high %v1263_v21, %v1263_v21  ;;  %v3553_v39 = vpop.f32.mrb[15].mxu1 }
 0x2f5   : > { %v3691_v40 = vpack.i.bf16 %v1300_v38, %v1263_v21 }
 0x2f6   : > { %v1268_v41 = vpop.f32.mrb[16].mxu1 }
 0x2f7   : > { %3692 = vxpose.xlu1.b32.start.end [1/1] (short) (narrow) %v3691_v40, 24  ;;  %v3556_v42 = vpop.f32.mrb[17].mxu1  ;;  %v1301_v47 = vcombine.high %v1268_v41, %v1268_v41 }
 0x2f9   : > { %3675 = vxpose.xlu0.b32.start.end [1/1] (short) (narrow) %v3674_v43, 24  ;;  %v3708_v51 = vpack.i.bf16 %v1301_v47, %v1268_v41 }
 0x2fa   : > { %v1273_v44 = vpop.f32.mrb[18].mxu1 }
 0x2fb   : > { %v1302_v45 = vcombine.high %v1273_v44, %v1273_v44  ;;  %v3559_v46 = vpop.f32.mrb[19].mxu1 }
 0x2fd   : > { %v3725_v48 = vpack.i.bf16 %v1302_v45, %v1273_v44 }
 0x2fe   : > { %v1278_v49 = vpop.f32.mrb[20].mxu1 }
 0x2ff   : > { %v3562_v50 = vpop.f32.mrb[21].mxu1  ;;  %v1303_v52 = vcombine.high %v1278_v49, %v1278_v49 }
 0x300   : > { %3726 = vxpose.xlu1.b32.start.end [1/1] (short) (narrow) %v3725_v48, 24 }
 0x301   : > { %v3742_v53 = vpack.i.bf16 %v1303_v52, %v1278_v49 }
 0x302   : > { %3709 = vxpose.xlu0.b32.start.end [1/1] (short) (narrow) %v3708_v51, 24 }
 0x30b   : > { %3743 = vxpose.xlu0.b32.start.end [1/1] (short) (narrow) %v3742_v53, 24 }
 0x361   : > { %v1283_v54 = vpop.f32.mrb[22].mxu1 }
 0x362   : > { %v1304_v55 = vcombine.high %v1283_v54, %v1283_v54  ;;  %v3565_v56 = vpop.f32.mrb[23].mxu1 }
 0x364   : > { %v3759_v57 = vpack.i.bf16 %v1304_v55, %v1283_v54 }
 0x366   : > { %3760 = vxpose.xlu1.b32.start.end [1/1] (short) (narrow) %v3759_v57, 24 }
 0x367   : > { %v3625_v58 = vpop.trf.xlu0 }
 0x368   : > { %v4694_v59 = vunpack.i.h.bf16 %v3625_v58  ;;  %v4707_v6 = vunpack.i.l.bf16 %v3625_v58 }
 0x36a   : > { %v1939_v17 = vrot.slane %v4707_v6, 1  ;;  %v2116_v28 = vrot.slane %v4707_v6, 2  ;;  %v2121_v35 = vrot.slane %v4694_v59, 2  ;;  %v1944_v36 = vrot.slane %v4694_v59, 1 }
 0x36b   : > { %v3630_v60 = vpop.trf.xlu0  ;;  %v3642_v61 = vpop.trf.xlu1 }
 0x36c   : > { %v4696_v62 = vunpack.i.h.bf16 %v3630_v60  ;;  %v4698_v63 = vunpack.i.l.bf16 %v3642_v61  ;;  %v4709_v8 = vunpack.i.h.bf16 %v3642_v61  ;;  %v4718_v12 = vunpack.i.l.bf16 %v3630_v60 }
 0x36e   : > { %v3776_v0 = vpack.i.bf16 %v4696_v62, %v4694_v59  ;;  %v1940_v18 = vrot.slane %v4718_v12, 1  ;;  %v2117_v29 = vrot.slane %v4718_v12, 2  ;;  %v2122_v7 = vrot.slane %v4696_v62, 2 }
 0x36f   : > { %v3647_v1 = vpop.trf.xlu1  ;;  %v3635_v2 = vpop.trf.xlu0  ;;  %v1945_v21 = vrot.slane %v4696_v62, 1  ;;  %v1949_v44 = vrot.slane %v4698_v63, 1  ;;  %v2126_v58 = vrot.slane %v4698_v63, 2 }
 0x370   : > { %v4702_v3 = vunpack.i.l.bf16 %v3647_v1  ;;  %3777 = vrot.lane.b32.xlu0 %v3776_v0, %s4440_s13  ;;  %v4715_v11 = vunpack.i.h.bf16 %v3647_v1  ;;  %v3636_v13 = vunpack.i.l.bf16 %v3635_v2  ;;  %v1941_v22 = vsel %vm1938_vm5, %v1939_v17, %v1940_v18 }
 0x371   : > { %v3639_v31 = vunpack.i.h.bf16 %v3635_v2  ;;  %v2118_v38 = vsel %vm2115_vm6, %v2116_v28, %v2117_v29  ;;  %v2123_v43 = vsel %vm2115_vm6, %v2121_v35, %v2122_v7  ;;  %v1946_v50 = vsel %vm1938_vm5, %v1944_v36, %v1945_v21 }
 0x372   : > { %v3781_v4 = vpack.i.bf16 %v4702_v3, %v4698_v63  ;;  %v3791_v16 = vpack.i.bf16 %v4715_v11, %v4709_v8  ;;  %v1942_v19 = vrot.slane %v3636_v13, 1  ;;  %v2119_v32 = vrot.slane %v3636_v13, 2 }
 0x373   : > { %v4711_v9 = vpop.trf.xlu0  ;;  %v4713_v10 = vpop.trf.xlu1  ;;  %v2124_v40 = vrot.slane %v3639_v31, 2  ;;  %v1947_v42 = vrot.slane %v3639_v31, 1  ;;  %v1950_v48 = vrot.slane %v4702_v3, 1  ;;  %v2127_v0 = vrot.slane %v4702_v3, 2 }
 0x374   : > { %3782 = vrot.lane.b32.xlu0 %v3781_v4, %s4441_s14  ;;  %v1943_v23 = vsel %vm1938_vm5, %v1940_v18, %v1942_v19  ;;  %v4737_v24 = vunpack.i.l.bf16 %v4711_v9  ;;  %v3653_v37 = vunpack.i.l.bf16 %v4713_v10  ;;  %v2120_v39 = vsel %vm2115_vm6, %v2117_v29, %v2119_v32 }
 0x375   : > { %v3801_v27 = vpack.i.bf16 %v1943_v23, %v1941_v22  ;;  %v3806_v46 = vpack.i.bf16 %v2120_v39, %v2118_v38  ;;  %v2125_v47 = vsel %vm2115_vm6, %v2122_v7, %v2124_v40  ;;  %v1948_v51 = vsel %vm1938_vm5, %v1945_v21, %v1947_v42 }
 0x376   : > { %5999 = vst [vmem:[#allocation2_spill] sm:$0xff] %v4737_v24  ;;  %v1952_v45 = vrot.slane %v3653_v37, 1  ;;  %v3656_v53 = vunpack.i.h.bf16 %v4713_v10  ;;  %v3826_v54 = vpack.i.bf16 %v2125_v47, %v2123_v43  ;;  %v2129_v55 = vrot.slane %v3653_v37, 2 }
 0x377   : > { %v4720_v14 = vpop.trf.xlu0  ;;  %v4722_v15 = vpop.trf.xlu1  ;;  %v3821_v56 = vpack.i.bf16 %v1948_v51, %v1946_v50  ;;  %v1951_v57 = vsel %vm1938_vm5, %v1949_v44, %v1950_v48  ;;  %v1955_v17 = vrot.slane %v4715_v11, 1  ;;  %v2128_v19 = vsel %vm2115_vm6, %v2126_v58, %v2127_v0 }
 0x378   : > { %3787 = vrot.lane.b32.xlu0 %v3781_v4, %s4440_s13  ;;  %v4743_v26 = vunpack.i.l.bf16 %v4720_v14  ;;  %v1953_v61 = vsel %vm1938_vm5, %v1950_v48, %v1952_v45  ;;  %v1957_v1 = vrot.slane %v3656_v53, 1  ;;  %v1954_v4 = vrot.slane %v4709_v8, 1 }
 0x379   : > { %v2130_v22 = vsel %vm2115_vm6, %v2127_v0, %v2129_v55  ;;  %v4799_v23 = vunpack.i.h.bf16 %v4711_v9  ;;  %v1959_v35 = vrot.slane %v4737_v24, 1  ;;  %v2136_v40 = vrot.slane %v4737_v24, 2 }
 0x37a   : > { %6000 = vst [vmem:[#allocation3_spill] sm:$0xff] %v4743_v26  ;;  %v3811_v33 = vpack.i.bf16 %v4743_v26, %v4737_v24  ;;  %v3856_v29 = vpack.i.bf16 %v2130_v22, %v2128_v19  ;;  %v1956_v32 = vsel %vm1938_vm5, %v1954_v4, %v1955_v17  ;;  %v1960_v7 = vrot.slane %v4743_v26, 1 }
 0x37b   : > { %v4729_v20 = vpop.trf.xlu0  ;;  %v4732_v5 = vpop.trf.xlu1  ;;  %6001 = vst [vmem:[#allocation4_spill] sm:$0xff] %v4799_v23  ;;  %v2137_v42 = vrot.slane %v4743_v26, 2  ;;  %v4844_v51 = vunpack.i.h.bf16 %v4722_v15 }
 0x37c   : > { %3792 = vrot.lane.b32.xlu0 %v3791_v16, %s4441_s14  ;;  %v3670_v2 = vunpack.i.l.bf16 %v4729_v20  ;;  %v1961_v38 = vsel %vm1938_vm5, %v1959_v35, %v1960_v7  ;;  %v4878_v35 = vunpack.i.l.bf16 %v4722_v15 }
 0x37d   : > { %v2138_v47 = vsel %vm2115_vm6, %v2136_v40, %v2137_v42  ;;  %6004 = vst [vmem:[#allocation7_spill] sm:$0xff] %v4844_v51 }
 0x37e   : > { %v1962_v28 = vrot.slane %v3670_v2, 1  ;;  %v2139_v36 = vrot.slane %v3670_v2, 2  ;;  %6006 = vst [vmem:[#allocation9_spill] sm:$0xff] %v4878_v35 }
 0x37f   : > { %v4739_v25 = vpop.trf.xlu0  ;;  %v4747_v30 = vpop.trf.xlu1 }
 0x380   : > { %3797 = vrot.lane.b32.xlu0 %v3791_v16, %s4440_s13  ;;  %v3851_v16 = vpack.i.bf16 %v1953_v61, %v1951_v57  ;;  %v1963_v39 = vsel %vm1938_vm5, %v1960_v7, %v1962_v28  ;;  %v4828_v43 = vunpack.i.l.bf16 %v4739_v25  ;;  %v2140_v48 = vsel %vm2115_vm6, %v2137_v42, %v2139_v36 }
 0x381   : > { %v4830_v44 = vpack.i.bf16 %v1963_v39, %v1961_v38  ;;  %v4849_v55 = vpack.i.bf16 %v2140_v48, %v2138_v47  ;;  %v3704_v7 = vunpack.i.l.bf16 %v4747_v30  ;;  %v4884_v36 = vunpack.i.l.bf16 %v4732_v5 }
 0x382   : > { %6002 = vst [vmem:[#allocation5_spill] sm:$0xff] %v4828_v43  ;;  %v1969_v57 = vrot.slane %v4828_v43, 1 }
 0x383   : > { %v4749_v34 = vpop.trf.xlu0  ;;  %v4773_v52 = vpop.trf.xlu1  ;;  %6007 = vst [vmem:[#allocation10_spill] sm:$0xff] %v4884_v36  ;;  %v1982_v40 = vrot.slane %v3704_v7, 1  ;;  %v2159_v47 = vrot.slane %v3704_v7, 2 }
 0x384   : > { %3802 = vrot.lane.b32.xlu0 %v3801_v27, %s4442_s16  ;;  %v4802_v27 = vunpack.i.h.bf16 %v4720_v14  ;;  %v4833_v45 = vunpack.i.l.bf16 %v4749_v34 }
 0x386   : > { %v3841_v14 = vpack.i.bf16 %v4802_v27, %v4799_v23  ;;  %6003 = vst [vmem:[#allocation6_spill] sm:$0xff] %v4833_v45  ;;  %v1970_v58 = vrot.slane %v4833_v45, 1  ;;  %v2147_v2 = vrot.slane %v4833_v45, 2  ;;  %v3881_v42 = vpack.i.bf16 %v4833_v45, %v4828_v43 }
 0x387   : > { %v4761_v41 = vpop.trf.xlu0  ;;  %v4789_v13 = vpop.trf.xlu1 }
 0x388   : > { %3812 = vrot.lane.b32.xlu0 %v3811_v33, %s4441_s14  ;;  %v1971_v4 = vsel %vm1938_vm5, %v1969_v57, %v1970_v58  ;;  %v1980_v57 = vrot.slane %v4884_v36, 1 }
 0x38b   : > { %v4768_v49 = vpop.trf.xlu0  ;;  %v4811_v9 = vpop.trf.xlu1 }
 0x38c   : > { %3817 = vrot.lane.b32.xlu0 %v3811_v33, %s4440_s13  ;;  %3807 = vrot.lane.b32.xlu1 %v3806_v46, %s4443_s18  ;;  %v1958_v33 = vsel %vm1938_vm5, %v1955_v17, %v1957_v1  ;;  %v3687_v46 = vunpack.i.l.bf16 %v4761_v41  ;;  %v2146_v1 = vrot.slane %v4828_v43, 2  ;;  %v4887_v38 = vunpack.i.l.bf16 %v4768_v49 }
 0x38d   : > { %v4816_v21 = vpack.i.bf16 %v1958_v33, %v1956_v32  ;;  %v3707_v32 = vunpack.i.h.bf16 %v4747_v30  ;;  %v2134_v33 = vrot.slane %v3656_v53, 2  ;;  %v1984_v53 = vrot.slane %v4844_v51, 1 }
 0x38e   : > { %v2149_v61 = vrot.slane %v3687_v46, 2  ;;  %v2148_v22 = vsel %vm2115_vm6, %v2146_v1, %v2147_v2  ;;  %6008 = vst [vmem:[#allocation11_spill] sm:$0xff] %v4887_v38 }
 0x38f   : > { %v4779_v60 = vpop.trf.xlu0  ;;  %v1987_v10 = vrot.slane %v3707_v32, 1  ;;  %v2164_v39 = vrot.slane %v3707_v32, 2 }
 0x390   : > { %3827 = vrot.lane.b32.xlu0 %v3826_v54, %s4443_s18  ;;  %3822 = vrot.lane.b32.xlu1 %v3821_v56, %s4442_s16  ;;  %v2150_v28 = vsel %vm2115_vm6, %v2147_v2, %v2149_v61  ;;  %v2157_v61 = vrot.slane %v4884_v36, 2 }
 0x393   : > { %v4792_v18 = vpop.trf.xlu0 }
 0x394   : > { %3832 = vrot.lane.b32.xlu0 %v3821_v56, %s4432_s15  ;;  %3852 = vrot.lane.b32.xlu1 %v3851_v16, %s4442_s16  ;;  %v1972_v56 = vrot.slane %v3687_v46, 1  ;;  %v2131_v46 = vrot.slane %v4709_v8, 2 }
 0x396   : > { %v1973_v17 = vsel %vm1938_vm5, %v1970_v58, %v1972_v56  ;;  %v1979_v56 = vrot.slane %v4878_v35, 1  ;;  %v2156_v58 = vrot.slane %v4878_v35, 2 }
 0x397   : > { %v4804_v31 = vpop.trf.xlu0  ;;  %v4867_v19 = vpack.i.bf16 %v1973_v17, %v1971_v4  ;;  %v4913_v4 = vunpack.i.h.bf16 %v4768_v49 }
 0x398   : > { %3837 = vrot.lane.b32.xlu0 %v3826_v54, %s4444_s19  ;;  %3857 = vrot.lane.b32.xlu1 %v3856_v29, %s4443_s18  ;;  %v4847_v54 = vunpack.i.h.bf16 %v4732_v5  ;;  %v2161_v5 = vrot.slane %v4844_v51, 2  ;;  %v2158_v49 = vsel %vm2115_vm6, %v2156_v58, %v2157_v61  ;;  %v1964_v58 = vrot.slane %v4799_v23, 1 }
 0x399   : > { %6010 = vst [vmem:[#allocation13_spill] sm:$0xff] %v4913_v4 }
 0x39a   : > { %6005 = vst [vmem:[#allocation8_spill] sm:$0xff] %v4847_v54  ;;  %v4858_v0 = vpack.i.bf16 %v4847_v54, %v4844_v51  ;;  %v1985_v15 = vrot.slane %v4847_v54, 1  ;;  %v2162_v30 = vrot.slane %v4847_v54, 2  ;;  %v5083_v51 = vunpack.i.l.bf16 %v4804_v31 }
 0x39b   : > { %v4818_v37 = vpop.trf.xlu0 }
 0x39c   : > { %3842 = vrot.lane.b32.xlu0 %v3841_v14, %s4441_s14  ;;  %3892 = vrot.lane.b32.xlu1 %v4816_v21, %s4442_s16  ;;  %v1986_v1 = vsel %vm1938_vm5, %v1984_v53, %v1985_v15  ;;  %v1988_v2 = vsel %vm1938_vm5, %v1985_v15, %v1987_v10  ;;  %v2163_v17 = vsel %vm2115_vm6, %v2161_v5, %v2162_v30  ;;  %v5086_v54 = vunpack.i.l.bf16 %v4818_v37 }
 0x39d   : > { %v1981_v53 = vsel %vm1938_vm5, %v1979_v56, %v1980_v57  ;;  %v1983_v10 = vsel %vm1938_vm5, %v1980_v57, %v1982_v40  ;;  %v4925_v15 = vpack.i.bf16 %v1988_v2, %v1986_v1  ;;  %v2160_v5 = vsel %vm2115_vm6, %v2157_v61, %v2159_v47  ;;  %6015 = vst [vmem:[#allocation18_spill] sm:$0xff] %v5083_v51 }
 0x39e   : > { %v4948_v40 = vunpack.i.l.bf16 %v4773_v52  ;;  %v4961_v47 = vunpack.i.h.bf16 %v4749_v34  ;;  %v3673_v34 = vunpack.i.h.bf16 %v4729_v20  ;;  %v1965_v61 = vrot.slane %v4802_v27, 1  ;;  %6016 = vst [vmem:[#allocation19_spill] sm:$0xff] %v5086_v54 }
 0x39f   : > { %v4841_v50 = vpop.trf.xlu0 }
 0x3a0   : > { %3847 = vrot.lane.b32.xlu0 %v3841_v14, %s4440_s13  ;;  %3932 = vrot.lane.b32.xlu1 %v4830_v44, %s4442_s16  ;;  %v4881_v14 = vpack.i.bf16 %v2150_v28, %v2148_v22  ;;  %v2165_v22 = vsel %vm2115_vm6, %v2162_v30, %v2164_v39  ;;  %v4919_v28 = vunpack.i.h.bf16 %v4779_v60  ;;  %v4933_v30 = vpack.i.bf16 %v1983_v10, %v1981_v53 }
 0x3a1   : > { %v4930_v39 = vpack.i.bf16 %v2165_v22, %v2163_v17  ;;  %6013 = vst [vmem:[#allocation16_spill] sm:$0xff] %v4961_v47  ;;  %v1967_v57 = vrot.slane %v3673_v34, 1  ;;  %v2144_v20 = vrot.slane %v3673_v34, 2  ;;  %v2142_v22 = vrot.slane %v4802_v27, 2 }
 0x3a2   : > { %6011 = vst [vmem:[#allocation14_spill] sm:$0xff] %v4919_v28 }
 0x3a3   : > { %v1968_v2 = vsel %vm1938_vm5, %v1965_v61, %v1967_v57  ;;  %v2145_v53 = vsel %vm2115_vm6, %v2142_v22, %v2144_v20 }
 0x3a4   : > { %3862 = vrot.lane.b32.xlu0 %v3851_v16, %s4445_s20  ;;  %3937 = vrot.lane.b32.xlu1 %v4849_v55, %s4443_s18 }
 0x3a8   : > { %3867 = vrot.lane.b32.xlu0 %v3856_v29, %s4436_s17  ;;  %3997 = vrot.lane.b32.xlu1 %v4858_v0, %s4440_s13 }
 0x3ac   : > { %3872 = vrot.lane.b32.xlu0 %v3851_v16, %s4432_s15  ;;  %4002 = vrot.lane.b32.xlu1 %v4867_v19, %s4442_s16  ;;  %v4890_v16 = vunpack.i.l.bf16 %v4779_v60 }
 0x3ae   : > { %6009 = vst [vmem:[#allocation12_spill] sm:$0xff] %v4890_v16  ;;  %v4031_v48 = vpack.i.bf16 %v4890_v16, %v4887_v38 }
 0x3b0   : > { %3877 = vrot.lane.b32.xlu0 %v3856_v29, %s4444_s19  ;;  %4007 = vrot.lane.b32.xlu1 %v4881_v14, %s4443_s18  ;;  %v2132_v29 = vrot.slane %v4715_v11, 2 }
 0x3b2   : > { %v2133_v32 = vsel %vm2115_vm6, %v2131_v46, %v2132_v29  ;;  %v2135_v7 = vsel %vm2115_vm6, %v2132_v29, %v2134_v33  ;;  %v4071_v33 = vpack.i.bf16 %v4919_v28, %v4913_v4  ;;  %v4937_v46 = vpack.i.bf16 %v2160_v5, %v2158_v49 }
 0x3b3   : > { %v3896_v60 = vpack.i.bf16 %v2135_v7, %v2133_v32  ;;  %v4958_v29 = vunpack.i.h.bf16 %v4739_v25  ;;  %v4121_v25 = vpack.i.bf16 %v4884_v36, %v4878_v35 }
 0x3b4   : > { %3882 = vrot.lane.b32.xlu0 %v3881_v42, %s4441_s14  ;;  %4032 = vrot.lane.b32.xlu1 %v4031_v48, %s4441_s14 }
 0x3b5   : > { %6012 = vst [vmem:[#allocation15_spill] sm:$0xff] %v4958_v29  ;;  %v3921_v56 = vpack.i.bf16 %v4961_v47, %v4958_v29  ;;  %v2151_v35 = vrot.slane %v4958_v29, 2 }
 0x3b8   : > { %3887 = vrot.lane.b32.xlu0 %v3881_v42, %s4440_s13  ;;  %4037 = vrot.lane.b32.xlu1 %v4031_v48, %s4440_s13  ;;  %v4951_v42 = vunpack.i.l.bf16 %v4789_v13 }
 0x3ba   : > { %v4091_v48 = vpack.i.bf16 %v4951_v42, %v4948_v40 }
 0x3bc   : > { %3897 = vrot.lane.b32.xlu0 %v3896_v60, %s4443_s18  ;;  %4072 = vrot.lane.b32.xlu1 %v4071_v33, %s4441_s14 }
 0x3c0   : > { %3902 = vrot.lane.b32.xlu0 %v4816_v21, %s4445_s20  ;;  %4077 = vrot.lane.b32.xlu1 %v4071_v33, %s4440_s13  ;;  %v5022_v33 = vunpack.i.h.bf16 %v4789_v13  ;;  %v1990_v13 = vrot.slane %v4890_v16, 1 }
 0x3c4   : > { %3907 = vrot.lane.b32.xlu0 %v3896_v60, %s4436_s17  ;;  %4082 = vrot.lane.b32.xlu1 %v4933_v30, %s4442_s16 }
 0x3c8   : > { %3912 = vrot.lane.b32.xlu0 %v4816_v21, %s4432_s15  ;;  %4087 = vrot.lane.b32.xlu1 %v4937_v46, %s4443_s18 }
 0x3cc   : > { %3917 = vrot.lane.b32.xlu0 %v3896_v60, %s4444_s19  ;;  %4092 = vrot.lane.b32.xlu1 %v4091_v48, %s4441_s14  ;;  %v5019_v60 = vunpack.i.h.bf16 %v4773_v52  ;;  %v1989_v52 = vrot.slane %v4887_v38, 1 }
 0x3ce   : > { %6014 = vst [vmem:[#allocation17_spill] sm:$0xff] %v5019_v60  ;;  %v4161_v34 = vpack.i.bf16 %v5022_v33, %v5019_v60  ;;  %v1991_v20 = vsel %vm1938_vm5, %v1989_v52, %v1990_v13 }
 0x3d0   : > { %3922 = vrot.lane.b32.xlu0 %v3921_v56, %s4441_s14  ;;  %4097 = vrot.lane.b32.xlu1 %v4091_v48, %s4440_s13 }
 0x3d4   : > { %3927 = vrot.lane.b32.xlu0 %v3921_v56, %s4440_s13  ;;  %4122 = vrot.lane.b32.xlu1 %v4121_v25, %s4440_s13  ;;  %v3721_v56 = vunpack.i.l.bf16 %v4792_v18 }
 0x3d6   : > { %v1992_v57 = vrot.slane %v3721_v56, 1 }
 0x3d8   : > { %3942 = vrot.lane.b32.xlu0 %v4830_v44, %s4445_s20  ;;  %4127 = vrot.lane.b32.xlu1 %v4933_v30, %s4432_s15 }
 0x3dc   : > { %3947 = vrot.lane.b32.xlu0 %v4849_v55, %s4436_s17  ;;  %4132 = vrot.lane.b32.xlu1 %v4937_v46, %s4444_s19 }
 0x3e0   : > { %3952 = vrot.lane.b32.xlu0 %v4830_v44, %s4432_s15  ;;  %4137 = vrot.lane.b32.xlu1 %v4858_v0, %s4441_s14  ;;  %v2141_v44 = vrot.slane %v4799_v23, 2  ;;  %v1966_v0 = vsel %vm1938_vm5, %v1964_v58, %v1965_v61  ;;  %v2169_v61 = vrot.slane %v3721_v56, 2 }
 0x3e1   : > { %v3966_v32 = vpack.i.bf16 %v1968_v2, %v1966_v0  ;;  %v2166_v0 = vrot.slane %v4887_v38, 2  ;;  %v2167_v2 = vrot.slane %v4890_v16, 2 }
 0x3e2   : > { %v4988_v21 = vpop.permute.xlu0 %3777  ;;  %v2143_v7 = vsel %vm2115_vm6, %v2141_v44, %v2142_v22  ;;  %v1993_v44 = vsel %vm1938_vm5, %v1990_v13, %v1992_v57 }
 0x3e3   : > { %v3971_v5 = vpack.i.bf16 %v2145_v53, %v2143_v7  ;;  %v4171_v7 = vpack.i.bf16 %v1993_v44, %v1991_v20  ;;  %v2168_v53 = vsel %vm2115_vm6, %v2166_v0, %v2167_v2  ;;  %v2170_v56 = vsel %vm2115_vm6, %v2167_v2, %v2169_v61 }
 0x3e4   : > { %3957 = vrot.lane.b32.xlu0 %v4849_v55, %s4444_s19  ;;  %4142 = vrot.lane.b32.xlu1 %v4925_v15, %s4432_s15  ;;  %v4176_v13 = vpack.i.bf16 %v2170_v56, %v2168_v53  ;;  %v3690_v61 = vunpack.i.h.bf16 %v4761_v41  ;;  %v1974_v53 = vrot.slane %v4958_v29, 1  ;;  %v1975_v56 = vrot.slane %v4961_v47, 1 }
 0x3e6   : > { %v4996_v1 = vpop.permute.xlu0 %3782  ;;  %v5001_v17 = vpop.trf.xlu1  ;;  %v1977_v0 = vrot.slane %v3690_v61, 1  ;;  %v2154_v41 = vrot.slane %v3690_v61, 2  ;;  %v1976_v43 = vsel %vm1938_vm5, %v1974_v53, %v1975_v56  ;;  %v4201_v53 = vpack.i.bf16 %v5086_v54, %v5083_v51 }
 0x3e8   : > { %3962 = vrot.lane.b32.xlu0 %v4121_v25, %s4441_s14  ;;  %4147 = vrot.lane.b32.xlu1 %v4930_v39, %s4444_s19  ;;  %v1978_v45 = vsel %vm1938_vm5, %v1975_v56, %v1977_v0 }
 0x3e9   : > { %v4041_v36 = vpack.i.bf16 %v1978_v45, %v1976_v43 }
 0x3ea   : > { %v5007_v55 = vpop.permute.xlu0 %3787  ;;  %v5011_v10 = vpop.trf.xlu1 }
 0x3ec   : > { %3967 = vrot.lane.b32.xlu0 %v3966_v32, %s4442_s16  ;;  %4152 = vrot.lane.b32.xlu1 %v4925_v15, %s4445_s20 }
 0x3ee   : > { %v5016_v49 = vpop.permute.xlu0 %3792  ;;  %v5024_v48 = vpop.trf.xlu1 }
 0x3f0   : > { %3972 = vrot.lane.b32.xlu0 %v3971_v5, %s4443_s18  ;;  %4157 = vrot.lane.b32.xlu1 %v4930_v39, %s4436_s17 }
 0x3f2   : > { %v5030_v25 = vpop.permute.xlu0 %3797 }
 0x3f4   : > { %3977 = vrot.lane.b32.xlu0 %v3966_v32, %s4445_s20  ;;  %4162 = vrot.lane.b32.xlu1 %v4161_v34, %s4441_s14 }
 0x3f6   : > { %v5038_v58 = vpop.permute.xlu0 %3802 }
 0x3f8   : > { %3982 = vrot.lane.b32.xlu0 %v3971_v5, %s4436_s17  ;;  %4167 = vrot.lane.b32.xlu1 %v4161_v34, %s4440_s13 }
 0x3fa   : > { %v5046_v22 = vpop.permute.xlu0 %3812 }
 0x3fc   : > { %3987 = vrot.lane.b32.xlu0 %v3966_v32, %s4432_s15  ;;  %4172 = vrot.lane.b32.xlu1 %v4171_v7, %s4442_s16 }
 0x3fe   : > { %v5052_v52 = vpop.permute.xlu0 %3817  ;;  %v5054_v57 = vpop.permute.xlu1 %3807 }
 0x400   : > { %3992 = vrot.lane.b32.xlu0 %v3971_v5, %s4444_s19  ;;  %4177 = vrot.lane.b32.xlu1 %v4176_v13, %s4443_s18 }
 0x402   : > { %v5058_v34 = vpop.permute.xlu0 %3827  ;;  %v5060_v20 = vpop.permute.xlu1 %3822 }
 0x404   : > { %4012 = vrot.lane.b32.xlu0 %v4867_v19, %s4445_s20  ;;  %4182 = vrot.lane.b32.xlu1 %v4171_v7, %s4445_s20 }
 0x406   : > { %v5065_v32 = vpop.permute.xlu0 %3832  ;;  %v5068_v44 = vpop.permute.xlu1 %3852 }
 0x408   : > { %4017 = vrot.lane.b32.xlu0 %v4881_v14, %s4436_s17  ;;  %4187 = vrot.lane.b32.xlu1 %v4176_v13, %s4436_s17 }
 0x40a   : > { %v5073_v5 = vpop.permute.xlu0 %3837  ;;  %v5075_v2 = vpop.permute.xlu1 %3857 }
 0x40c   : > { %4022 = vrot.lane.b32.xlu0 %v4867_v19, %s4432_s15  ;;  %4192 = vrot.lane.b32.xlu1 %v4171_v7, %s4432_s15  ;;  %v2152_v19 = vrot.slane %v4961_v47, 2  ;;  %v3724_v7 = vunpack.i.h.bf16 %v4792_v18  ;;  %v1994_v18 = vrot.slane %v4913_v4, 1 }
 0x40e   : > { %v5088_v38 = vpop.permute.xlu0 %3842  ;;  %v5090_v16 = vpop.permute.xlu1 %3892  ;;  %v2153_v0 = vsel %vm2115_vm6, %v2151_v35, %v2152_v19  ;;  %v2155_v56 = vsel %vm2115_vm6, %v2152_v19, %v2154_v41  ;;  %v1997_v29 = vrot.slane %v3724_v7, 1  ;;  %v2174_v45 = vrot.slane %v3724_v7, 2 }
 0x40f   : > { %6017 = vst [vmem:[#allocation20_spill] sm:$0xff] %v5088_v38  ;;  %v4046_v43 = vpack.i.bf16 %v2155_v56, %v2153_v0  ;;  %v2171_v19 = vrot.slane %v4913_v4, 2  ;;  %v3824_v4 = vunpack.i.l.bf16 %v5060_v20  ;;  %v3789_v38 = vunpack.i.l.bf16 %v5007_v55 }
 0x410   : > { %4027 = vrot.lane.b32.xlu0 %v4881_v14, %s4444_s19  ;;  %4197 = vrot.lane.b32.xlu1 %v4176_v13, %s4444_s19  ;;  %v1995_v14 = vrot.slane %v4919_v28, 1 }
 0x412   : > { %v5100_v61 = vpop.permute.xlu0 %3847  ;;  %v5102_v24 = vpop.permute.xlu1 %3932  ;;  %v1996_v35 = vsel %vm1938_vm5, %v1994_v18, %v1995_v14  ;;  %v1998_v41 = vsel %vm1938_vm5, %v1995_v14, %v1997_v29 }
 0x413   : > { %6018 = vst [vmem:[#allocation21_spill] sm:$0xff] %v5100_v61  ;;  %6019 = vst [vmem:[#allocation22_spill] sm:$0xff] %v5102_v24  ;;  %v2172_v61 = vrot.slane %v4919_v28, 2  ;;  %v5126_v0 = vpack.i.bf16 %v1998_v41, %v1996_v35  ;;  %v5149_v41 = vunpack.i.h.bf16 %v4804_v31  ;;  %v1999_v31 = vrot.slane %v4948_v40, 1 }
 0x414   : > { %4042 = vrot.lane.b32.xlu0 %v4041_v36, %s4442_s16  ;;  %4202 = vrot.lane.b32.xlu1 %v4201_v53, %s4441_s14 }
 0x415   : > { %v2173_v7 = vsel %vm2115_vm6, %v2171_v19, %v2172_v61  ;;  %v2175_v56 = vsel %vm2115_vm6, %v2172_v61, %v2174_v45  ;;  %v3738_v61 = vunpack.i.l.bf16 %v4811_v9  ;;  %6027 = vst [vmem:[#allocation30_spill] sm:$0xff] %v5149_v41  ;;  %v5152_v19 = vunpack.i.h.bf16 %v4818_v37 }
 0x416   : > { %v5112_v13 = vpop.permute.xlu0 %3862  ;;  %v5114_v47 = vpop.permute.xlu1 %3937  ;;  %v5135_v14 = vpack.i.bf16 %v2175_v56, %v2173_v7  ;;  %v3825_v56 = vunpack.i.h.bf16 %v5060_v20  ;;  %v3830_v37 = vunpack.i.h.bf16 %v5058_v34 }
 0x417   : > { %6020 = vst [vmem:[#allocation23_spill] sm:$0xff] %v5112_v13  ;;  %6021 = vst [vmem:[#allocation24_spill] sm:$0xff] %v5114_v47  ;;  %v4241_v20 = vpack.i.bf16 %v5152_v19, %v5149_v41  ;;  %v2176_v13 = vrot.slane %v4948_v40, 2  ;;  %v3790_v47 = vunpack.i.h.bf16 %v5007_v55 }
 0x418   : > { %4047 = vrot.lane.b32.xlu0 %v4046_v43, %s4443_s18  ;;  %4207 = vrot.lane.b32.xlu1 %v4201_v53, %s4440_s13  ;;  %6028 = vst [vmem:[#allocation31_spill] sm:$0xff] %v5152_v19 }
 0x41a   : > { %v5122_v26 = vpop.permute.xlu0 %3867  ;;  %v5124_v24 = vpop.permute.xlu1 %3997 }
 0x41b   : > { %6022 = vst [vmem:[#allocation25_spill] sm:$0xff] %v5122_v26  ;;  %6023 = vst [vmem:[#allocation26_spill] sm:$0xff] %v5124_v24  ;;  %v2179_v24 = vrot.slane %v3738_v61, 2 }
 0x41c   : > { %4052 = vrot.lane.b32.xlu0 %v4041_v36, %s4445_s20  ;;  %4222 = vrot.lane.b32.xlu1 %v5126_v0, %s4445_s20 }
 0x41e   : > { %v3873_v29 = vpop.permute.xlu0 %3872  ;;  %v5133_v18 = vpop.permute.xlu1 %4002 }
 0x41f   : > { %6024 = vst [vmem:[#allocation27_spill] sm:$0xff] %v5133_v18  ;;  %v3829_v18 = vunpack.i.l.bf16 %v5058_v34 }
 0x420   : > { %4057 = vrot.lane.b32.xlu0 %v4046_v43, %s4436_s17  ;;  %4227 = vrot.lane.b32.xlu1 %v5135_v14, %s4436_s17 }
 0x422   : > { %v3878_v53 = vpop.permute.xlu0 %3877  ;;  %v5140_v35 = vpop.permute.xlu1 %4007 }
 0x423   : > { %6025 = vst [vmem:[#allocation28_spill] sm:$0xff] %v5140_v35  ;;  %v2000_v35 = vrot.slane %v4951_v42, 1  ;;  %v3880_v23 = vunpack.i.h.bf16 %v3878_v53 }
 0x424   : > { %4062 = vrot.lane.b32.xlu0 %v4041_v36, %s4432_s15  ;;  %4232 = vrot.lane.b32.xlu1 %v5126_v0, %s4432_s15  ;;  %v2002_v36 = vrot.slane %v3738_v61, 1 }
 0x425   : > { %v2001_v34 = vsel %vm1938_vm5, %v1999_v31, %v2000_v35  ;;  %v3879_v31 = vunpack.i.l.bf16 %v3878_v53 }
 0x426   : > { %v5146_v45 = vpop.permute.xlu0 %3882  ;;  %v5154_v7 = vpop.permute.xlu1 %4032 }
 0x427   : > { %6026 = vst [vmem:[#allocation29_spill] sm:$0xff] %v5146_v45  ;;  %6029 = vst [vmem:[#allocation32_spill] sm:$0xff] %v5154_v7  ;;  %v2897_v45 = vsel %vm2894_vm7, %v4694_v59, %v3824_v4  ;;  %v3875_v4 = vunpack.i.h.bf16 %v3873_v29 }
 0x428   : > { %4067 = vrot.lane.b32.xlu0 %v4046_v43, %s4444_s19  ;;  %4237 = vrot.lane.b32.xlu1 %v5135_v14, %s4444_s19  ;;  %v2898_v43 = vsel %vm2894_vm7, %v4696_v62, %v3825_v56  ;;  %v2177_v62 = vrot.slane %v4951_v42, 2  ;;  %v2930_v59 = vsel %vm2927_vm8, %v2897_v45, %v3829_v18 }
 0x429   : > { %v2931_v56 = vsel %vm2927_vm8, %v2898_v43, %v3830_v37 }
 0x42a   : > { %v5161_v28 = vpop.permute.xlu0 %3887  ;;  %v5167_v7 = vpop.permute.xlu1 %4037  ;;  %v2964_v18 = vsel %vm2960_vm9, %v2931_v56, %v3790_v47  ;;  %v2178_v53 = vsel %vm2115_vm6, %v2176_v13, %v2177_v62  ;;  %v3741_v47 = vunpack.i.h.bf16 %v4811_v9  ;;  %v3854_v13 = vunpack.i.l.bf16 %v5068_v44 }
 0x42b   : > { %6030 = vst [vmem:[#allocation33_spill] sm:$0xff] %v5167_v7  ;;  %v2003_v7 = vsel %vm1938_vm5, %v2000_v35, %v2002_v36  ;;  %v2963_v35 = vsel %vm2960_vm9, %v2930_v59, %v3789_v38  ;;  %v2996_v55 = vsel %vm752_vm1, %v2964_v18, %v3875_v4 }
 0x42c   : > { %4102 = vrot.lane.b32.xlu0 %v4925_v15, %s4442_s16  ;;  %4242 = vrot.lane.b32.xlu1 %v4241_v20, %s4441_s14  ;;  %v3874_v15 = vunpack.i.l.bf16 %v3873_v29  ;;  %v5195_v45 = vpack.i.bf16 %v2003_v7, %v2001_v34  ;;  %v3029_v43 = vsel %vm3025_vm10, %v2996_v55, %v3880_v23  ;;  %v3795_v7 = vunpack.i.h.bf16 %v5016_v49 }
 0x42d   : > { %v3794_v34 = vunpack.i.l.bf16 %v5016_v49  ;;  %v3860_v49 = vunpack.i.h.bf16 %v5075_v2  ;;  %v2007_v55 = vrot.slane %v3741_v47, 1 }
 0x42e   : > { %v5178_v26 = vpop.permute.xlu0 %3897  ;;  %v5186_v61 = vpop.permute.xlu1 %4072  ;;  %v2995_v36 = vsel %vm752_vm1, %v2963_v35, %v3874_v15  ;;  %v3062_v9 = vsel %vm3058_vm11, %v3029_v43, %v3795_v7  ;;  %v3800_v7 = vunpack.i.h.bf16 %v5030_v25 }
 0x430   : > { %4107 = vrot.lane.b32.xlu0 %v4930_v39, %s4443_s18  ;;  %4247 = vrot.lane.b32.xlu1 %v4241_v20, %s4440_s13  ;;  %v2180_v39 = vsel %vm2115_vm6, %v2177_v62, %v2179_v24  ;;  %v3028_v20 = vsel %vm3025_vm10, %v2995_v36, %v3879_v31  ;;  %v3855_v24 = vunpack.i.h.bf16 %v5068_v44  ;;  %v3859_v31 = vunpack.i.l.bf16 %v5075_v2 }
 0x431   : > { %v5214_v62 = vpack.i.bf16 %v2180_v39, %v2178_v53  ;;  %v3814_v2 = vunpack.i.l.bf16 %v5046_v22 }
 0x432   : > { %v3903_v29 = vpop.permute.xlu0 %3902  ;;  %v5199_v37 = vpop.permute.xlu1 %4077  ;;  %v2900_v53 = vsel %vm2894_vm7, %v4702_v3, %v3855_v24  ;;  %v5252_v3 = vunpack.i.l.bf16 %v5001_v17  ;;  %v5255_v24 = vunpack.i.l.bf16 %v5011_v10 }
 0x433   : > { %v3905_v38 = vunpack.i.h.bf16 %v3903_v29  ;;  %v3904_v59 = vunpack.i.l.bf16 %v3903_v29  ;;  %v2933_v43 = vsel %vm2927_vm8, %v2900_v53, %v3860_v49 }
 0x434   : > { %4112 = vrot.lane.b32.xlu0 %v4933_v30, %s4445_s20  ;;  %4252 = vrot.lane.b32.xlu1 %v5195_v45, %s4442_s16  ;;  %v3061_v30 = vsel %vm3058_vm11, %v3028_v20, %v3794_v34  ;;  %v3799_v34 = vunpack.i.l.bf16 %v5030_v25 }
 0x435   : > { %v3094_v35 = vsel %vm3091_vm12, %v3061_v30, %v3904_v59  ;;  %v3095_v44 = vsel %vm3091_vm12, %v3062_v9, %v3905_v38  ;;  %v2966_v30 = vsel %vm2960_vm9, %v2933_v43, %v3800_v7  ;;  %v2182_v43 = vrot.slane %v5022_v33, 2 }
 0x436   : > { %v3908_v23 = vpop.permute.xlu0 %3907  ;;  %v5218_v15 = vpop.permute.xlu1 %4082 }
 0x437   : > { %v3910_v56 = vunpack.i.h.bf16 %v3908_v23  ;;  %v3909_v4 = vunpack.i.l.bf16 %v3908_v23  ;;  %v2005_v23 = vrot.slane %v5022_v33, 1 }
 0x438   : > { %4117 = vrot.lane.b32.xlu0 %v4937_v46, %s4436_s17  ;;  %4257 = vrot.lane.b32.xlu1 %v5214_v62, %s4443_s18  ;;  %v2899_v46 = vsel %vm2894_vm7, %v4698_v63, %v3854_v13  ;;  %v2004_v63 = vrot.slane %v5019_v60, 1 }
 0x439   : > { %v5229_v18 = vsel %vm755_vm2, %v3094_v35, %v3909_v4  ;;  %v5232_v29 = vsel %vm755_vm2, %v3095_v44, %v3910_v56  ;;  %v2932_v20 = vsel %vm2927_vm8, %v2899_v46, %v3859_v31  ;;  %v3758_v4 = vunpack.i.h.bf16 %v4841_v50 }
 0x43a   : > { %v3913_v36 = vpop.permute.xlu0 %3912  ;;  %v5240_v39 = vpop.permute.xlu1 %4087  ;;  %v4286_v46 = vpack.i.bf16 %v5255_v24, %v5252_v3 }
 0x43b   : > { %v3915_v38 = vunpack.i.h.bf16 %v3913_v36  ;;  %v3914_v59 = vunpack.i.l.bf16 %v3913_v36  ;;  %v2184_v36 = vrot.slane %v3741_v47, 2  ;;  %v2017_v7 = vrot.slane %v3758_v4, 1 }
 0x43c   : > { %4212 = vrot.lane.b32.xlu0 %v5126_v0, %s4442_s16  ;;  %4262 = vrot.lane.b32.xlu1 %v5195_v45, %s4445_s20  ;;  %v2965_v0 = vsel %vm2960_vm9, %v2932_v20, %v3799_v34  ;;  %v2181_v20 = vrot.slane %v5019_v60, 2  ;;  %v3755_v34 = vunpack.i.l.bf16 %v4841_v50  ;;  %v2014_v47 = vrot.slane %v5149_v41, 1 }
 0x43d   : > { %v2997_v49 = vsel %vm752_vm1, %v2965_v0, %v3914_v59  ;;  %v2998_v31 = vsel %vm752_vm1, %v2966_v30, %v3915_v38  ;;  %v2008_v59 = vsel %vm1938_vm5, %v2005_v23, %v2007_v55  ;;  %v2191_v0 = vrot.slane %v5149_v41, 2 }
 0x43e   : > { %v3918_v13 = vpop.permute.xlu0 %3917  ;;  %v5260_v56 = vpop.permute.xlu1 %4092  ;;  %v2192_v30 = vrot.slane %v5152_v19, 2  ;;  %v2183_v55 = vsel %vm2115_vm6, %v2181_v20, %v2182_v43  ;;  %v2185_v50 = vsel %vm2115_vm6, %v2182_v43, %v2184_v36  ;;  %v5312_v43 = vunpack.i.h.bf16 %v5001_v17 }
 0x43f   : > { %v3920_v9 = vunpack.i.h.bf16 %v3918_v13  ;;  %v3919_v25 = vunpack.i.l.bf16 %v3918_v13  ;;  %v2015_v13 = vrot.slane %v5152_v19, 1 }
 0x440   : > { %4217 = vrot.lane.b32.xlu0 %v5135_v14, %s4443_s18  ;;  %4267 = vrot.lane.b32.xlu1 %v5214_v62, %s4436_s17  ;;  %v2006_v14 = vsel %vm1938_vm5, %v2004_v63, %v2005_v23  ;;  %v2194_v23 = vrot.slane %v3758_v4, 2  ;;  %v2193_v36 = vsel %vm2115_vm6, %v2191_v0, %v2192_v30  ;;  %v3899_v0 = vunpack.i.l.bf16 %v5178_v26 }
 0x441   : > { %v3030_v35 = vsel %vm3025_vm10, %v2997_v49, %v3919_v25  ;;  %v3031_v44 = vsel %vm3025_vm10, %v2998_v31, %v3920_v9  ;;  %v5291_v63 = vpack.i.bf16 %v2008_v59, %v2006_v14  ;;  %v5299_v49 = vrot.slane %v3755_v34, 2 }
 0x442   : > { %v5271_v53 = vpop.permute.xlu0 %3922  ;;  %v5277_v38 = vpop.permute.xlu1 %4097  ;;  %v5306_v14 = vpack.i.bf16 %v2185_v50, %v2183_v55  ;;  %v2016_v20 = vsel %vm1938_vm5, %v2014_v47, %v2015_v13  ;;  %v2018_v4 = vsel %vm1938_vm5, %v2015_v13, %v2017_v7  ;;  %v5315_v59 = vunpack.i.h.bf16 %v5011_v10 }
 0x443   : > { %v2195_v47 = vsel %vm2115_vm6, %v2192_v30, %v2194_v23  ;;  %v3895_v7 = vunpack.i.h.bf16 %v5090_v16  ;;  %v3894_v13 = vunpack.i.l.bf16 %v5090_v16  ;;  %v3063_v17 = vsel %vm3058_vm11, %v3030_v35, %v3814_v2 }
 0x444   : > { %4287 = vrot.lane.b32.xlu0 %v4286_v46, %s4440_s13  ;;  %4272 = vrot.lane.b32.xlu1 %v5195_v45, %s4432_s15  ;;  %v5297_v45 = vrot.slane %v3755_v34, 1  ;;  %v3815_v34 = vunpack.i.h.bf16 %v5046_v22  ;;  %v3900_v22 = vunpack.i.h.bf16 %v5178_v26  ;;  %v4321_v16 = vpack.i.bf16 %v5315_v59, %v5312_v43 }
 0x445   : > { %v5335_v2 = vpack.i.bf16 %v2018_v4, %v2016_v20  ;;  %v3772_v35 = vunpack.i.l.bf16 %v5024_v48  ;;  %v5340_v19 = vpack.i.bf16 %v2195_v47, %v2193_v36  ;;  %v2902_v26 = vsel %vm2894_vm7, %v4715_v11, %v3895_v7 }
 0x446   : > { %v5289_v9 = vpop.permute.xlu0 %3927  ;;  %v5295_v25 = vpop.permute.xlu1 %4122  ;;  %v3064_v10 = vsel %vm3058_vm11, %v3031_v44, %v3815_v34  ;;  %v2010_v20 = vrot.slane %v5086_v54, 1  ;;  %v3819_v47 = vunpack.i.l.bf16 %v5052_v52 }
 0x448   : > { %4292 = vrot.lane.b32.xlu0 %v5291_v63, %s4442_s16  ;;  %4277 = vrot.lane.b32.xlu1 %v5214_v62, %s4444_s19 }
 0x44a   : > { %v3943_v31 = vpop.permute.xlu0 %3942  ;;  %v5319_v50 = vpop.permute.xlu1 %4127 }
 0x44b   : > { %v3945_v62 = vunpack.i.h.bf16 %v3943_v31  ;;  %v3944_v55 = vunpack.i.l.bf16 %v3943_v31 }
 0x44c   : > { %4297 = vrot.lane.b32.xlu0 %v5306_v14, %s4443_s18  ;;  %4282 = vrot.lane.b32.xlu1 %v4286_v46, %s4441_s14  ;;  %v2901_v46 = vsel %vm2894_vm7, %v4709_v8, %v3894_v13  ;;  %v3820_v8 = vunpack.i.h.bf16 %v5052_v52  ;;  %v2392_v13 = vrot.slane %v5255_v24, 1  ;;  %v2186_v52 = vrot.slane %v5083_v51, 2 }
 0x44d   : > { %v3096_v31 = vsel %vm3091_vm12, %v3063_v17, %v3944_v55  ;;  %v3097_v41 = vsel %vm3091_vm12, %v3064_v10, %v3945_v62  ;;  %v2391_v62 = vrot.slane %v5252_v3, 1  ;;  %v2934_v4 = vsel %vm2927_vm8, %v2901_v46, %v3899_v0 }
 0x44e   : > { %v3948_v30 = vpop.permute.xlu0 %3947  ;;  %v5338_v34 = vpop.permute.xlu1 %4132  ;;  %v2935_v55 = vsel %vm2927_vm8, %v2902_v26, %v3900_v22  ;;  %v2394_v10 = vrot.slane %v3772_v35, 1  ;;  %v2187_v26 = vrot.slane %v5086_v54, 2  ;;  %v2793_v17 = vrot.slane %v5312_v43, 2 }
 0x44f   : > { %v3950_v44 = vunpack.i.h.bf16 %v3948_v30  ;;  %v3949_v23 = vunpack.i.l.bf16 %v3948_v30 }
 0x450   : > { %4322 = vrot.lane.b32.xlu0 %v4321_v16, %s4441_s14  ;;  %4302 = vrot.lane.b32.xlu1 %v5291_v63, %s4445_s20  ;;  %v3775_v16 = vunpack.i.h.bf16 %v5024_v48 }
 0x451   : > { %v5354_v36 = vsel %vm755_vm2, %v3096_v31, %v3949_v23  ;;  %v5357_v11 = vsel %vm755_vm2, %v3097_v41, %v3950_v44  ;;  %v2967_v31 = vsel %vm2960_vm9, %v2934_v4, %v3819_v47  ;;  %v2968_v41 = vsel %vm2960_vm9, %v2935_v55, %v3820_v8 }
 0x452   : > { %v3953_v7 = vpop.permute.xlu0 %3952  ;;  %v5364_v30 = vpop.permute.xlu1 %4137  ;;  %v2393_v4 = vsel %vm1938_vm5, %v2391_v62, %v2392_v13  ;;  %v2492_v55 = vrot.slane %v5252_v3, 2  ;;  %v2493_v8 = vrot.slane %v5255_v24, 2  ;;  %v6031_v47 = vrot.slane %v5083_v51, 1 }
 0x453   : > { %v3955_v22 = vunpack.i.h.bf16 %v3953_v7  ;;  %v3954_v0 = vunpack.i.l.bf16 %v3953_v7  ;;  %v2495_v7 = vrot.slane %v3772_v35, 2  ;;  %v2013_v62 = vsel %vm1938_vm5, %v2010_v20, %v5297_v45 }
 0x454   : > { %4357 = vrot.lane.b32.xlu0 %v5335_v2, %s4442_s16  ;;  %4307 = vrot.lane.b32.xlu1 %v5306_v14, %s4436_s17  ;;  %v2011_v48 = vsel %vm1938_vm5, %v6031_v47, %v2010_v20  ;;  %v2692_v3 = vrot.slane %v5312_v43, 1  ;;  %v2693_v24 = vrot.slane %v5315_v59, 1  ;;  %v2695_v47 = vrot.slane %v3775_v16, 1 }
 0x455   : > { %v2999_v44 = vsel %vm752_vm1, %v2967_v31, %v3954_v0  ;;  %v3000_v23 = vsel %vm752_vm1, %v2968_v41, %v3955_v22  ;;  %v2395_v41 = vsel %vm1938_vm5, %v2392_v13, %v2394_v10  ;;  %v2794_v13 = vrot.slane %v5315_v59, 2 }
 0x456   : > { %v3958_v46 = vpop.permute.xlu0 %3957  ;;  %v5383_v22 = vpop.permute.xlu1 %4142  ;;  %v2796_v10 = vrot.slane %v3775_v16, 2  ;;  %v3805_v45 = vunpack.i.h.bf16 %v5038_v58  ;;  %v3804_v20 = vunpack.i.l.bf16 %v5038_v58  ;;  %v5406_v43 = vpack.i.bf16 %v2395_v41, %v2393_v4 }
 0x457   : > { %v3960_v0 = vunpack.i.h.bf16 %v3958_v46  ;;  %v3959_v31 = vunpack.i.l.bf16 %v3958_v46  ;;  %v2188_v59 = vsel %vm2115_vm6, %v2186_v52, %v2187_v26  ;;  %v2190_v58 = vsel %vm2115_vm6, %v2187_v26, %v5299_v49 }
 0x458   : > { %4382 = vrot.lane.b32.xlu0 %v5340_v19, %s4443_s18  ;;  %4312 = vrot.lane.b32.xlu1 %v5291_v63, %s4432_s15  ;;  %v2496_v63 = vsel %vm2115_vm6, %v2493_v8, %v2495_v7  ;;  %v5421_v16 = vpack.i.bf16 %v2013_v62, %v2011_v48  ;;  %v2696_v4 = vsel %vm1938_vm5, %v2693_v24, %v2695_v47  ;;  %v3835_v48 = vunpack.i.h.bf16 %v5065_v32 }
 0x459   : > { %v5394_v35 = vsel %vm3025_vm10, %v2999_v44, %v3959_v31  ;;  %v5397_v46 = vsel %vm3025_vm10, %v3000_v23, %v3960_v0  ;;  %v3810_v44 = vunpack.i.h.bf16 %v5054_v57  ;;  %v3809_v31 = vunpack.i.l.bf16 %v5054_v57 }
 0x45a   : > { %v5404_v51 = vpop.permute.xlu0 %3962  ;;  %v5410_v23 = vpop.permute.xlu1 %4147  ;;  %v2494_v0 = vsel %vm2115_vm6, %v2492_v55, %v2493_v8  ;;  %v2694_v57 = vsel %vm1938_vm5, %v2692_v3, %v2693_v24  ;;  %v2795_v55 = vsel %vm2115_vm6, %v2793_v17, %v2794_v13  ;;  %v2896_v8 = vsel %vm2894_vm7, %v4718_v12, %v3805_v45 }
 0x45b   : > { %v2895_v52 = vsel %vm2894_vm7, %v4707_v6, %v3804_v20  ;;  %v5430_v41 = vpack.i.bf16 %v2496_v63, %v2494_v0  ;;  %v2797_v49 = vsel %vm2115_vm6, %v2794_v13, %v2796_v10  ;;  %v3834_v62 = vunpack.i.l.bf16 %v5065_v32 }
 0x45c   : > { %4397 = vrot.lane.b32.xlu0 %v5406_v43, %s4432_s15  ;;  %4317 = vrot.lane.b32.xlu1 %v5306_v14, %s4444_s19  ;;  %v2929_v14 = vsel %vm2927_vm8, %v2896_v8, %v3810_v44  ;;  %v2928_v26 = vsel %vm2927_vm8, %v2895_v52, %v3809_v31  ;;  %v3780_v12 = vunpack.i.h.bf16 %v4988_v21  ;;  %v3779_v3 = vunpack.i.l.bf16 %v4988_v21 }
 0x45d   : > { %v3784_v47 = vunpack.i.l.bf16 %v4996_v1  ;;  %v3839_v13 = vunpack.i.l.bf16 %v5073_v5  ;;  %v5447_v10 = vpack.i.bf16 %v2190_v58, %v2188_v59  ;;  %v4406_v21 = vpack.i.bf16 %v2696_v4, %v2694_v57 }
 0x45e   : > { %v3968_v7 = vpop.permute.xlu0 %3967  ;;  %v5437_v17 = vpop.permute.xlu1 %4152  ;;  %v2961_v32 = vsel %vm2960_vm9, %v2928_v26, %v3779_v3  ;;  %v2962_v45 = vsel %vm2960_vm9, %v2929_v14, %v3780_v12  ;;  %v4411_v44 = vpack.i.bf16 %v2797_v49, %v2795_v55  ;;  %v3889_v59 = vunpack.i.l.bf16 %v5161_v28  ;;  %v6032_v26 = vld [vmem:[#allocation4_spill] sm:$0xff] }
 0x45f   : > { %v3970_v6 = vunpack.i.h.bf16 %v3968_v7  ;;  %v3969_v24 = vunpack.i.l.bf16 %v3968_v7  ;;  %v2993_v31 = vsel %vm752_vm1, %v2961_v32, %v3834_v62  ;;  %v2994_v0 = vsel %vm752_vm1, %v2962_v45, %v3835_v48 }
 0x460   : > { %4402 = vrot.lane.b32.xlu0 %v5430_v41, %s4444_s19  ;;  %4327 = vrot.lane.b32.xlu1 %v5421_v16, %s4442_s16  ;;  %v3890_v7 = vunpack.i.h.bf16 %v5161_v28  ;;  %v3840_v57 = vunpack.i.h.bf16 %v5073_v5  ;;  %v3026_v4 = vsel %vm3025_vm10, %v2993_v31, %v3839_v13  ;;  %v6033_v28 = vld [vmem:[#allocation20_spill] sm:$0xff]  ;;  %v6034_v5 = vld [vmem:[#allocation22_spill] sm:$0xff] }
 0x461   : > { %v2906_v58 = vsel %vm2894_vm7, %v4802_v27, %v3970_v6  ;;  %v2905_v14 = vsel %vm2894_vm7, %v6032_v26, %v3969_v24  ;;  %v3845_v48 = vunpack.i.h.bf16 %v6033_v28  ;;  %v3844_v27 = vunpack.i.l.bf16 %v6033_v28 }
 0x462   : > { %v3973_v20 = vpop.permute.xlu0 %3972  ;;  %v5453_v52 = vpop.permute.xlu1 %4157  ;;  %v3935_v6 = vunpack.i.h.bf16 %v6034_v5  ;;  %v3934_v24 = vunpack.i.l.bf16 %v6034_v5  ;;  %v3785_v26 = vunpack.i.h.bf16 %v4996_v1 }
 0x463   : > { %v3975_v63 = vunpack.i.h.bf16 %v3973_v20  ;;  %v3974_v8 = vunpack.i.l.bf16 %v3973_v20  ;;  %v6035_v20 = vld [vmem:[#allocation24_spill] sm:$0xff] }
 0x464   : > { %4407 = vrot.lane.b32.xlu0 %v4406_v21, %s4445_s20  ;;  %4332 = vrot.lane.b32.xlu1 %v5447_v10, %s4443_s18  ;;  %v3940_v21 = vunpack.i.h.bf16 %v6035_v20  ;;  %v3939_v31 = vunpack.i.l.bf16 %v6035_v20  ;;  %v4089_v20 = vunpack.i.l.bf16 %v5240_v39 }
 0x465   : > { %v2938_v55 = vsel %vm2927_vm8, %v2905_v14, %v3974_v8  ;;  %v2939_v49 = vsel %vm2927_vm8, %v2906_v58, %v3975_v63  ;;  %v3065_v63 = vsel %vm3058_vm11, %v5394_v35, %v3844_v27  ;;  %v3066_v8 = vsel %vm3058_vm11, %v5397_v46, %v3845_v48  ;;  %v6036_v35 = vld [vmem:[#allocation3_spill] sm:$0xff]  ;;  %v6037_v46 = vld [vmem:[#allocation2_spill] sm:$0xff]  ;;  %v6038_v48 = vld [vmem:[#allocation21_spill] sm:$0xff] }
 0x466   : > { %v3978_v62 = vpop.permute.xlu0 %3977  ;;  %v5471_v12 = vsel %vm2960_vm9, %v2938_v55, %v3889_v59  ;;  %v5474_v3 = vsel %vm2960_vm9, %v2939_v49, %v3890_v7  ;;  %v5478_v45 = vpop.permute.xlu1 %4162  ;;  %v3027_v7 = vsel %vm3025_vm10, %v2994_v0, %v3840_v57  ;;  %v3059_v55 = vsel %vm3058_vm11, %v3026_v4, %v3784_v47 }
 0x467   : > { %v3980_v13 = vunpack.i.h.bf16 %v3978_v62  ;;  %v3979_v32 = vunpack.i.l.bf16 %v3978_v62  ;;  %v2904_v49 = vsel %vm2894_vm7, %v6036_v35, %v3935_v6  ;;  %v3850_v27 = vunpack.i.h.bf16 %v6038_v48 }
 0x468   : > { %4412 = vrot.lane.b32.xlu0 %v4411_v44, %s4436_s17  ;;  %4337 = vrot.lane.b32.xlu1 %v5421_v16, %s4445_s20  ;;  %v2903_v44 = vsel %vm2894_vm7, %v6037_v46, %v3934_v24  ;;  %v2937_v5 = vsel %vm2927_vm8, %v2904_v49, %v3940_v21  ;;  %v3060_v1 = vsel %vm3058_vm11, %v3027_v7, %v3785_v26  ;;  %v4085_v47 = vunpack.i.h.bf16 %v5218_v15  ;;  %v6040_v7 = vld [vmem:[#allocation25_spill] sm:$0xff]  ;;  %v6041_v46 = vld [vmem:[#allocation26_spill] sm:$0xff] }
 0x469   : > { %v3098_v59 = vsel %vm3091_vm12, %v3065_v63, %v3979_v32  ;;  %v3099_v58 = vsel %vm3091_vm12, %v3066_v8, %v3980_v13  ;;  %v2936_v62 = vsel %vm2927_vm8, %v2903_v44, %v3939_v31  ;;  %v4084_v4 = vunpack.i.l.bf16 %v5218_v15  ;;  %v6039_v15 = vld [vmem:[#allocation23_spill] sm:$0xff] }
 0x46a   : > { %v3983_v14 = vpop.permute.xlu0 %3982  ;;  %v5498_v57 = vpop.permute.xlu1 %4167  ;;  %v3849_v13 = vunpack.i.l.bf16 %v6038_v48  ;;  %v4090_v32 = vunpack.i.h.bf16 %v5240_v39  ;;  %v3865_v63 = vunpack.i.h.bf16 %v6039_v15  ;;  %v3864_v8 = vunpack.i.l.bf16 %v6039_v15  ;;  %v6043_v15 = vld [vmem:[#allocation9_spill] sm:$0xff] }
 0x46b   : > { %v3985_v28 = vunpack.i.h.bf16 %v3983_v14  ;;  %v3984_v0 = vunpack.i.l.bf16 %v3983_v14  ;;  %v3869_v26 = vunpack.i.l.bf16 %v6040_v7  ;;  %v2970_v39 = vsel %vm2960_vm9, %v2937_v5, %v3850_v27 }
 0x46c   : > { %4342 = vrot.lane.b32.xlu1 %v5447_v10, %s4436_s17  ;;  %v2969_v49 = vsel %vm2960_vm9, %v2936_v62, %v3849_v13  ;;  %v4000_v44 = vunpack.i.h.bf16 %v6041_v46  ;;  %v2911_v31 = vsel %vm2894_vm7, %v6043_v15, %v4084_v4  ;;  %v4145_v13 = vunpack.i.h.bf16 %v5383_v22 }
 0x46d   : > { %v5509_v6 = vsel %vm755_vm2, %v3098_v59, %v3984_v0  ;;  %v5512_v24 = vsel %vm755_vm2, %v3099_v58, %v3985_v28  ;;  %v3870_v59 = vunpack.i.h.bf16 %v6040_v7  ;;  %v3999_v28 = vunpack.i.l.bf16 %v6041_v46  ;;  %v6042_v0 = vld [vmem:[#allocation10_spill] sm:$0xff]  ;;  %v6044_v7 = vld [vmem:[#allocation29_spill] sm:$0xff] }
 0x46e   : > { %v3988_v21 = vpop.permute.xlu0 %3987  ;;  %v5523_v58 = vpop.permute.xlu1 %4172  ;;  %v2912_v48 = vsel %vm2894_vm7, %v6042_v0, %v4085_v47  ;;  %v3885_v54 = vunpack.i.h.bf16 %v6044_v7  ;;  %v2944_v62 = vsel %vm2927_vm8, %v2911_v31, %v4089_v20  ;;  %v4144_v46 = vunpack.i.l.bf16 %v5383_v22 }
 0x46f   : > { %v3990_v14 = vunpack.i.h.bf16 %v3988_v21  ;;  %v3989_v35 = vunpack.i.l.bf16 %v3988_v21  ;;  %v3884_v21 = vunpack.i.l.bf16 %v6044_v7  ;;  %v2945_v27 = vsel %vm2927_vm8, %v2912_v48, %v4090_v32 }
 0x470   : > { %4347 = vrot.lane.b32.xlu1 %v5421_v16, %s4432_s15  ;;  %v4150_v4 = vunpack.i.h.bf16 %v5410_v23  ;;  %v4149_v16 = vunpack.i.l.bf16 %v5410_v23  ;;  %v3092_v22 = vsel %vm3091_vm12, %v3059_v55, %v3864_v8  ;;  %v3093_v31 = vsel %vm3091_vm12, %v3060_v1, %v3865_v63 }
 0x471   : > { %v3001_v15 = vsel %vm752_vm1, %v2969_v49, %v3989_v35  ;;  %v3002_v7 = vsel %vm752_vm1, %v2970_v39, %v3990_v14  ;;  %v2977_v48 = vsel %vm2960_vm9, %v2944_v62, %v3999_v28  ;;  %v3124_v63 = vsel %vm755_vm2, %v3092_v22, %v3869_v26  ;;  %v6045_v62 = vld [vmem:[#allocation32_spill] sm:$0xff] }
 0x472   : > { %v3993_v5 = vpop.permute.xlu0 %3992  ;;  %v5541_v60 = vpop.permute.xlu1 %4177  ;;  %v3009_v49 = vsel %vm752_vm1, %v2977_v48, %v4144_v46  ;;  %v3125_v8 = vsel %vm755_vm2, %v3093_v31, %v3870_v59 }
 0x473   : > { %v3995_v47 = vunpack.i.h.bf16 %v3993_v5  ;;  %v3994_v0 = vunpack.i.l.bf16 %v3993_v5  ;;  %v2978_v5 = vsel %vm2960_vm9, %v2945_v27, %v4000_v44  ;;  %v3042_v55 = vsel %vm3025_vm10, %v3009_v49, %v4149_v16 }
 0x474   : > { %4352 = vrot.lane.b32.xlu1 %v5447_v10, %s4444_s19  ;;  %v3010_v39 = vsel %vm752_vm1, %v2978_v5, %v4145_v13  ;;  %v4035_v27 = vunpack.i.h.bf16 %v6045_v62  ;;  %v4034_v13 = vunpack.i.l.bf16 %v6045_v62  ;;  %v3156_v26 = vpack.c.bf16 %v3125_v8, %v3124_v63 }
 0x475   : > { %v3034_v20 = vsel %vm3025_vm10, %v3001_v15, %v3994_v0  ;;  %v3035_v32 = vsel %vm3025_vm10, %v3002_v7, %v3995_v47  ;;  %v3043_v1 = vsel %vm3025_vm10, %v3010_v39, %v4150_v4 }
 0x476   : > { %v4013_v23 = vpop.permute.xlu0 %4012  ;;  %v3067_v35 = vsel %vm3058_vm11, %v3034_v20, %v3884_v21  ;;  %v3068_v14 = vsel %vm3058_vm11, %v3035_v32, %v3885_v54  ;;  %v4183_v10 = vpop.permute.xlu1 %4182  ;;  %v3075_v20 = vsel %vm3058_vm11, %v3042_v55, %v4034_v13  ;;  %v3076_v32 = vsel %vm3058_vm11, %v3043_v1, %v4035_v27 }
 0x477   : > { %v4015_v47 = vunpack.i.h.bf16 %v4013_v23  ;;  %v4014_v0 = vunpack.i.l.bf16 %v4013_v23  ;;  %v4185_v54 = vunpack.i.h.bf16 %v4183_v10  ;;  %v4184_v21 = vunpack.i.l.bf16 %v4183_v10 }
 0x478   : > { %4362 = vrot.lane.b32.xlu1 %v5335_v2, %s4445_s20  ;;  %v3220_v63 = vsel %vm3215_vm13, %v3156_v26, 0 }
 0x479   : > { %v3100_v44 = vsel %vm3091_vm12, %v3067_v35, %v4014_v0  ;;  %v3101_v28 = vsel %vm3091_vm12, %v3068_v14, %v4015_v47  ;;  %v3108_v22 = vsel %vm3091_vm12, %v3075_v20, %v4184_v21  ;;  %v3109_v31 = vsel %vm3091_vm12, %v3076_v32, %v4185_v54 }
 0x47a   : > { %v4018_v46 = vpop.permute.xlu0 %4017  ;;  %v4188_v15 = vpop.permute.xlu1 %4187  ;;  %v3925_v21 = vunpack.i.h.bf16 %v5271_v53  ;;  %v4130_v20 = vunpack.i.h.bf16 %v5319_v50  ;;  %v4129_v32 = vunpack.i.l.bf16 %v5319_v50 }
 0x47b   : > { %v4020_v16 = vunpack.i.h.bf16 %v4018_v46  ;;  %v4019_v4 = vunpack.i.l.bf16 %v4018_v46  ;;  %v4190_v7 = vunpack.i.h.bf16 %v4188_v15  ;;  %v4189_v59 = vunpack.i.l.bf16 %v4188_v15 }
 0x47c   : > { %4367 = vrot.lane.b32.xlu1 %v5340_v19, %s4436_s17 }
 0x47d   : > { %v5576_v48 = vsel %vm755_vm2, %v3100_v44, %v4019_v4  ;;  %v5579_v5 = vsel %vm755_vm2, %v3101_v28, %v4020_v16  ;;  %v3140_v35 = vsel %vm755_vm2, %v3108_v22, %v4189_v59  ;;  %v3141_v14 = vsel %vm755_vm2, %v3109_v31, %v4190_v7 }
 0x47e   : > { %v4023_v23 = vpop.permute.xlu0 %4022  ;;  %v3160_v49 = vpack.c.bf16 %v5579_v5, %v5576_v48  ;;  %v5585_v0 = vpop.permute.xlu1 %4192  ;;  %v3164_v10 = vpack.c.bf16 %v3141_v14, %v3140_v35  ;;  %v4125_v7 = vunpack.i.h.bf16 %v5295_v25  ;;  %v4135_v35 = vunpack.i.h.bf16 %v5338_v34  ;;  %v6047_v14 = vld [vmem:[#allocation16_spill] sm:$0xff] }
 0x47f   : > { %v4025_v39 = vunpack.i.h.bf16 %v4023_v23  ;;  %v4024_v47 = vunpack.i.l.bf16 %v4023_v23 }
 0x480   : > { %3573 = vmatprep.subr.msk.bf16.mxu0 %vm3215_vm13, %v3164_v10  ;;  %4372 = vrot.lane.b32.xlu1 %v5335_v2, %s4432_s15 }
 0x481   : > { %v3003_v55 = vsel %vm752_vm1, %v5471_v12, %v4024_v47  ;;  %v3004_v1 = vsel %vm752_vm1, %v5474_v3, %v4025_v39  ;;  %3503 = vmatpush3.bf16.xpose.msra.mxu0 %v3220_v63  ;;  %v3924_v12 = vunpack.i.l.bf16 %v5271_v53  ;;  %v6046_v53 = vld [vmem:[#allocation27_spill] sm:$0xff]  ;;  %v4155_v63 = vunpack.i.h.bf16 %v5437_v17 }
 0x482   : > { %v4028_v8 = vpop.permute.xlu0 %4027  ;;  %v5595_v54 = vpop.permute.xlu1 %4197  ;;  %v4005_v15 = vunpack.i.h.bf16 %v6046_v53  ;;  %v4004_v26 = vunpack.i.l.bf16 %v6046_v53  ;;  %v6048_v47 = vld [vmem:[#allocation15_spill] sm:$0xff] }
 0x483   : > { %v4030_v44 = vunpack.i.h.bf16 %v4028_v8  ;;  %v4029_v28 = vunpack.i.l.bf16 %v4028_v8 }
 0x484   : > { %4377 = vrot.lane.b32.xlu1 %v5340_v19, %s4444_s19  ;;  %v4124_v19 = vunpack.i.l.bf16 %v5295_v25  ;;  %v4140_v25 = vunpack.i.h.bf16 %v5364_v30 }
 0x485   : > { %v3036_v62 = vsel %vm3025_vm10, %v3003_v55, %v4029_v28  ;;  %v3037_v3 = vsel %vm3025_vm10, %v3004_v1, %v4030_v44  ;;  %v4139_v55 = vunpack.i.l.bf16 %v5364_v30 }
 0x486   : > { %v4043_v2 = vpop.permute.xlu0 %4042  ;;  %v3069_v27 = vsel %vm3058_vm11, %v3036_v62, %v3924_v12  ;;  %v3070_v13 = vsel %vm3058_vm11, %v3037_v3, %v3925_v21  ;;  %v5605_v46 = vpop.permute.xlu1 %4202 }
 0x487   : > { %v4045_v16 = vunpack.i.h.bf16 %v4043_v2  ;;  %v4044_v4 = vunpack.i.l.bf16 %v4043_v2  ;;  %v4160_v2 = vunpack.i.h.bf16 %v5453_v52 }
 0x488   : > { %4387 = vrot.lane.b32.xlu1 %v5406_v43, %s4445_s20  ;;  %v4134_v43 = vunpack.i.l.bf16 %v5338_v34  ;;  %v4154_v34 = vunpack.i.l.bf16 %v5437_v17 }
 0x489   : > { %v2910_v39 = vsel %vm2894_vm7, %v6047_v14, %v4045_v16  ;;  %v2909_v10 = vsel %vm2894_vm7, %v6048_v47, %v4044_v4  ;;  %v3929_v47 = vunpack.i.l.bf16 %v5289_v9 }
 0x48a   : > { %v4048_v59 = vpop.permute.xlu0 %4047  ;;  %v5615_v23 = vpop.permute.xlu1 %4207 }
 0x48b   : > { %v4050_v22 = vunpack.i.h.bf16 %v4048_v59  ;;  %v4049_v31 = vunpack.i.l.bf16 %v4048_v59  ;;  %v6049_v59 = vld [vmem:[#allocation28_spill] sm:$0xff] }
 0x48c   : > { %4392 = vrot.lane.b32.xlu1 %v5430_v41, %s4436_s17  ;;  %v4159_v41 = vunpack.i.l.bf16 %v5453_v52 }
 0x48d   : > { %v2942_v50 = vsel %vm2927_vm8, %v2909_v10, %v4049_v31  ;;  %v2943_v1 = vsel %vm2927_vm8, %v2910_v39, %v4050_v22  ;;  %v3930_v39 = vunpack.i.h.bf16 %v5289_v9 }
 0x48e   : > { %v2975_v8 = vsel %vm2960_vm9, %v2942_v50, %v4124_v19  ;;  %v2976_v44 = vsel %vm2960_vm9, %v2943_v1, %v4125_v7  ;;  %v4053_v28 = vpop.permute.xlu0 %4052  ;;  %v5635_v3 = vpop.permute.xlu1 %4222  ;;  %v6050_v50 = vld [vmem:[#allocation6_spill] sm:$0xff] }
 0x48f   : > { %v3007_v21 = vsel %vm752_vm1, %v2975_v8, %v4129_v32  ;;  %v3008_v30 = vsel %vm752_vm1, %v2976_v44, %v4130_v20  ;;  %v4055_v12 = vunpack.i.h.bf16 %v4053_v28  ;;  %v4054_v62 = vunpack.i.l.bf16 %v4053_v28 }
 0x490   : > { %v3040_v16 = vsel %vm3025_vm10, %v3007_v21, %v4134_v43  ;;  %v3041_v17 = vsel %vm3025_vm10, %v3008_v30, %v4135_v35  ;;  %v4010_v20 = vunpack.i.h.bf16 %v6049_v59  ;;  %v4009_v32 = vunpack.i.l.bf16 %v6049_v59 }
 0x491   : > { %v3102_v4 = vsel %vm3091_vm12, %v3069_v27, %v4054_v62  ;;  %v3103_v53 = vsel %vm3091_vm12, %v3070_v13, %v4055_v12  ;;  %v3073_v7 = vsel %vm3058_vm11, %v3040_v16, %v4139_v55  ;;  %v3074_v19 = vsel %vm3058_vm11, %v3041_v17, %v4140_v25 }
 0x492   : > { %v4058_v22 = vpop.permute.xlu0 %4057  ;;  %v3106_v31 = vsel %vm3091_vm12, %v3073_v7, %v4154_v34  ;;  %v3107_v52 = vsel %vm3091_vm12, %v3074_v19, %v4155_v63  ;;  %v5649_v35 = vpop.permute.xlu1 %4227  ;;  %v2908_v1 = vsel %vm2894_vm7, %v6050_v50, %v4005_v15  ;;  %v6051_v63 = vld [vmem:[#allocation5_spill] sm:$0xff]  ;;  %v3177_v15 = vld [vmem:[%s5964_s6] sm:$0xf]  ;;  %v4446_v16 = vmov 0  }
 0x493   : > { %v4060_v43 = vunpack.i.h.bf16 %v4058_v22  ;;  %v4059_v14 = vunpack.i.l.bf16 %v4058_v22  ;;  %v5652_v27 = vsel %vm755_vm2, %v3106_v31, %v4159_v41  ;;  %v5655_v13 = vsel %vm755_vm2, %v3107_v52, %v4160_v2  ;;  %4416 = vset.pattern.permute.xlu0 %v4446_v16 }
 0x494   : > { %v3163_v10 = vpack.c.bf16 %v5655_v13, %v5652_v27  ;;  %v2907_v34 = vsel %vm2894_vm7, %v6051_v63, %v4004_v26  ;;  %v2941_v28 = vsel %vm2927_vm8, %v2908_v1, %v4010_v20  ;;  %3180 = vperm.xlu0 %4416, %v3177_v15   ;;  %v3965_v19 = vunpack.i.h.bf16 %v5404_v51  ;;  %v6052_v63 = vld [vmem:[#allocation33_spill] sm:$0xff] }
 0x495   : > { %v5662_v25 = vsel %vm755_vm2, %v3102_v4, %v4059_v14  ;;  %v5665_v55 = vsel %vm755_vm2, %v3103_v53, %v4060_v43  ;;  %v2940_v9 = vsel %vm2927_vm8, %v2907_v34, %v4009_v32  ;;  %v2974_v2 = vsel %vm2960_vm9, %v2941_v28, %v3930_v39 }
 0x496   : > { %v4063_v8 = vpop.permute.xlu0 %4062  ;;  %v3161_v44 = vpack.c.bf16 %v5665_v55, %v5662_v25  ;;  %v5675_v12 = vpop.permute.xlu1 %4232  ;;  %v2973_v62 = vsel %vm2960_vm9, %v2940_v9, %v3929_v47  ;;  %v3964_v59 = vunpack.i.l.bf16 %v5404_v51  ;;  %v4175_v22 = vunpack.i.h.bf16 %v5523_v58 }
 0x497   : > { %v4065_v21 = vunpack.i.h.bf16 %v4063_v8  ;;  %v4064_v30 = vunpack.i.l.bf16 %v4063_v8  ;;  %v4174_v31 = vunpack.i.l.bf16 %v5523_v58  ;;  %v4180_v39 = vunpack.i.h.bf16 %v5541_v60 }
 0x498   : > { %v4179_v47 = vunpack.i.l.bf16 %v5541_v60  ;;  %v4040_v34 = vunpack.i.h.bf16 %v6052_v63  ;;  %v4039_v8 = vunpack.i.l.bf16 %v6052_v63  ;;  %v4075_v9 = vunpack.i.h.bf16 %v5186_v61 }
 0x499   : > { %v3005_v26 = vsel %vm752_vm1, %v2973_v62, %v4064_v30  ;;  %v3006_v41 = vsel %vm752_vm1, %v2974_v2, %v4065_v21  ;;  %v4074_v58 = vunpack.i.l.bf16 %v5186_v61  ;;  %v4080_v28 = vunpack.i.h.bf16 %v5199_v37  ;;  %v6053_v21 = vld [vmem:[#allocation12_spill] sm:$0xff]  ;;  %v6054_v62 = vld [vmem:[#allocation11_spill] sm:$0xff] }
 0x49a   : > { %v4068_v17 = vpop.permute.xlu0 %4067  ;;  %v5684_v7 = vpop.permute.xlu1 %4237  ;;  %v2916_v30 = vsel %vm2894_vm7, %v6053_v21, %v4175_v22  ;;  %v2915_v60 = vsel %vm2894_vm7, %v6054_v62, %v4174_v31  ;;  %v4194_v61 = vunpack.i.l.bf16 %v5585_v0  ;;  %v4199_v22 = vunpack.i.l.bf16 %v5595_v54 }
 0x49b   : > { %v4070_v4 = vunpack.i.h.bf16 %v4068_v17  ;;  %v4069_v53 = vunpack.i.l.bf16 %v4068_v17  ;;  %v2948_v15 = vsel %vm2927_vm8, %v2915_v60, %v4179_v47  ;;  %v4224_v47 = vunpack.i.l.bf16 %v5635_v3 }
 0x49c   : > { %v4230_v60 = vunpack.i.h.bf16 %v5649_v35 }
 0x49d   : > { %v3038_v20 = vsel %vm3025_vm10, %v3005_v26, %v4069_v53  ;;  %v3039_v32 = vsel %vm3025_vm10, %v3006_v41, %v4070_v4  ;;  %v2949_v26 = vsel %vm2927_vm8, %v2916_v30, %v4180_v39  ;;  %v4195_v4 = vunpack.i.h.bf16 %v5585_v0  ;;  %v6055_v53 = vld [vmem:[#allocation8_spill] sm:$0xff] }
 0x49e   : > { %v4103_v52 = vpop.permute.xlu0 %4102  ;;  %v3071_v43 = vsel %vm3058_vm11, %v3038_v20, %v3964_v59  ;;  %v3072_v14 = vsel %vm3058_vm11, %v3039_v32, %v3965_v19  ;;  %v5696_v50 = vpop.permute.xlu1 %4242  ;;  %v6056_v59 = vld [vmem:[#allocation7_spill] sm:$0xff]  ;;  %v4200_v32 = vunpack.i.h.bf16 %v5595_v54  ;;  %v4225_v39 = vunpack.i.h.bf16 %v5635_v3 }
 0x49f   : > { %v4105_v51 = vunpack.i.h.bf16 %v4103_v52  ;;  %v4104_v1 = vunpack.i.l.bf16 %v4103_v52 }
 0x4a1   : > { %v2914_v19 = vsel %vm2894_vm7, %v6055_v53, %v4105_v51  ;;  %v2913_v20 = vsel %vm2894_vm7, %v6056_v59, %v4104_v1  ;;  %v4234_v53 = vunpack.i.l.bf16 %v5675_v12 }
 0x4a2   : > { %v4108_v2 = vpop.permute.xlu0 %4107  ;;  %v5709_v17 = vpop.permute.xlu1 %4247 }
 0x4a3   : > { %v4110_v41 = vunpack.i.h.bf16 %v4108_v2  ;;  %v4109_v16 = vunpack.i.l.bf16 %v4108_v2  ;;  %v4229_v2 = vunpack.i.l.bf16 %v5649_v35 }
 0x4a5   : > { %v2946_v31 = vsel %vm2927_vm8, %v2913_v20, %v4109_v16  ;;  %v2947_v52 = vsel %vm2927_vm8, %v2914_v19, %v4110_v41 }
 0x4a6   : > { %v2979_v0 = vsel %vm2960_vm9, %v2946_v31, %v4039_v8  ;;  %v2980_v63 = vsel %vm2960_vm9, %v2947_v52, %v4040_v34  ;;  %v4113_v51 = vpop.permute.xlu0 %4112  ;;  %v5727_v54 = vpop.permute.xlu1 %4252  ;;  %v4239_v31 = vunpack.i.l.bf16 %v5684_v7  ;;  %v4417_v52 = vld [vmem:[%s5963_s5] sm:$0xff]  }
 0x4a7   : > { %v3011_v21 = vsel %vm752_vm1, %v2979_v0, %v4194_v61  ;;  %v3012_v1 = vsel %vm752_vm1, %v2980_v63, %v4195_v4  ;;  %v4115_v30 = vunpack.i.h.bf16 %v4113_v51  ;;  %v4114_v62 = vunpack.i.l.bf16 %v4113_v51 }
 0x4a8   : > { %v3044_v41 = vsel %vm3025_vm10, %v3011_v21, %v4199_v22  ;;  %v3045_v3 = vsel %vm3025_vm10, %v3012_v1, %v4200_v32  ;;  %v4235_v61 = vunpack.i.h.bf16 %v5675_v12  ;;  %v2982_v63 = vsel %vm2960_vm9, %v2949_v26, %v4080_v28 }
 0x4a9   : > { %v3104_v8 = vsel %vm3091_vm12, %v3071_v43, %v4114_v62  ;;  %v3105_v34 = vsel %vm3091_vm12, %v3072_v14, %v4115_v30  ;;  %v3077_v16 = vsel %vm3058_vm11, %v3044_v41, %v4074_v58  ;;  %v3078_v4 = vsel %vm3058_vm11, %v3045_v3, %v4075_v9 }
 0x4aa   : > { %v4118_v19 = vpop.permute.xlu0 %4117  ;;  %v3110_v59 = vsel %vm3091_vm12, %v3077_v16, %v4224_v47  ;;  %v3111_v35 = vsel %vm3091_vm12, %v3078_v4, %v4225_v39  ;;  %v5741_v32 = vpop.permute.xlu1 %4257  ;;  %v4079_v58 = vunpack.i.l.bf16 %v5199_v37  ;;  %v4240_v9 = vunpack.i.h.bf16 %v5684_v7 }
 0x4ab   : > { %v4120_v20 = vunpack.i.h.bf16 %v4118_v19  ;;  %v4119_v22 = vunpack.i.l.bf16 %v4118_v19  ;;  %v3142_v43 = vsel %vm755_vm2, %v3110_v59, %v4229_v2  ;;  %v3143_v14 = vsel %vm755_vm2, %v3111_v35, %v4230_v60  ;;  %v4419_v19 = vld [vmem:[%s5963_s5 + $0x10] ss:$0 sps:$4 sm:$0x33]  }
 0x4ac   : > { %v3165_v12 = vpack.c.bf16 %v3143_v14, %v3142_v43  ;;  %v2981_v0 = vsel %vm2960_vm9, %v2948_v15, %v4079_v58  ;;  %v6057_v7 = vpack.c.bf16 %v5232_v29, %v5229_v18  ;;  %v3014_v30 = vsel %vm752_vm1, %v2982_v63, %v4235_v61  ;;  %v4418_v18 = vld [vmem:[%s5963_s5 + $0x8] sm:$0xff]  }
 0x4ad   : > { %v5752_v39 = vsel %vm755_vm2, %v3104_v8, %v4119_v22  ;;  %v5755_v47 = vsel %vm755_vm2, %v3105_v34, %v4120_v20  ;;  %v3013_v1 = vsel %vm752_vm1, %v2981_v0, %v4234_v53  ;;  %v3047_v28 = vsel %vm3025_vm10, %v3014_v30, %v4240_v9  ;;  %v6058_v9 = vld [vmem:[#allocation14_spill] sm:$0xff] }
 0x4ae   : > { %v4213_v37 = vpop.permute.xlu0 %4212  ;;  %3574 = vmatprep.subr.msk.bf16.mxu0 %vm3215_vm13, %v3165_v12  ;;  %v3223_v51 = vsel %vm3215_vm13, %v6057_v7, 0  ;;  %v3162_v21 = vpack.c.bf16 %v5755_v47, %v5752_v39  ;;  %v4263_v62 = vpop.permute.xlu1 %4262  ;;  %v3046_v15 = vsel %vm3025_vm10, %v3013_v1, %v4239_v31  ;;  %v4095_v29 = vunpack.i.h.bf16 %v5260_v56  ;;  %v6059_v12 = vld [vmem:[#allocation13_spill] sm:$0xff] }
 0x4af   : > { %3505 = vmatpush3.bf16.xpose.msra.mxu0 %v3223_v51  ;;  %3199 = vxpose.xlu1.c.b16.start [1/3] (short) (narrow) %v4417_v52, 16  ;;  %v4094_v26 = vunpack.i.l.bf16 %v5260_v56  ;;  %v4265_v60 = vunpack.i.h.bf16 %v4263_v62  ;;  %v4264_v2 = vunpack.i.l.bf16 %v4263_v62  ;;  %v4215_v16 = vunpack.i.h.bf16 %v4213_v37 }
 0x4b0   : > { %v3080_v8 = vsel %vm3058_vm11, %v3047_v28, %v4095_v29  ;;  %v4214_v4 = vunpack.i.l.bf16 %v4213_v37  ;;  %v6060_v0 = vpack.c.bf16 %v5357_v11, %v5354_v36  ;;  %v4100_v30 = vunpack.i.h.bf16 %v5277_v38 }
 0x4b1   : > { %v3079_v3 = vsel %vm3058_vm11, %v3046_v15, %v4094_v26  ;;  %v3113_v56 = vsel %vm3091_vm12, %v3080_v8, %v4265_v60  ;;  %v2918_v31 = vsel %vm2894_vm7, %v6058_v9, %v4215_v16  ;;  %v4099_v62 = vunpack.i.l.bf16 %v5277_v38 }
 0x4b2   : > { %v4218_v41 = vpop.permute.xlu0 %4217  ;;  %v4268_v34 = vpop.permute.xlu1 %4267  ;;  %v3112_v59 = vsel %vm3091_vm12, %v3079_v3, %v4264_v2  ;;  %v2917_v52 = vsel %vm2894_vm7, %v6059_v12, %v4214_v4  ;;  %v3226_v63 = vsel %vm3215_vm13, %v6060_v0, 0  ;;  %v4165_v29 = vunpack.i.h.bf16 %v5478_v45 }
 0x4b3   : > { %v4270_v61 = vunpack.i.h.bf16 %v4268_v34  ;;  %v4269_v53 = vunpack.i.l.bf16 %v4268_v34  ;;  %3200 = vxpose.xlu1.c.b16.cont [2/3] (short) (narrow) %v4418_v18, 16  ;;  %v4220_v35 = vunpack.i.h.bf16 %v4218_v41  ;;  %v4219_v20 = vunpack.i.l.bf16 %v4218_v41 }
 0x4b4   : > { %v4164_v26 = vunpack.i.l.bf16 %v5478_v45 }
 0x4b5   : > { %v3144_v22 = vsel %vm755_vm2, %v3112_v59, %v4269_v53  ;;  %v3145_v43 = vsel %vm755_vm2, %v3113_v56, %v4270_v61  ;;  %v2950_v37 = vsel %vm2927_vm8, %v2917_v52, %v4219_v20  ;;  %v2951_v7 = vsel %vm2927_vm8, %v2918_v31, %v4220_v35 }
 0x4b6   : > { %v3166_v14 = vpack.c.bf16 %v3145_v43, %v3144_v22  ;;  %v4273_v58 = vpop.permute.xlu1 %4272  ;;  %v2983_v28 = vsel %vm2960_vm9, %v2950_v37, %v4099_v62  ;;  %v2984_v36 = vsel %vm2960_vm9, %v2951_v7, %v4100_v30  ;;  %v5809_v4 = vpop.permute.xlu0 %4287  ;;  %v4254_v59 = vunpack.i.l.bf16 %v5727_v54 }
 0x4b7   : > { %3201 = vxpose.xlu1.c.b16.end [3/3] (short) (narrow) %v4419_v19, 16  ;;  %v4275_v51 = vunpack.i.h.bf16 %v4273_v58  ;;  %v4274_v1 = vunpack.i.l.bf16 %v4273_v58  ;;  %v4255_v19 = vunpack.i.h.bf16 %v5727_v54  ;;  %v4260_v20 = vunpack.i.h.bf16 %v5741_v32 }
 0x4b8   : > { %3575 = vmatprep.subr.msk.bf16.mxu0 %vm3215_vm13, %v3166_v14  ;;  %v4259_v22 = vunpack.i.l.bf16 %v5741_v32  ;;  %v2919_v0 = vsel %vm2894_vm7, %v4948_v40, %v4254_v59  ;;  %v6061_v32 = vpack.c.bf16 %v5512_v24, %v5509_v6  ;;  %v4170_v30 = vunpack.i.h.bf16 %v5498_v57 }
 0x4b9   : > { %3507 = vmatpush3.bf16.xpose.msra.mxu0 %v3226_v63  ;;  %v3015_v60 = vsel %vm752_vm1, %v2983_v28, %v4274_v1  ;;  %v3016_v2 = vsel %vm752_vm1, %v2984_v36, %v4275_v51  ;;  %v2920_v54 = vsel %vm2894_vm7, %v4951_v42, %v4255_v19  ;;  %v4169_v42 = vunpack.i.l.bf16 %v5498_v57 }
 0x4ba   : > { %v4278_v15 = vpop.permute.xlu1 %4277  ;;  %v4293_v31 = vpop.permute.xlu0 %4292  ;;  %v3229_v63 = vsel %vm3215_vm13, %v6061_v32, 0  ;;  %v2952_v37 = vsel %vm2927_vm8, %v2919_v0, %v4259_v22  ;;  %v2953_v7 = vsel %vm2927_vm8, %v2920_v54, %v4260_v20  ;;  %v4205_v28 = vunpack.i.h.bf16 %v5605_v46  ;;  %v6062_v0 = vld [vmem:[#allocation17_spill] sm:$0xff] }
 0x4bb   : > { %v4280_v11 = vunpack.i.h.bf16 %v4278_v15  ;;  %v4279_v18 = vunpack.i.l.bf16 %v4278_v15  ;;  %v2985_v40 = vsel %vm2960_vm9, %v2952_v37, %v4169_v42  ;;  %v2986_v6 = vsel %vm2960_vm9, %v2953_v7, %v4170_v30 }
 0x4bc   : > { %v4204_v36 = vunpack.i.l.bf16 %v5605_v46  ;;  %v4294_v19 = vunpack.i.l.bf16 %v4293_v31  ;;  %v3232_v32 = vsel %vm3215_vm13, %v3160_v49, 0 }
 0x4bd   : > { %v3048_v41 = vsel %vm3025_vm10, %v3015_v60, %v4279_v18  ;;  %v3049_v38 = vsel %vm3025_vm10, %v3016_v2, %v4280_v11 }
 0x4be   : > { %v5805_v3 = vpop.permute.xlu1 %4282  ;;  %v3081_v8 = vsel %vm3058_vm11, %v3048_v41, %v4164_v26  ;;  %v3082_v34 = vsel %vm3058_vm11, %v3049_v38, %v4165_v29  ;;  %v4298_v11 = vpop.permute.xlu0 %4297 }
 0x4bf   : > { %v4299_v20 = vunpack.i.l.bf16 %v4298_v11 }
 0x4c2   : > { %v4303_v16 = vpop.permute.xlu1 %4302  ;;  %v5844_v38 = vpop.permute.xlu0 %4322 }
 0x4c3   : > { %v4305_v61 = vunpack.i.h.bf16 %v4303_v16  ;;  %v4304_v53 = vunpack.i.l.bf16 %v4303_v16 }
 0x4c5   : > { %v3115_v43 = vsel %vm3091_vm12, %v3082_v34, %v4305_v61  ;;  %v3114_v14 = vsel %vm3091_vm12, %v3081_v8, %v4304_v53 }
 0x4c6   : > { %v4308_v45 = vpop.permute.xlu1 %4307  ;;  %v5848_v34 = vpop.permute.xlu0 %4357 }
 0x4c7   : > { %v4310_v56 = vunpack.i.h.bf16 %v4308_v45  ;;  %v4309_v35 = vunpack.i.l.bf16 %v4308_v45  ;;  %v4295_v45 = vunpack.i.h.bf16 %v4293_v31  ;;  %v2921_v31 = vsel %vm2894_vm7, %v6062_v0, %v4294_v19 }
 0x4c9   : > { %v3146_v58 = vsel %vm755_vm2, %v3114_v14, %v4309_v35  ;;  %v3147_v9 = vsel %vm755_vm2, %v3115_v43, %v4310_v56  ;;  %v4300_v35 = vunpack.i.h.bf16 %v4298_v11  ;;  %v2922_v54 = vsel %vm2894_vm7, %v5022_v33, %v4295_v45 }
 0x4ca   : > { %v3167_v12 = vpack.c.bf16 %v3147_v9, %v3146_v58  ;;  %v4313_v52 = vpop.permute.xlu1 %4312  ;;  %v4383_v9 = vpop.permute.xlu0 %4382  ;;  %v4209_v33 = vunpack.i.l.bf16 %v5615_v23 }
 0x4cb   : > { %v4315_v51 = vunpack.i.h.bf16 %v4313_v52  ;;  %v4314_v1 = vunpack.i.l.bf16 %v4313_v52  ;;  %v2955_v37 = vsel %vm2927_vm8, %v2922_v54, %v4300_v35  ;;  %v4385_v45 = vunpack.i.h.bf16 %v4383_v9 }
 0x4cc   : > { %3576 = vmatprep.subr.msk.bf16.mxu0 %vm3215_vm13, %v3167_v12  ;;  %v4384_v19 = vunpack.i.l.bf16 %v4383_v9  ;;  %v4289_v54 = vunpack.i.l.bf16 %v5809_v4 }
 0x4cd   : > { %3509 = vmatpush3.bf16.xpose.msra.mxu0 %v3229_v63  ;;  %v3018_v18 = vsel %vm752_vm1, %v2986_v6, %v4315_v51  ;;  %v3017_v29 = vsel %vm752_vm1, %v2985_v40, %v4314_v1  ;;  %v2954_v63 = vsel %vm2927_vm8, %v2921_v31, %v4299_v20  ;;  %v4210_v1 = vunpack.i.h.bf16 %v5615_v23  ;;  %v6064_v31 = vld [vmem:[#allocation30_spill] sm:$0xff] }
 0x4ce   : > { %v4318_v62 = vpop.permute.xlu1 %4317  ;;  %v2987_v42 = vsel %vm2960_vm9, %v2954_v63, %v4209_v33  ;;  %v4244_v40 = vunpack.i.l.bf16 %v5696_v50  ;;  %v4398_v6 = vpop.permute.xlu0 %4397 }
 0x4cf   : > { %v4320_v24 = vunpack.i.h.bf16 %v4318_v62  ;;  %v4319_v15 = vunpack.i.l.bf16 %v4318_v62  ;;  %v2988_v48 = vsel %vm2960_vm9, %v2955_v37, %v4210_v1  ;;  %v4245_v62 = vunpack.i.h.bf16 %v5696_v50 }
 0x4d0   : > { %v4399_v63 = vunpack.i.l.bf16 %v4398_v6 }
 0x4d1   : > { %v3050_v26 = vsel %vm3025_vm10, %v3017_v29, %v4319_v15  ;;  %v3051_v57 = vsel %vm3025_vm10, %v3018_v18, %v4320_v24 }
 0x4d2   : > { %v5840_v60 = vpop.permute.xlu1 %4327  ;;  %v3083_v2 = vsel %vm3058_vm11, %v3050_v26, %v4204_v36  ;;  %v3084_v41 = vsel %vm3058_vm11, %v3051_v57, %v4205_v28  ;;  %v4403_v57 = vpop.permute.xlu0 %4402 }
 0x4d3   : > { %v4330_v35 = vunpack.i.h.bf16 %v5840_v60  ;;  %v4329_v20 = vunpack.i.l.bf16 %v5840_v60  ;;  %v6063_v60 = vld [vmem:[#allocation31_spill] sm:$0xff]  ;;  %v4404_v37 = vunpack.i.l.bf16 %v4403_v57 }
 0x4d6   : > { %v5846_v8 = vpop.permute.xlu1 %4332  ;;  %v4408_v55 = vpop.permute.xlu0 %4407 }
 0x4d7   : > { %v4335_v9 = vunpack.i.h.bf16 %v5846_v8 }
 0x4da   : > { %v4338_v46 = vpop.permute.xlu1 %4337 }
 0x4db   : > { %v4340_v16 = vunpack.i.h.bf16 %v4338_v46  ;;  %v4339_v61 = vunpack.i.l.bf16 %v4338_v46  ;;  %v4360_v46 = vunpack.i.h.bf16 %v5848_v34 }
 0x4dd   : > { %v3116_v22 = vsel %vm3091_vm12, %v3083_v2, %v4339_v61  ;;  %v3117_v43 = vsel %vm3091_vm12, %v3084_v41, %v4340_v16  ;;  %v4359_v16 = vunpack.i.l.bf16 %v5848_v34  ;;  %v3235_v34 = vsel %vm3215_vm13, %v3161_v44, 0 }
 0x4de   : > { %v4343_v53 = vpop.permute.xlu1 %4342  ;;  %v2926_v0 = vsel %vm2894_vm7, %v6063_v60, %v4360_v46 }
 0x4df   : > { %v4345_v59 = vunpack.i.h.bf16 %v4343_v53  ;;  %v4344_v56 = vunpack.i.l.bf16 %v4343_v53  ;;  %v2925_v25 = vsel %vm2894_vm7, %v6064_v31, %v4359_v16 }
 0x4e0   : > { %v2958_v44 = vsel %vm2927_vm8, %v2925_v25, %v4384_v19  ;;  %v4284_v19 = vunpack.i.l.bf16 %v5805_v3 }
 0x4e1   : > { %v3148_v14 = vsel %vm755_vm2, %v3116_v22, %v4344_v56  ;;  %v3149_v58 = vsel %vm755_vm2, %v3117_v43, %v4345_v59 }
 0x4e2   : > { %v3168_v12 = vpack.c.bf16 %v3149_v58, %v3148_v14  ;;  %v4348_v52 = vpop.permute.xlu1 %4347  ;;  %v4250_v14 = vunpack.i.h.bf16 %v5709_v17  ;;  %v4249_v58 = vunpack.i.l.bf16 %v5709_v17  ;;  %v2959_v17 = vsel %vm2927_vm8, %v2926_v0, %v4385_v45 }
 0x4e3   : > { %v4350_v7 = vunpack.i.h.bf16 %v4348_v52  ;;  %v4349_v51 = vunpack.i.l.bf16 %v4348_v52  ;;  %v4290_v52 = vunpack.i.h.bf16 %v5809_v4  ;;  %v4285_v45 = vunpack.i.h.bf16 %v5805_v3 }
 0x4e4   : > { %3577 = vmatprep.subr.msk.bf16.mxu0 %vm3215_vm13, %v3168_v12  ;;  %v4334_v12 = vunpack.i.l.bf16 %v5846_v8  ;;  %v4405_v8 = vunpack.i.h.bf16 %v4403_v57 }
 0x4e5   : > { %3511 = vmatpush3.bf16.xpose.msra.mxu0 %v3232_v32  ;;  %v3020_v24 = vsel %vm752_vm1, %v2988_v48, %v4350_v7  ;;  %v3019_v15 = vsel %vm752_vm1, %v2987_v42, %v4349_v51  ;;  %v4400_v32 = vunpack.i.h.bf16 %v4398_v6  ;;  %v6065_v7 = vld [vmem:[#allocation19_spill] sm:$0xff]  ;;  %v6066_v51 = vld [vmem:[#allocation18_spill] sm:$0xff] }
 0x4e6   : > { %v4353_v30 = vpop.permute.xlu1 %4352  ;;  %v2924_v4 = vsel %vm2894_vm7, %v6065_v7, %v4330_v35  ;;  %v2923_v1 = vsel %vm2894_vm7, %v6066_v51, %v4329_v20 }
 0x4e7   : > { %v4355_v5 = vunpack.i.h.bf16 %v4353_v30  ;;  %v4354_v49 = vunpack.i.l.bf16 %v4353_v30  ;;  %v2956_v30 = vsel %vm2927_vm8, %v2923_v1, %v4334_v12  ;;  %v2957_v42 = vsel %vm2927_vm8, %v2924_v4, %v4335_v9 }
 0x4e9   : > { %v3052_v28 = vsel %vm3025_vm10, %v3019_v15, %v4354_v49  ;;  %v3053_v23 = vsel %vm3025_vm10, %v3020_v24, %v4355_v5  ;;  %v2991_v49 = vsel %vm2960_vm9, %v2958_v44, %v4289_v54  ;;  %v4325_v24 = vunpack.i.h.bf16 %v5844_v38 }
 0x4ea   : > { %v4363_v36 = vpop.permute.xlu1 %4362  ;;  %v3085_v11 = vsel %vm3058_vm11, %v3052_v28, %v4244_v40  ;;  %v3086_v18 = vsel %vm3058_vm11, %v3053_v23, %v4245_v62  ;;  %v2992_v62 = vsel %vm2960_vm9, %v2959_v17, %v4290_v52  ;;  %v4324_v15 = vunpack.i.l.bf16 %v5844_v38 }
 0x4eb   : > { %v4365_v29 = vunpack.i.h.bf16 %v4363_v36  ;;  %v4364_v26 = vunpack.i.l.bf16 %v4363_v36  ;;  %v3023_v28 = vsel %vm752_vm1, %v2991_v49, %v4399_v63  ;;  %v3024_v23 = vsel %vm752_vm1, %v2992_v62, %v4400_v32 }
 0x4ec   : > { %v3056_v36 = vsel %vm3025_vm10, %v3023_v28, %v4404_v37  ;;  %v3238_v44 = vsel %vm3215_vm13, %v3162_v21, 0  ;;  %v3241_v17 = vsel %vm3215_vm13, %v3163_v10, 0 }
 0x4ed   : > { %v3118_v61 = vsel %vm3091_vm12, %v3085_v11, %v4364_v26  ;;  %v3119_v53 = vsel %vm3091_vm12, %v3086_v18, %v4365_v29  ;;  %v3057_v11 = vsel %vm3025_vm10, %v3024_v23, %v4405_v8  ;;  %v4413_v18 = vpop.permute.xlu0 %4412  ;;  %v2989_v29 = vsel %vm2960_vm9, %v2956_v30, %v4249_v58 }
 0x4ee   : > { %v4368_v2 = vpop.permute.xlu1 %4367  ;;  %v2990_v26 = vsel %vm2960_vm9, %v2957_v42, %v4250_v14  ;;  %v3089_v35 = vsel %vm3058_vm11, %v3056_v36, %v4324_v15  ;;  %v3090_v20 = vsel %vm3058_vm11, %v3057_v11, %v4325_v24 }
 0x4ef   : > { %v4370_v41 = vunpack.i.h.bf16 %v4368_v2  ;;  %v4369_v50 = vunpack.i.l.bf16 %v4368_v2  ;;  %v4410_v2 = vunpack.i.h.bf16 %v4408_v55 }
 0x4f1   : > { %v3150_v59 = vsel %vm755_vm2, %v3118_v61, %v4369_v50  ;;  %v3151_v56 = vsel %vm755_vm2, %v3119_v53, %v4370_v41  ;;  %v4409_v41 = vunpack.i.l.bf16 %v4408_v55  ;;  %v3123_v12 = vsel %vm3091_vm12, %v3090_v20, %v4410_v2 }
 0x4f2   : > { %v3169_v22 = vpack.c.bf16 %v3151_v56, %v3150_v59  ;;  %v4373_v43 = vpop.permute.xlu1 %4372  ;;  %v4415_v59 = vunpack.i.h.bf16 %v4413_v18  ;;  %v4414_v56 = vunpack.i.l.bf16 %v4413_v18 }
 0x4f3   : > { %v4375_v48 = vunpack.i.h.bf16 %v4373_v43  ;;  %v4374_v5 = vunpack.i.l.bf16 %v4373_v43  ;;  %v3122_v9 = vsel %vm3091_vm12, %v3089_v35, %v4409_v41 }
 0x4f4   : > { %3578 = vmatprep.subr.msk.bf16.mxu0 %vm3215_vm13, %v3169_v22  ;;  %v3154_v54 = vsel %vm755_vm2, %v3122_v9, %v4414_v56  ;;  %v3155_v60 = vsel %vm755_vm2, %v3123_v12, %v4415_v59 }
 0x4f5   : > { %3513 = vmatpush3.bf16.xpose.msra.mxu0 %v3235_v34  ;;  %v3021_v50 = vsel %vm752_vm1, %v2989_v29, %v4374_v5  ;;  %v3022_v38 = vsel %vm752_vm1, %v2990_v26, %v4375_v48  ;;  %v3171_v55 = vpack.c.bf16 %v3155_v60, %v3154_v54 }
 0x4f6   : > { %v4378_v33 = vpop.permute.xlu1 %4377 }
 0x4f7   : > { %v4380_v40 = vunpack.i.h.bf16 %v4378_v33  ;;  %v4379_v6 = vunpack.i.l.bf16 %v4378_v33 }
 0x4f9   : > { %v3054_v46 = vsel %vm3025_vm10, %v3021_v50, %v4379_v6  ;;  %v3055_v16 = vsel %vm3025_vm10, %v3022_v38, %v4380_v40 }
 0x4fa   : > { %v4388_v57 = vpop.permute.xlu1 %4387  ;;  %v3087_v43 = vsel %vm3058_vm11, %v3054_v46, %v4284_v19  ;;  %v3088_v34 = vsel %vm3058_vm11, %v3055_v16, %v4285_v45 }
 0x4fb   : > { %v4390_v61 = vunpack.i.h.bf16 %v4388_v57  ;;  %v4389_v53 = vunpack.i.l.bf16 %v4388_v57 }
 0x4fd   : > { %v3120_v52 = vsel %vm3091_vm12, %v3087_v43, %v4389_v53  ;;  %v3121_v3 = vsel %vm3091_vm12, %v3088_v34, %v4390_v61 }
 0x4fe   : > { %v4393_v22 = vpop.permute.xlu1 %4392 }
 0x4ff   : > { %v4395_v14 = vunpack.i.h.bf16 %v4393_v22  ;;  %v4394_v58 = vunpack.i.l.bf16 %v4393_v22 }
 0x501   : > { %v3152_v0 = vsel %vm755_vm2, %v3120_v52, %v4394_v58  ;;  %v3153_v31 = vsel %vm755_vm2, %v3121_v3, %v4395_v14 }
 0x502   : > { %v3170_v25 = vpack.c.bf16 %v3153_v31, %v3152_v0 }
 0x504   : > { %3579 = vmatprep.subr.msk.bf16.mxu0 %vm3215_vm13, %v3170_v25 }
 0x505   : > { %3515 = vmatpush3.bf16.xpose.msra.mxu0 %v3238_v44 }
 0x506   : > { %3580 = vmatprep.subr.msk.bf16.mxu0 %vm3215_vm13, %v3171_v55 }
 0x50d   : > { %3517 = vmatpush3.bf16.xpose.msra.mxu0 %v3241_v17 }
 0x513   : > { %v3181_v63 = vpop.permute.xlu0 %3180 }
 0x515   : > { %v3207_v32 = vpop.trf.xlu1 }
 0x516   : > { %3518 = vmatprep.mubr.msk.bf16.mxu0 %vm3215_vm13, %v3207_v32 }
 0x517   : > { %3519 = vmatmul.mubr.msk.bf16.vlgmr.msra.gmra.mrb[0].mxu0 %vm3215_vm13, %v3207_v32 }
 0x5ea   : > { %v3301_v8 = vpop.f32.mrb[0].mxu0 }
 0x5eb   : > { %v3302_v39 = vadd.f32 %v3301_v8, %v3181_v63  ;;  %v3303_v47 = vpop.f32.mrb[1].mxu0 }
 0x5ec   : > { %v3304_v21 = vadd.f32 %v3303_v47, %v3181_v63  ;;  %v3305_v37 = vpop.f32.mrb[2].mxu0 }
 0x5ed   : > { %v3328_v7 = vmul.f32 %v3302_v39, %v3302_v39  ;;  %v3306_v27 = vpop.f32.mrb[3].mxu0  ;;  %v3323_v13 = vsel %vm3322_vm14, %v3302_v39, 0.0 }
 0x5ee   : > { %v3460_v10 = vpack.c.bf16 %v3304_v21, %v3302_v39  ;;  %v3329_v4 = vmul.f32 %v3304_v21, %v3304_v21  ;;  %v3324_v51 = vsel %vm3322_vm14, %v3304_v21, 0.0 }
 0x5ef   : > { %v3325_v1 = vadd.f32 %v3324_v51, %v3323_v13  ;;  %v3330_v33 = vsel %vm3322_vm14, %v3328_v7, 0.0 }
 0x5f0   : > { %3461 = vst.sshfl [vmem:[%s312_s10] sm:$0x33 pattern:$0x76325410] %v3460_v10  ;;  %v3331_v30 = vsel %vm3322_vm14, %v3329_v4, 0.0 }
 0x5f1   : > { %3326 = vadd.xlane.f32.xlu0 %v3325_v1  ;;  %v3332_v42 = vadd.f32 %v3331_v30, %v3330_v33 }
 0x5f5   : > { %3333 = vadd.xlane.f32.xlu0 %v3332_v42 }
 0x67e   : > { %v3327_v48 = vpop.xlane.xlu0 %3326 }
 0x682   : > { %v3334_v5 = vpop.xlane.xlu0 %3333 }
 0x683   : > { %v3336_v49 = vsel %vm3335_vm15, %v3327_v48, %v3334_v5 }
 0x684   : > { %3338 = vst.msk [vmem:[%s316_s12] sm:$0xf] %vm3337_vm0, %v3336_v49 }
 0x685 PF: > { %s19_s27 = sadd.s32 1, %s4426_s27  }
 0x686   : > { %p16_p4 = scmp.ge.s32.totalorder %s19_s27, 4  }
 0x688   :  { %18 = sbr.rel (!%p16_p4) target bundleno = 1 (0x1), region = 90 }

// kernel: up_forward.3
= control target key start
LH: loop header
LB: loop body
LE: loop exit
PB: predicated region body
PF: predicated region fallthrough
CT: control target
= control target key end

     0   :  { %s6314_s30 = smov 0   ;;  %s8217_s0 = inlined_call_operand.vmem [shape: f32[2,4,8,8], index: 0, kind: input, shape index: {}]   ;;  %s8218_s1 = inlined_call_operand.vmem [shape: f32[2,4,16,16], index: 1, kind: input, shape index: {}]   ;;  %s8219_s2 = inlined_call_operand.vmem [shape: f32[18,8], index: 2, kind: input, shape index: {}, may-alias: {2,3}]   ;;  %s8220_s3 = inlined_call_operand.vmem [shape: f32[18,8], index: 3, kind: input, shape index: {}, may-alias: {2,3}]   ;;  %s8221_s4 = inlined_call_operand.vmem [shape: f32[18,16], index: 4, kind: input, shape index: {}, may-alias: {4,5}]   ;;  %s8222_s5 = inlined_call_operand.vmem [shape: f32[18,16], index: 5, kind: input, shape index: {}, may-alias: {4,5}]   ;;  %s8223_s6 = inlined_call_operand.vmem [shape: bf16[72,4], index: 6, kind: input, shape index: {}]   ;;  %s8224_s7 = inlined_call_operand.vmem [shape: f32[4,1], index: 7, kind: input, shape index: {}]   ;;  %s8225_s8 = inlined_call_operand.vmem [shape: bf16[2,4,256], index: 8, kind: output, shape index: {0}]   ;;  %s8226_s9 = inlined_call_operand.vmem [shape: f32[2,4,2], index: 9, kind: output, shape index: {1}]  }
   0x1 LB: > { %s4878_s10 = sadd.s32 4294967295, %s6242_s30   ;;  %p4882_p0 = scmp.ge.s32.totalorder %s6242_s30, 1  ;;  %s6242_s30 = sphi %s6314_s30, %s20_s30  }
   0x2   : > { %p300_p1 = scmp.lt.s32.totalorder %s6242_s30, 3 }
   0x4   : > { %p301_p2 = pnand %p4882_p0, %p300_p1 }
   0x6   : > { %304 = sbr.rel (%p301_p2) target bundleno = 1749 (0x6d5), region = 52 }
   0xd   : > { %p345_p3 = scmp.lt.s32.totalorder %s4878_s10, 1  ;;  %v388_v0 = vlaneseq  ;;  %v6244_v1 = vmov 1983009808   ;;  %v6245_v4 = vmov 1934713408   ;;  %s6246_s19 = smov 8  }
   0xe   : > { %v386_v2 = vunpack.c.l.s4 %v6244_v1  ;;  %v418_v5 = vunpack.c.l.s4 %v6245_v4  ;;  %s6247_s20 = smov 24   ;;  %s6248_s21 = smov 16   ;;  %vm6250_vm0 = vmmov 0   ;;  %vm531_vm1 = vcmask 64512  }
   0xf   : > { %s8377_s10 = smov (!%p345_p3, %s4878_s10), 1  ;;  %v389_v3 = vshrl.u32 %v388_v0, 7  ;;  %s6252_s22 = smov 32   ;;  %vm533_vm2 = vcmask 130048   ;;  %vm535_vm3 = vcmask 195584   ;;  %vm1970_vm4 = vcmask 261120   ;;  %vm5082_vm6 = vmpackc.low %vm531_vm1, %vm531_vm1 }
  0x10   : > { %v387_v6 = vunpack.c.0.s8 %v386_v2  ;;  %s4936_s11 = sshll.u32 %s8377_s10, 5  ;;  %s4937_s12 = sshll.u32 %s8377_s10, 6  ;;  %v419_v8 = vunpack.c.0.s8 %v418_v5  ;;  %vm1973_vm5 = vcmask 392192   ;;  %vm5089_vm7 = vmpackc.low %vm533_vm2, %vm533_vm2  ;;  %vm3263_vm8 = vcmask 31744  }
  0x11   : > { %s349_s15 = scalar_lea.vmem %s8217_s0, %s4936_s11  ;;  %s6332_s18 = scalar_lea.vmem %s8218_s1, %s4937_s12  ;;  %vm3366_vm9 = vcmask 1046528   ;;  %vm3543_vm10 = vcmask 1045504   ;;  %vm4450_vm11 = vcmask 326656   ;;  %vm4515_vm12 = vcmask 457728  }
  0x12   : > { %v6334_v7 = vsub.s32 %v387_v6, %v389_v3  ;;  %v6225_v9 = vld [vmem:[%s349_s15] ss:$16 sps:$4 sm:$0xff]   ;;  %v6227_v10 = vld [vmem:[%s349_s15 + $0x4] ss:$16 sps:$4 sm:$0xff]   ;;  %v6228_v11 = vld [vmem:[%s349_s15 + $0x8] ss:$16 sps:$4 sm:$0xff]   ;;  %v6342_v19 = vsub.s32 %v419_v8, %v389_v3 }
  0x13   : > { %v6230_v12 = vld [vmem:[%s349_s15 + $0xc] ss:$16 sps:$4 sm:$0xff]   ;;  %v369_v13 = vld [vmem:[%s6332_s18] sm:$0xff]  ;;  %v371_v16 = vld [vmem:[%s6332_s18 + $0x10] sm:$0xff]  ;;  %s6253_s23 = smov 48   ;;  %s6254_s26 = smov 112  }
  0x14   : > { %v391_v14 = vrot.slane %v6225_v9, %v6334_v7  ;;  %v398_v15 = vrot.slane %v6227_v10, %v6334_v7  ;;  %v407_v17 = vrot.slane %v6228_v11, %v6334_v7  ;;  %v414_v18 = vrot.slane %v6230_v12, %v6334_v7  ;;  %v373_v20 = vld [vmem:[%s6332_s18 + $0x20] sm:$0xff]  ;;  %v375_v21 = vld [vmem:[%s6332_s18 + $0x30] sm:$0xff]  ;;  %v370_v38 = vld [vmem:[%s6332_s18 + $0x8] sm:$0xff]  ;;  %s6255_s27 = smov 120   ;;  %s6256_s11 = smov 104  }
  0x15   : > { %v1672_v22 = vcombine.low %v369_v13, %v373_v20  ;;  %v1673_v23 = vcombine.high %v369_v13, %v373_v20  ;;  %v1688_v24 = vcombine.low %v371_v16, %v375_v21  ;;  %v1689_v25 = vcombine.high %v371_v16, %v375_v21  ;;  %v372_v47 = vld [vmem:[%s6332_s18 + $0x18] sm:$0xff]  ;;  %v374_v48 = vld [vmem:[%s6332_s18 + $0x28] sm:$0xff]  ;;  %s6257_s16 = smov 96   ;;  %s6258_s24 = smov 80  }
  0x16   : > { %v415_v26 = vcombine.low %v391_v14, %v407_v17  ;;  %v416_v27 = vcombine.high %v391_v14, %v407_v17  ;;  %v431_v28 = vcombine.low %v398_v15, %v414_v18  ;;  %v432_v29 = vcombine.high %v398_v15, %v414_v18  ;;  %v376_v49 = vld [vmem:[%s6332_s18 + $0x38] sm:$0xff]  ;;  %s6259_s25 = smov 4   ;;  %s6262_s28 = smov 64  }
  0x17   : > { %v1680_v30 = vrot.slane %v1672_v22, %v6334_v7  ;;  %v1687_v31 = vrot.slane %v1673_v23, %v6334_v7  ;;  %v1696_v32 = vrot.slane %v1688_v24, %v6334_v7  ;;  %v1703_v33 = vrot.slane %v1689_v25, %v6334_v7  ;;  %s4938_s17 = sshll.u32 %s8377_s10, 2 }
  0x18   : > { %v423_v34 = vrot.slane %v415_v26, %v6342_v19  ;;  %v430_v35 = vrot.slane %v416_v27, %v6342_v19  ;;  %v439_v36 = vrot.slane %v431_v28, %v6342_v19  ;;  %v446_v37 = vrot.slane %v432_v29, %v6342_v19 }
  0x19   : > { %v1704_v39 = vcombine.low %v1680_v30, %v1696_v32  ;;  %v1705_v40 = vcombine.high %v1680_v30, %v1696_v32  ;;  %v1720_v41 = vcombine.low %v1687_v31, %v1703_v33  ;;  %v1721_v42 = vcombine.high %v1687_v31, %v1703_v33 }
  0x1a   : > { %v451_v43 = vcombine.low %v423_v34, %v430_v35  ;;  %v4890_v44 = vcombine.high %v423_v34, %v430_v35  ;;  %v467_v45 = vcombine.low %v439_v36, %v446_v37  ;;  %v4891_v46 = vcombine.high %v439_v36, %v446_v37 }
  0x1b   : > { %v1712_v50 = vrot.slane %v1704_v39, %v6342_v19  ;;  %v1719_v51 = vrot.slane %v1705_v40, %v6342_v19  ;;  %v1728_v52 = vrot.slane %v1720_v41, %v6342_v19  ;;  %v1735_v53 = vrot.slane %v1721_v42, %v6342_v19 }
  0x1c   : > { %v458_v54 = vrot.slane %v451_v43, %v6334_v7  ;;  %v466_v55 = vrot.slane %v4890_v44, %v6334_v7  ;;  %v474_v56 = vrot.slane %v467_v45, %v6334_v7  ;;  %v482_v57 = vrot.slane %v4891_v46, %v6334_v7 }
  0x1d   : > { %v1740_v58 = vcombine.low %v370_v38, %v374_v48  ;;  %v1741_v59 = vcombine.high %v370_v38, %v374_v48  ;;  %v1756_v60 = vcombine.low %v372_v47, %v376_v49  ;;  %v1757_v61 = vcombine.high %v372_v47, %v376_v49 }
  0x1e   : > { %v483_v62 = vcombine.low %v458_v54, %v466_v55  ;;  %v499_v63 = vcombine.low %v474_v56, %v482_v57  ;;  %v484_v0 = vcombine.high %v458_v54, %v466_v55  ;;  %v500_v1 = vcombine.high %v474_v56, %v482_v57 }
  0x1f   : > { %v1748_v2 = vrot.slane %v1740_v58, %v6334_v7  ;;  %v1755_v3 = vrot.slane %v1741_v59, %v6334_v7  ;;  %v1764_v4 = vrot.slane %v1756_v60, %v6334_v7  ;;  %v1771_v5 = vrot.slane %v1757_v61, %v6334_v7 }
  0x20   : > { %v6371_v6 = vrot.slane %v483_v62, %v6342_v19  ;;  %v6374_v8 = vrot.slane %v499_v63, %v6342_v19  ;;  %v498_v9 = vrot.slane %v484_v0, %v6342_v19  ;;  %v514_v10 = vrot.slane %v500_v1, %v6342_v19 }
  0x21   : > { %v1772_v11 = vcombine.low %v1748_v2, %v1764_v4  ;;  %v1773_v12 = vcombine.high %v1748_v2, %v1764_v4  ;;  %v1788_v13 = vcombine.low %v1755_v3, %v1771_v5  ;;  %v1789_v14 = vcombine.high %v1755_v3, %v1771_v5 }
  0x22   : > { %v516_v15 = vcombine.high %v6371_v6, %v6374_v8  ;;  %v515_v16 = vcombine.low %v6371_v6, %v6374_v8  ;;  %v517_v17 = vcombine.low %v498_v9, %v514_v10  ;;  %v518_v18 = vcombine.high %v498_v9, %v514_v10  ;;  %v378_v6 = vld [vmem:[%s8219_s2 + $0x8] sm:$0xff]  ;;  %v379_v8 = vld [vmem:[%s8219_s2 + $0x10] sm:$0x3] }
  0x23   : > { %v1780_v20 = vrot.slane %v1772_v11, %v6342_v19  ;;  %v1787_v21 = vrot.slane %v1773_v12, %v6342_v19  ;;  %v1796_v22 = vrot.slane %v1788_v13, %v6342_v19  ;;  %v1803_v23 = vrot.slane %v1789_v14, %v6342_v19 }
  0x24   : > { %520 = vrot.lane.b32.xlu0 %v516_v15, %s6246_s19  ;;  %528 = vrot.lane.b32.xlu1 %v518_v18, %s6247_s20  ;;  %v1808_v24 = vcombine.low %v1712_v50, %v1719_v51  ;;  %v4907_v25 = vcombine.high %v1712_v50, %v1719_v51  ;;  %v1824_v26 = vcombine.low %v1728_v52, %v1735_v53  ;;  %v6249_v46 = vmov 0.0  }
  0x25   : > { %v4908_v27 = vcombine.high %v1728_v52, %v1735_v53  ;;  %v1876_v28 = vcombine.low %v1780_v20, %v1787_v21  ;;  %v4909_v29 = vcombine.high %v1780_v20, %v1787_v21  ;;  %v1892_v30 = vcombine.low %v1796_v22, %v1803_v23  ;;  %4990 = vmatprep.subr.mxu0 %v6249_v46 }
  0x26   : > { %v1815_v31 = vrot.slane %v1808_v24, %v6334_v7  ;;  %v1823_v32 = vrot.slane %v4907_v25, %v6334_v7  ;;  %v1831_v33 = vrot.slane %v1824_v26, %v6334_v7  ;;  %v4910_v34 = vcombine.high %v1796_v22, %v1803_v23  ;;  %4992 = vmatprep.mubr.msk.f32.mxu0 %vm6250_vm0, %v6249_v46 }
  0x27   : > { %v1839_v35 = vrot.slane %v4908_v27, %v6334_v7  ;;  %v1883_v36 = vrot.slane %v1876_v28, %v6334_v7  ;;  %v1891_v37 = vrot.slane %v4909_v29, %v6334_v7  ;;  %v1899_v38 = vrot.slane %v1892_v30, %v6334_v7  ;;  %5007 = vmatprep.mubr.msk.f32.mxu1 %vm6250_vm0, %v6249_v46  ;;  %v377_v29 = vld [vmem:[%s8219_s2] sm:$0xff] }
  0x28   : > { %524 = vrot.lane.b32.xlu0 %v517_v17, %s6248_s21  ;;  %v1840_v39 = vcombine.low %v1815_v31, %v1823_v32  ;;  %v1907_v40 = vrot.slane %v4910_v34, %v6334_v7  ;;  %v1841_v41 = vcombine.high %v1815_v31, %v1823_v32  ;;  %v6251_v3 = vmov 0.0|0.0  }
  0x29   : > { %v1856_v42 = vcombine.low %v1831_v33, %v1839_v35  ;;  %v1908_v43 = vcombine.low %v1883_v36, %v1891_v37  ;;  %v1857_v44 = vcombine.high %v1831_v33, %v1839_v35  ;;  %v1909_v45 = vcombine.high %v1883_v36, %v1891_v37  ;;  %5080 = vmatprep.subr.bf16.mxu1 %v6251_v3 }
  0x2a   : > { %v6399_v47 = vrot.slane %v1840_v39, %v6342_v19  ;;  %v1924_v48 = vcombine.low %v1899_v38, %v1907_v40  ;;  %v1855_v49 = vrot.slane %v1841_v41, %v6342_v19  ;;  %v1925_v50 = vcombine.high %v1899_v38, %v1907_v40 }
  0x2b   : > { %v6403_v51 = vrot.slane %v1856_v42, %v6342_v19  ;;  %v6406_v52 = vrot.slane %v1908_v43, %v6342_v19  ;;  %v1871_v53 = vrot.slane %v1857_v44, %v6342_v19  ;;  %v1923_v54 = vrot.slane %v1909_v45, %v6342_v19 }
  0x2c   : > { %v6411_v55 = vrot.slane %v1924_v48, %v6342_v19  ;;  %v1939_v56 = vrot.slane %v1925_v50, %v6342_v19  ;;  %v537_v5 = vcombine.low %v6249_v46, %v6249_v46  ;;  %v572_v11 = vcombine.high %v6249_v46, %v6249_v46  ;;  %v1667_v48 = vld [vmem:[%s8221_s4 + $0x8] sm:$0xff] }
  0x2d   : > { %v1873_v57 = vcombine.high %v6399_v47, %v6403_v51  ;;  %v1872_v58 = vcombine.low %v6399_v47, %v6403_v51  ;;  %v1874_v59 = vcombine.low %v1855_v49, %v1871_v53  ;;  %v1875_v60 = vcombine.high %v1855_v49, %v1871_v53  ;;  %v1666_v47 = vld [vmem:[%s8221_s4] sm:$0xff]  ;;  %v1668_v49 = vld [vmem:[%s8221_s4 + $0x10] sm:$0x3] }
  0x2e   : > { %v1940_v61 = vcombine.low %v6406_v52, %v6411_v55  ;;  %v1941_v62 = vcombine.high %v6406_v52, %v6411_v55  ;;  %v1942_v63 = vcombine.low %v1923_v54, %v1939_v56  ;;  %v1943_v0 = vcombine.high %v1923_v54, %v1939_v56 }
  0x2f   : > { %v544_v9 = vrot.slane %v537_v5, %v6334_v7  ;;  %v6434_v10 = vrot.slane %v537_v5, %v6342_v19  ;;  %v586_v18 = vrot.slane %v572_v11, %v6342_v19  ;;  %v382_v5 = vld [vmem:[%s8220_s3 + $0x10] sm:$0x3]  ;;  %vm4548_vm13 = vcmask 523264  }
  0x30   : > { %v5127_v1 = vpack.i.bf16 %v1941_v62, %v1873_v57  ;;  %v5132_v2 = vpack.i.bf16 %v1942_v63, %v1874_v59  ;;  %v5137_v4 = vpack.i.bf16 %v1943_v0, %v1875_v60  ;;  %v380_v57 = vld [vmem:[%s8220_s3] sm:$0xff]  ;;  %vm4656_vm14 = vcmask 588800  }
  0x31   : > { %v545_v12 = vcombine.low %v544_v9, %v544_v9  ;;  %v546_v13 = vcombine.high %v544_v9, %v544_v9  ;;  %v587_v14 = vcombine.high %v6434_v10, %v6249_v46  ;;  %v588_v22 = vcombine.high %v586_v18, %v6249_v46 }
  0x32   : > { %5128 = vrot.lane.b32.xlu1 %v5127_v1, %s6248_s21  ;;  %5133 = vrot.lane.b32.xlu0 %v5132_v2, %s6252_s22  ;;  %vm4763_vm15 = vcmask 1043456  }
  0x33   : > { %v6441_v15 = vrot.slane %v545_v12, %v6342_v19  ;;  %v560_v17 = vrot.slane %v546_v13, %v6342_v19 }
  0x35   : > { %v562_v20 = vcombine.high %v6441_v15, %v6441_v15  ;;  %v563_v21 = vcombine.low %v560_v17, %v560_v17  ;;  %v564_v23 = vcombine.high %v560_v17, %v560_v17  ;;  %v561_v53 = vcombine.low %v6441_v15, %v6441_v15 }
  0x36   : > { %5138 = vrot.lane.b32.xlu1 %v5137_v4, %s6253_s23 }
  0x37   : > { %591 = vrot.lane.b32.xlu0 %v562_v20, %s6246_s19 }
  0x3a   : > { %593 = vrot.lane.b32.xlu1 %v587_v14, %s6246_s19 }
  0x3b   : > { %599 = vrot.lane.b32.xlu0 %v563_v21, %s6248_s21 }
  0x3e   : > { %601 = vrot.lane.b32.xlu1 %v586_v18, %s6248_s21 }
  0x3f   : > { %607 = vrot.lane.b32.xlu0 %v564_v23, %s6247_s20 }
  0x42   : > { %609 = vrot.lane.b32.xlu1 %v588_v22, %s6247_s20 }
  0x43   : > { %1982 = vrot.lane.b32.xlu0 %v563_v21, %s6252_s22 }
  0x46   : > { %1976 = vrot.lane.b32.xlu1 %v562_v20, %s6248_s21 }
  0x4a   : > { %1988 = vrot.lane.b32.xlu1 %v564_v23, %s6253_s23 }
  0x4e   : > { %1978 = vrot.lane.b32.xlu1 %v587_v14, %s6248_s21 }
  0x52   : > { %1984 = vrot.lane.b32.xlu1 %v586_v18, %s6252_s22 }
  0x56   : > { %1990 = vrot.lane.b32.xlu1 %v588_v22, %s6253_s23 }
  0x96   : > { %v521_v24 = vpop.permute.xlu0 %520  ;;  %v529_v25 = vpop.permute.xlu1 %528 }
  0x97   : > { %v532_v26 = vsel %vm531_vm1, %v515_v16, %v521_v24  ;;  %v1669_v24 = vld [vmem:[%s8222_s5] sm:$0xff] }
  0x9a   : > { %v525_v27 = vpop.permute.xlu0 %524 }
  0x9b   : > { %v534_v28 = vsel %vm533_vm2, %v532_v26, %v525_v27 }
  0x9c   : > { %v536_v30 = vsel %vm535_vm3, %v534_v28, %v529_v25  ;;  %v1670_v25 = vld [vmem:[%s8222_s5 + $0x8] sm:$0xff] }
  0x9d   : > { %4991 = vmatpush3.msra.mxu0 %v536_v30  ;;  %v5088_v26 = vpack.c.bf16 %v1670_v25, %v1669_v24 }
  0x9e   : > { %4993 = vmatmul.mubr.msk.f32.vlgmr.msra.gmra.mrb[0].mxu0 %vm531_vm1, %v377_v29  ;;  %5084 = vmatprep.subr.bf16.mxu0 %v6251_v3 }
  0x9f   : > { %4995 = vmatprep.mubr.msk.f32.mxu0 %vm6250_vm0, %v6249_v46 }
  0xa2   : > { %4996 = vmatmul.mubr.msk.f32.gmra.mrb[2].mxu0 %vm531_vm1, %v378_v6 }
  0xa3   : > { %4998 = vmatprep.mubr.msk.f32.mxu0 %vm6250_vm0, %v6249_v46 }
  0xa4   : > { %v5129_v16 = vpop.permute.xlu1 %5128  ;;  %v5134_v31 = vpop.permute.xlu0 %5133 }
  0xa5   : > { %v5131_v32 = vunpack.i.h.bf16 %v5129_v16  ;;  %v5130_v33 = vunpack.i.l.bf16 %v5129_v16  ;;  %v5136_v34 = vunpack.i.h.bf16 %v5134_v31  ;;  %v5135_v35 = vunpack.i.l.bf16 %v5134_v31 }
  0xa6   : > { %4999 = vmatmul.mubr.msk.f32.gmra.mrb[4].mxu0 %vm531_vm1, %v379_v8 }
  0xa7   : > { %v1969_v36 = vsel %vm533_vm2, %v1940_v61, %v5131_v32  ;;  %v1968_v37 = vsel %vm533_vm2, %v1872_v58, %v5130_v33  ;;  %5038 = vmatprep.mubr.msk.f32.mxu0 %vm6250_vm0, %v6249_v46  ;;  %v381_v58 = vld [vmem:[%s8220_s3 + $0x8] sm:$0xff] }
  0xa8   : > { %v1972_v38 = vsel %vm1970_vm4, %v1969_v36, %v5136_v34  ;;  %v1971_v39 = vsel %vm1970_vm4, %v1968_v37, %v5135_v35  ;;  %v5139_v40 = vpop.permute.xlu1 %5138  ;;  %v5081_v59 = vpack.c.bf16 %v381_v58, %v380_v57  ;;  %v1671_v35 = vld [vmem:[%s8222_s5 + $0x10] sm:$0x3] }
  0xa9   : > { %v5141_v41 = vunpack.i.h.bf16 %v5139_v40  ;;  %v5140_v42 = vunpack.i.l.bf16 %v5139_v40  ;;  %v592_v51 = vpop.permute.xlu0 %591 }
  0xaa   : > { %v613_v55 = vsel %vm531_vm1, %v561_v53, %v592_v51  ;;  %5083 = vmatpush3.bf16.xpose.msk.msra.mxu1 %vm5082_vm6, %v5081_v59 }
  0xab   : > { %v1974_v43 = vsel %vm1973_vm5, %v1971_v39, %v5140_v42  ;;  %v1975_v44 = vsel %vm1973_vm5, %v1972_v38, %v5141_v41  ;;  %5005 = vmatprep.subr.mxu1 %v6249_v46 }
  0xac   : > { %v5085_v45 = vpack.c.bf16 %v1975_v44, %v1974_v43  ;;  %v594_v50 = vpop.permute.xlu1 %593 }
  0xad   : > { %v600_v54 = vpop.permute.xlu0 %599 }
  0xae   : > { %5086 = vmatpush3.bf16.msra.mxu0 %v5085_v45  ;;  %v615_v60 = vsel %vm533_vm2, %v613_v55, %v600_v54 }
  0xaf   : > { %5087 = vmatprep.subr.bf16.mxu0 %v6251_v3  ;;  %v614_v3 = vsel %vm531_vm1, %v6434_v10, %v594_v50 }
  0xb0   : > { %v602_v52 = vpop.permute.xlu1 %601 }
  0xb1   : > { %5039 = vmatmul.mubr.msk.f32.vlgmr.msra.gmra.mrb[6].mxu0 %vm533_vm2, %v1666_v47  ;;  %v608_v61 = vpop.permute.xlu0 %607  ;;  %v616_v9 = vsel %vm533_vm2, %v614_v3, %v602_v52 }
  0xb2   : > { %5041 = vmatprep.mubr.msk.f32.mxu0 %vm6250_vm0, %v6249_v46  ;;  %v617_v62 = vsel %vm535_vm3, %v615_v60, %v608_v61  ;;  %5006 = vmatpush3.xpose.msk.msra.mxu1 %vm531_vm1, %v382_v5 }
  0xb4   : > { %v610_v56 = vpop.permute.xlu1 %609 }
  0xb5   : > { %5042 = vmatmul.mubr.msk.f32.gmra.mrb[8].mxu0 %vm533_vm2, %v1667_v48  ;;  %v618_v14 = vsel %vm535_vm3, %v616_v9, %v610_v56  ;;  %v1983_v21 = vpop.permute.xlu0 %1982 }
  0xb6   : > { %5044 = vmatprep.mubr.msk.f32.mxu0 %vm6250_vm0, %v6249_v46 }
  0xb7   : > { %5090 = vmatpush3.bf16.xpose.msk.msra.mxu0 %vm5089_vm7, %v5088_v26 }
  0xb8   : > { %v1977_v0 = vpop.permute.xlu1 %1976  ;;  %5051 = vmatprep.subr.mxu0 %v6249_v46 }
  0xb9   : > { %5045 = vmatmul.mubr.msk.f32.gmra.mrb[10].mxu0 %vm533_vm2, %v1668_v49  ;;  %v1994_v18 = vsel %vm533_vm2, %v561_v53, %v1977_v0 }
  0xba   : > { %5053 = vmatprep.mubr.msk.f32.mxu0 %vm6250_vm0, %v6249_v46  ;;  %v1996_v23 = vsel %vm1970_vm4, %v1994_v18, %v1983_v21 }
  0xbc   : > { %v1989_v13 = vpop.permute.xlu1 %1988 }
  0xbd   : > { %v1998_v27 = vsel %vm1973_vm5, %v1996_v23, %v1989_v13 }
  0xbf   : > { %5052 = vmatpush3.xpose.msk.msra.mxu0 %vm533_vm2, %v1671_v35 }
  0xc0   : > { %v1979_v22 = vpop.permute.xlu1 %1978 }
  0xc1   : > { %v1995_v8 = vsel %vm533_vm2, %v6434_v10, %v1979_v22 }
  0xc4   : > { %v1985_v28 = vpop.permute.xlu1 %1984 }
  0xc5   : > { %v1997_v32 = vsel %vm1970_vm4, %v1995_v8, %v1985_v28 }
  0xc8   : > { %v1991_v33 = vpop.permute.xlu1 %1990 }
  0xc9   : > { %v1999_v10 = vsel %vm1973_vm5, %v1997_v32, %v1991_v33 }
 0x171   : > { %v694_v63 = vpop.f32.mrb[0].mxu0 }
 0x172   : > { %v6530_v1 = vadd.f32 %v694_v63, %v617_v62  ;;  %v4994_v2 = vpop.f32.mrb[1].mxu0 }
 0x174   : > { %720 = vrot.lane.b32.xlu1 %v6530_v1, %s6254_s26  ;;  %711 = vrot.lane.b32.xlu0 %v6530_v1, %s6255_s27 }
 0x175   : > { %v699_v4 = vpop.f32.mrb[2].mxu0 }
 0x176   : > { %v6541_v11 = vadd.f32 %v699_v4, %v617_v62  ;;  %v4997_v12 = vpop.f32.mrb[3].mxu0 }
 0x178   : > { %729 = vrot.lane.b32.xlu0 %v6530_v1, %s6256_s11  ;;  %713 = vrot.lane.b32.xlu1 %v6541_v11, %s6255_s27 }
 0x179   : > { %v704_v15 = vpop.f32.mrb[4].mxu0 }
 0x17a   : > { %v5000_v17 = vpop.f32.mrb[5].mxu0  ;;  %v6551_v20 = vadd.f32 %v704_v15, %v618_v14 }
 0x17c   : > { %722 = vrot.lane.b32.xlu0 %v6541_v11, %s6254_s26  ;;  %731 = vrot.lane.b32.xlu1 %v6541_v11, %s6256_s11 }
 0x180   : > { %724 = vrot.lane.b32.xlu1 %v6551_v20, %s6254_s26  ;;  %715 = vrot.lane.b32.xlu0 %v6551_v20, %s6255_s27  ;;  %s6261_s27 = smov 56  }
 0x184   : > { %v2075_v29 = vpop.f32.mrb[6].mxu0  ;;  %733 = vrot.lane.b32.xlu0 %v6551_v20, %s6256_s11 }
 0x185   : > { %v6568_v30 = vadd.f32 %v2075_v29, %v1998_v27  ;;  %v5040_v6 = vpop.f32.mrb[7].mxu0 }
 0x187   : > { %2101 = vrot.lane.b32.xlu1 %v6568_v30, %s6257_s16 }
 0x188   : > { %v2080_v16 = vpop.f32.mrb[8].mxu0  ;;  %2092 = vrot.lane.b32.xlu0 %v6568_v30, %s6254_s26 }
 0x189   : > { %v6575_v31 = vadd.f32 %v2080_v16, %v1998_v27  ;;  %v5043_v34 = vpop.f32.mrb[9].mxu0 }
 0x18b   : > { %2094 = vrot.lane.b32.xlu1 %v6575_v31, %s6254_s26 }
 0x18c   : > { %2110 = vrot.lane.b32.xlu0 %v6568_v30, %s6258_s24  ;;  %v2085_v36 = vpop.f32.mrb[10].mxu0 }
 0x18d   : > { %v5046_v37 = vpop.f32.mrb[11].mxu0  ;;  %v6587_v38 = vadd.f32 %v2085_v36, %v1999_v10 }
 0x18f   : > { %2112 = vrot.lane.b32.xlu1 %v6575_v31, %s6258_s24 }
 0x190   : > { %2103 = vrot.lane.b32.xlu0 %v6575_v31, %s6257_s16 }
 0x193   : > { %2105 = vrot.lane.b32.xlu1 %v6587_v38, %s6257_s16 }
 0x194   : > { %2096 = vrot.lane.b32.xlu0 %v6587_v38, %s6254_s26  ;;  %s6260_s26 = smov 40  }
 0x198   : > { %2114 = vrot.lane.b32.xlu0 %v6587_v38, %s6258_s24 }
 0x1e6   : > { %v721_v39 = vpop.permute.xlu1 %720  ;;  %v712_v40 = vpop.permute.xlu0 %711 }
 0x1e7   : > { %v738_v41 = vcombine.low %v6530_v1, %v721_v39  ;;  %v739_v44 = vcombine.high %v6530_v1, %v721_v39 }
 0x1e9   : > { %v746_v48 = vrot.slane %v738_v41, %v6334_v7  ;;  %v753_v53 = vrot.slane %v739_v44, %v6334_v7 }
 0x1ea   : > { %v730_v42 = vpop.permute.xlu0 %729  ;;  %v714_v43 = vpop.permute.xlu1 %713 }
 0x1eb   : > { %v754_v45 = vcombine.low %v712_v40, %v730_v42  ;;  %v755_v47 = vcombine.high %v712_v40, %v730_v42 }
 0x1ed   : > { %v762_v49 = vrot.slane %v754_v45, %v6334_v7  ;;  %v769_v50 = vrot.slane %v755_v47, %v6334_v7 }
 0x1ee   : > { %v723_v51 = vpop.permute.xlu0 %722  ;;  %v732_v52 = vpop.permute.xlu1 %731 }
 0x1ef   : > { %v770_v54 = vcombine.low %v746_v48, %v762_v49  ;;  %v771_v55 = vcombine.high %v746_v48, %v762_v49  ;;  %v806_v56 = vcombine.low %v6541_v11, %v723_v51  ;;  %v822_v57 = vcombine.low %v714_v43, %v732_v52 }
 0x1f0   : > { %v786_v58 = vcombine.low %v753_v53, %v769_v50  ;;  %v787_v2 = vcombine.high %v753_v53, %v769_v50  ;;  %v807_v12 = vcombine.high %v6541_v11, %v723_v51  ;;  %v823_v13 = vcombine.high %v714_v43, %v732_v52 }
 0x1f1   : > { %v778_v59 = vrot.slane %v770_v54, %v6342_v19  ;;  %v785_v60 = vrot.slane %v771_v55, %v6342_v19  ;;  %v814_v0 = vrot.slane %v806_v56, %v6334_v7  ;;  %v830_v1 = vrot.slane %v822_v57, %v6334_v7 }
 0x1f2   : > { %v716_v61 = vpop.permute.xlu0 %715  ;;  %v725_v62 = vpop.permute.xlu1 %724  ;;  %v794_v5 = vrot.slane %v786_v58, %v6342_v19  ;;  %v801_v21 = vrot.slane %v787_v2, %v6342_v19  ;;  %v821_v23 = vrot.slane %v807_v12, %v6334_v7  ;;  %v837_v24 = vrot.slane %v823_v13, %v6334_v7 }
 0x1f3   : > { %v802_v63 = vcombine.high %v778_v59, %v6249_v46  ;;  %v803_v4 = vcombine.high %v785_v60, %v6249_v46  ;;  %v838_v14 = vcombine.low %v814_v0, %v830_v1  ;;  %v839_v11 = vcombine.high %v814_v0, %v830_v1 }
 0x1f4   : > { %v804_v18 = vcombine.high %v794_v5, %v6249_v46  ;;  %v805_v29 = vcombine.high %v801_v21, %v6249_v46  ;;  %v854_v8 = vcombine.low %v821_v23, %v837_v24  ;;  %v874_v41 = vcombine.low %v6551_v20, %v725_v62 }
 0x1f5   : > { %v917_v3 = vcombine.low %v778_v59, %v802_v63  ;;  %v918_v17 = vcombine.low %v785_v60, %v803_v4  ;;  %v846_v25 = vrot.slane %v838_v14, %v6342_v19  ;;  %v853_v10 = vrot.slane %v839_v11, %v6342_v19 }
 0x1f6   : > { %v734_v9 = vpop.permute.xlu0 %733  ;;  %v919_v28 = vcombine.low %v794_v5, %v804_v18  ;;  %v920_v40 = vcombine.low %v801_v21, %v805_v29  ;;  %v862_v48 = vrot.slane %v854_v8, %v6342_v19  ;;  %v881_v56 = vrot.slane %v874_v41, %v6334_v7 }
 0x1f7   : > { %5008 = vmatmul.mubr.msk.f32.vlgmr.msra.gmra.mrb[0].mxu1 %vm531_vm1, %v917_v3  ;;  %v882_v34 = vcombine.low %v716_v61, %v734_v9  ;;  %v870_v35 = vcombine.high %v846_v25, %v6249_v46  ;;  %v871_v20 = vcombine.high %v853_v10, %v6249_v46 }
 0x1f8   : > { %5010 = vmatprep.mubr.msk.f32.mxu1 %vm6250_vm0, %v6249_v46  ;;  %v872_v58 = vcombine.high %v862_v48, %v6249_v46 }
 0x1f9   : > { %v2102_v15 = vpop.permute.xlu1 %2101  ;;  %v889_v49 = vrot.slane %v882_v34, %v6334_v7  ;;  %v921_v51 = vcombine.low %v846_v25, %v870_v35  ;;  %v922_v63 = vcombine.low %v853_v10, %v871_v20 }
 0x1fa   : > { %v2093_v22 = vpop.permute.xlu0 %2092  ;;  %v2119_v26 = vcombine.low %v6568_v30, %v2102_v15  ;;  %v2120_v16 = vcombine.high %v6568_v30, %v2102_v15  ;;  %v855_v30 = vcombine.high %v821_v23, %v837_v24  ;;  %v923_v4 = vcombine.low %v862_v48, %v872_v58 }
 0x1fb   : > { %5011 = vmatmul.mubr.msk.f32.gmra.mrb[2].mxu1 %vm531_vm1, %v918_v17  ;;  %v890_v60 = vcombine.low %v881_v56, %v889_v49 }
 0x1fc   : > { %5013 = vmatprep.mubr.msk.f32.mxu1 %vm6250_vm0, %v6249_v46  ;;  %v2127_v36 = vrot.slane %v2119_v26, %v6334_v7  ;;  %v2134_v43 = vrot.slane %v2120_v16, %v6334_v7  ;;  %v869_v59 = vrot.slane %v855_v30, %v6342_v19 }
 0x1fd   : > { %v6621_v27 = vpop.permute.xlu1 %2094  ;;  %v897_v9 = vrot.slane %v890_v60, %v6342_v19 }
 0x1fe   : > { %v2111_v6 = vpop.permute.xlu0 %2110  ;;  %v873_v5 = vcombine.high %v869_v59, %v6249_v46 }
 0x1ff   : > { %v2135_v32 = vcombine.low %v2093_v22, %v2111_v6  ;;  %v2136_v33 = vcombine.high %v2093_v22, %v2111_v6  ;;  %5014 = vmatmul.mubr.msk.f32.gmra.mrb[4].mxu1 %vm531_vm1, %v919_v28  ;;  %v898_v24 = vcombine.high %v897_v9, %v6249_v46 }
 0x200   : > { %5016 = vmatprep.mubr.msk.f32.mxu1 %vm6250_vm0, %v6249_v46  ;;  %v924_v22 = vcombine.low %v869_v59, %v873_v5 }
 0x201   : > { %v2143_v37 = vrot.slane %v2135_v32, %v6334_v7  ;;  %v2150_v39 = vrot.slane %v2136_v33, %v6334_v7  ;;  %v2113_v47 = vpop.permute.xlu1 %2112  ;;  %v925_v8 = vcombine.low %v897_v9, %v898_v24 }
 0x202   : > { %v2104_v42 = vpop.permute.xlu0 %2103  ;;  %v2203_v50 = vcombine.low %v6621_v27, %v2113_v47  ;;  %v2204_v12 = vcombine.high %v6621_v27, %v2113_v47 }
 0x203   : > { %v2151_v44 = vcombine.low %v2127_v36, %v2143_v37  ;;  %v2152_v45 = vcombine.high %v2127_v36, %v2143_v37  ;;  %5017 = vmatmul.mubr.msk.f32.gmra.mrb[6].mxu1 %vm531_vm1, %v920_v40  ;;  %v2167_v53 = vcombine.low %v2134_v43, %v2150_v39  ;;  %v2187_v54 = vcombine.low %v6575_v31, %v2104_v42 }
 0x204   : > { %5019 = vmatprep.mubr.msk.f32.mxu1 %vm6250_vm0, %v6249_v46  ;;  %v2168_v61 = vcombine.high %v2134_v43, %v2150_v39  ;;  %v2211_v62 = vrot.slane %v2203_v50, %v6334_v7  ;;  %v2188_v13 = vcombine.high %v6575_v31, %v2104_v42  ;;  %v2218_v31 = vrot.slane %v2204_v12, %v6334_v7 }
 0x205   : > { %v2159_v52 = vrot.slane %v2151_v44, %v6342_v19  ;;  %v2166_v55 = vrot.slane %v2152_v45, %v6342_v19  ;;  %v2195_v1 = vrot.slane %v2187_v54, %v6334_v7  ;;  %v2175_v3 = vrot.slane %v2167_v53, %v6342_v19  ;;  %v2106_v6 = vpop.permute.xlu1 %2105 }
 0x206   : > { %v2097_v14 = vpop.permute.xlu0 %2096  ;;  %v2182_v21 = vrot.slane %v2168_v61, %v6342_v19  ;;  %v2202_v23 = vrot.slane %v2188_v13, %v6334_v7  ;;  %v2255_v35 = vcombine.low %v6587_v38, %v2106_v6 }
 0x207   : > { %v2183_v57 = vcombine.high %v2159_v52, %v6249_v46  ;;  %5020 = vmatmul.mubr.msk.f32.gmra.mrb[8].mxu1 %vm531_vm1, %v921_v51  ;;  %v2184_v2 = vcombine.high %v2166_v55, %v6249_v46  ;;  %v2219_v15 = vcombine.low %v2195_v1, %v2211_v62  ;;  %v2185_v18 = vcombine.high %v2175_v3, %v6249_v46 }
 0x208   : > { %5022 = vmatprep.mubr.msk.f32.mxu1 %vm6250_vm0, %v6249_v46  ;;  %v2220_v11 = vcombine.high %v2195_v1, %v2211_v62  ;;  %v2186_v26 = vcombine.high %v2182_v21, %v6249_v46  ;;  %v2235_v29 = vcombine.low %v2202_v23, %v2218_v31  ;;  %v2236_v10 = vcombine.high %v2202_v23, %v2218_v31 }
 0x209   : > { %v2298_v0 = vcombine.low %v2159_v52, %v2183_v57  ;;  %v2299_v17 = vcombine.low %v2166_v55, %v2184_v2  ;;  %v2300_v25 = vcombine.low %v2175_v3, %v2185_v18  ;;  %v2227_v27 = vrot.slane %v2219_v15, %v6342_v19 }
 0x20a   : > { %v2115_v28 = vpop.permute.xlu0 %2114  ;;  %v2301_v32 = vcombine.low %v2182_v21, %v2186_v26  ;;  %v2234_v34 = vrot.slane %v2220_v11, %v6342_v19  ;;  %v2243_v40 = vrot.slane %v2235_v29, %v6342_v19  ;;  %v2262_v30 = vrot.slane %v2255_v35, %v6334_v7 }
 0x20b   : > { %5023 = vmatmul.mubr.msk.f32.gmra.mrb[10].mxu1 %vm531_vm1, %v922_v63  ;;  %5054 = vmatmul.mubr.msk.f32.vlgmr.msra.gmra.mrb[12].mxu0 %vm533_vm2, %v2298_v0  ;;  %v2263_v16 = vcombine.low %v2097_v14, %v2115_v28  ;;  %v2251_v33 = vcombine.high %v2227_v27, %v6249_v46  ;;  %v2250_v43 = vrot.slane %v2236_v10, %v6342_v19 }
 0x20c   : > { %5025 = vmatprep.mubr.msk.f32.mxu1 %vm6250_vm0, %v6249_v46  ;;  %5056 = vmatprep.mubr.msk.f32.mxu0 %vm6250_vm0, %v6249_v46  ;;  %v2252_v39 = vcombine.high %v2234_v34, %v6249_v46  ;;  %v2253_v42 = vcombine.high %v2243_v40, %v6249_v46 }
 0x20d   : > { %v2270_v36 = vrot.slane %v2263_v16, %v6334_v7  ;;  %v2302_v37 = vcombine.low %v2227_v27, %v2251_v33  ;;  %v2254_v7 = vcombine.high %v2250_v43, %v6249_v46 }
 0x20e   : > { %v2303_v41 = vcombine.low %v2234_v34, %v2252_v39  ;;  %v2304_v45 = vcombine.low %v2243_v40, %v2253_v42 }
 0x20f   : > { %5026 = vmatmul.mubr.msk.f32.gmra.mrb[12].mxu1 %vm531_vm1, %v923_v4  ;;  %5057 = vmatmul.mubr.msk.f32.gmra.mrb[14].mxu0 %vm533_vm2, %v2299_v17  ;;  %v2271_v38 = vcombine.low %v2262_v30, %v2270_v36  ;;  %v2305_v47 = vcombine.low %v2250_v43, %v2254_v7 }
 0x210   : > { %5028 = vmatprep.mubr.msk.f32.mxu1 %vm6250_vm0, %v6249_v46  ;;  %5059 = vmatprep.mubr.msk.f32.mxu0 %vm6250_vm0, %v6249_v46 }
 0x211   : > { %v2278_v44 = vrot.slane %v2271_v38, %v6342_v19 }
 0x213   : > { %5029 = vmatmul.mubr.msk.f32.gmra.mrb[14].mxu1 %vm531_vm1, %v924_v22  ;;  %5060 = vmatmul.mubr.msk.f32.gmra.mrb[16].mxu0 %vm533_vm2, %v2300_v25  ;;  %v2279_v48 = vcombine.high %v2278_v44, %v6249_v46 }
 0x214   : > { %5031 = vmatprep.mubr.msk.f32.mxu1 %vm6250_vm0, %v6249_v46  ;;  %5062 = vmatprep.mubr.msk.f32.mxu0 %vm6250_vm0, %v6249_v46 }
 0x215   : > { %v2306_v49 = vcombine.low %v2278_v44, %v2279_v48 }
 0x217   : > { %5032 = vmatmul.mubr.msk.f32.gmra.mrb[16].mxu1 %vm531_vm1, %v925_v8  ;;  %5063 = vmatmul.mubr.msk.f32.gmra.mrb[18].mxu0 %vm533_vm2, %v2301_v32 }
 0x218   : > { %5065 = vmatprep.mubr.msk.f32.mxu0 %vm6250_vm0, %v6249_v46 }
 0x21b   : > { %5066 = vmatmul.mubr.msk.f32.gmra.mrb[20].mxu0 %vm533_vm2, %v2302_v37 }
 0x21c   : > { %5068 = vmatprep.mubr.msk.f32.mxu0 %vm6250_vm0, %v6249_v46 }
 0x21f   : > { %5069 = vmatmul.mubr.msk.f32.gmra.mrb[22].mxu0 %vm533_vm2, %v2303_v41 }
 0x220   : > { %5071 = vmatprep.mubr.msk.f32.mxu0 %vm6250_vm0, %v6249_v46 }
 0x223   : > { %5072 = vmatmul.mubr.msk.f32.gmra.mrb[24].mxu0 %vm533_vm2, %v2304_v45 }
 0x224   : > { %5074 = vmatprep.mubr.msk.f32.mxu0 %vm6250_vm0, %v6249_v46 }
 0x227   : > { %5075 = vmatmul.mubr.msk.f32.gmra.mrb[26].mxu0 %vm533_vm2, %v2305_v47 }
 0x228   : > { %5077 = vmatprep.mubr.msk.f32.mxu0 %vm6250_vm0, %v6249_v46  ;;  %vm4776_vm0 = vcmask 7168  }
 0x22b   : > { %5078 = vmatmul.mubr.msk.f32.gmra.mrb[28].mxu0 %vm533_vm2, %v2306_v49 }
 0x2ca   : > { %v1019_v19 = vpop.f32.mrb[0].mxu1 }
 0x2cb   : > { %v1072_v50 = vcombine.high %v1019_v19, %v1019_v19  ;;  %v5009_v51 = vpop.f32.mrb[1].mxu1 }
 0x2cd   : > { %v5142_v20 = vpack.i.bf16 %v1072_v50, %v1019_v19 }
 0x2ce   : > { %v1024_v52 = vpop.f32.mrb[2].mxu1 }
 0x2cf   : > { %v1073_v53 = vcombine.high %v1024_v52, %v1024_v52  ;;  %v5012_v54 = vpop.f32.mrb[3].mxu1  ;;  %5143 = vxpose.xlu1.b32.start.end [1/1] (short) (narrow) %v5142_v20, 24 }
 0x2d1   : > { %v5159_v55 = vpack.i.bf16 %v1073_v53, %v1024_v52 }
 0x2d2   : > { %v1029_v56 = vpop.f32.mrb[4].mxu1 }
 0x2d3   : > { %v5015_v57 = vpop.f32.mrb[5].mxu1  ;;  %5160 = vxpose.xlu0.b32.start.end [1/1] (short) (narrow) %v5159_v55, 24  ;;  %v1074_v58 = vcombine.high %v1029_v56, %v1029_v56 }
 0x2d5   : > { %v5176_v63 = vpack.i.bf16 %v1074_v58, %v1029_v56 }
 0x2d6   : > { %v1034_v59 = vpop.f32.mrb[6].mxu1 }
 0x2d7   : > { %v1075_v60 = vcombine.high %v1034_v59, %v1034_v59  ;;  %v5018_v61 = vpop.f32.mrb[7].mxu1 }
 0x2d9   : > { %v5193_v46 = vpack.i.bf16 %v1075_v60, %v1034_v59 }
 0x2da   : > { %v1039_v62 = vpop.f32.mrb[8].mxu1 }
 0x2db   : > { %v5021_v0 = vpop.f32.mrb[9].mxu1  ;;  %5194 = vxpose.xlu1.b32.start.end [1/1] (short) (narrow) %v5193_v46, 24  ;;  %v1076_v3 = vcombine.high %v1039_v62, %v1039_v62 }
 0x2dc   : > { %5177 = vxpose.xlu0.b32.start.end [1/1] (short) (narrow) %v5176_v63, 24 }
 0x2dd   : > { %v5227_v18 = vpack.i.bf16 %v1076_v3, %v1039_v62 }
 0x2de   : > { %v1044_v1 = vpop.f32.mrb[10].mxu1  ;;  %v2400_v2 = vpop.f32.mrb[12].mxu0 }
 0x2df   : > { %v2453_v4 = vcombine.high %v2400_v2, %v2400_v2  ;;  %v5024_v5 = vpop.f32.mrb[11].mxu1  ;;  %v5055_v9 = vpop.f32.mrb[13].mxu0  ;;  %v1077_v31 = vcombine.high %v1044_v1, %v1044_v1 }
 0x2e1   : > { %v5210_v12 = vpack.i.bf16 %v2453_v4, %v2400_v2  ;;  %v5261_v29 = vpack.i.bf16 %v1077_v31, %v1044_v1 }
 0x2e2   : > { %v1049_v13 = vpop.f32.mrb[12].mxu1  ;;  %v2405_v14 = vpop.f32.mrb[14].mxu0 }
 0x2e3   : > { %v5027_v15 = vpop.f32.mrb[13].mxu1  ;;  %v5058_v17 = vpop.f32.mrb[15].mxu0  ;;  %v2454_v11 = vcombine.high %v2405_v14, %v2405_v14  ;;  %v1078_v30 = vcombine.high %v1049_v13, %v1049_v13 }
 0x2e4   : > { %5211 = vxpose.xlu1.b32.start.end [1/1] (short) (narrow) %v5210_v12, 24 }
 0x2e5   : > { %5228 = vxpose.xlu0.b32.start.end [1/1] (short) (narrow) %v5227_v18, 24  ;;  %v5244_v6 = vpack.i.bf16 %v2454_v11, %v2405_v14  ;;  %v5295_v44 = vpack.i.bf16 %v1078_v30, %v1049_v13 }
 0x2e6   : > { %v1054_v21 = vpop.f32.mrb[14].mxu1  ;;  %v2410_v22 = vpop.f32.mrb[16].mxu0 }
 0x2e7   : > { %v5030_v23 = vpop.f32.mrb[15].mxu1  ;;  %v5061_v24 = vpop.f32.mrb[17].mxu0  ;;  %v1079_v32 = vcombine.high %v1054_v21, %v1054_v21  ;;  %v2455_v33 = vcombine.high %v2410_v22, %v2410_v22 }
 0x2e9   : > { %v5329_v10 = vpack.i.bf16 %v1079_v32, %v1054_v21  ;;  %v5278_v36 = vpack.i.bf16 %v2455_v33, %v2410_v22 }
 0x2ea   : > { %v1059_v25 = vpop.f32.mrb[16].mxu1  ;;  %v2415_v26 = vpop.f32.mrb[18].mxu0 }
 0x2eb   : > { %v5033_v27 = vpop.f32.mrb[17].mxu1  ;;  %v5064_v28 = vpop.f32.mrb[19].mxu0  ;;  %v2456_v47 = vcombine.high %v2415_v26, %v2415_v26  ;;  %v1080_v50 = vcombine.high %v1059_v25, %v1059_v25 }
 0x2ed   : > { %5262 = vxpose.xlu1.b32.start.end [1/1] (short) (narrow) %v5261_v29, 24  ;;  %v5312_v49 = vpack.i.bf16 %v2456_v47, %v2415_v26  ;;  %v5363_v20 = vpack.i.bf16 %v1080_v50, %v1059_v25 }
 0x2ee   : > { %5245 = vxpose.xlu0.b32.start.end [1/1] (short) (narrow) %v5244_v6, 24  ;;  %v2420_v8 = vpop.f32.mrb[20].mxu0 }
 0x2ef   : > { %v5067_v16 = vpop.f32.mrb[21].mxu0  ;;  %v2457_v40 = vcombine.high %v2420_v8, %v2420_v8 }
 0x2f1   : > { %v5346_v42 = vpack.i.bf16 %v2457_v40, %v2420_v8 }
 0x2f2   : > { %v2425_v34 = vpop.f32.mrb[22].mxu0 }
 0x2f3   : > { %v5070_v35 = vpop.f32.mrb[23].mxu0  ;;  %v2458_v52 = vcombine.high %v2425_v34, %v2425_v34 }
 0x2f5   : > { %v5380_v53 = vpack.i.bf16 %v2458_v52, %v2425_v34 }
 0x2f6   : > { %5330 = vxpose.xlu1.b32.start.end [1/1] (short) (narrow) %v5329_v10, 24  ;;  %v2430_v37 = vpop.f32.mrb[24].mxu0 }
 0x2f7   : > { %5279 = vxpose.xlu0.b32.start.end [1/1] (short) (narrow) %v5278_v36, 24  ;;  %v5073_v39 = vpop.f32.mrb[25].mxu0  ;;  %v2459_v7 = vcombine.high %v2430_v37, %v2430_v37 }
 0x2f9   : > { %v5397_v48 = vpack.i.bf16 %v2459_v7, %v2430_v37 }
 0x2fa   : > { %v2435_v38 = vpop.f32.mrb[26].mxu0 }
 0x2fb   : > { %v5076_v41 = vpop.f32.mrb[27].mxu0  ;;  %v2460_v54 = vcombine.high %v2435_v38, %v2435_v38 }
 0x2fd   : > { %v5414_v55 = vpack.i.bf16 %v2460_v54, %v2435_v38 }
 0x2fe   : > { %v2440_v43 = vpop.f32.mrb[28].mxu0 }
 0x2ff   : > { %5347 = vxpose.xlu1.b32.start.end [1/1] (short) (narrow) %v5346_v42, 24  ;;  %v5079_v45 = vpop.f32.mrb[29].mxu0  ;;  %v2461_v19 = vcombine.high %v2440_v43, %v2440_v43 }
 0x300   : > { %5296 = vxpose.xlu0.b32.start.end [1/1] (short) (narrow) %v5295_v44, 24 }
 0x301   : > { %v5431_v51 = vpack.i.bf16 %v2461_v19, %v2440_v43 }
 0x308   : > { %5398 = vxpose.xlu1.b32.start.end [1/1] (short) (narrow) %v5397_v48, 24 }
 0x309   : > { %5313 = vxpose.xlu0.b32.start.end [1/1] (short) (narrow) %v5312_v49, 24 }
 0x311   : > { %5432 = vxpose.xlu1.b32.start.end [1/1] (short) (narrow) %v5431_v51, 24 }
 0x312   : > { %5364 = vxpose.xlu0.b32.start.end [1/1] (short) (narrow) %v5363_v20, 24 }
 0x31b   : > { %5381 = vxpose.xlu0.b32.start.end [1/1] (short) (narrow) %v5380_v53, 24 }
 0x324   : > { %5415 = vxpose.xlu0.b32.start.end [1/1] (short) (narrow) %v5414_v55, 24 }
 0x34f   : > { %v5144_v56 = vpop.trf.xlu1 }
 0x350   : > { %v5145_v60 = vunpack.i.l.bf16 %v5144_v56  ;;  %v5148_v0 = vunpack.i.h.bf16 %v5144_v56 }
 0x353   : > { %v5149_v57 = vpop.trf.xlu1  ;;  %v5161_v58 = vpop.trf.xlu0 }
 0x354   : > { %v5150_v59 = vunpack.i.l.bf16 %v5149_v57  ;;  %v5162_v9 = vunpack.i.l.bf16 %v5161_v58  ;;  %v5153_v21 = vunpack.i.h.bf16 %v5149_v57  ;;  %v5165_v11 = vunpack.i.h.bf16 %v5161_v58 }
 0x356   : > { %v5448_v62 = vpack.i.bf16 %v5150_v59, %v5145_v60 }
 0x357   : > { %v5154_v61 = vpop.trf.xlu1  ;;  %v5166_v46 = vpop.trf.xlu0 }
 0x358   : > { %5449 = vrot.lane.b32.xlu0 %v5448_v62, %s6259_s25  ;;  %v5155_v63 = vunpack.i.l.bf16 %v5154_v61  ;;  %v5170_v4 = vunpack.i.h.bf16 %v5166_v46  ;;  %v5167_v5 = vunpack.i.l.bf16 %v5166_v46  ;;  %v5158_v18 = vunpack.i.h.bf16 %v5154_v61 }
 0x35a   : > { %v5453_v3 = vpack.i.bf16 %v5148_v0, %v5155_v63  ;;  %v5458_v17 = vpack.i.bf16 %v5167_v5, %v5162_v9  ;;  %v5463_v23 = vpack.i.bf16 %v5158_v18, %v5153_v21 }
 0x35b   : > { %v5195_v1 = vpop.trf.xlu1  ;;  %v5171_v2 = vpop.trf.xlu0 }
 0x35c   : > { %5454 = vrot.lane.b32.xlu1 %v5453_v3, %s6259_s25  ;;  %v5175_v12 = vunpack.i.h.bf16 %v5171_v2  ;;  %v5172_v24 = vunpack.i.l.bf16 %v5171_v2  ;;  %v5196_v28 = vunpack.i.l.bf16 %v5195_v1  ;;  %v5199_v41 = vunpack.i.h.bf16 %v5195_v1 }
 0x35e   : > { %v5478_v15 = vpack.i.bf16 %v5175_v12, %v5170_v4  ;;  %v5468_v16 = vpack.i.bf16 %v5165_v11, %v5172_v24 }
 0x35f   : > { %v5200_v13 = vpop.trf.xlu1  ;;  %v5178_v14 = vpop.trf.xlu0 }
 0x360   : > { %5479 = vrot.lane.b32.xlu0 %v5478_v15, %s6259_s25  ;;  %5459 = vrot.lane.b32.xlu1 %v5458_v17, %s6259_s25  ;;  %v5179_v26 = vunpack.i.l.bf16 %v5178_v14  ;;  %v5182_v27 = vunpack.i.h.bf16 %v5178_v14  ;;  %v5201_v29 = vunpack.i.l.bf16 %v5200_v13  ;;  %v5204_v36 = vunpack.i.h.bf16 %v5200_v13 }
 0x362   : > { %v5488_v30 = vpack.i.bf16 %v5201_v29, %v5196_v28 }
 0x363   : > { %v5205_v22 = vpop.trf.xlu1  ;;  %v5183_v31 = vpop.trf.xlu0 }
 0x364   : > { %5464 = vrot.lane.b32.xlu1 %v5463_v23, %s6259_s25  ;;  %v5184_v25 = vunpack.i.l.bf16 %v5183_v31  ;;  %v5187_v33 = vunpack.i.h.bf16 %v5183_v31  ;;  %v5209_v40 = vunpack.i.h.bf16 %v5205_v22  ;;  %v5206_v42 = vunpack.i.l.bf16 %v5205_v22 }
 0x366   : > { %v5473_v34 = vpack.i.bf16 %v5184_v25, %v5179_v26  ;;  %v5508_v45 = vpack.i.bf16 %v5209_v40, %v5204_v36  ;;  %v5498_v50 = vpack.i.bf16 %v5199_v41, %v5206_v42 }
 0x367   : > { %v5188_v6 = vpop.trf.xlu0  ;;  %v6719_v8 = vpop.trf.xlu1 }
 0x368   : > { %v5189_v32 = vunpack.i.l.bf16 %v5188_v6  ;;  %5469 = vrot.lane.b32.xlu1 %v5468_v16, %s6259_s25  ;;  %v5192_v35 = vunpack.i.h.bf16 %v5188_v6 }
 0x36a   : > { %v5483_v10 = vpack.i.bf16 %v5182_v27, %v5189_v32  ;;  %v5493_v38 = vpack.i.bf16 %v5192_v35, %v5187_v33 }
 0x36b   : > { %v5229_v37 = vpop.trf.xlu0  ;;  %v6722_v39 = vpop.trf.xlu1 }
 0x36c   : > { %5484 = vrot.lane.b32.xlu0 %v5483_v10, %s6259_s25  ;;  %5474 = vrot.lane.b32.xlu1 %v5473_v34, %s6259_s25  ;;  %v5230_v7 = vunpack.i.l.bf16 %v5229_v37  ;;  %v5233_v48 = vunpack.i.h.bf16 %v5229_v37 }
 0x36f   : > { %v5234_v43 = vpop.trf.xlu0  ;;  %v6726_v44 = vpop.trf.xlu1 }
 0x370   : > { %5489 = vrot.lane.b32.xlu0 %v5488_v30, %s6259_s25  ;;  %v5235_v47 = vunpack.i.l.bf16 %v5234_v43  ;;  %5494 = vrot.lane.b32.xlu1 %v5493_v38, %s6259_s25  ;;  %v5238_v51 = vunpack.i.h.bf16 %v5234_v43 }
 0x372   : > { %v5503_v53 = vpack.i.bf16 %v5235_v47, %v5230_v7 }
 0x373   : > { %v5239_v49 = vpop.trf.xlu0  ;;  %v5263_v19 = vpop.trf.xlu1 }
 0x374   : > { %v5240_v20 = vunpack.i.l.bf16 %v5239_v49  ;;  %5509 = vrot.lane.b32.xlu0 %v5508_v45, %s6259_s25  ;;  %v5243_v52 = vunpack.i.h.bf16 %v5239_v49  ;;  %5499 = vrot.lane.b32.xlu1 %v5498_v50, %s6259_s25  ;;  %v5264_v54 = vunpack.i.l.bf16 %v5263_v19  ;;  %v5267_v60 = vunpack.i.h.bf16 %v5263_v19 }
 0x376   : > { %v5513_v55 = vpack.i.bf16 %v5233_v48, %v5240_v20  ;;  %v5523_v59 = vpack.i.bf16 %v5243_v52, %v5238_v51 }
 0x377   : > { %v5268_v56 = vpop.trf.xlu1  ;;  %v6732_v57 = vpop.trf.xlu0 }
 0x378   : > { %v5269_v58 = vunpack.i.l.bf16 %v5268_v56  ;;  %5514 = vrot.lane.b32.xlu0 %v5513_v55, %s6259_s25  ;;  %5504 = vrot.lane.b32.xlu1 %v5503_v53, %s6259_s25  ;;  %v5272_v61 = vunpack.i.h.bf16 %v5268_v56 }
 0x37a   : > { %v5518_v46 = vpack.i.bf16 %v5269_v58, %v5264_v54 }
 0x37b   : > { %v5273_v62 = vpop.trf.xlu1  ;;  %v6736_v63 = vpop.trf.xlu0 }
 0x37c   : > { %v5277_v0 = vunpack.i.h.bf16 %v5273_v62  ;;  %v5274_v1 = vunpack.i.l.bf16 %v5273_v62  ;;  %5519 = vrot.lane.b32.xlu0 %v5518_v46, %s6259_s25  ;;  %5524 = vrot.lane.b32.xlu1 %v5523_v59, %s6259_s25 }
 0x37e   : > { %v5538_v2 = vpack.i.bf16 %v5277_v0, %v5272_v61  ;;  %v5528_v3 = vpack.i.bf16 %v5267_v60, %v5274_v1 }
 0x37f   : > { %v6740_v4 = vpop.trf.xlu0  ;;  %v5331_v5 = vpop.trf.xlu1 }
 0x380   : > { %5539 = vrot.lane.b32.xlu0 %v5538_v2, %s6259_s25  ;;  %5529 = vrot.lane.b32.xlu1 %v5528_v3, %s6259_s25  ;;  %v5335_v27 = vunpack.i.h.bf16 %v5331_v5  ;;  %v5332_v28 = vunpack.i.l.bf16 %v5331_v5 }
 0x383   : > { %v6744_v9 = vpop.trf.xlu0  ;;  %v5336_v12 = vpop.trf.xlu1 }
 0x384   : > { %v5337_v29 = vunpack.i.l.bf16 %v5336_v12  ;;  %v5340_v36 = vunpack.i.h.bf16 %v5336_v12 }
 0x386   : > { %v5548_v40 = vpack.i.bf16 %v5337_v29, %v5332_v28  ;;  %v5255_v28 = vunpack.i.h.bf16 %v6736_v63 }
 0x387   : > { %v6746_v13 = vpop.trf.xlu0  ;;  %v5341_v14 = vpop.trf.xlu1 }
 0x388   : > { %v5342_v16 = vunpack.i.l.bf16 %v5341_v14  ;;  %v5345_v38 = vunpack.i.h.bf16 %v5341_v14 }
 0x38a   : > { %v5558_v41 = vpack.i.bf16 %v5335_v27, %v5342_v16  ;;  %v5568_v45 = vpack.i.bf16 %v5345_v38, %v5340_v36  ;;  %v5247_v27 = vunpack.i.l.bf16 %v6732_v57  ;;  %v5252_v16 = vunpack.i.l.bf16 %v6736_v63 }
 0x38b   : > { %v6748_v15 = vpop.trf.xlu0  ;;  %v6750_v17 = vpop.trf.xlu1  ;;  %v5260_v63 = vunpack.i.h.bf16 %v6740_v4 }
 0x38f   : > { %v5297_v18 = vpop.trf.xlu0  ;;  %v6752_v21 = vpop.trf.xlu1 }
 0x390   : > { %v5298_v22 = vunpack.i.l.bf16 %v5297_v18  ;;  %v5301_v11 = vunpack.i.h.bf16 %v5297_v18  ;;  %v5216_v18 = vunpack.i.h.bf16 %v6719_v8 }
 0x393   : > { %v5302_v31 = vpop.trf.xlu0  ;;  %v6754_v23 = vpop.trf.xlu1 }
 0x394   : > { %v5303_v24 = vunpack.i.l.bf16 %v5302_v31  ;;  %v5306_v25 = vunpack.i.h.bf16 %v5302_v31  ;;  %v5221_v31 = vunpack.i.h.bf16 %v6722_v39 }
 0x396   : > { %v5533_v26 = vpack.i.bf16 %v5303_v24, %v5298_v22  ;;  %v5226_v24 = vunpack.i.h.bf16 %v6726_v44 }
 0x397   : > { %v5307_v6 = vpop.trf.xlu0  ;;  %v6756_v32 = vpop.trf.xlu1 }
 0x398   : > { %v5311_v33 = vunpack.i.h.bf16 %v5307_v6  ;;  %v5308_v34 = vunpack.i.l.bf16 %v5307_v6  ;;  %5534 = vrot.lane.b32.xlu1 %v5533_v26, %s6259_s25 }
 0x39a   : > { %v5543_v35 = vpack.i.bf16 %v5301_v11, %v5308_v34  ;;  %v5553_v10 = vpack.i.bf16 %v5311_v33, %v5306_v25  ;;  %v5250_v11 = vunpack.i.h.bf16 %v6732_v57 }
 0x39b   : > { %v6759_v37 = vpop.trf.xlu0  ;;  %v6761_v30 = vpop.trf.xlu1 }
 0x39c   : > { %5544 = vrot.lane.b32.xlu0 %v5543_v35, %s6259_s25  ;;  %5554 = vrot.lane.b32.xlu1 %v5553_v10, %s6259_s25 }
 0x39f   : > { %v6765_v42 = vpop.trf.xlu0  ;;  %v6767_v43 = vpop.trf.xlu1 }
 0x3a0   : > { %5549 = vrot.lane.b32.xlu0 %v5548_v40, %s6259_s25  ;;  %5559 = vrot.lane.b32.xlu1 %v5558_v41, %s6259_s25 }
 0x3a3   : > { %v6771_v7 = vpop.trf.xlu0  ;;  %v6773_v47 = vpop.trf.xlu1 }
 0x3a4   : > { %5569 = vrot.lane.b32.xlu0 %v5568_v45, %s6259_s25 }
 0x3a7   : > { %v5365_v48 = vpop.trf.xlu0  ;;  %v6776_v49 = vpop.trf.xlu1 }
 0x3a8   : > { %v5366_v19 = vunpack.i.l.bf16 %v5365_v48  ;;  %v5369_v52 = vunpack.i.h.bf16 %v5365_v48 }
 0x3ab   : > { %v5370_v50 = vpop.trf.xlu0  ;;  %v6778_v51 = vpop.trf.xlu1 }
 0x3ac   : > { %8275 = vst [vmem:[#allocation2_spill] sm:$0xff] %v6778_v51  ;;  %v5371_v20 = vunpack.i.l.bf16 %v5370_v50  ;;  %v5374_v53 = vunpack.i.h.bf16 %v5370_v50 }
 0x3ae   : > { %v5563_v54 = vpack.i.bf16 %v5371_v20, %v5366_v19 }
 0x3af   : > { %v5375_v55 = vpop.trf.xlu0 }
 0x3b0   : > { %v5379_v56 = vunpack.i.h.bf16 %v5375_v55  ;;  %v5376_v58 = vunpack.i.l.bf16 %v5375_v55  ;;  %5564 = vrot.lane.b32.xlu1 %v5563_v54, %s6259_s25 }
 0x3b2   : > { %v5573_v59 = vpack.i.bf16 %v5369_v52, %v5376_v58  ;;  %v5578_v60 = vpack.i.bf16 %v5379_v56, %v5374_v53 }
 0x3b3   : > { %v6781_v61 = vpop.trf.xlu0 }
 0x3b4   : > { %5574 = vrot.lane.b32.xlu0 %v5573_v59, %s6259_s25  ;;  %5579 = vrot.lane.b32.xlu1 %v5578_v60, %s6259_s25  ;;  %s359_s25 = scalar_lea.vmem %s8225_s8, %s4938_s17 }
 0x3b7   : > { %v6785_v46 = vpop.trf.xlu0 }
 0x3bb   : > { %v6787_v62 = vpop.trf.xlu0 }
 0x3bf   : > { %v6789_v0 = vpop.trf.xlu0 }
 0x3c3   : > { %v6791_v1 = vpop.trf.xlu0 }
 0x3c7   : > { %v6793_v2 = vpop.trf.xlu0 }
 0x3cb   : > { %v6798_v12 = vpop.permute.xlu0 %5449 }
 0x3ce   : > { %v6795_v3 = vpop.permute.xlu1 %5454 }
 0x3cf   : > { %v5457_v5 = vunpack.i.h.bf16 %v6795_v3 }
 0x3d1   : > { %v6802_v22 = vsel %vm3263_vm8, %v5216_v18, %v5457_v5 }
 0x3d2   : > { %v5460_v14 = vpop.permute.xlu1 %5459  ;;  %8276 = vst [vmem:[#allocation3_spill] sm:$0xff] %v6802_v22  ;;  %v5480_v25 = vpop.permute.xlu0 %5479  ;;  %v3372_v33 = vrot.slane %v6802_v22, 1  ;;  %v3549_v50 = vrot.slane %v6802_v22, 2 }
 0x3d3   : > { %v5462_v34 = vunpack.i.h.bf16 %v5460_v14  ;;  %v5461_v35 = vunpack.i.l.bf16 %v5460_v14  ;;  %v5482_v10 = vunpack.i.h.bf16 %v5480_v25  ;;  %v5481_v36 = vunpack.i.l.bf16 %v5480_v25 }
 0x3d4   : > { %v5213_v25 = vunpack.i.l.bf16 %v6719_v8  ;;  %v5456_v8 = vunpack.i.l.bf16 %v6795_v3  ;;  %v5284_v3 = vunpack.i.h.bf16 %v6744_v9 }
 0x3d5   : > { %v6825_v53 = vsel %vm3263_vm8, %v5252_v16, %v5462_v34  ;;  %v6828_v54 = vsel %vm3263_vm8, %v5247_v27, %v5461_v35  ;;  %v3275_v58 = vsel %vm3263_vm8, %v5260_v63, %v5482_v10  ;;  %v6834_v59 = vsel %vm3263_vm8, %v5255_v28, %v5481_v36 }
 0x3d6   : > { %v5465_v26 = vpop.permute.xlu1 %5464  ;;  %8277 = vst [vmem:[#allocation4_spill] sm:$0xff] %v6825_v53  ;;  %8278 = vst [vmem:[#allocation5_spill] sm:$0xff] %v6828_v54  ;;  %v5218_v27 = vunpack.i.l.bf16 %v6722_v39  ;;  %v5223_v28 = vunpack.i.l.bf16 %v6726_v44  ;;  %v5289_v16 = vunpack.i.h.bf16 %v6746_v13  ;;  %v5452_v10 = vunpack.i.h.bf16 %v6798_v12 }
 0x3d7   : > { %v5467_v29 = vunpack.i.h.bf16 %v5465_v26  ;;  %v5466_v6 = vunpack.i.l.bf16 %v5465_v26  ;;  %8279 = vst [vmem:[#allocation6_spill] sm:$0xff] %v6834_v59 }
 0x3d9   : > { %v3269_v40 = vsel %vm3263_vm8, %v5226_v24, %v5467_v29  ;;  %v6813_v38 = vsel %vm3263_vm8, %v5221_v31, %v5466_v6  ;;  %v3385_v29 = vrot.slane %v3275_v58, 1  ;;  %v3383_v6 = vrot.slane %v6834_v59, 1 }
 0x3da   : > { %v3375_v41 = vrot.slane %v3269_v40, 1  ;;  %v3552_v45 = vrot.slane %v3269_v40, 2  ;;  %v3373_v57 = vrot.slane %v6813_v38, 1  ;;  %v3550_v48 = vrot.slane %v6813_v38, 2  ;;  %v6817_v19 = vpop.permute.xlu1 %5469 }
 0x3db   : > { %v5472_v20 = vunpack.i.h.bf16 %v6817_v19  ;;  %v5583_v52 = vpack.i.bf16 %v6813_v38, %v6802_v22  ;;  %v3386_v63 = vsel %vm3366_vm9, %v3383_v6, %v3385_v29 }
 0x3dc   : > { %v3374_v55 = vsel %vm3366_vm9, %v3372_v33, %v3373_v57  ;;  %v3376_v56 = vsel %vm3366_vm9, %v3373_v57, %v3375_v41  ;;  %v3551_v31 = vsel %vm3543_vm10, %v3549_v50, %v3550_v48  ;;  %v3553_v24 = vsel %vm3543_vm10, %v3550_v48, %v3552_v45 }
 0x3dd   : > { %v6837_v60 = vsel %vm3263_vm8, %v5250_v11, %v5472_v20  ;;  %5584 = vrot.lane.b32.xlu0 %v5583_v52, %s6247_s20  ;;  %v6842_v14 = vpack.i.bf16 %v3376_v56, %v3374_v55  ;;  %v5588_v11 = vpack.i.bf16 %v6825_v53, %v6828_v54  ;;  %v5294_v33 = vunpack.i.h.bf16 %v6748_v15 }
 0x3de   : > { %8280 = vst [vmem:[#allocation7_spill] sm:$0xff] %v6837_v60  ;;  %v6840_v5 = vpop.permute.xlu0 %5484  ;;  %v6844_v18 = vpop.permute.xlu1 %5474  ;;  %v3382_v26 = vrot.slane %v6837_v60, 1  ;;  %v6863_v35 = vpack.i.bf16 %v3553_v24, %v3551_v31  ;;  %v3559_v40 = vrot.slane %v6837_v60, 2  ;;  %v5451_v41 = vunpack.i.l.bf16 %v6798_v12 }
 0x3df   : > { %5629 = vrot.lane.b32.xlu1 %v6842_v14, %s6246_s19  ;;  %v5487_v39 = vunpack.i.h.bf16 %v6840_v5  ;;  %v3562_v48 = vrot.slane %v3275_v58, 2  ;;  %v3560_v50 = vrot.slane %v6834_v59, 2  ;;  %v3266_v20 = vsel %vm3263_vm8, %v5223_v28, %v5456_v8 }
 0x3e0   : > { %v3384_v36 = vsel %vm3366_vm9, %v3382_v26, %v3383_v6  ;;  %v6886_v31 = vsel %vm3263_vm8, %v5218_v27, %v5452_v10  ;;  %v6895_v28 = vsel %vm3263_vm8, %v5213_v25, %v5451_v41  ;;  %v3370_v6 = vrot.slane %v3266_v20, 1 }
 0x3e1   : > { %5589 = vrot.lane.b32.xlu0 %v5588_v11, %s6253_s23  ;;  %v6883_v56 = vpack.i.bf16 %v3386_v63, %v3384_v36  ;;  %8282 = vst [vmem:[#allocation9_spill] sm:$0xff] %v6886_v31  ;;  %v6889_v58 = vsel %vm3263_vm8, %v5284_v3, %v5487_v39  ;;  %v3561_v26 = vsel %vm3543_vm10, %v3559_v40, %v3560_v50  ;;  %8284 = vst [vmem:[#allocation11_spill] sm:$0xff] %v6895_v28 }
 0x3e2   : > { %v6861_v34 = vpop.permute.xlu0 %5489  ;;  %v5495_v44 = vpop.permute.xlu1 %5494  ;;  %8283 = vst [vmem:[#allocation10_spill] sm:$0xff] %v6889_v58  ;;  %v3392_v25 = vrot.slane %v6889_v58, 1  ;;  %v3368_v10 = vrot.slane %v6886_v31, 1  ;;  %v3367_v39 = vrot.slane %v6895_v28, 1  ;;  %v3545_v63 = vrot.slane %v6886_v31, 2 }
 0x3e3   : > { %v5497_v45 = vunpack.i.h.bf16 %v5495_v44  ;;  %v5496_v57 = vunpack.i.l.bf16 %v5495_v44  ;;  %5634 = vrot.lane.b32.xlu1 %v6863_v35, %s6248_s21 }
 0x3e4   : > { %v3371_v3 = vsel %vm3366_vm9, %v3368_v10, %v3370_v6 }
 0x3e5   : > { %v3281_v52 = vsel %vm3263_vm8, %v5294_v33, %v5497_v45  ;;  %v6878_v55 = vsel %vm3263_vm8, %v5289_v16, %v5496_v57  ;;  %5594 = vrot.lane.b32.xlu0 %v5588_v11, %s6247_s20  ;;  %v5598_v11 = vpack.i.bf16 %v6834_v59, %v6837_v60  ;;  %v3563_v16 = vsel %vm3543_vm10, %v3560_v50, %v3562_v48 }
 0x3e6   : > { %8281 = vst [vmem:[#allocation8_spill] sm:$0xff] %v6878_v55  ;;  %v6881_v12 = vpop.permute.xlu0 %5509  ;;  %v6891_v24 = vpop.permute.xlu1 %5499  ;;  %v3395_v29 = vrot.slane %v3281_v52, 1  ;;  %v3393_v27 = vrot.slane %v6878_v55, 1  ;;  %v6906_v8 = vpack.i.bf16 %v3563_v16, %v3561_v26  ;;  %v3572_v44 = vrot.slane %v3281_v52, 2 }
 0x3e7   : > { %5699 = vrot.lane.b32.xlu1 %v6883_v56, %s6246_s19  ;;  %v3570_v40 = vrot.slane %v6878_v55, 2  ;;  %v3547_v57 = vrot.slane %v3266_v20, 2  ;;  %v3569_v48 = vrot.slane %v6889_v58, 2  ;;  %v3544_v52 = vrot.slane %v6895_v28, 2 }
 0x3e8   : > { %v3394_v41 = vsel %vm3366_vm9, %v3392_v25, %v3393_v27  ;;  %v3396_v45 = vsel %vm3366_vm9, %v3393_v27, %v3395_v29  ;;  %v3369_v16 = vsel %vm3366_vm9, %v3367_v39, %v3368_v10  ;;  %v5281_v29 = vunpack.i.l.bf16 %v6744_v9 }
 0x3e9   : > { %5599 = vrot.lane.b32.xlu0 %v5598_v11, %s6253_s23  ;;  %v6922_v50 = vpack.i.bf16 %v3396_v45, %v3394_v41  ;;  %v3571_v25 = vsel %vm3543_vm10, %v3569_v48, %v3570_v40  ;;  %v3573_v20 = vsel %vm3543_vm10, %v3570_v40, %v3572_v44  ;;  %v5357_v27 = vunpack.i.h.bf16 %v6752_v21 }
 0x3ea   : > { %v6904_v33 = vpop.permute.xlu0 %5514  ;;  %v6911_v36 = vpop.permute.xlu1 %5504  ;;  %v5477_v41 = vunpack.i.h.bf16 %v6844_v18  ;;  %v5476_v45 = vunpack.i.l.bf16 %v6844_v18  ;;  %v3548_v39 = vsel %vm3543_vm10, %v3545_v63, %v3547_v57  ;;  %v5286_v44 = vunpack.i.l.bf16 %v6746_v13 }
 0x3eb   : > { %5704 = vrot.lane.b32.xlu1 %v6906_v8, %s6248_s21  ;;  %v5517_v10 = vunpack.i.h.bf16 %v6904_v33  ;;  %v5352_v9 = vunpack.i.h.bf16 %v6750_v17  ;;  %v5383_v40 = vunpack.i.l.bf16 %v6781_v61  ;;  %v6943_v48 = vpack.i.bf16 %v3573_v20, %v3571_v25 }
 0x3ec   : > { %v3546_v18 = vsel %vm3543_vm10, %v3544_v52, %v3545_v63  ;;  %v5512_v60 = vunpack.i.h.bf16 %v6881_v12  ;;  %v5511_v57 = vunpack.i.l.bf16 %v6881_v12  ;;  %v5502_v13 = vunpack.i.h.bf16 %v6891_v24 }
 0x3ed   : > { %5604 = vrot.lane.b32.xlu0 %v5598_v11, %s6247_s20  ;;  %v5608_v11 = vpack.i.bf16 %v3371_v3, %v3369_v16  ;;  %v5613_v59 = vpack.i.bf16 %v3548_v39, %v3546_v18  ;;  %v5388_v25 = vunpack.i.l.bf16 %v6785_v46  ;;  %v6956_v20 = vsel %vm3263_vm8, %v5286_v44, %v5477_v41 }
 0x3ee   : > { %v6925_v26 = vpop.permute.xlu1 %5524  ;;  %v5520_v6 = vpop.permute.xlu0 %5519  ;;  %v6962_v63 = vsel %vm3263_vm8, %v5352_v9, %v5517_v10  ;;  %v5318_v52 = vunpack.i.h.bf16 %v6759_v37  ;;  %v5323_v12 = vunpack.i.h.bf16 %v6765_v42 }
 0x3ef   : > { %v5526_v31 = vunpack.i.l.bf16 %v6925_v26  ;;  %5779 = vrot.lane.b32.xlu1 %v6922_v50, %s6246_s19  ;;  %v5522_v28 = vunpack.i.h.bf16 %v5520_v6  ;;  %v5521_v3 = vunpack.i.l.bf16 %v5520_v6  ;;  %8286 = vst [vmem:[#allocation13_spill] sm:$0xff] %v6962_v63 }
 0x3f0   : > { %v6983_v10 = vsel %vm3263_vm8, %v5318_v52, %v5502_v13  ;;  %v5471_v52 = vunpack.i.l.bf16 %v6817_v19  ;;  %v5386_v19 = vunpack.i.h.bf16 %v6781_v61  ;;  %v5648_v61 = vpack.i.bf16 %v6878_v55, %v6889_v58 }
 0x3f1   : > { %5609 = vrot.lane.b32.xlu0 %v5608_v11, %s6246_s19  ;;  %v6946_v16 = vsel %vm3263_vm8, %v5357_v27, %v5526_v31  ;;  %v6959_v31 = vsel %vm3263_vm8, %v5281_v29, %v5476_v45  ;;  %v5328_v27 = vunpack.i.h.bf16 %v6771_v7  ;;  %v6973_v11 = vsel %vm3263_vm8, %v5388_v25, %v5522_v28  ;;  %8291 = vst [vmem:[#allocation18_spill] sm:$0xff] %v6983_v10 }
 0x3f2   : > { %8285 = vst [vmem:[#allocation12_spill] sm:$0xff] %v6946_v16  ;;  %v6970_v6 = vpack.i.bf16 %v6946_v16, %v6962_v63  ;;  %8288 = vst [vmem:[#allocation15_spill] sm:$0xff] %v6973_v11  ;;  %v6976_v29 = vsel %vm3263_vm8, %v5383_v40, %v5521_v3  ;;  %v6980_v45 = vsel %vm3263_vm8, %v5323_v12, %v5511_v57  ;;  %v3579_v40 = vrot.slane %v6983_v10, 2  ;;  %v7000_v13 = vpop.permute.xlu0 %5539  ;;  %v7002_v25 = vpop.permute.xlu1 %5529 }
 0x3f3   : > { %5784 = vrot.lane.b32.xlu1 %v6943_v48, %s6248_s21  ;;  %8289 = vst [vmem:[#allocation16_spill] sm:$0xff] %v6976_v29  ;;  %v3287_v41 = vsel %vm3263_vm8, %v5328_v27, %v5512_v60  ;;  %8290 = vst [vmem:[#allocation17_spill] sm:$0xff] %v6980_v45  ;;  %v5843_v28 = vpack.i.bf16 %v6973_v11, %v6976_v29  ;;  %v3402_v60 = vrot.slane %v6983_v10, 1  ;;  %v3403_v44 = vrot.slane %v6980_v45, 1 }
 0x3f4   : > { %8287 = vst [vmem:[#allocation14_spill] sm:$0xff] %v6970_v6  ;;  %v3405_v39 = vrot.slane %v3287_v41, 1  ;;  %v3582_v9 = vrot.slane %v3287_v41, 2  ;;  %v3580_v57 = vrot.slane %v6980_v45, 2  ;;  %v5541_v27 = vunpack.i.l.bf16 %v7000_v13 }
 0x3f5   : > { %5614 = vrot.lane.b32.xlu0 %v5613_v59, %s6248_s21  ;;  %v5618_v59 = vpack.i.bf16 %v6956_v20, %v6959_v31  ;;  %v3404_v3 = vsel %vm3366_vm9, %v3402_v60, %v3403_v44  ;;  %v5532_v41 = vunpack.i.h.bf16 %v7002_v25  ;;  %v5257_v60 = vunpack.i.l.bf16 %v6740_v4 }
 0x3f6   : > { %v3406_v18 = vsel %vm3366_vm9, %v3403_v44, %v3405_v39  ;;  %v3583_v39 = vsel %vm3543_vm10, %v3580_v57, %v3582_v9  ;;  %v3555_v58 = vrot.slane %v6825_v53, 2 }
 0x3f7   : > { %5809 = vrot.lane.b32.xlu1 %v6970_v6, %s6247_s20  ;;  %v7008_v12 = vpack.i.bf16 %v3406_v18, %v3404_v3  ;;  %v7028_v4 = vsel %vm3263_vm8, %v5386_v19, %v5532_v41  ;;  %v3377_v3 = vrot.slane %v6828_v54, 1  ;;  %v3378_v18 = vrot.slane %v6825_v53, 1 }
 0x3f8   : > { %v5400_v41 = vunpack.i.l.bf16 %v6756_v32  ;;  %v5362_v19 = vunpack.i.h.bf16 %v6754_v23 }
 0x3f9   : > { %5619 = vrot.lane.b32.xlu0 %v5618_v59, %s6253_s23 }
 0x3fb   : > { %5844 = vrot.lane.b32.xlu1 %v5843_v28, %s6253_s23 }
 0x3fd   : > { %5624 = vrot.lane.b32.xlu0 %v5618_v59, %s6247_s20  ;;  %v3581_v59 = vsel %vm3543_vm10, %v3579_v40, %v3580_v57  ;;  %v5527_v57 = vunpack.i.h.bf16 %v6925_v26 }
 0x3fe   : > { %v7022_v44 = vpack.i.bf16 %v3583_v39, %v3581_v59  ;;  %v5405_v59 = vunpack.i.l.bf16 %v6761_v30 }
 0x3ff   : > { %5849 = vrot.lane.b32.xlu1 %v5843_v28, %s6247_s20  ;;  %v5391_v28 = vunpack.i.h.bf16 %v6785_v46 }
 0x400   : > { %8292 = vst [vmem:[#allocation19_spill] sm:$0xff] %v7022_v44 }
 0x401   : > { %5639 = vrot.lane.b32.xlu0 %v6842_v14, %s6252_s22  ;;  %v3272_v14 = vsel %vm3263_vm8, %v5257_v60, %v5471_v52  ;;  %v7025_v40 = vsel %vm3263_vm8, %v5391_v28, %v5541_v27  ;;  %v3379_v28 = vsel %vm3366_vm9, %v3377_v3, %v3378_v18 }
 0x402   : > { %v3380_v46 = vrot.slane %v3272_v14, 1  ;;  %v3557_v39 = vrot.slane %v3272_v14, 2  ;;  %v3293_v14 = vsel %vm3263_vm8, %v5362_v19, %v5527_v57  ;;  %v3412_v57 = vrot.slane %v6962_v63, 1 }
 0x403   : > { %5854 = vrot.lane.b32.xlu1 %v7008_v12, %s6246_s19  ;;  %v3415_v3 = vrot.slane %v3293_v14, 1 }
 0x404   : > { %v3381_v60 = vsel %vm3366_vm9, %v3378_v18, %v3380_v46  ;;  %v3558_v6 = vsel %vm3543_vm10, %v3555_v58, %v3557_v39 }
 0x405   : > { %5644 = vrot.lane.b32.xlu0 %v6863_v35, %s6260_s26  ;;  %v5883_v35 = vpack.i.bf16 %v7025_v40, %v7028_v4  ;;  %v5658_v46 = vpack.i.bf16 %v3381_v60, %v3379_v28  ;;  %v3590_v60 = vrot.slane %v6946_v16, 2 }
 0x407   : > { %5859 = vrot.lane.b32.xlu1 %v7022_v44, %s6248_s21 }
 0x409   : > { %5649 = vrot.lane.b32.xlu0 %v5648_v61, %s6253_s23 }
 0x40a   : > { %v5535_v9 = vpop.permute.xlu1 %5534 }
 0x40b   : > { %v5537_v52 = vunpack.i.h.bf16 %v5535_v9  ;;  %v5536_v27 = vunpack.i.l.bf16 %v5535_v9  ;;  %5884 = vrot.lane.b32.xlu1 %v5883_v35, %s6253_s23  ;;  %v3554_v9 = vrot.slane %v6828_v54, 2 }
 0x40d   : > { %5654 = vrot.lane.b32.xlu0 %v5648_v61, %s6247_s20  ;;  %v7048_v55 = vsel %vm3263_vm8, %v5405_v59, %v5537_v52  ;;  %v7051_v26 = vsel %vm3263_vm8, %v5400_v41, %v5536_v27  ;;  %v3556_v18 = vsel %vm3543_vm10, %v3554_v9, %v3555_v58  ;;  %v3413_v52 = vrot.slane %v6946_v16, 1 }
 0x40e   : > { %8293 = vst [vmem:[#allocation20_spill] sm:$0xff] %v7048_v55  ;;  %8294 = vst [vmem:[#allocation21_spill] sm:$0xff] %v7051_v26  ;;  %v5918_v61 = vpack.i.bf16 %v7048_v55, %v7051_v26  ;;  %v5663_v27 = vpack.i.bf16 %v3558_v6, %v3556_v18  ;;  %v5545_v41 = vpop.permute.xlu0 %5544  ;;  %v3589_v58 = vrot.slane %v6962_v63, 2  ;;  %v7074_v19 = vpop.permute.xlu1 %5554  ;;  %v5492_v18 = vunpack.i.h.bf16 %v6861_v34 }
 0x40f   : > { %5889 = vrot.lane.b32.xlu1 %v5883_v35, %s6247_s20  ;;  %v3592_v35 = vrot.slane %v3293_v14, 2  ;;  %v3414_v59 = vsel %vm3366_vm9, %v3412_v57, %v3413_v52  ;;  %v3416_v39 = vsel %vm3366_vm9, %v3413_v52, %v3415_v3  ;;  %v5531_v3 = vunpack.i.l.bf16 %v7002_v25 }
 0x410   : > { %v7072_v6 = vpack.i.bf16 %v3416_v39, %v3414_v59  ;;  %v3591_v28 = vsel %vm3543_vm10, %v3589_v58, %v3590_v60  ;;  %v5491_v52 = vunpack.i.l.bf16 %v6861_v34  ;;  %v5393_v57 = vunpack.i.l.bf16 %v6787_v62 }
 0x411   : > { %5659 = vrot.lane.b32.xlu0 %v5658_v46, %s6246_s19  ;;  %v3593_v9 = vsel %vm3543_vm10, %v3590_v60, %v3592_v35  ;;  %v5315_v59 = vunpack.i.l.bf16 %v6759_v37  ;;  %v5320_v39 = vunpack.i.l.bf16 %v6765_v42  ;;  %v5547_v58 = vunpack.i.h.bf16 %v5545_v41 }
 0x412   : > { %8295 = vst [vmem:[#allocation22_spill] sm:$0xff] %v7072_v6  ;;  %v7078_v14 = vpop.permute.xlu0 %5549  ;;  %v7091_v35 = vpop.permute.xlu1 %5559  ;;  %v3296_v25 = vsel %vm3263_vm8, %v5393_v57, %v5531_v3  ;;  %v5556_v34 = vunpack.i.l.bf16 %v7074_v19  ;;  %v5546_v63 = vunpack.i.l.bf16 %v5545_v41  ;;  %v5403_v37 = vunpack.i.h.bf16 %v6756_v32 }
 0x413   : > { %5919 = vrot.lane.b32.xlu1 %v5918_v61, %s6253_s23  ;;  %v5408_v42 = vunpack.i.h.bf16 %v6761_v30  ;;  %v5410_v3 = vunpack.i.l.bf16 %v6767_v43  ;;  %v3420_v57 = vrot.slane %v3296_v25, 1  ;;  %v3417_v32 = vrot.slane %v6976_v29, 1 }
 0x414   : > { %v3597_v54 = vrot.slane %v3296_v25, 2 }
 0x415   : > { %5664 = vrot.lane.b32.xlu0 %v5663_v27, %s6248_s21  ;;  %v7118_v41 = vsel %vm3263_vm8, %v5408_v42, %v5556_v34  ;;  %v3302_v30 = vsel %vm3263_vm8, %v5410_v3, %v5546_v63  ;;  %v3595_v34 = vrot.slane %v6973_v11, 2  ;;  %v5434_v42 = vunpack.i.l.bf16 %v6773_v47 }
 0x416   : > { %v7095_v60 = vpop.permute.xlu0 %5569  ;;  %8300 = vst [vmem:[#allocation27_spill] sm:$0xff] %v7118_v41  ;;  %v3430_v3 = vrot.slane %v3302_v30, 1  ;;  %v3607_v53 = vrot.slane %v3302_v30, 2  ;;  %v3605_v30 = vrot.slane %v7048_v55, 2 }
 0x417   : > { %5924 = vrot.lane.b32.xlu1 %v5918_v61, %s6247_s20  ;;  %v7083_v61 = vpack.i.bf16 %v3593_v9, %v3591_v28  ;;  %v7101_v28 = vsel %vm3263_vm8, %v5320_v39, %v5492_v18  ;;  %v7104_v9 = vsel %vm3263_vm8, %v5315_v59, %v5491_v52  ;;  %v7115_v18 = vsel %vm3263_vm8, %v5403_v37, %v5547_v58 }
 0x418   : > { %8297 = vst [vmem:[#allocation24_spill] sm:$0xff] %v7101_v28  ;;  %8298 = vst [vmem:[#allocation25_spill] sm:$0xff] %v7104_v9  ;;  %v5688_v52 = vpack.i.bf16 %v7101_v28, %v7104_v9  ;;  %v3594_v37 = vrot.slane %v6976_v29, 2  ;;  %v5948_v63 = vpack.i.bf16 %v7118_v41, %v7115_v18 }
 0x419   : > { %5669 = vrot.lane.b32.xlu0 %v5658_v46, %s6261_s27  ;;  %8296 = vst [vmem:[#allocation23_spill] sm:$0xff] %v7083_v61  ;;  %8299 = vst [vmem:[#allocation26_spill] sm:$0xff] %v7115_v18 }
 0x41a   : > { %v3596_v22 = vsel %vm3543_vm10, %v3594_v37, %v3595_v34 }
 0x41b   : > { %5929 = vrot.lane.b32.xlu1 %v7072_v6, %s6246_s19 }
 0x41d   : > { %5674 = vrot.lane.b32.xlu0 %v5663_v27, %s6262_s28 }
 0x41f   : > { %5934 = vrot.lane.b32.xlu1 %v7083_v61, %s6248_s21 }
 0x421   : > { %5679 = vrot.lane.b32.xlu0 %v5658_v46, %s6252_s22 }
 0x422   : > { %v5565_v46 = vpop.permute.xlu1 %5564 }
 0x423   : > { %5939 = vrot.lane.b32.xlu1 %v7072_v6, %s6252_s22  ;;  %v5567_v59 = vunpack.i.h.bf16 %v5565_v46  ;;  %v5566_v39 = vunpack.i.l.bf16 %v5565_v46  ;;  %v5439_v6 = vunpack.i.l.bf16 %v6776_v49  ;;  %v5444_v46 = vunpack.i.l.bf16 %v6778_v51 }
 0x424   : > { %v3428_v51 = vrot.slane %v7048_v55, 1 }
 0x425   : > { %5684 = vrot.lane.b32.xlu0 %v5663_v27, %s6260_s26  ;;  %v3418_v27 = vrot.slane %v6973_v11, 1  ;;  %v7140_v29 = vsel %vm3263_vm8, %v5439_v6, %v5567_v59  ;;  %v3427_v6 = vrot.slane %v7051_v26, 1  ;;  %v3604_v59 = vrot.slane %v7051_v26, 2 }
 0x426   : > { %v7112_v16 = vpop.permute.xlu0 %5574 }
 0x427   : > { %5944 = vrot.lane.b32.xlu1 %v7083_v61, %s6260_s26  ;;  %v5576_v58 = vunpack.i.l.bf16 %v7112_v16  ;;  %v7137_v61 = vsel %vm3263_vm8, %v5434_v42, %v5566_v39  ;;  %v3419_v11 = vsel %vm3366_vm9, %v3417_v32, %v3418_v27  ;;  %v3421_v25 = vsel %vm3366_vm9, %v3418_v27, %v3420_v57 }
 0x428   : > { %v3598_v39 = vsel %vm3543_vm10, %v3595_v34, %v3597_v54  ;;  %v3819_v42 = vrot.slane %v7137_v61, 1  ;;  %v3820_v32 = vrot.slane %v7140_v29, 1  ;;  %v3431_v57 = vsel %vm3366_vm9, %v3428_v51, %v3430_v3 }
 0x429   : > { %5689 = vrot.lane.b32.xlu0 %v5688_v52, %s6253_s23  ;;  %v3314_v44 = vsel %vm3263_vm8, %v5444_v46, %v5576_v58  ;;  %v3920_v27 = vrot.slane %v7137_v61, 2  ;;  %v3921_v58 = vrot.slane %v7140_v29, 2  ;;  %v7159_v54 = vpack.i.bf16 %v3421_v25, %v3419_v11 }
 0x42a   : > { %v3822_v37 = vrot.slane %v3314_v44, 1  ;;  %v3608_v34 = vsel %vm3543_vm10, %v3605_v30, %v3607_v53  ;;  %v7162_v46 = vpack.i.bf16 %v3598_v39, %v3596_v22  ;;  %v3429_v3 = vsel %vm3366_vm9, %v3427_v6, %v3428_v51 }
 0x42b   : > { %5949 = vrot.lane.b32.xlu1 %v5948_v63, %s6253_s23  ;;  %v3606_v26 = vsel %vm3543_vm10, %v3604_v59, %v3605_v30  ;;  %v7168_v55 = vpack.i.bf16 %v3431_v57, %v3429_v3  ;;  %v3821_v11 = vsel %vm3366_vm9, %v3819_v42, %v3820_v32  ;;  %v3922_v22 = vsel %vm3543_vm10, %v3920_v27, %v3921_v58 }
 0x42c   : > { %v5486_v39 = vunpack.i.l.bf16 %v6840_v5  ;;  %v5551_v6 = vunpack.i.l.bf16 %v7078_v14  ;;  %v5291_v59 = vunpack.i.l.bf16 %v6748_v15  ;;  %v5542_v42 = vunpack.i.h.bf16 %v7000_v13 }
 0x42d   : > { %5694 = vrot.lane.b32.xlu0 %v5688_v52, %s6247_s20  ;;  %v3923_v52 = vrot.slane %v3314_v44, 2  ;;  %v3823_v44 = vsel %vm3366_vm9, %v3820_v32, %v3822_v37  ;;  %v5417_v32 = vunpack.i.l.bf16 %v6789_v0  ;;  %v5422_v57 = vunpack.i.l.bf16 %v6791_v1 }
 0x42e   : > { %v7177_v53 = vpack.i.bf16 %v3823_v44, %v3821_v11  ;;  %v5396_v5 = vunpack.i.h.bf16 %v6787_v62  ;;  %v3278_v30 = vsel %vm3263_vm8, %v5291_v59, %v5486_v39  ;;  %v3387_v27 = vrot.slane %v6959_v31, 1 }
 0x42f   : > { %5954 = vrot.lane.b32.xlu1 %v5948_v63, %s6247_s20  ;;  %v7174_v63 = vpack.i.bf16 %v3608_v34, %v3606_v26  ;;  %v3924_v25 = vsel %vm3543_vm10, %v3921_v58, %v3923_v52  ;;  %v5552_v26 = vunpack.i.h.bf16 %v7078_v14  ;;  %v5728_v14 = vpack.i.bf16 %v6980_v45, %v6983_v10 }
 0x430   : > { %v7182_v51 = vpack.i.bf16 %v3924_v25, %v3922_v22  ;;  %v3299_v13 = vsel %vm3263_vm8, %v5396_v5, %v5542_v42  ;;  %v3390_v62 = vrot.slane %v3278_v30, 1  ;;  %v3388_v58 = vrot.slane %v6956_v20, 1 }
 0x431   : > { %5709 = vrot.lane.b32.xlu0 %v6883_v56, %s6261_s27  ;;  %v7205_v15 = vsel %vm3263_vm8, %v5422_v57, %v5552_v26  ;;  %v3425_v37 = vrot.slane %v3299_v13, 1  ;;  %v3422_v52 = vrot.slane %v7028_v4, 1  ;;  %v3423_v34 = vrot.slane %v7025_v40, 1 }
 0x432   : > { %8302 = vst [vmem:[#allocation29_spill] sm:$0xff] %v7205_v15  ;;  %v3567_v3 = vrot.slane %v3278_v30, 2  ;;  %v3389_v11 = vsel %vm3366_vm9, %v3387_v27, %v3388_v58  ;;  %v3391_v44 = vsel %vm3366_vm9, %v3388_v58, %v3390_v62  ;;  %v3564_v22 = vrot.slane %v6959_v31, 2  ;;  %v7236_v27 = vpop.permute.xlu1 %5579 }
 0x433   : > { %5979 = vrot.lane.b32.xlu1 %v7159_v54, %s6261_s27  ;;  %v3565_v25 = vrot.slane %v6956_v20, 2  ;;  %v3602_v39 = vrot.slane %v3299_v13, 2  ;;  %v3424_v26 = vsel %vm3366_vm9, %v3422_v52, %v3423_v34  ;;  %v3599_v59 = vrot.slane %v7028_v4, 2 }
 0x434   : > { %v3600_v42 = vrot.slane %v7025_v40, 2  ;;  %v5413_v10 = vunpack.i.h.bf16 %v6767_v43 }
 0x435   : > { %5714 = vrot.lane.b32.xlu0 %v6906_v8, %s6262_s28  ;;  %v3566_v57 = vsel %vm3543_vm10, %v3564_v22, %v3565_v25  ;;  %v3568_v5 = vsel %vm3543_vm10, %v3565_v25, %v3567_v3  ;;  %v5349_v25 = vunpack.i.l.bf16 %v6750_v17 }
 0x436   : > { %v3601_v13 = vsel %vm3543_vm10, %v3599_v59, %v3600_v42  ;;  %v5743_v62 = vpack.i.bf16 %v3568_v5, %v3566_v57  ;;  %v5425_v59 = vunpack.i.h.bf16 %v6791_v1 }
 0x437   : > { %5984 = vrot.lane.b32.xlu1 %v7162_v46, %s6262_s28 }
 0x439   : > { %5719 = vrot.lane.b32.xlu0 %v6883_v56, %s6252_s22  ;;  %v7202_v56 = vsel %vm3263_vm8, %v5417_v32, %v5551_v6  ;;  %v3426_v6 = vsel %vm3366_vm9, %v3423_v34, %v3425_v37  ;;  %v5738_v32 = vpack.i.bf16 %v3391_v44, %v3389_v11  ;;  %v5507_v11 = vunpack.i.h.bf16 %v6911_v36 }
 0x43a   : > { %8301 = vst [vmem:[#allocation28_spill] sm:$0xff] %v7202_v56  ;;  %v6008_v30 = vpack.i.bf16 %v3426_v6, %v3424_v26  ;;  %v5506_v44 = vunpack.i.l.bf16 %v6911_v36  ;;  %v5571_v26 = vunpack.i.l.bf16 %v7095_v60 }
 0x43b   : > { %5989 = vrot.lane.b32.xlu1 %v7159_v54, %s6252_s22 }
 0x43c   : > { %v7270_v36 = vsel %vm3263_vm8, %v5349_v25, %v5506_v44  ;;  %v7278_v57 = vsel %vm3263_vm8, %v5425_v59, %v5571_v26  ;;  %v5325_v25 = vunpack.i.l.bf16 %v6771_v7 }
 0x43d   : > { %5724 = vrot.lane.b32.xlu0 %v6906_v8, %s6260_s26  ;;  %v5998_v8 = vpack.i.bf16 %v7205_v15, %v7202_v56  ;;  %8305 = vst [vmem:[#allocation32_spill] sm:$0xff] %v7278_v57 }
 0x43f   : > { %5994 = vrot.lane.b32.xlu1 %v7162_v46, %s6260_s26 }
 0x441   : > { %5729 = vrot.lane.b32.xlu0 %v5728_v14, %s6253_s23 }
 0x443   : > { %5999 = vrot.lane.b32.xlu1 %v5998_v8, %s6253_s23 }
 0x445   : > { %5734 = vrot.lane.b32.xlu0 %v5728_v14, %s6247_s20  ;;  %v3603_v14 = vsel %vm3543_vm10, %v3600_v42, %v3602_v39  ;;  %v5354_v39 = vunpack.i.l.bf16 %v6752_v21  ;;  %v5420_v21 = vunpack.i.h.bf16 %v6789_v0 }
 0x446   : > { %v6013_v58 = vpack.i.bf16 %v3603_v14, %v3601_v13 }
 0x447   : > { %6004 = vrot.lane.b32.xlu1 %v5998_v8, %s6247_s20  ;;  %v7267_v42 = vsel %vm3263_vm8, %v5354_v39, %v5507_v11  ;;  %v5501_v11 = vunpack.i.l.bf16 %v6891_v24 }
 0x448   : > { %v5768_v1 = vpack.i.bf16 %v7267_v42, %v7270_v36 }
 0x449   : > { %5739 = vrot.lane.b32.xlu0 %v5738_v32, %s6246_s19  ;;  %v3284_v26 = vsel %vm3263_vm8, %v5325_v25, %v5501_v11 }
 0x44a   : > { %v3577_v25 = vrot.slane %v3284_v26, 2 }
 0x44b   : > { %6009 = vrot.lane.b32.xlu1 %v6008_v30, %s6246_s19 }
 0x44d   : > { %5744 = vrot.lane.b32.xlu0 %v5743_v62, %s6248_s21 }
 0x44f   : > { %v7239_v8 = vpop.permute.xlu0 %5584  ;;  %6014 = vrot.lane.b32.xlu1 %v6013_v58, %s6248_s21 }
 0x450   : > { %8303 = vst [vmem:[#allocation30_spill] sm:$0xff] %v7239_v8 }
 0x451   : > { %5749 = vrot.lane.b32.xlu0 %v5738_v32, %s6261_s27  ;;  %v7243_v37 = vpop.permute.xlu1 %5629 }
 0x453   : > { %v7245_v52 = vpop.permute.xlu0 %5589  ;;  %6019 = vrot.lane.b32.xlu1 %v6008_v30, %s6261_s27 }
 0x454   : > { %8304 = vst [vmem:[#allocation31_spill] sm:$0xff] %v7245_v52 }
 0x455   : > { %5754 = vrot.lane.b32.xlu0 %v5743_v62, %s6262_s28  ;;  %v7249_v34 = vpop.permute.xlu1 %5634 }
 0x457   : > { %v7251_v3 = vpop.permute.xlu0 %5594  ;;  %6024 = vrot.lane.b32.xlu1 %v6013_v58, %s6262_s28 }
 0x459   : > { %5759 = vrot.lane.b32.xlu0 %v5738_v32, %s6252_s22  ;;  %v7257_v22 = vpop.permute.xlu1 %5699  ;;  %v5562_v32 = vunpack.i.h.bf16 %v7091_v35 }
 0x45b   : > { %v7262_v6 = vpop.permute.xlu0 %5599  ;;  %6029 = vrot.lane.b32.xlu1 %v6008_v30, %s6252_s22  ;;  %v7286_v30 = vsel %vm3263_vm8, %v5420_v21, %v5562_v32  ;;  %v3400_v32 = vrot.slane %v3284_v26, 1  ;;  %v3397_v21 = vrot.slane %v7104_v9, 1 }
 0x45c   : > { %8306 = vst [vmem:[#allocation33_spill] sm:$0xff] %v7286_v30  ;;  %v6038_v0 = vpack.i.bf16 %v7278_v57, %v7286_v30 }
 0x45d   : > { %5764 = vrot.lane.b32.xlu0 %v5743_v62, %s6260_s26  ;;  %v7274_v17 = vpop.permute.xlu1 %5704 }
 0x45f   : > { %v7280_v5 = vpop.permute.xlu0 %5604  ;;  %6034 = vrot.lane.b32.xlu1 %v6013_v58, %s6260_s26 }
 0x461   : > { %5769 = vrot.lane.b32.xlu0 %v5768_v1, %s6253_s23  ;;  %v7289_v13 = vpop.permute.xlu1 %5779 }
 0x462   : > { %8307 = vst [vmem:[#allocation34_spill] sm:$0xff] %v7289_v13  ;;  %v8322_v13 = vld [vmem:[#allocation19_spill] sm:$0xff] }
 0x463   : > { %v7293_v14 = vpop.permute.xlu0 %5609  ;;  %6039 = vrot.lane.b32.xlu1 %v6038_v0, %s6253_s23 }
 0x464   : > { %8308 = vst [vmem:[#allocation35_spill] sm:$0xff] %v7293_v14  ;;  %v8321_v14 = vld [vmem:[#allocation3_spill] sm:$0xff] }
 0x465   : > { %5774 = vrot.lane.b32.xlu0 %v5768_v1, %s6247_s20  ;;  %v7297_v62 = vpop.permute.xlu1 %5784  ;;  %v3398_v1 = vrot.slane %v7101_v28, 1 }
 0x466   : > { %8309 = vst [vmem:[#allocation36_spill] sm:$0xff] %v7297_v62 }
 0x467   : > { %v7299_v58 = vpop.permute.xlu0 %5614  ;;  %6044 = vrot.lane.b32.xlu1 %v6038_v0, %s6247_s20  ;;  %v5557_v0 = vunpack.i.h.bf16 %v7074_v19  ;;  %v3401_v45 = vsel %vm3366_vm9, %v3398_v1, %v3400_v32  ;;  %v3575_v19 = vrot.slane %v7101_v28, 2  ;;  %v6088_v32 = vpack.i.bf16 %v7140_v29, %v7137_v61 }
 0x468   : > { %8310 = vst [vmem:[#allocation37_spill] sm:$0xff] %v7299_v58  ;;  %v3609_v61 = vrot.slane %v7115_v18, 2 }
 0x469   : > { %5789 = vrot.lane.b32.xlu0 %v6922_v50, %s6261_s27  ;;  %v7305_v44 = vpop.permute.xlu1 %5809  ;;  %v3305_v52 = vsel %vm3263_vm8, %v5413_v10, %v5557_v0  ;;  %v3578_v43 = vsel %vm3543_vm10, %v3575_v19, %v3577_v25  ;;  %v3432_v10 = vrot.slane %v7115_v18, 1  ;;  %v3433_v0 = vrot.slane %v7118_v41, 1 }
 0x46a   : > { %8311 = vst [vmem:[#allocation38_spill] sm:$0xff] %v7305_v44  ;;  %v3574_v44 = vrot.slane %v7104_v9, 2 }
 0x46b   : > { %v7308_v39 = vpop.permute.xlu0 %5619  ;;  %6069 = vrot.lane.b32.xlu1 %v7168_v55, %s6261_s27 }
 0x46d   : > { %5794 = vrot.lane.b32.xlu0 %v6943_v48, %s6262_s28  ;;  %v7315_v59 = vpop.permute.xlu1 %5844 }
 0x46e   : > { %8312 = vst [vmem:[#allocation39_spill] sm:$0xff] %v7315_v59  ;;  %v3399_v59 = vsel %vm3366_vm9, %v3397_v21, %v3398_v1  ;;  %v3435_v21 = vrot.slane %v3305_v52, 1  ;;  %v3576_v1 = vsel %vm3543_vm10, %v3574_v44, %v3575_v19  ;;  %v3610_v44 = vrot.slane %v7118_v41, 2 }
 0x46f   : > { %v7317_v24 = vpop.permute.xlu0 %5624  ;;  %6074 = vrot.lane.b32.xlu1 %v7174_v63, %s6262_s28  ;;  %v5813_v26 = vpack.i.bf16 %v3401_v45, %v3399_v59  ;;  %v5818_v45 = vpack.i.bf16 %v3578_v43, %v3576_v1  ;;  %v3612_v59 = vrot.slane %v3305_v52, 2  ;;  %v5596_v41 = vunpack.i.l.bf16 %v7251_v3 }
 0x470   : > { %v3436_v29 = vsel %vm3366_vm9, %v3433_v0, %v3435_v21  ;;  %v3611_v1 = vsel %vm3543_vm10, %v3609_v61, %v3610_v44 }
 0x471   : > { %5799 = vrot.lane.b32.xlu0 %v6922_v50, %s6252_s22  ;;  %v7323_v7 = vpop.permute.xlu1 %5849 }
 0x473   : > { %v7328_v11 = vpop.permute.xlu0 %5639  ;;  %6079 = vrot.lane.b32.xlu1 %v7168_v55, %s6252_s22 }
 0x474   : > { %8313 = vst [vmem:[#allocation40_spill] sm:$0xff] %v7328_v11 }
 0x475   : > { %5804 = vrot.lane.b32.xlu0 %v6943_v48, %s6260_s26  ;;  %v7336_v50 = vpop.permute.xlu1 %5854 }
 0x476   : > { %8314 = vst [vmem:[#allocation41_spill] sm:$0xff] %v7336_v50 }
 0x477   : > { %v7342_v8 = vpop.permute.xlu0 %5644  ;;  %6084 = vrot.lane.b32.xlu1 %v7174_v63, %s6260_s26 }
 0x478   : > { %8315 = vst [vmem:[#allocation42_spill] sm:$0xff] %v7342_v8  ;;  %v3613_v8 = vsel %vm3543_vm10, %v3610_v44, %v3612_v59  ;;  %v5561_v44 = vunpack.i.l.bf16 %v7091_v35 }
 0x479   : > { %5814 = vrot.lane.b32.xlu0 %v5813_v26, %s6246_s19  ;;  %v7348_v48 = vpop.permute.xlu1 %5859 }
 0x47a   : > { %8316 = vst [vmem:[#allocation43_spill] sm:$0xff] %v7348_v48  ;;  %v3434_v48 = vsel %vm3366_vm9, %v3432_v10, %v3433_v0  ;;  %v6103_v0 = vpack.i.bf16 %v3613_v8, %v3611_v1  ;;  %v5442_v1 = vunpack.i.h.bf16 %v6776_v49  ;;  %v5581_v49 = vunpack.i.l.bf16 %v7236_v27 }
 0x47b   : > { %v7355_v50 = vpop.permute.xlu0 %5649  ;;  %6089 = vrot.lane.b32.xlu1 %v6088_v32, %s6253_s23  ;;  %v6098_v52 = vpack.i.bf16 %v3436_v29, %v3434_v48  ;;  %v5359_v29 = vunpack.i.l.bf16 %v6754_v23  ;;  %v5631_v23 = vunpack.i.l.bf16 %v7243_v37 }
 0x47d   : > { %5819 = vrot.lane.b32.xlu0 %v5818_v45, %s6248_s21  ;;  %v7359_v25 = vpop.permute.xlu1 %5884  ;;  %v4324_v18 = vsel %vm531_vm1, %v8321_v14, %v5631_v23  ;;  %v7434_v14 = vsel %vm3263_vm8, %v5442_v1, %v5581_v49 }
 0x47f   : > { %v7365_v19 = vpop.permute.xlu0 %5654  ;;  %6094 = vrot.lane.b32.xlu1 %v6088_v32, %s6247_s20  ;;  %v5516_v32 = vunpack.i.l.bf16 %v6904_v33  ;;  %v5437_v33 = vunpack.i.h.bf16 %v6773_v47  ;;  %v5577_v47 = vunpack.i.h.bf16 %v7112_v16  ;;  %v5597_v16 = vunpack.i.h.bf16 %v7251_v3 }
 0x480   : > { %v5572_v3 = vunpack.i.h.bf16 %v7095_v60 }
 0x481   : > { %5824 = vrot.lane.b32.xlu0 %v5813_v26, %s6261_s27  ;;  %v7369_v43 = vpop.permute.xlu1 %5889  ;;  %v7394_v8 = vsel %vm3263_vm8, %v5359_v29, %v5516_v32  ;;  %v5636_v32 = vunpack.i.l.bf16 %v7249_v34 }
 0x482   : > { %8317 = vst [vmem:[#allocation44_spill] sm:$0xff] %v7369_v43  ;;  %v5637_v43 = vunpack.i.h.bf16 %v7249_v34  ;;  %v3410_v29 = vrot.slane %v7394_v8, 1  ;;  %v3438_v34 = vrot.slane %v7205_v15, 1 }
 0x483   : > { %v7373_v10 = vpop.permute.xlu0 %5659  ;;  %6099 = vrot.lane.b32.xlu1 %v6098_v52, %s6246_s19  ;;  %v4356_v62 = vsel %vm533_vm2, %v4324_v18, %v5636_v32 }
 0x484   : > { %v4388_v23 = vsel %vm535_vm3, %v4356_v62, %v5596_v41 }
 0x485   : > { %5829 = vrot.lane.b32.xlu0 %v5818_v45, %s6262_s28  ;;  %v7377_v21 = vpop.permute.xlu1 %5919 }
 0x486   : > { %8318 = vst [vmem:[#allocation45_spill] sm:$0xff] %v7377_v21  ;;  %v5632_v21 = vunpack.i.h.bf16 %v7243_v37 }
 0x487   : > { %v7379_v11 = vpop.permute.xlu0 %5664  ;;  %6104 = vrot.lane.b32.xlu1 %v6103_v0, %s6248_s21 }
 0x488   : > { %v4325_v58 = vsel %vm531_vm1, %v6813_v38, %v5632_v21  ;;  %v7431_v21 = vsel %vm3263_vm8, %v5437_v33, %v5577_v47 }
 0x489   : > { %5834 = vrot.lane.b32.xlu0 %v5813_v26, %s6252_s22  ;;  %v7383_v48 = vpop.permute.xlu1 %5924 }
 0x48b   : > { %v7386_v59 = vpop.permute.xlu0 %5669  ;;  %6109 = vrot.lane.b32.xlu1 %v6098_v52, %s6261_s27 }
 0x48c   : > { %8319 = vst [vmem:[#allocation46_spill] sm:$0xff] %v7386_v59  ;;  %v3437_v59 = vrot.slane %v7202_v56, 1 }
 0x48d   : > { %5839 = vrot.lane.b32.xlu0 %v5818_v45, %s6260_s26  ;;  %v7391_v61 = vpop.permute.xlu1 %5929  ;;  %v5427_v45 = vunpack.i.l.bf16 %v6793_v2 }
 0x48f   : > { %v7397_v26 = vpop.permute.xlu0 %5674  ;;  %6114 = vrot.lane.b32.xlu1 %v6103_v0, %s6262_s28  ;;  %v3308_v37 = vsel %vm3263_vm8, %v5427_v45, %v5561_v44  ;;  %v4357_v44 = vsel %vm533_vm2, %v4325_v58, %v5637_v43  ;;  %v3407_v58 = vrot.slane %v7270_v36, 1  ;;  %v3408_v43 = vrot.slane %v7267_v42, 1 }
 0x490   : > { %8320 = vst [vmem:[#allocation47_spill] sm:$0xff] %v7397_v26  ;;  %v3440_v28 = vrot.slane %v3308_v37, 1  ;;  %v3617_v38 = vrot.slane %v3308_v37, 2  ;;  %v4389_v32 = vsel %vm535_vm3, %v4357_v44, %v5597_v16  ;;  %v3439_v37 = vsel %vm3366_vm9, %v3437_v59, %v3438_v34 }
 0x491   : > { %5864 = vrot.lane.b32.xlu0 %v7008_v12, %s6261_s27  ;;  %v7409_v35 = vpop.permute.xlu1 %5934  ;;  %v3615_v44 = vrot.slane %v7205_v15, 2  ;;  %v3411_v59 = vsel %vm3366_vm9, %v3408_v43, %v3410_v29  ;;  %v8324_v15 = vld [vmem:[#allocation5_spill] sm:$0xff] }
 0x492   : > { %v3441_v16 = vsel %vm3366_vm9, %v3438_v34, %v3440_v28 }
 0x493   : > { %v5680_v26 = vpop.permute.xlu0 %5679  ;;  %6119 = vrot.lane.b32.xlu1 %v6098_v52, %s6252_s22 }
 0x494   : > { %v5682_v45 = vunpack.i.h.bf16 %v5680_v26  ;;  %v5681_v52 = vunpack.i.l.bf16 %v5680_v26  ;;  %v3614_v26 = vrot.slane %v7202_v56, 2 }
 0x495   : > { %5869 = vrot.lane.b32.xlu0 %v8322_v13, %s6262_s28  ;;  %v7428_v9 = vpop.permute.xlu1 %5939 }
 0x496   : > { %v4421_v1 = vsel %vm1970_vm4, %v4389_v32, %v5682_v45  ;;  %v4420_v49 = vsel %vm1970_vm4, %v4388_v23, %v5681_v52  ;;  %v5430_v45 = vunpack.i.h.bf16 %v6793_v2  ;;  %v3587_v52 = vrot.slane %v7394_v8, 2 }
 0x497   : > { %v5685_v18 = vpop.permute.xlu0 %5684  ;;  %6124 = vrot.lane.b32.xlu1 %v6103_v0, %s6260_s26  ;;  %v6128_v0 = vpack.i.bf16 %v7434_v14, %v7431_v21  ;;  %v3584_v23 = vrot.slane %v7270_v36, 2  ;;  %v3585_v32 = vrot.slane %v7267_v42, 2  ;;  %v7469_v2 = vpack.i.bf16 %v3441_v16, %v3439_v37 }
 0x498   : > { %v5687_v33 = vunpack.i.h.bf16 %v5685_v18  ;;  %v5686_v47 = vunpack.i.l.bf16 %v5685_v18  ;;  %v3409_v18 = vsel %vm3366_vm9, %v3407_v58, %v3408_v43  ;;  %v3311_v8 = vsel %vm3263_vm8, %v5430_v45, %v5572_v3 }
 0x499   : > { %5874 = vrot.lane.b32.xlu0 %v7008_v12, %s6252_s22  ;;  %v7447_v60 = vpop.permute.xlu1 %5944  ;;  %v3616_v34 = vsel %vm3543_vm10, %v3614_v26, %v3615_v44  ;;  %v7478_v29 = vpack.i.bf16 %v3411_v59, %v3409_v18  ;;  %v3586_v43 = vsel %vm3543_vm10, %v3584_v23, %v3585_v32  ;;  %v3443_v16 = vrot.slane %v7278_v57, 1 }
 0x49a   : > { %v4453_v41 = vsel %vm4450_vm11, %v4420_v49, %v5686_v47  ;;  %v4454_v62 = vsel %vm4450_vm11, %v4421_v1, %v5687_v33  ;;  %v3618_v33 = vsel %vm3543_vm10, %v3615_v44, %v3617_v38  ;;  %v3445_v47 = vrot.slane %v3311_v8, 1 }
 0x49b   : > { %v7458_v12 = vpop.permute.xlu0 %5689  ;;  %6129 = vrot.lane.b32.xlu1 %v6128_v0, %s6253_s23  ;;  %v7486_v26 = vpack.i.bf16 %v3618_v33, %v3616_v34  ;;  %v3622_v38 = vrot.slane %v3311_v8, 2  ;;  %v5602_v1 = vunpack.i.h.bf16 %v7262_v6  ;;  %v5601_v49 = vunpack.i.l.bf16 %v7262_v6 }
 0x49c   : > { %v3442_v6 = vrot.slane %v7286_v30, 1  ;;  %v3620_v23 = vrot.slane %v7278_v57, 2  ;;  %v3619_v34 = vrot.slane %v7286_v30, 2  ;;  %v5662_v33 = vunpack.i.h.bf16 %v7373_v10 }
 0x49d   : > { %5879 = vrot.lane.b32.xlu0 %v8322_v13, %s6260_s26  ;;  %v7467_v28 = vpop.permute.xlu1 %5949  ;;  %v3588_v13 = vsel %vm3543_vm10, %v3585_v32, %v3587_v52  ;;  %v4485_v52 = vsel %vm1973_vm5, %v4453_v41, %v5601_v49  ;;  %v4486_v18 = vsel %vm1973_vm5, %v4454_v62, %v5602_v1  ;;  %v5661_v41 = vunpack.i.l.bf16 %v7373_v10 }
 0x49e   : > { %v7492_v37 = vpack.i.bf16 %v3588_v13, %v3586_v43  ;;  %v3444_v43 = vsel %vm3366_vm9, %v3442_v6, %v3443_v16  ;;  %v3446_v13 = vsel %vm3366_vm9, %v3443_v16, %v3445_v47  ;;  %v5667_v1 = vunpack.i.h.bf16 %v7379_v11 }
 0x49f   : > { %v7474_v58 = vpop.permute.xlu0 %5694  ;;  %6144 = vrot.lane.b32.xlu1 %v7469_v2, %s6261_s27  ;;  %v5666_v49 = vunpack.i.l.bf16 %v7379_v11  ;;  %v3623_v6 = vsel %vm3543_vm10, %v3620_v23, %v3622_v38  ;;  %v5937_v47 = vunpack.i.h.bf16 %v7409_v35  ;;  %v5936_v16 = vunpack.i.l.bf16 %v7409_v35 }
 0x4a0   : > { %v4326_v30 = vsel %vm531_vm1, %v8324_v15, %v5661_v41  ;;  %v5607_v38 = vunpack.i.h.bf16 %v7280_v5 }
 0x4a1   : > { %5894 = vrot.lane.b32.xlu0 %v7478_v29, %s6246_s19  ;;  %v7484_v3 = vpop.permute.xlu1 %5954  ;;  %v4358_v35 = vsel %vm533_vm2, %v4326_v30, %v5666_v49  ;;  %v5606_v30 = vunpack.i.l.bf16 %v7280_v5 }
 0x4a3   : > { %v5710_v0 = vpop.permute.xlu0 %5709  ;;  %6149 = vrot.lane.b32.xlu1 %v7486_v26, %s6262_s28 }
 0x4a4   : > { %v5712_v44 = vunpack.i.h.bf16 %v5710_v0  ;;  %v5711_v45 = vunpack.i.l.bf16 %v5710_v0 }
 0x4a5   : > { %5899 = vrot.lane.b32.xlu0 %v7492_v37, %s6248_s21  ;;  %v7499_v59 = vpop.permute.xlu1 %5979 }
 0x4a6   : > { %v4518_v32 = vsel %vm4515_vm12, %v4485_v52, %v5711_v45  ;;  %v4519_v8 = vsel %vm4515_vm12, %v4486_v18, %v5712_v44  ;;  %v5932_v45 = vunpack.i.h.bf16 %v7391_v61  ;;  %v5931_v52 = vunpack.i.l.bf16 %v7391_v61  ;;  %v8323_v61 = vld [vmem:[#allocation4_spill] sm:$0xff] }
 0x4a7   : > { %v5715_v62 = vpop.permute.xlu0 %5714  ;;  %6154 = vrot.lane.b32.xlu1 %v7469_v2, %s6252_s22  ;;  %v3621_v18 = vsel %vm3543_vm10, %v3619_v34, %v3620_v23  ;;  %v4327_v56 = vsel %vm531_vm1, %v8323_v61, %v5662_v33  ;;  %v8325_v34 = vld [vmem:[#allocation12_spill] sm:$0xff] }
 0x4a8   : > { %v5717_v0 = vunpack.i.h.bf16 %v5715_v62  ;;  %v5716_v44 = vunpack.i.l.bf16 %v5715_v62  ;;  %v4359_v23 = vsel %vm533_vm2, %v4327_v56, %v5667_v1  ;;  %v4341_v33 = vsel %vm531_vm1, %v8325_v34, %v5932_v45 }
 0x4a9   : > { %5904 = vrot.lane.b32.xlu0 %v7478_v29, %s6261_s27  ;;  %v7518_v10 = vpop.permute.xlu1 %5984  ;;  %v5851_v1 = vunpack.i.l.bf16 %v7323_v7 }
 0x4aa   : > { %v7525_v11 = vsel %vm4548_vm13, %v4518_v32, %v5716_v44  ;;  %v7528_v62 = vsel %vm4548_vm13, %v4519_v8, %v5717_v0  ;;  %v6163_v32 = vpack.i.bf16 %v3446_v13, %v3444_v43  ;;  %v7540_v8 = vpack.i.bf16 %v3623_v6, %v3621_v18  ;;  %v8326_v0 = vld [vmem:[#allocation13_spill] sm:$0xff] }
 0x4ab   : > { %v5720_v57 = vpop.permute.xlu0 %5719  ;;  %6159 = vrot.lane.b32.xlu1 %v7486_v26, %s6260_s26  ;;  %v4340_v15 = vsel %vm531_vm1, %v8326_v0, %v5931_v52  ;;  %v4373_v43 = vsel %vm533_vm2, %v4341_v33, %v5937_v47  ;;  %v5852_v13 = vunpack.i.h.bf16 %v7323_v7  ;;  %v4391_v18 = vsel %vm535_vm3, %v4359_v23, %v5607_v38 }
 0x4ac   : > { %v5722_v41 = vunpack.i.h.bf16 %v5720_v57  ;;  %v5721_v44 = vunpack.i.l.bf16 %v5720_v57  ;;  %v4372_v56 = vsel %vm533_vm2, %v4340_v15, %v5936_v16  ;;  %v4390_v57 = vsel %vm535_vm3, %v4358_v35, %v5606_v30 }
 0x4ad   : > { %5909 = vrot.lane.b32.xlu0 %v7492_v37, %s6262_s28  ;;  %v5990_v61 = vpop.permute.xlu1 %5989  ;;  %v4404_v47 = vsel %vm535_vm3, %v4372_v56, %v5851_v1  ;;  %v4405_v33 = vsel %vm535_vm3, %v4373_v43, %v5852_v13 }
 0x4ae   : > { %v5992_v49 = vunpack.i.h.bf16 %v5990_v61  ;;  %v5991_v45 = vunpack.i.l.bf16 %v5990_v61  ;;  %v4422_v5 = vsel %vm1970_vm4, %v4390_v57, %v5721_v44  ;;  %v4423_v16 = vsel %vm1970_vm4, %v4391_v18, %v5722_v41 }
 0x4af   : > { %v5725_v52 = vpop.permute.xlu0 %5724  ;;  %6164 = vrot.lane.b32.xlu1 %v6163_v32, %s6246_s19 }
 0x4b0   : > { %v5727_v6 = vunpack.i.h.bf16 %v5725_v52  ;;  %v5726_v34 = vunpack.i.l.bf16 %v5725_v52  ;;  %v4436_v23 = vsel %vm1970_vm4, %v4404_v47, %v5991_v45  ;;  %v4437_v44 = vsel %vm1970_vm4, %v4405_v33, %v5992_v49 }
 0x4b1   : > { %5914 = vrot.lane.b32.xlu0 %v7478_v29, %s6252_s22  ;;  %v5995_v7 = vpop.permute.xlu1 %5994 }
 0x4b2   : > { %v4455_v0 = vsel %vm4450_vm11, %v4422_v5, %v5726_v34  ;;  %v4456_v35 = vsel %vm4450_vm11, %v4423_v16, %v5727_v6  ;;  %v5997_v15 = vunpack.i.h.bf16 %v5995_v7  ;;  %v5996_v38 = vunpack.i.l.bf16 %v5995_v7  ;;  %v8327_v5 = vld [vmem:[#allocation14_spill] sm:$0xff] }
 0x4b3   : > { %v7567_v61 = vpop.permute.xlu0 %5729  ;;  %6169 = vrot.lane.b32.xlu1 %v7540_v8, %s6248_s21  ;;  %v5622_v7 = vunpack.i.h.bf16 %v7308_v39 }
 0x4b4   : > { %v4469_v41 = vsel %vm4450_vm11, %v4436_v23, %v5996_v38  ;;  %v4470_v29 = vsel %vm4450_vm11, %v4437_v44, %v5997_v15  ;;  %v5621_v15 = vunpack.i.l.bf16 %v7308_v39  ;;  %v5887_v39 = vunpack.i.h.bf16 %v7359_v25 }
 0x4b5   : > { %5959 = vrot.lane.b32.xlu0 %v7159_v54, %s6246_s19  ;;  %v7575_v30 = vpop.permute.xlu1 %5999 }
 0x4b7   : > { %v7577_v56 = vpop.permute.xlu0 %5734  ;;  %6174 = vrot.lane.b32.xlu1 %v6163_v32, %s6261_s27 }
 0x4b9   : > { %5964 = vrot.lane.b32.xlu0 %v7162_v46, %s6248_s21  ;;  %v7582_v43 = vpop.permute.xlu1 %6004 }
 0x4bb   : > { %v5740_v13 = vpop.permute.xlu0 %5739  ;;  %6179 = vrot.lane.b32.xlu1 %v7540_v8, %s6262_s28 }
 0x4bc   : > { %v5742_v1 = vunpack.i.h.bf16 %v5740_v13  ;;  %v5741_v49 = vunpack.i.l.bf16 %v5740_v13 }
 0x4bd   : > { %5969 = vrot.lane.b32.xlu0 %v7492_v37, %s6260_s26  ;;  %v6010_v54 = vpop.permute.xlu1 %6009 }
 0x4be   : > { %v6012_v45 = vunpack.i.h.bf16 %v6010_v54  ;;  %v6011_v52 = vunpack.i.l.bf16 %v6010_v54  ;;  %v4331_v46 = vsel %vm531_vm1, %v6956_v20, %v5742_v1  ;;  %v4330_v34 = vsel %vm531_vm1, %v6959_v31, %v5741_v49 }
 0x4bf   : > { %v5745_v57 = vpop.permute.xlu0 %5744  ;;  %6184 = vrot.lane.b32.xlu1 %v6163_v32, %s6252_s22  ;;  %v5886_v49 = vunpack.i.l.bf16 %v7359_v25  ;;  %v4502_v25 = vsel %vm1973_vm5, %v4470_v29, %v5887_v39 }
 0x4c0   : > { %v5747_v18 = vunpack.i.h.bf16 %v5745_v57  ;;  %v5746_v6 = vunpack.i.l.bf16 %v5745_v57  ;;  %v4345_v20 = vsel %vm531_vm1, %v7025_v40, %v6012_v45  ;;  %v4344_v31 = vsel %vm531_vm1, %v7028_v4, %v6011_v52 }
 0x4c1   : > { %5974 = vrot.lane.b32.xlu0 %v8327_v5, %s6253_s23  ;;  %v6015_v16 = vpop.permute.xlu1 %6014  ;;  %v4487_v40 = vsel %vm1973_vm5, %v4455_v0, %v5621_v15  ;;  %v4488_v4 = vsel %vm1973_vm5, %v4456_v35, %v5622_v7  ;;  %v8328_v5 = vld [vmem:[#allocation2_spill] sm:$0xff] }
 0x4c2   : > { %v7596_v37 = vsel %vm533_vm2, %v4330_v34, %v5746_v6  ;;  %v7599_v47 = vsel %vm533_vm2, %v4331_v46, %v5747_v18  ;;  %v6017_v33 = vunpack.i.h.bf16 %v6015_v16  ;;  %v6016_v32 = vunpack.i.l.bf16 %v6015_v16 }
 0x4c3   : > { %v5750_v38 = vpop.permute.xlu0 %5749  ;;  %6189 = vrot.lane.b32.xlu1 %v7540_v8, %s6260_s26  ;;  %v5582_v18 = vunpack.i.h.bf16 %v7236_v27  ;;  %v4501_v6 = vsel %vm1973_vm5, %v4469_v41, %v5886_v49  ;;  %v5447_v16 = vunpack.i.h.bf16 %v8328_v5  ;;  %v5701_v27 = vunpack.i.l.bf16 %v7257_v22 }
 0x4c4   : > { %v7610_v23 = vsel %vm533_vm2, %v4344_v31, %v6016_v32  ;;  %v7613_v44 = vsel %vm533_vm2, %v4345_v20, %v6017_v33  ;;  %v5752_v13 = vunpack.i.h.bf16 %v5750_v38  ;;  %v5751_v1 = vunpack.i.l.bf16 %v5750_v38 }
 0x4c5   : > { %6049 = vrot.lane.b32.xlu0 %v7168_v55, %s6246_s19  ;;  %v6020_v8 = vpop.permute.xlu1 %6019  ;;  %v5702_v33 = vunpack.i.h.bf16 %v7257_v22  ;;  %v3317_v20 = vsel %vm3263_vm8, %v5447_v16, %v5582_v18  ;;  %v5707_v31 = vunpack.i.h.bf16 %v7274_v17  ;;  %v5706_v38 = vunpack.i.l.bf16 %v7274_v17 }
 0x4c6   : > { %v4520_v54 = vsel %vm4515_vm12, %v4487_v40, %v5751_v1  ;;  %v4521_v45 = vsel %vm4515_vm12, %v4488_v4, %v5752_v13  ;;  %v6022_v52 = vunpack.i.h.bf16 %v6020_v8  ;;  %v6021_v57 = vunpack.i.l.bf16 %v6020_v8 }
 0x4c7   : > { %v5755_v46 = vpop.permute.xlu0 %5754  ;;  %6194 = vrot.lane.b32.xlu1 %v7177_v53, %s6261_s27  ;;  %v5627_v22 = vunpack.i.h.bf16 %v7317_v24  ;;  %v5626_v1 = vunpack.i.l.bf16 %v7317_v24  ;;  %v4120_v40 = vrot.slane %v7431_v21, 1  ;;  %v4121_v24 = vrot.slane %v7434_v14, 1 }
 0x4c8   : > { %v4534_v0 = vsel %vm4515_vm12, %v4501_v6, %v6021_v57  ;;  %v4535_v55 = vsel %vm4515_vm12, %v4502_v25, %v6022_v52  ;;  %v5757_v35 = vunpack.i.h.bf16 %v5755_v46  ;;  %v5756_v34 = vunpack.i.l.bf16 %v5755_v46  ;;  %v8330_v57 = vld [vmem:[#allocation6_spill] sm:$0xff]  ;;  %v8331_v6 = vld [vmem:[#allocation7_spill] sm:$0xff] }
 0x4c9   : > { %6054 = vrot.lane.b32.xlu0 %v7174_v63, %s6248_s21  ;;  %v6025_v41 = vpop.permute.xlu1 %6024  ;;  %v4123_v52 = vrot.slane %v3317_v20, 1  ;;  %v4329_v18 = vsel %vm531_vm1, %v8330_v57, %v5702_v33  ;;  %v4328_v25 = vsel %vm531_vm1, %v8331_v6, %v5701_v27  ;;  %v4221_v46 = vrot.slane %v7431_v21, 2 }
 0x4ca   : > { %v7636_v29 = vsel %vm4548_vm13, %v4520_v54, %v5756_v34  ;;  %v7639_v32 = vsel %vm4548_vm13, %v4521_v45, %v5757_v35  ;;  %v6027_v7 = vunpack.i.h.bf16 %v6025_v41  ;;  %v6026_v15 = vunpack.i.l.bf16 %v6025_v41  ;;  %v8329_v54 = vld [vmem:[#allocation22_spill] sm:$0xff] }
 0x4cb   : > { %v5760_v13 = vpop.permute.xlu0 %5759  ;;  %6199 = vrot.lane.b32.xlu1 %v7182_v51, %s6262_s28  ;;  %v4222_v33 = vrot.slane %v7434_v14, 2 }
 0x4cc   : > { %v7651_v39 = vsel %vm4548_vm13, %v4534_v0, %v6026_v15  ;;  %v7654_v49 = vsel %vm4548_vm13, %v4535_v55, %v6027_v7  ;;  %v5762_v4 = vunpack.i.h.bf16 %v5760_v13  ;;  %v5761_v8 = vunpack.i.l.bf16 %v5760_v13  ;;  %v8332_v15 = vld [vmem:[#allocation23_spill] sm:$0xff] }
 0x4cd   : > { %6059 = vrot.lane.b32.xlu0 %v8329_v54, %s6261_s27  ;;  %v7661_v45 = vpop.permute.xlu1 %6029  ;;  %v4360_v0 = vsel %vm533_vm2, %v4328_v25, %v5706_v38  ;;  %v4361_v55 = vsel %vm533_vm2, %v4329_v18, %v5707_v31  ;;  %v4224_v7 = vrot.slane %v3317_v20, 2  ;;  %v4122_v13 = vsel %vm3366_vm9, %v4120_v40, %v4121_v24 }
 0x4ce   : > { %v4393_v34 = vsel %vm535_vm3, %v4361_v55, %v5627_v22  ;;  %v4392_v5 = vsel %vm535_vm3, %v4360_v0, %v5626_v1  ;;  %v4124_v22 = vsel %vm3366_vm9, %v4121_v24, %v4123_v52  ;;  %v5652_v24 = vunpack.i.h.bf16 %v7355_v50 }
 0x4cf   : > { %v5765_v35 = vpop.permute.xlu0 %5764  ;;  %6204 = vrot.lane.b32.xlu1 %v7177_v53, %s6252_s22  ;;  %v4424_v27 = vsel %vm1970_vm4, %v4392_v5, %v5761_v8  ;;  %v4425_v21 = vsel %vm1970_vm4, %v4393_v34, %v5762_v4  ;;  %v6213_v20 = vpack.i.bf16 %v4124_v22, %v4122_v13  ;;  %v4223_v4 = vsel %vm3543_vm10, %v4221_v46, %v4222_v33 }
 0x4d0   : > { %v5767_v16 = vunpack.i.h.bf16 %v5765_v35  ;;  %v5766_v41 = vunpack.i.l.bf16 %v5765_v35  ;;  %v4225_v8 = vsel %vm3543_vm10, %v4222_v33, %v4224_v7  ;;  %v5656_v33 = vunpack.i.l.bf16 %v7365_v19 }
 0x4d1   : > { %6064 = vrot.lane.b32.xlu0 %v8332_v15, %s6262_s28  ;;  %v7680_v31 = vpop.permute.xlu1 %6034 }
 0x4d2   : > { %v4457_v53 = vsel %vm4450_vm11, %v4424_v27, %v5766_v41  ;;  %v4458_v38 = vsel %vm4450_vm11, %v4425_v21, %v5767_v16  ;;  %v5657_v41 = vunpack.i.h.bf16 %v7365_v19  ;;  %v4394_v13 = vsel %vm535_vm3, %v7596_v37, %v5656_v33 }
 0x4d3   : > { %v7686_v1 = vpop.permute.xlu0 %5769  ;;  %6209 = vrot.lane.b32.xlu1 %v7182_v51, %s6260_s26  ;;  %v6218_v51 = vpack.i.bf16 %v4225_v8, %v4223_v4  ;;  %v4490_v25 = vsel %vm1973_vm5, %v4458_v38, %v5652_v24  ;;  %v5926_v38 = vunpack.i.l.bf16 %v7383_v48 }
 0x4d4   : > { %v4395_v22 = vsel %vm535_vm3, %v7599_v47, %v5657_v41 }
 0x4d5   : > { %6134 = vrot.lane.b32.xlu0 %v7469_v2, %s6246_s19  ;;  %v7692_v14 = vpop.permute.xlu1 %6039  ;;  %v5651_v2 = vunpack.i.l.bf16 %v7355_v50  ;;  %v4408_v24 = vsel %vm535_vm3, %v7610_v23, %v5926_v38 }
 0x4d7   : > { %v7696_v54 = vpop.permute.xlu0 %5774  ;;  %6214 = vrot.lane.b32.xlu1 %v6213_v20, %s6261_s27  ;;  %v4489_v6 = vsel %vm1973_vm5, %v4457_v53, %v5651_v2  ;;  %v5927_v53 = vunpack.i.h.bf16 %v7383_v48  ;;  %s363_s27 = scalar_lea.vmem %s8226_s9, %s4938_s17 }
 0x4d9   : > { %6139 = vrot.lane.b32.xlu0 %v7486_v26, %s6248_s21  ;;  %v7701_v40 = vpop.permute.xlu1 %6044  ;;  %v4409_v2 = vsel %vm535_vm3, %v7613_v44, %v5927_v53 }
 0x4db   : > { %v5790_v52 = vpop.permute.xlu0 %5789  ;;  %6219 = vrot.lane.b32.xlu1 %v6218_v51, %s6262_s28 }
 0x4dc   : > { %v5792_v57 = vunpack.i.h.bf16 %v5790_v52  ;;  %v5791_v18 = vunpack.i.l.bf16 %v5790_v52 }
 0x4dd   : > { %v7708_v46 = vpop.permute.xlu1 %6069 }
 0x4de   : > { %v4522_v26 = vsel %vm4515_vm12, %v4489_v6, %v5791_v18  ;;  %v4523_v0 = vsel %vm4515_vm12, %v4490_v25, %v5792_v57  ;;  %v5692_v18 = vunpack.i.h.bf16 %v7458_v12  ;;  %v5691_v6 = vunpack.i.l.bf16 %v7458_v12  ;;  %v4606_v12 = vld [vmem:[%s8224_s7] sm:$0xf] }
 0x4df   : > { %v5795_v55 = vpop.permute.xlu0 %5794  ;;  %v5952_v25 = vunpack.i.h.bf16 %v7467_v28 }
 0x4e0   : > { %v5797_v35 = vunpack.i.h.bf16 %v5795_v55  ;;  %v5796_v34 = vunpack.i.l.bf16 %v5795_v55 }
 0x4e1   : > { %v7712_v5 = vpop.permute.xlu1 %6074 }
 0x4e2   : > { %v7715_v50 = vsel %vm4548_vm13, %v4522_v26, %v5796_v34  ;;  %v7718_v16 = vsel %vm4548_vm13, %v4523_v0, %v5797_v35  ;;  %v5951_v35 = vunpack.i.l.bf16 %v7467_v28 }
 0x4e3   : > { %v5800_v7 = vpop.permute.xlu0 %5799 }
 0x4e4   : > { %v5802_v21 = vunpack.i.h.bf16 %v5800_v7  ;;  %v5801_v15 = vunpack.i.l.bf16 %v5800_v7 }
 0x4e5   : > { %v6080_v20 = vpop.permute.xlu1 %6079 }
 0x4e6   : > { %v4426_v4 = vsel %vm1970_vm4, %v4394_v13, %v5801_v15  ;;  %v4427_v19 = vsel %vm1970_vm4, %v4395_v22, %v5802_v21  ;;  %v6082_v8 = vunpack.i.h.bf16 %v6080_v20  ;;  %v6081_v51 = vunpack.i.l.bf16 %v6080_v20 }
 0x4e7   : > { %v5805_v48 = vpop.permute.xlu0 %5804  ;;  %v6263_v15 = vmov 0  }
 0x4e8   : > { %v4440_v52 = vsel %vm1970_vm4, %v4408_v24, %v6081_v51  ;;  %v4441_v37 = vsel %vm1970_vm4, %v4409_v2, %v6082_v8  ;;  %v5807_v57 = vunpack.i.h.bf16 %v5805_v48  ;;  %v5806_v47 = vunpack.i.l.bf16 %v5805_v48  ;;  %6223 = vset.pattern.permute.xlu1 %v6263_v15  ;;  %v8333_v24 = vld [vmem:[#allocation24_spill] sm:$0xff]  ;;  %v8334_v48 = vld [vmem:[#allocation25_spill] sm:$0xff] }
 0x4e9   : > { %v6085_v26 = vpop.permute.xlu1 %6084  ;;  %4609 = vperm.xlu1 %6223, %v4606_v12   ;;  %v5737_v8 = vunpack.i.h.bf16 %v7577_v56  ;;  %v5736_v51 = vunpack.i.l.bf16 %v7577_v56 }
 0x4ea   : > { %v4459_v0 = vsel %vm4450_vm11, %v4426_v4, %v5806_v47  ;;  %v4460_v23 = vsel %vm4450_vm11, %v4427_v19, %v5807_v57  ;;  %v6087_v55 = vunpack.i.h.bf16 %v6085_v26  ;;  %v6086_v44 = vunpack.i.l.bf16 %v6085_v26  ;;  %v6231_v26 = vld [vmem:[%s8223_s6] sm:$0xff]  }
 0x4eb   : > { %v5815_v34 = vpop.permute.xlu0 %5814  ;;  %v4491_v41 = vsel %vm1973_vm5, %v4459_v0, %v5691_v6  ;;  %v4492_v33 = vsel %vm1973_vm5, %v4460_v23, %v5692_v18  ;;  %v8335_v18 = vld [vmem:[#allocation34_spill] sm:$0xff] }
 0x4ec   : > { %v4473_v7 = vsel %vm4450_vm11, %v4440_v52, %v6086_v44  ;;  %v4474_v21 = vsel %vm4450_vm11, %v4441_v37, %v6087_v55  ;;  %v5817_v53 = vunpack.i.h.bf16 %v5815_v34  ;;  %v5816_v38 = vunpack.i.l.bf16 %v5815_v34  ;;  %v8336_v55 = vld [vmem:[#allocation36_spill] sm:$0xff] }
 0x4ed   : > { %v7752_v13 = vpop.permute.xlu1 %6089  ;;  %v7755_v28 = vsel %vm1973_vm5, %v4473_v7, %v5951_v35  ;;  %v7758_v22 = vsel %vm1973_vm5, %v4474_v21, %v5952_v25  ;;  %v5781_v6 = vunpack.i.l.bf16 %v8335_v18  ;;  %v5782_v23 = vunpack.i.h.bf16 %v8335_v18 }
 0x4ee   : > { %v4335_v2 = vsel %vm531_vm1, %v8333_v24, %v5817_v53  ;;  %v4334_v52 = vsel %vm531_vm1, %v8334_v48, %v5816_v38  ;;  %v5786_v44 = vunpack.i.l.bf16 %v8336_v55  ;;  %v5787_v12 = vunpack.i.h.bf16 %v8336_v55  ;;  %v8337_v38 = vld [vmem:[#allocation10_spill] sm:$0xff]  ;;  %v8338_v24 = vld [vmem:[#allocation8_spill] sm:$0xff] }
 0x4ef   : > { %v5820_v20 = vpop.permute.xlu0 %5819  ;;  %v6007_v18 = vunpack.i.h.bf16 %v7582_v43 }
 0x4f0   : > { %v5822_v4 = vunpack.i.h.bf16 %v5820_v20  ;;  %v5821_v19 = vunpack.i.l.bf16 %v5820_v20  ;;  %v4332_v20 = vsel %vm531_vm1, %v8337_v38, %v5781_v6 }
 0x4f1   : > { %v7766_v37 = vpop.permute.xlu1 %6094  ;;  %v4364_v48 = vsel %vm533_vm2, %v4332_v20, %v5786_v44  ;;  %v6006_v44 = vunpack.i.l.bf16 %v7582_v43 }
 0x4f2   : > { %v4366_v57 = vsel %vm533_vm2, %v4334_v52, %v5821_v19  ;;  %v4367_v47 = vsel %vm533_vm2, %v4335_v2, %v5822_v4  ;;  %v4333_v2 = vsel %vm531_vm1, %v8338_v24, %v5782_v23 }
 0x4f3   : > { %v5825_v25 = vpop.permute.xlu0 %5824  ;;  %v7775_v56 = vsel %vm535_vm3, %v4366_v57, %v5736_v51  ;;  %v7778_v0 = vsel %vm535_vm3, %v4367_v47, %v5737_v8  ;;  %v6232_v51 = vld [vmem:[%s8223_s6 + $0x8] sm:$0xff]   ;;  %v5697_v57 = vunpack.i.h.bf16 %v7474_v58  ;;  %v5696_v47 = vunpack.i.l.bf16 %v7474_v58 }
 0x4f4   : > { %v5827_v35 = vunpack.i.h.bf16 %v5825_v25  ;;  %v5826_v34 = vunpack.i.l.bf16 %v5825_v25 }
 0x4f5   : > { %v6100_v7 = vpop.permute.xlu1 %6099  ;;  %v4396_v24 = vsel %vm535_vm3, %v4364_v48, %v5696_v47  ;;  %v8341_v48 = vld [vmem:[#allocation35_spill] sm:$0xff] }
 0x4f6   : > { %v4524_v21 = vsel %vm4515_vm12, %v4491_v41, %v5826_v34  ;;  %v4525_v53 = vsel %vm4515_vm12, %v4492_v33, %v5827_v35  ;;  %v6102_v4 = vunpack.i.h.bf16 %v6100_v7  ;;  %v6101_v19 = vunpack.i.l.bf16 %v6100_v7  ;;  %v8339_v35 = vld [vmem:[#allocation27_spill] sm:$0xff] }
 0x4f7   : > { %v5830_v8 = vpop.permute.xlu0 %5829  ;;  %4640 = vxpose.xlu0.c.b16.start [1/5] (short) (narrow) %v6231_v26, 16  ;;  %v4365_v33 = vsel %vm533_vm2, %v4333_v2, %v5787_v12  ;;  %v8340_v12 = vld [vmem:[#allocation26_spill] sm:$0xff]  ;;  %v5611_v47 = vunpack.i.l.bf16 %v8341_v48 }
 0x4f8   : > { %v5832_v52 = vunpack.i.h.bf16 %v5830_v8  ;;  %v5831_v41 = vunpack.i.l.bf16 %v5830_v8  ;;  %v4349_v34 = vsel %vm531_vm1, %v8339_v35, %v6102_v4  ;;  %v4348_v7 = vsel %vm531_vm1, %v8340_v12, %v6101_v19 }
 0x4f9   : > { %v6105_v6 = vpop.permute.xlu1 %6104  ;;  %v4397_v4 = vsel %vm535_vm3, %v4365_v33, %v5697_v57  ;;  %v6234_v33 = vld [vmem:[%s8223_s6 + $0x18] sm:$0xff]   ;;  %v5612_v57 = vunpack.i.h.bf16 %v8341_v48 }
 0x4fa   : > { %v7798_v25 = vsel %vm4548_vm13, %v4524_v21, %v5831_v41  ;;  %v7801_v26 = vsel %vm4548_vm13, %v4525_v53, %v5832_v52  ;;  %v6107_v23 = vunpack.i.h.bf16 %v6105_v6  ;;  %v6106_v55 = vunpack.i.l.bf16 %v6105_v6  ;;  %v6233_v21 = vld [vmem:[%s8223_s6 + $0x10] sm:$0xff]  }
 0x4fb   : > { %v5835_v58 = vpop.permute.xlu0 %5834  ;;  %4641 = vxpose.xlu0.c.b16.cont [2/5] (short) (narrow) %v6232_v51, 16 }
 0x4fc   : > { %v4380_v38 = vsel %vm533_vm2, %v4348_v7, %v6106_v55  ;;  %v4381_v20 = vsel %vm533_vm2, %v4349_v34, %v6107_v23  ;;  %v5837_v43 = vunpack.i.h.bf16 %v5835_v58  ;;  %v5836_v8 = vunpack.i.l.bf16 %v5835_v58 }
 0x4fd   : > { %v6110_v19 = vpop.permute.xlu1 %6109  ;;  %v7818_v51 = vsel %vm535_vm3, %v4380_v38, %v6006_v44  ;;  %v7821_v2 = vsel %vm535_vm3, %v4381_v20, %v6007_v18  ;;  %v8342_v18 = vld [vmem:[#allocation37_spill] sm:$0xff]  ;;  %v5732_v7 = vunpack.i.h.bf16 %v7567_v61  ;;  %v5731_v58 = vunpack.i.l.bf16 %v7567_v61  ;;  %v6235_v61 = vld [vmem:[%s8223_s6 + $0x20] ss:$0 sps:$4 sm:$0xff]  }
 0x4fe   : > { %v4428_v52 = vsel %vm1970_vm4, %v4396_v24, %v5836_v8  ;;  %v4429_v41 = vsel %vm1970_vm4, %v4397_v4, %v5837_v43  ;;  %v6112_v6 = vunpack.i.h.bf16 %v6110_v19  ;;  %v6111_v55 = vunpack.i.l.bf16 %v6110_v19 }
 0x4ff   : > { %v5840_v23 = vpop.permute.xlu0 %5839  ;;  %4642 = vxpose.xlu0.c.b16.cont [3/5] (short) (narrow) %v6233_v21, 16  ;;  %v5617_v34 = vunpack.i.h.bf16 %v8342_v18  ;;  %v5616_v12 = vunpack.i.l.bf16 %v8342_v18 }
 0x500   : > { %v5842_v44 = vunpack.i.h.bf16 %v5840_v23  ;;  %v5841_v35 = vunpack.i.l.bf16 %v5840_v23  ;;  %v4539_v4 = vsel %vm4515_vm12, %v7758_v22, %v6112_v6  ;;  %v4538_v24 = vsel %vm4515_vm12, %v7755_v28, %v6111_v55 }
 0x501   : > { %v6115_v38 = vpop.permute.xlu1 %6114 }
 0x502   : > { %v4461_v21 = vsel %vm4450_vm11, %v4428_v52, %v5841_v35  ;;  %v4462_v20 = vsel %vm4450_vm11, %v4429_v41, %v5842_v44  ;;  %v6117_v43 = vunpack.i.h.bf16 %v6115_v38  ;;  %v6116_v8 = vunpack.i.l.bf16 %v6115_v38  ;;  %v8343_v44 = vld [vmem:[#allocation9_spill] sm:$0xff]  ;;  %v8344_v35 = vld [vmem:[#allocation11_spill] sm:$0xff] }
 0x503   : > { %v5865_v19 = vpop.permute.xlu0 %5864  ;;  %v4493_v23 = vsel %vm1973_vm5, %v4461_v21, %v5731_v58  ;;  %v4494_v48 = vsel %vm1973_vm5, %v4462_v20, %v5732_v7  ;;  %4643 = vxpose.xlu0.c.b16.cont [4/5] (short) (narrow) %v6234_v33, 16  ;;  %v4323_v33 = vsel %vm531_vm1, %v8343_v44, %v5612_v57  ;;  %v4322_v18 = vsel %vm531_vm1, %v8344_v35, %v5611_v47  ;;  %v8346_v57 = vld [vmem:[#allocation30_spill] sm:$0xff] }
 0x504   : > { %v7846_v52 = vsel %vm4548_vm13, %v4538_v24, %v6116_v8  ;;  %v7849_v41 = vsel %vm4548_vm13, %v4539_v4, %v6117_v43  ;;  %v5867_v22 = vunpack.i.h.bf16 %v5865_v19  ;;  %v5866_v6 = vunpack.i.l.bf16 %v5865_v19  ;;  %v8345_v43 = vld [vmem:[#allocation40_spill] sm:$0xff]  ;;  %v8347_v35 = vld [vmem:[#allocation42_spill] sm:$0xff] }
 0x505   : > { %v7853_v55 = vpop.permute.xlu1 %6119  ;;  %v4354_v38 = vsel %vm533_vm2, %v4322_v18, %v5616_v12  ;;  %v4355_v21 = vsel %vm533_vm2, %v4323_v33, %v5617_v34  ;;  %v5642_v8 = vunpack.i.h.bf16 %v8345_v43  ;;  %v5641_v4 = vunpack.i.l.bf16 %v8345_v43 }
 0x506   : > { %v4526_v7 = vsel %vm4515_vm12, %v4493_v23, %v5866_v6  ;;  %v4527_v58 = vsel %vm4515_vm12, %v4494_v48, %v5867_v22  ;;  %v5587_v44 = vunpack.i.h.bf16 %v8346_v57  ;;  %v5586_v47 = vunpack.i.l.bf16 %v8346_v57 }
 0x507   : > { %v5870_v20 = vpop.permute.xlu0 %5869  ;;  %4644 = vxpose.xlu0.c.b16.end [5/5] (short) (narrow) %v6235_v61, 16  ;;  %v5647_v23 = vunpack.i.h.bf16 %v8347_v35  ;;  %v5646_v48 = vunpack.i.l.bf16 %v8347_v35 }
 0x508   : > { %v5872_v24 = vunpack.i.h.bf16 %v5870_v20  ;;  %v5871_v19 = vunpack.i.l.bf16 %v5870_v20  ;;  %v4386_v61 = vsel %vm535_vm3, %v4354_v38, %v5586_v47  ;;  %v4387_v6 = vsel %vm535_vm3, %v4355_v21, %v5587_v44  ;;  %v8350_v47 = vld [vmem:[#allocation31_spill] sm:$0xff] }
 0x509   : > { %v7869_v22 = vpop.permute.xlu1 %6124  ;;  %v4418_v20 = vsel %vm1970_vm4, %v4386_v61, %v5641_v4  ;;  %v4419_v43 = vsel %vm1970_vm4, %v4387_v6, %v5642_v8  ;;  %v5592_v8 = vunpack.i.h.bf16 %v8350_v47  ;;  %v5591_v61 = vunpack.i.l.bf16 %v8350_v47  ;;  %v8351_v6 = vld [vmem:[#allocation47_spill] sm:$0xff] }
 0x50a   : > { %v7872_v34 = vsel %vm4548_vm13, %v4526_v7, %v5871_v19  ;;  %v7875_v12 = vsel %vm4548_vm13, %v4527_v58, %v5872_v24  ;;  %v4451_v7 = vsel %vm4450_vm11, %v4418_v20, %v5646_v48  ;;  %v4452_v19 = vsel %vm4450_vm11, %v4419_v43, %v5647_v23  ;;  %v8349_v24 = vld [vmem:[#allocation46_spill] sm:$0xff] }
 0x50b   : > { %v5875_v33 = vpop.permute.xlu0 %5874  ;;  %v5672_v38 = vunpack.i.h.bf16 %v8349_v24  ;;  %v5671_v21 = vunpack.i.l.bf16 %v8349_v24  ;;  %v5677_v48 = vunpack.i.h.bf16 %v8351_v6  ;;  %v5676_v23 = vunpack.i.l.bf16 %v8351_v6 }
 0x50c   : > { %v5877_v57 = vunpack.i.h.bf16 %v5875_v33  ;;  %v5876_v35 = vunpack.i.l.bf16 %v5875_v33  ;;  %v4483_v24 = vsel %vm1973_vm5, %v4451_v7, %v5591_v61  ;;  %v8352_v61 = vld [vmem:[#allocation38_spill] sm:$0xff] }
 0x50d   : > { %v7885_v58 = vpop.permute.xlu1 %6129  ;;  %v4516_v47 = vsel %vm4515_vm12, %v4483_v24, %v5671_v21  ;;  %v5812_v53 = vunpack.i.h.bf16 %v8352_v61 }
 0x50e   : > { %8348 = vst [vmem:[#allocation3_spill] sm:$0xff] %v7885_v58  ;;  %v4430_v44 = vsel %vm1970_vm4, %v7775_v56, %v5876_v35  ;;  %v4431_v4 = vsel %vm1970_vm4, %v7778_v0, %v5877_v57  ;;  %v4484_v56 = vsel %vm1973_vm5, %v4452_v19, %v5592_v8  ;;  %v5772_v35 = vunpack.i.h.bf16 %v7686_v1 }
 0x50f   : > { %v5880_v33 = vpop.permute.xlu0 %5879  ;;  %v5771_v0 = vunpack.i.l.bf16 %v7686_v1  ;;  %v4517_v18 = vsel %vm4515_vm12, %v4484_v56, %v5672_v38  ;;  %v5947_v56 = vunpack.i.h.bf16 %v7447_v60 }
 0x510   : > { %v5882_v20 = vunpack.i.h.bf16 %v5880_v33  ;;  %v5881_v43 = vunpack.i.l.bf16 %v5880_v33  ;;  %6224 = vset.pattern.permute.xlu0 %v6263_v15  ;;  %v7909_v15 = vsel %vm4548_vm13, %v4516_v47, %v5676_v23  ;;  %v7912_v7 = vsel %vm4548_vm13, %v4517_v18, %v5677_v48 }
 0x511   : > { %v7902_v57 = vpop.permute.xlu1 %6144  ;;  %v4581_v18 = vpack.c.bf16 %v7912_v7, %v7909_v15  ;;  %v5942_v48 = vunpack.i.h.bf16 %v7428_v9  ;;  %v5982_v47 = vunpack.i.h.bf16 %v7499_v59 }
 0x512   : > { %v4463_v6 = vsel %vm4450_vm11, %v4430_v44, %v5881_v43  ;;  %v4464_v33 = vsel %vm4450_vm11, %v4431_v4, %v5882_v20  ;;  %v5811_v44 = vunpack.i.l.bf16 %v8352_v61  ;;  %v8353_v4 = vld [vmem:[#allocation39_spill] sm:$0xff]  ;;  %v5941_v43 = vunpack.i.l.bf16 %v7428_v9 }
 0x513   : > { %v5895_v19 = vpop.permute.xlu0 %5894  ;;  %v4495_v8 = vsel %vm1973_vm5, %v4463_v6, %v5771_v0  ;;  %v4496_v1 = vsel %vm1973_vm5, %v4464_v33, %v5772_v35  ;;  %v5847_v20 = vunpack.i.h.bf16 %v8353_v4  ;;  %v5846_v23 = vunpack.i.l.bf16 %v8353_v4 }
 0x514   : > { %v5897_v21 = vunpack.i.h.bf16 %v5895_v19  ;;  %v5896_v24 = vunpack.i.l.bf16 %v5895_v19  ;;  %v5946_v35 = vunpack.i.l.bf16 %v7447_v60  ;;  %v5981_v6 = vunpack.i.l.bf16 %v7499_v59 }
 0x515   : > { %v7917_v38 = vpop.permute.xlu1 %6149  ;;  %v5987_v61 = vunpack.i.h.bf16 %v7518_v10  ;;  %v5986_v4 = vunpack.i.l.bf16 %v7518_v10  ;;  %v6042_v59 = vunpack.i.h.bf16 %v7692_v14 }
 0x516   : > { %v4339_v15 = vsel %vm531_vm1, %v7267_v42, %v5897_v21  ;;  %v4338_v9 = vsel %vm531_vm1, %v7270_v36, %v5896_v24 }
 0x517   : > { %v5900_v0 = vpop.permute.xlu0 %5899 }
 0x518   : > { %v5902_v33 = vunpack.i.h.bf16 %v5900_v0  ;;  %v5901_v19 = vunpack.i.l.bf16 %v5900_v0  ;;  %v6041_v0 = vunpack.i.l.bf16 %v7692_v14 }
 0x519   : > { %v6155_v7 = vpop.permute.xlu1 %6154 }
 0x51a   : > { %v4370_v60 = vsel %vm533_vm2, %v4338_v9, %v5901_v19  ;;  %v4371_v27 = vsel %vm533_vm2, %v4339_v15, %v5902_v33  ;;  %v6157_v28 = vunpack.i.h.bf16 %v6155_v7  ;;  %v6156_v63 = vunpack.i.l.bf16 %v6155_v7 }
 0x51b   : > { %v4402_v17 = vsel %vm535_vm3, %v4370_v60, %v5811_v44  ;;  %v4403_v10 = vsel %vm535_vm3, %v4371_v27, %v5812_v53  ;;  %v5905_v58 = vpop.permute.xlu0 %5904 }
 0x51c   : > { %v4434_v42 = vsel %vm1970_vm4, %v4402_v17, %v5941_v43  ;;  %v4435_v36 = vsel %vm1970_vm4, %v4403_v10, %v5942_v48  ;;  %v4444_v21 = vsel %vm1970_vm4, %v7818_v51, %v6156_v63  ;;  %v4445_v24 = vsel %vm1970_vm4, %v7821_v2, %v6157_v28 }
 0x51d   : > { %v4467_v33 = vsel %vm4450_vm11, %v4434_v42, %v5946_v35  ;;  %v4468_v19 = vsel %vm4450_vm11, %v4435_v36, %v5947_v56  ;;  %v5907_v14 = vunpack.i.h.bf16 %v5905_v58  ;;  %v5906_v15 = vunpack.i.l.bf16 %v5905_v58  ;;  %v6160_v44 = vpop.permute.xlu1 %6159 }
 0x51e   : > { %v6162_v9 = vunpack.i.h.bf16 %v6160_v44  ;;  %v6161_v27 = vunpack.i.l.bf16 %v6160_v44  ;;  %v4499_v53 = vsel %vm1973_vm5, %v4467_v33, %v5846_v23  ;;  %v4500_v17 = vsel %vm1973_vm5, %v4468_v19, %v5847_v20  ;;  %v8355_v33 = vld [vmem:[#allocation44_spill] sm:$0xff] }
 0x51f   : > { %v4528_v48 = vsel %vm4515_vm12, %v4495_v8, %v5906_v15  ;;  %v4529_v63 = vsel %vm4515_vm12, %v4496_v1, %v5907_v14  ;;  %v5910_v51 = vpop.permute.xlu0 %5909  ;;  %v4532_v2 = vsel %vm4515_vm12, %v4499_v53, %v5981_v6  ;;  %v4533_v28 = vsel %vm4515_vm12, %v4500_v17, %v5982_v47  ;;  %v8356_v15 = vld [vmem:[#allocation45_spill] sm:$0xff] }
 0x520   : > { %v4477_v43 = vsel %vm4450_vm11, %v4444_v21, %v6161_v27  ;;  %v4478_v58 = vsel %vm4450_vm11, %v4445_v24, %v6162_v9  ;;  %v5912_v56 = vunpack.i.h.bf16 %v5910_v51  ;;  %v5911_v35 = vunpack.i.l.bf16 %v5910_v51 }
 0x521   : > { %v7958_v7 = vpop.permute.xlu1 %6164  ;;  %v4565_v23 = vsel %vm4548_vm13, %v4532_v2, %v5986_v4  ;;  %v4566_v20 = vsel %vm4548_vm13, %v4533_v28, %v5987_v61  ;;  %v4509_v8 = vsel %vm1973_vm5, %v4477_v43, %v6041_v0  ;;  %v4510_v1 = vsel %vm1973_vm5, %v4478_v58, %v6042_v59  ;;  %v8358_v43 = vld [vmem:[#allocation15_spill] sm:$0xff] }
 0x522   : > { %v7965_v6 = vsel %vm4548_vm13, %v4528_v48, %v5911_v35  ;;  %v7968_v47 = vsel %vm4548_vm13, %v4529_v63, %v5912_v56  ;;  %v4589_v10 = vpack.c.bf16 %v4566_v20, %v4565_v23  ;;  %v4661_v61 = vsel %vm4656_vm14, %v4581_v18, 0  ;;  %v8359_v56 = vld [vmem:[#allocation16_spill] sm:$0xff] }
 0x523   : > { %v7970_v60 = vpop.permute.xlu0 %5914  ;;  %v4587_v42 = vpack.c.bf16 %v7968_v47, %v7965_v6  ;;  %v8354_v59 = vpack.c.bf16 %v7654_v49, %v7651_v39  ;;  %v5892_v19 = vunpack.i.h.bf16 %v8355_v33  ;;  %v5891_v14 = vunpack.i.l.bf16 %v8355_v33 }
 0x524   : > { %5091 = vmatprep.subr.msk.bf16.mxu1 %vm4656_vm14, %v4589_v10  ;;  %v5922_v44 = vunpack.i.h.bf16 %v8356_v15  ;;  %v5921_v18 = vunpack.i.l.bf16 %v8356_v15  ;;  %v8357_v39 = vpack.c.bf16 %v7528_v62, %v7525_v11  ;;  %v6032_v17 = vunpack.i.h.bf16 %v7661_v45 }
 0x525   : > { %v7976_v4 = vpop.permute.xlu1 %6169  ;;  %4973 = vmatpush3.bf16.xpose.msra.mxu1 %v4661_v61  ;;  %v6031_v48 = vunpack.i.l.bf16 %v7661_v45  ;;  %v6037_v2 = vunpack.i.h.bf16 %v7680_v31  ;;  %v6036_v28 = vunpack.i.l.bf16 %v7680_v31 }
 0x526   : > { %5092 = vmatprep.subr.msk.bf16.mxu1 %vm4656_vm14, %v8354_v59  ;;  %v4664_v49 = vsel %vm4656_vm14, %v8357_v39, 0  ;;  %v6076_v39 = vunpack.i.l.bf16 %v7712_v5 }
 0x527   : > { %v5960_v0 = vpop.permute.xlu0 %5959 }
 0x528   : > { %v5962_v36 = vunpack.i.h.bf16 %v5960_v0  ;;  %v5961_v21 = vunpack.i.l.bf16 %v5960_v0 }
 0x529   : > { %v6175_v24 = vpop.permute.xlu1 %6174 }
 0x52a   : > { %v6177_v9 = vunpack.i.h.bf16 %v6175_v24  ;;  %v6176_v27 = vunpack.i.l.bf16 %v6175_v24  ;;  %v4343_v58 = vsel %vm531_vm1, %v8358_v43, %v5962_v36  ;;  %v4342_v35 = vsel %vm531_vm1, %v8359_v56, %v5961_v21 }
 0x52b   : > { %v5965_v53 = vpop.permute.xlu0 %5964 }
 0x52c   : > { %v5967_v63 = vunpack.i.h.bf16 %v5965_v53  ;;  %v5966_v51 = vunpack.i.l.bf16 %v5965_v53  ;;  %v4542_v10 = vsel %vm4515_vm12, %v4509_v8, %v6176_v27  ;;  %v4543_v61 = vsel %vm4515_vm12, %v4510_v1, %v6177_v9 }
 0x52d   : > { %v6180_v23 = vpop.permute.xlu1 %6179  ;;  %4975 = vmatpush3.bf16.xpose.msra.mxu1 %v4664_v49  ;;  %v6071_v8 = vunpack.i.l.bf16 %v7708_v46  ;;  %v6072_v9 = vunpack.i.h.bf16 %v7708_v46  ;;  %v6077_v53 = vunpack.i.h.bf16 %v7712_v5 }
 0x52e   : > { %v4374_v11 = vsel %vm533_vm2, %v4342_v35, %v5966_v51  ;;  %v4375_v62 = vsel %vm533_vm2, %v4343_v58, %v5967_v63  ;;  %v6182_v20 = vunpack.i.h.bf16 %v6180_v23  ;;  %v6181_v45 = vunpack.i.l.bf16 %v6180_v23  ;;  %v8361_v58 = vld [vmem:[#allocation43_spill] sm:$0xff] }
 0x52f   : > { %v4406_v31 = vsel %vm535_vm3, %v4374_v11, %v5891_v14  ;;  %v4407_v59 = vsel %vm535_vm3, %v4375_v62, %v5892_v19  ;;  %v8004_v0 = vpop.permute.xlu0 %5969  ;;  %v5861_v5 = vunpack.i.l.bf16 %v8361_v58  ;;  %v8362_v11 = vpack.c.bf16 %v7639_v32, %v7636_v29 }
 0x530   : > { %v4438_v36 = vsel %vm1970_vm4, %v4406_v31, %v6031_v48  ;;  %v4439_v21 = vsel %vm1970_vm4, %v4407_v59, %v6032_v17  ;;  %v8009_v24 = vsel %vm4548_vm13, %v4542_v10, %v6181_v45  ;;  %v8012_v33 = vsel %vm4548_vm13, %v4543_v61, %v6182_v20  ;;  %v8363_v45 = vld [vmem:[#allocation18_spill] sm:$0xff]  ;;  %v8364_v61 = vld [vmem:[#allocation17_spill] sm:$0xff] }
 0x531   : > { %v4471_v1 = vsel %vm4450_vm11, %v4438_v36, %v6036_v28  ;;  %v4472_v14 = vsel %vm4450_vm11, %v4439_v21, %v6037_v2  ;;  %v4594_v19 = vpack.c.bf16 %v8012_v33, %v8009_v24  ;;  %v8019_v15 = vpop.permute.xlu1 %6184  ;;  %v8360_v28 = vld [vmem:[#allocation41_spill] sm:$0xff]  ;;  %v4667_v62 = vsel %vm4656_vm14, %v8362_v11, 0 }
 0x532   : > { %v4503_v27 = vsel %vm1973_vm5, %v4471_v1, %v5921_v18  ;;  %v4504_v17 = vsel %vm1973_vm5, %v4472_v14, %v5922_v44  ;;  %v5856_v18 = vunpack.i.l.bf16 %v8360_v28  ;;  %v5857_v43 = vunpack.i.h.bf16 %v8360_v28 }
 0x533   : > { %v8025_v49 = vpop.permute.xlu0 %5974  ;;  %v4536_v48 = vsel %vm4515_vm12, %v4503_v27, %v6071_v8  ;;  %v4537_v63 = vsel %vm4515_vm12, %v4504_v17, %v6072_v9  ;;  %v5862_v59 = vunpack.i.h.bf16 %v8361_v58  ;;  %v8365_v21 = vpack.c.bf16 %v7849_v41, %v7846_v52  ;;  %v8367_v17 = vld [vmem:[#allocation21_spill] sm:$0xff] }
 0x534   : > { %v4569_v2 = vsel %vm4548_vm13, %v4536_v48, %v6076_v39  ;;  %v4570_v46 = vsel %vm4548_vm13, %v4537_v63, %v6077_v53  ;;  %v4336_v10 = vsel %vm531_vm1, %v8363_v45, %v5856_v18  ;;  %v4337_v31 = vsel %vm531_vm1, %v8364_v61, %v5857_v43  ;;  %v8366_v53 = vld [vmem:[#allocation20_spill] sm:$0xff] }
 0x535   : > { %v8030_v51 = vpop.permute.xlu1 %6189  ;;  %v4591_v35 = vpack.c.bf16 %v4570_v46, %v4569_v2  ;;  %v4368_v36 = vsel %vm533_vm2, %v4336_v10, %v5861_v5  ;;  %v5957_v32 = vunpack.i.h.bf16 %v7484_v3  ;;  %v5956_v8 = vunpack.i.l.bf16 %v7484_v3 }
 0x536   : > { %v5777_v9 = vunpack.i.h.bf16 %v7696_v54  ;;  %v5776_v27 = vunpack.i.l.bf16 %v7696_v54  ;;  %v6122_v41 = vunpack.i.h.bf16 %v7853_v55  ;;  %v6121_v63 = vunpack.i.l.bf16 %v7853_v55 }
 0x537   : > { %v6050_v56 = vpop.permute.xlu0 %6049  ;;  %5093 = vmatprep.subr.msk.bf16.mxu1 %vm4656_vm14, %v4591_v35  ;;  %v6127_v46 = vunpack.i.h.bf16 %v7869_v22  ;;  %v6126_v54 = vunpack.i.l.bf16 %v7869_v22  ;;  %v4369_v58 = vsel %vm533_vm2, %v4337_v31, %v5862_v59  ;;  %v6002_v5 = vunpack.i.h.bf16 %v7575_v30 }
 0x538   : > { %v6052_v23 = vunpack.i.h.bf16 %v6050_v56  ;;  %v6051_v44 = vunpack.i.l.bf16 %v6050_v56  ;;  %4977 = vmatpush3.bf16.xpose.msra.mxu1 %v4667_v62  ;;  %v6001_v35 = vunpack.i.l.bf16 %v7575_v30  ;;  %v8088_v45 = vsel %vm535_vm3, %v4369_v58, %v5777_v9 }
 0x539   : > { %v8042_v20 = vpop.permute.xlu1 %6194  ;;  %5094 = vmatprep.subr.msk.bf16.mxu1 %vm4656_vm14, %v8365_v21  ;;  %v4400_v10 = vsel %vm535_vm3, %v4368_v36, %v5776_v27  ;;  %v6147_v61 = vunpack.i.h.bf16 %v7902_v57  ;;  %v6146_v30 = vunpack.i.l.bf16 %v7902_v57  ;;  %v6167_v31 = vunpack.i.h.bf16 %v7958_v7 }
 0x53a   : > { %v4347_v39 = vsel %vm531_vm1, %v8366_v53, %v6052_v23  ;;  %v4346_v48 = vsel %vm531_vm1, %v8367_v17, %v6051_v44  ;;  %v8368_v44 = vpack.c.bf16 %v7718_v16, %v7715_v50  ;;  %v6166_v59 = vunpack.i.l.bf16 %v7958_v7  ;;  %v8369_v17 = vld [vmem:[#allocation32_spill] sm:$0xff] }
 0x53b   : > { %v6055_v29 = vpop.permute.xlu0 %6054  ;;  %v6172_v36 = vunpack.i.h.bf16 %v7976_v4  ;;  %v6152_v57 = vunpack.i.h.bf16 %v7917_v38  ;;  %v6092_v27 = vunpack.i.h.bf16 %v7752_v13  ;;  %v6091_v53 = vunpack.i.l.bf16 %v7752_v13 }
 0x53c   : > { %v6057_v1 = vunpack.i.h.bf16 %v6055_v29  ;;  %v6056_v14 = vunpack.i.l.bf16 %v6055_v29  ;;  %v4670_v11 = vsel %vm4656_vm14, %v8368_v44, 0  ;;  %v6047_v29 = vunpack.i.h.bf16 %v7701_v40 }
 0x53d   : > { %v8062_v52 = vpop.permute.xlu1 %6199 }
 0x53e   : > { %v4378_v3 = vsel %vm533_vm2, %v4346_v48, %v6056_v14  ;;  %v4379_v2 = vsel %vm533_vm2, %v4347_v39, %v6057_v1  ;;  %v6151_v1 = vunpack.i.l.bf16 %v7917_v38  ;;  %v6097_v39 = vunpack.i.h.bf16 %v7766_v37  ;;  %v8370_v48 = vld [vmem:[#allocation33_spill] sm:$0xff] }
 0x53f   : > { %v4410_v28 = vsel %vm535_vm3, %v4378_v3, %v5956_v8  ;;  %v4411_v18 = vsel %vm535_vm3, %v4379_v2, %v5957_v32  ;;  %v8072_v43 = vpop.permute.xlu0 %6059  ;;  %v6046_v32 = vunpack.i.l.bf16 %v7701_v40  ;;  %v6171_v8 = vunpack.i.l.bf16 %v7976_v4 }
 0x540   : > { %v4442_v55 = vsel %vm1970_vm4, %v4410_v28, %v6121_v63  ;;  %v4443_v56 = vsel %vm1970_vm4, %v4411_v18, %v6122_v41  ;;  %4979 = vmatpush3.bf16.xpose.msra.mxu1 %v4670_v11  ;;  %v5916_v40 = vunpack.i.l.bf16 %v7970_v60  ;;  %v4353_v4 = vsel %vm531_vm1, %v8369_v17, %v6167_v31 }
 0x541   : > { %v4475_v23 = vsel %vm4450_vm11, %v4442_v55, %v6126_v54  ;;  %v4476_v22 = vsel %vm4450_vm11, %v4443_v56, %v6127_v46  ;;  %v8085_v62 = vpop.permute.xlu1 %6204  ;;  %v4352_v41 = vsel %vm531_vm1, %v8370_v48, %v6166_v59  ;;  %v6096_v2 = vunpack.i.l.bf16 %v7766_v37 }
 0x542   : > { %v4507_v50 = vsel %vm1973_vm5, %v4475_v23, %v6001_v35  ;;  %v4508_v16 = vsel %vm1973_vm5, %v4476_v22, %v6002_v5  ;;  %v4384_v46 = vsel %vm533_vm2, %v4352_v41, %v6171_v8  ;;  %v4385_v13 = vsel %vm533_vm2, %v4353_v4, %v6172_v36  ;;  %v8373_v35 = vld [vmem:[#allocation3_spill] sm:$0xff]  ;;  %v8375_v36 = vld [vmem:[#allocation28_spill] sm:$0xff] }
 0x543   : > { %v8095_v21 = vpop.permute.xlu0 %6064  ;;  %v4540_v7 = vsel %vm4515_vm12, %v4507_v50, %v6146_v30  ;;  %v4541_v9 = vsel %vm4515_vm12, %v4508_v16, %v6147_v61  ;;  %v8371_v54 = vpack.c.bf16 %v7801_v26, %v7798_v25  ;;  %v8372_v55 = vpack.c.bf16 %v7875_v12, %v7872_v34 }
 0x544   : > { %v4573_v63 = vsel %vm4548_vm13, %v4540_v7, %v6151_v1  ;;  %v4574_v3 = vsel %vm4548_vm13, %v4541_v9, %v6152_v57  ;;  %v6132_v23 = vunpack.i.h.bf16 %v8373_v35  ;;  %v6131_v37 = vunpack.i.l.bf16 %v8373_v35 }
 0x545   : > { %v6210_v14 = vpop.permute.xlu1 %6209  ;;  %v4673_v28 = vsel %vm4656_vm14, %v8371_v54, 0  ;;  %v4593_v5 = vpack.c.bf16 %v4574_v3, %v4573_v63  ;;  %v4676_v56 = vsel %vm4656_vm14, %v8372_v55, 0  ;;  %v5917_v22 = vunpack.i.h.bf16 %v7970_v60 }
 0x546   : > { %v8132_v44 = vsel %vm1970_vm4, %v4400_v10, %v5916_v40  ;;  %v6187_v25 = vunpack.i.h.bf16 %v8019_v15  ;;  %v6186_v26 = vunpack.i.l.bf16 %v8019_v15  ;;  %v4416_v11 = vsel %vm535_vm3, %v4384_v46, %v6096_v2  ;;  %v8374_v15 = vld [vmem:[#allocation29_spill] sm:$0xff] }
 0x547   : > { %v6135_v38 = vpop.permute.xlu0 %6134  ;;  %v4417_v61 = vsel %vm535_vm3, %v4385_v13, %v6097_v39  ;;  %5095 = vmatprep.subr.msk.bf16.mxu1 %vm4656_vm14, %v4593_v5  ;;  %v6192_v30 = vunpack.i.h.bf16 %v8030_v51  ;;  %v6191_v31 = vunpack.i.l.bf16 %v8030_v51  ;;  %v6207_v59 = vunpack.i.h.bf16 %v8085_v62 }
 0x548   : > { %v6137_v18 = vunpack.i.h.bf16 %v6135_v38  ;;  %v6136_v58 = vunpack.i.l.bf16 %v6135_v38  ;;  %4981 = vmatpush3.bf16.xpose.msra.mxu1 %v4673_v28  ;;  %v6206_v50 = vunpack.i.l.bf16 %v8085_v62  ;;  %v6212_v57 = vunpack.i.h.bf16 %v6210_v14 }
 0x549   : > { %v6215_v34 = vpop.permute.xlu1 %6214  ;;  %5096 = vmatprep.subr.msk.bf16.mxu1 %vm4656_vm14, %v4594_v19  ;;  %v6211_v51 = vunpack.i.l.bf16 %v6210_v14  ;;  %v6197_v9 = vunpack.i.h.bf16 %v8042_v20  ;;  %v6196_v62 = vunpack.i.l.bf16 %v8042_v20  ;;  %v6202_v17 = vunpack.i.h.bf16 %v8062_v52 }
 0x54a   : > { %v4351_v16 = vsel %vm531_vm1, %v8374_v15, %v6137_v18  ;;  %v4350_v8 = vsel %vm531_vm1, %v8375_v36, %v6136_v58  ;;  %v6201_v24 = vunpack.i.l.bf16 %v8062_v52  ;;  %v4449_v14 = vsel %vm1970_vm4, %v4417_v61, %v6207_v59 }
 0x54b   : > { %v6140_v12 = vpop.permute.xlu0 %6139  ;;  %v4448_v4 = vsel %vm1970_vm4, %v4416_v11, %v6206_v50  ;;  %v6217_v63 = vunpack.i.h.bf16 %v6215_v34  ;;  %v6216_v3 = vunpack.i.l.bf16 %v6215_v34  ;;  %v4433_v58 = vsel %vm1970_vm4, %v8088_v45, %v5917_v22 }
 0x54c   : > { %v6142_v60 = vunpack.i.h.bf16 %v6140_v12  ;;  %v6141_v10 = vunpack.i.l.bf16 %v6140_v12  ;;  %v5977_v55 = vunpack.i.h.bf16 %v8025_v49  ;;  %v5976_v35 = vunpack.i.l.bf16 %v8025_v49 }
 0x54d   : > { %v6220_v41 = vpop.permute.xlu1 %6219  ;;  %v6061_v11 = vunpack.i.l.bf16 %v8072_v43  ;;  %v6066_v22 = vunpack.i.l.bf16 %v8095_v21  ;;  %vm4778_vm1 = vcmask 11264  }
 0x54e   : > { %v4382_v1 = vsel %vm533_vm2, %v4350_v8, %v6141_v10  ;;  %v4383_v7 = vsel %vm533_vm2, %v4351_v16, %v6142_v60  ;;  %v6222_v13 = vunpack.i.h.bf16 %v6220_v41  ;;  %v6221_v54 = vunpack.i.l.bf16 %v6220_v41 }
 0x54f   : > { %v4414_v39 = vsel %vm535_vm3, %v4382_v1, %v6046_v32  ;;  %v4415_v40 = vsel %vm535_vm3, %v4383_v7, %v6047_v29  ;;  %v4481_v32 = vsel %vm4450_vm11, %v4448_v4, %v6211_v51  ;;  %v4482_v29 = vsel %vm4450_vm11, %v4449_v14, %v6212_v57 }
 0x550   : > { %v4446_v33 = vsel %vm1970_vm4, %v4414_v39, %v6186_v26  ;;  %v4447_v19 = vsel %vm1970_vm4, %v4415_v40, %v6187_v25  ;;  %4983 = vmatpush3.bf16.xpose.msra.mxu1 %v4676_v56  ;;  %v4513_v25 = vsel %vm1973_vm5, %v4481_v32, %v6131_v37  ;;  %v4514_v56 = vsel %vm1973_vm5, %v4482_v29, %v6132_v23 }
 0x551   : > { %v4479_v48 = vsel %vm4450_vm11, %v4446_v33, %v6191_v31  ;;  %v4480_v20 = vsel %vm4450_vm11, %v4447_v19, %v6192_v30  ;;  %v6062_v26 = vunpack.i.h.bf16 %v8072_v43  ;;  %v4546_v61 = vsel %vm4515_vm12, %v4513_v25, %v6216_v3 }
 0x552   : > { %v4511_v38 = vsel %vm1973_vm5, %v4479_v48, %v6091_v53  ;;  %v4512_v52 = vsel %vm1973_vm5, %v4480_v20, %v6092_v27  ;;  %v5972_v53 = vunpack.i.h.bf16 %v8004_v0  ;;  %v5971_v27 = vunpack.i.l.bf16 %v8004_v0 }
 0x553   : > { %v4544_v2 = vsel %vm4515_vm12, %v4511_v38, %v6196_v62  ;;  %v4545_v46 = vsel %vm4515_vm12, %v4512_v52, %v6197_v9  ;;  %v4547_v45 = vsel %vm4515_vm12, %v4514_v56, %v6217_v63  ;;  %v6067_v0 = vunpack.i.h.bf16 %v8095_v21 }
 0x554   : > { %v4577_v28 = vsel %vm4548_vm13, %v4544_v2, %v6201_v24  ;;  %v4578_v18 = vsel %vm4548_vm13, %v4545_v46, %v6202_v17  ;;  %v4579_v49 = vsel %vm4548_vm13, %v4546_v61, %v6221_v54  ;;  %v4580_v37 = vsel %vm4548_vm13, %v4547_v45, %v6222_v13 }
 0x555   : > { %v4595_v5 = vpack.c.bf16 %v4578_v18, %v4577_v28  ;;  %v4465_v23 = vsel %vm4450_vm11, %v8132_v44, %v5971_v27  ;;  %v4466_v34 = vsel %vm4450_vm11, %v4433_v58, %v5972_v53  ;;  %v4596_v60 = vpack.c.bf16 %v4580_v37, %v4579_v49 }
 0x556   : > { %v4497_v43 = vsel %vm1973_vm5, %v4465_v23, %v5976_v35  ;;  %v4498_v12 = vsel %vm1973_vm5, %v4466_v34, %v5977_v55  ;;  %v4679_v21 = vsel %vm4656_vm14, %v4587_v42, 0 }
 0x557   : > { %5097 = vmatprep.subr.msk.bf16.mxu1 %vm4656_vm14, %v4595_v5  ;;  %v4530_v30 = vsel %vm4515_vm12, %v4497_v43, %v6061_v11  ;;  %v4531_v31 = vsel %vm4515_vm12, %v4498_v12, %v6062_v26 }
 0x558   : > { %v4563_v10 = vsel %vm4548_vm13, %v4530_v30, %v6066_v22  ;;  %v4564_v44 = vsel %vm4548_vm13, %v4531_v31, %v6067_v0  ;;  %4985 = vmatpush3.bf16.xpose.msra.mxu1 %v4679_v21 }
 0x559   : > { %5098 = vmatprep.subr.msk.bf16.mxu1 %vm4656_vm14, %v4596_v60  ;;  %v4588_v50 = vpack.c.bf16 %v4564_v44, %v4563_v10 }
 0x55b   : > { %v4682_v15 = vsel %vm4656_vm14, %v4588_v50, 0 }
 0x55d   : > { %v4648_v59 = vpop.trf.xlu0 }
 0x55e   : > { %4988 = vmatprep.mubr.msk.bf16.mxu1 %vm4656_vm14, %v4648_v59 }
 0x560   : > { %4987 = vmatpush3.bf16.xpose.msra.mxu1 %v4682_v15 }
 0x567   : > { %4989 = vmatmul.mubr.msk.bf16.vlgmr.msra.gmra.mrb[20].mxu1 %vm4656_vm14, %v4648_v59 }
 0x568   : > { %v4610_v16 = vpop.permute.xlu1 %4609 }
 0x63a   : > { %v4742_v6 = vpop.f32.mrb[20].mxu1 }
 0x63b   : > { %v4743_v47 = vadd.f32 %v4742_v6, %v4610_v16  ;;  %v4744_v42 = vpop.f32.mrb[21].mxu1 }
 0x63c   : > { %v4745_v36 = vadd.f32 %v4744_v42, %v4610_v16  ;;  %v4746_v8 = vpop.f32.mrb[22].mxu1 }
 0x63d   : > { %v4769_v57 = vmul.f32 %v4743_v47, %v4743_v47  ;;  %v4747_v51 = vpop.f32.mrb[23].mxu1  ;;  %v4764_v1 = vsel %vm4763_vm15, %v4743_v47, 0.0 }
 0x63e   : > { %v4932_v7 = vpack.c.bf16 %v4745_v36, %v4743_v47  ;;  %v4770_v9 = vmul.f32 %v4745_v36, %v4745_v36  ;;  %v4765_v62 = vsel %vm4763_vm15, %v4745_v36, 0.0 }
 0x63f   : > { %v4766_v39 = vadd.f32 %v4765_v62, %v4764_v1  ;;  %v4771_v40 = vsel %vm4763_vm15, %v4769_v57, 0.0 }
 0x640   : > { %4933 = vst.sshfl [vmem:[%s359_s25] sm:$0x33 pattern:$0x76325410] %v4932_v7  ;;  %v4772_v17 = vsel %vm4763_vm15, %v4770_v9, 0.0 }
 0x641   : > { %4767 = vadd.xlane.f32.xlu1 %v4766_v39  ;;  %v4773_v24 = vadd.f32 %v4772_v17, %v4771_v40 }
 0x645   : > { %4774 = vadd.xlane.f32.xlu1 %v4773_v24 }
 0x6ce   : > { %v4768_v33 = vpop.xlane.xlu1 %4767 }
 0x6d2   : > { %v4775_v19 = vpop.xlane.xlu1 %4774 }
 0x6d3   : > { %v4777_v14 = vsel %vm4776_vm0, %v4768_v33, %v4775_v19 }
 0x6d4   : > { %4779 = vst.msk [vmem:[%s363_s27] sm:$0xf] %vm4778_vm1, %v4777_v14 }
 0x6d5 PF: > { %s20_s30 = sadd.s32 1, %s6242_s30  }
 0x6d6   : > { %p17_p4 = scmp.ge.s32.totalorder %s20_s30, 4  }
 0x6d8   :  { %19 = sbr.rel (!%p17_p4) target bundleno = 1 (0x1), region = 97 }

</bundles_post_ra>
